<compile_context>
chip_gen: v5e
topology: v5e:2x2
jax: 0.10.0
libtpu: 0.0.40
codegen_flags: <defaults>
</compile_context>

<pallas_src>
import functools

import numpy as np

import jax
import jax.numpy as jnp
from jax.experimental import pallas as pl
from jax.experimental.pallas import tpu as pltpu


# name -> (kernel_size, Cin, Cout, padding)    (PyTorch layer definitions)
LAYERS = {
    "red":    (9, 3, 10, 4),
    "green":  (7, 3, 14, 3),
    "blue":   (5, 3, 16, 2),
    "c0":     (3, 40, 40, 1),
    "c1":     (3, 40, 60, 1),
    "c2":     (3, 60, 40, 1),
    "c3":     (3, 40, 20, 1),
    "c4":     (3, 20, 10, 1),
    "output": (1, 10, 1, 0),
}


# ==========================================================================
# Fused whole-network kernel (runs once per batch image)
# ==========================================================================
def _ccnn_kernel(x_ref, w_rgb, b_rgb, w0, b0, w1, b1, w2, b2, w3, b3, w4, b4,
                 wo, bo, sp1, cp1, sp2, sp3, cr, o_ref,
                 p_rgb, p_a, p_b, p_c, p_d, *, H, W):
    H1, W1 = H // 2, W // 2
    H2, W2 = H1 // 2, W1 // 2
    H3, W3 = H2 // 2, W2 // 2
    Wp0, Wp1, Wp2, Wp3 = W + 8, W1 + 2, W2 + 2, W3 + 2

    def conv(pad_val, patch_ref, w_ref, b_ref, K, Wp, wide, relu=True):
        # pad_val: channel-major zero-padded (+ K-1 tail) image
        #          (Cin_p, Hp*Wp + K - 1)  -- a VMEM-resident value.
        # w_ref  : (K, Cout_p, K*Cin_p)    one matrix per kernel row.
        # Result : "wide" (Cout_p, H*Wp) map; columns w >= W hold wrap garbage
        #          that downstream selection matmuls never read.
        cin_p = pad_val.shape[0]
        acc = None
        for kh in range(K):
            for kw in range(K):
                off = kh * Wp + kw
                patch_ref[kw * cin_p:(kw + 1) * cin_p, :] = \
                    pad_val[:, off:off + wide]
            d = jnp.dot(w_ref[kh], patch_ref[...],
                        preferred_element_type=jnp.float32)
            acc = d if acc is None else acc + d
        y = acc + b_ref[...]
        return jnp.maximum(y, 0.0) if relu else y

    def pool_place(y, sp_ref):
        # Fused 2x2/stride-2 maxpool + crop of the wide columns + zero-pad
        # placement for the next 3x3 conv: 4 selection matmuls (one per pool
        # corner, 0/1 matrices) + elementwise max.
        r = jnp.dot(y, sp_ref[0], preferred_element_type=jnp.float32)
        for c in range(1, 4):
            r = jnp.maximum(
                r, jnp.dot(y, sp_ref[c], preferred_element_type=jnp.float32))
        return r

    xpad = x_ref[0]                                          # (8, L0)
    # red | green | blue fused into one 9x9, 8(ch-pad) -> 40 conv (+ReLU)
    y = conv(xpad, p_rgb, w_rgb, b_rgb, 9, Wp0, H * Wp0)     # (40, H*Wp0)
    a = pool_place(y, sp1)                                   # (40, L1)
    y = conv(a, p_a, w0, b0, 3, Wp1, H1 * Wp1)               # c0 -> (40, .)
    a = jnp.dot(y, cp1[...], preferred_element_type=jnp.float32)
    y = conv(a, p_a, w1, b1, 3, Wp1, H1 * Wp1)               # c1 -> (64, .)
    a = jnp.dot(y, cp1[...], preferred_element_type=jnp.float32)
    y = conv(a, p_b, w2, b2, 3, Wp1, H1 * Wp1)               # c2 -> (40, .)
    a = pool_place(y, sp2)                                   # (40, L2)
    y = conv(a, p_c, w3, b3, 3, Wp2, H2 * Wp2)               # c3 -> (24, .)
    a = pool_place(y, sp3)                                   # (24, L3)
    y = conv(a, p_d, w4, b4, 3, Wp3, H3 * Wp3)               # c4 -> (16, .)
    yc = jnp.dot(y, cr[...], preferred_element_type=jnp.float32)  # crop wide
    out = jnp.dot(wo[0], yc, preferred_element_type=jnp.float32) + bo[...]
    o_ref[0] = out.astype(o_ref.dtype)                       # (1, H3*W3)


# ==========================================================================
# Parameter / constant preparation (done once, outside jit)
# ==========================================================================
def _geometry(H, W):
    assert H % 8 == 0 and W % 8 == 0, "spatial dims must be divisible by 8"
    H1, W1 = H // 2, W // 2
    H2, W2 = H1 // 2, W1 // 2
    H3, W3 = H2 // 2, W2 // 2
    return dict(H=H, W=W, H1=H1, W1=W1, H2=H2, W2=W2, H3=H3, W3=W3,
                Wp0=W + 8, Wp1=W1 + 2, Wp2=W2 + 2, Wp3=W3 + 2,
                L0=(H + 8) * (W + 8) + 8)


def _layer_weight(w, b, cin_pad, cout_pad):
    """PyTorch (Cout,Cin,K,K) -> (K, Cout_p, K*Cin_p) per-kernel-row matrices."""
    cout, cin, K, _ = w.shape
    wt = jnp.transpose(w, (2, 0, 3, 1))                     # (Kh, Cout, Kw, Cin)
    wt = jnp.pad(wt, ((0, 0), (0, cout_pad - cout),
                      (0, 0), (0, cin_pad - cin)))
    wt = wt.reshape(K, cout_pad, K * cin_pad)
    bt = jnp.pad(b, (0, cout_pad - cout)).reshape(cout_pad, 1)
    return wt, bt


def _rgb_weight(params, cin_pad=8):
    """Embed the 7x7 / 5x5 branch kernels into the 9x9 tap grid and fuse the
    three branches (torch.cat order) into one (9, 40, 9*8) weight."""
    wr, br = params["red"]
    wg, bg = params["green"]
    wb, bb = params["blue"]
    w = jnp.zeros((40, 9, 9, cin_pad), jnp.float32)
    w = w.at[0:10, :, :, 0:3].set(jnp.transpose(wr, (0, 2, 3, 1)))
    w = w.at[10:24, 1:8, 1:8, 0:3].set(jnp.transpose(wg, (0, 2, 3, 1)))
    w = w.at[24:40, 2:7, 2:7, 0:3].set(jnp.transpose(wb, (0, 2, 3, 1)))
    w = jnp.transpose(w, (1, 0, 2, 3)).reshape(9, 40, 9 * cin_pad)
    b = jnp.concatenate([br, bg, bb]).reshape(40, 1)
    return w, b


def _pool_place_mats(Hin, Win, Wp_in):
    """4 corner selection matrices: wide (Hin*Wp_in) conv output -> zero-padded
    (+tail) buffer of the next 3x3 conv operating on the 2x2-pooled image."""
    Ho, Wo = Hin // 2, Win // 2
    Wp_n = Wo + 2
    L = (Ho + 2) * Wp_n + 2
    s = np.zeros((4, Hin * Wp_in, L), np.float32)
    for dy in range(2):
        for dx in range(2):
            c = dy * 2 + dx
            for ho in range(Ho):
                for wo in range(Wo):
                    s[c, (2 * ho + dy) * Wp_in + 2 * wo + dx,
                      (ho + 1) * Wp_n + 1 + wo] = 1.0
    return s


def _place_mat(Hin, Win, Wp_in):
    """Crop wide output + zero-pad placement for the next 3x3 conv (no pool)."""
    Wp_n = Win + 2
    L = (Hin + 2) * Wp_n + 2
    m = np.zeros((Hin * Wp_in, L), np.float32)
    for h in range(Hin):
        for w in range(Win):
            m[h * Wp_in + w, (h + 1) * Wp_n + 1 + w] = 1.0
    return m


def _crop_mat(Hin, Win, Wp_in):
    m = np.zeros((Hin * Wp_in, Hin * Win), np.float32)
    for h in range(Hin):
        for w in range(Win):
            m[h * Wp_in + w, h * Win + w] = 1.0
    return m


def prepare_params(params, H, W):
    g = _geometry(H, W)
    w_rgb, b_rgb = _rgb_weight(params)
    w0, b0 = _layer_weight(*params["c0"], cin_pad=40, cout_pad=40)
    w1, b1 = _layer_weight(*params["c1"], cin_pad=40, cout_pad=64)
    w2, b2 = _layer_weight(*params["c2"], cin_pad=64, cout_pad=40)
    w3, b3 = _layer_weight(*params["c3"], cin_pad=40, cout_pad=24)
    w4, b4 = _layer_weight(*params["c4"], cin_pad=24, cout_pad=16)
    wo, bo = _layer_weight(*params["output"], cin_pad=16, cout_pad=1)
    sp1 = jnp.asarray(_pool_place_mats(H, W, g["Wp0"]))
    cp1 = jnp.asarray(_place_mat(g["H1"], g["W1"], g["Wp1"]))
    sp2 = jnp.asarray(_pool_place_mats(g["H1"], g["W1"], g["Wp1"]))
    sp3 = jnp.asarray(_pool_place_mats(g["H2"], g["W2"], g["Wp2"]))
    cr = jnp.asarray(_crop_mat(g["H3"], g["W3"], g["Wp3"]))
    consts = (w_rgb, b_rgb, w0, b0, w1, b1, w2, b2, w3, b3, w4, b4, wo, bo,
              sp1, cp1, sp2, sp3, cr)
    return consts, g


# ==========================================================================
# Forward pass: one pallas_call for the whole network
# ==========================================================================
def compact_cnn_v7i(x_nchw, consts, geom):
    N, C, H, W = x_nchw.shape
    assert C == 3 and (H, W) == (geom["H"], geom["W"])
    g = geom

    # Glue (once, on the tiny input): channel-pad 3->8, spatial halo pad 4,
    # flatten to channel-major (C, Hp*Wp) and add a K-1 tail of zeros.
    xp = jnp.pad(x_nchw, ((0, 0), (0, 8 - C), (4, 4), (4, 4)))
    xp = xp.reshape(N, 8, (H + 8) * (W + 8))
    xp = jnp.pad(xp, ((0, 0), (0, 0), (0, 8)))

    def const_spec(a):
        nd = a.ndim
        return pl.BlockSpec(a.shape, lambda n, nd=nd: (0,) * nd)

    kernel = functools.partial(_ccnn_kernel, H=H, W=W)
    hw_out = g["H3"] * g["W3"]

    out = pl.pallas_call(
        kernel,
        out_shape=jax.ShapeDtypeStruct((N, 1, hw_out), jnp.float32),
        grid=(N,),
        in_specs=[pl.BlockSpec((1, 8, g["L0"]), lambda n: (n, 0, 0))]
                 + [const_spec(a) for a in consts],
        out_specs=pl.BlockSpec((1, 1, hw_out), lambda n: (n, 0, 0)),
        scratch_shapes=[
            pltpu.VMEM((9 * 8, H * g["Wp0"]), jnp.float32),         # rgb patch
            pltpu.VMEM((3 * 40, g["H1"] * g["Wp1"]), jnp.float32),  # c0 / c1
            pltpu.VMEM((3 * 64, g["H1"] * g["Wp1"]), jnp.float32),  # c2
            pltpu.VMEM((3 * 40, g["H2"] * g["Wp2"]), jnp.float32),  # c3
            pltpu.VMEM((3 * 24, g["H3"] * g["Wp3"]), jnp.float32),  # c4
        ],
        compiler_params=pltpu.CompilerParams(
            dimension_semantics=("parallel",)),
    )(xp, *consts)

    return out.reshape(N, 1, H // 8, W // 8)                 # NCHW density map


# ==========================================================================
# Parameters & pure-JAX reference (sanity check only)
# ==========================================================================
def init_params(key):
    params = {}
    keys = jax.random.split(key, len(LAYERS))
    for (name, (k, cin, cout, _p)), lk in zip(LAYERS.items(), keys):
        wk, bk = jax.random.split(lk)
        scale = 1.0 / float(cin * k * k) ** 0.5
        w = jax.random.normal(wk, (cout, cin, k, k), jnp.float32) * scale
        b = jax.random.normal(bk, (cout,), jnp.float32) * 0.01
        params[name] = (w, b)                                # PyTorch layout
    return params


def forward_ref(x, params):
    def conv(h, name, relu=True):
        k, _cin, cout, pad = LAYERS[name]
        w, b = params[name]
        y = jax.lax.conv_general_dilated(
            h, w, (1, 1), [(pad, pad), (pad, pad)],
            dimension_numbers=("NCHW", "OIHW", "NCHW"))
        y = y + b.reshape(1, cout, 1, 1)
        return jnp.maximum(y, 0.0) if relu else y

    def pool(h):
        return jax.lax.reduce_window(h, -jnp.inf, jax.lax.max,
                                     (1, 1, 2, 2), (1, 1, 2, 2), "VALID")

    x = jnp.concatenate([conv(x, "red"), conv(x, "green"), conv(x, "blue")], 1)
    x = pool(x)
    x = conv(x, "c0"); x = conv(x, "c1"); x = conv(x, "c2")
    x = pool(x)
    x = conv(x, "c3")
    x = pool(x)
    x = conv(x, "c4")
    return conv(x, "output", relu=False)


if __name__ == "__main__":
    key = jax.random.PRNGKey(0)
    pkey, xkey = jax.random.split(key)
    params = init_params(pkey)
    x = jax.random.normal(xkey, (2, 3, 16, 16), jnp.float32)   # NCHW input

    consts, geom = prepare_params(params, 16, 16)
    fwd = jax.jit(lambda xx: compact_cnn_v7i(xx, consts, geom))
    out = fwd(x)
    jax.block_until_ready(out)

    assert out.shape == (2, 1, 2, 2), out.shape
    ref = forward_ref(x, params)
    max_err = float(jnp.max(jnp.abs(out - ref)))
    assert max_err < 5e-2, f"mismatch vs reference: {max_err}"
    print("KERNEL_OK")
</pallas_src>

<mosaic_0001>
module attributes {stable_mosaic.version = 11 : i64} {
  func.func @_ccnn_kernel(%arg0: i32, %arg1: memref<1x8x584xf32, #tpu.memory_space<vmem>>, %arg2: memref<9x40x72xf32, #tpu.memory_space<vmem>>, %arg3: memref<40x1xf32, #tpu.memory_space<vmem>>, %arg4: memref<3x40x120xf32, #tpu.memory_space<vmem>>, %arg5: memref<40x1xf32, #tpu.memory_space<vmem>>, %arg6: memref<3x64x120xf32, #tpu.memory_space<vmem>>, %arg7: memref<64x1xf32, #tpu.memory_space<vmem>>, %arg8: memref<3x40x192xf32, #tpu.memory_space<vmem>>, %arg9: memref<40x1xf32, #tpu.memory_space<vmem>>, %arg10: memref<3x24x120xf32, #tpu.memory_space<vmem>>, %arg11: memref<24x1xf32, #tpu.memory_space<vmem>>, %arg12: memref<3x16x72xf32, #tpu.memory_space<vmem>>, %arg13: memref<16x1xf32, #tpu.memory_space<vmem>>, %arg14: memref<1x1x16xf32, #tpu.memory_space<vmem>>, %arg15: memref<1x1xf32, #tpu.memory_space<vmem>>, %arg16: memref<4x384x102xf32, #tpu.memory_space<vmem>>, %arg17: memref<80x102xf32, #tpu.memory_space<vmem>>, %arg18: memref<4x80x38xf32, #tpu.memory_space<vmem>>, %arg19: memref<4x24x18xf32, #tpu.memory_space<vmem>>, %arg20: memref<8x4xf32, #tpu.memory_space<vmem>>, %arg21: memref<1x1x4xf32, #tpu.memory_space<vmem>>, %arg22: memref<72x384xf32, #tpu.memory_space<vmem>>, %arg23: memref<120x80xf32, #tpu.memory_space<vmem>>, %arg24: memref<192x80xf32, #tpu.memory_space<vmem>>, %arg25: memref<120x24xf32, #tpu.memory_space<vmem>>, %arg26: memref<72x8xf32, #tpu.memory_space<vmem>>) attributes {dimension_semantics = [#tpu.dimension_semantics<parallel>], iteration_bounds = array<i64: 2>, scalar_prefetch = 0 : i64, scratch_operands = 5 : i64, tpu.core_type = #tpu.core_type<tc>, window_params = [{transform_indices = @transform_0, window_bounds = array<i64: 1, 8, 584>}, {pipeline_mode = #tpu.pipeline_mode<synchronous>, transform_indices = @transform_1, window_bounds = array<i64: 9, 40, 72>}, {pipeline_mode = #tpu.pipeline_mode<synchronous>, transform_indices = @transform_2, window_bounds = array<i64: 40, 1>}, {pipeline_mode = #tpu.pipeline_mode<synchronous>, transform_indices = @transform_3, window_bounds = array<i64: 3, 40, 120>}, {pipeline_mode = #tpu.pipeline_mode<synchronous>, transform_indices = @transform_4, window_bounds = array<i64: 40, 1>}, {pipeline_mode = #tpu.pipeline_mode<synchronous>, transform_indices = @transform_5, window_bounds = array<i64: 3, 64, 120>}, {pipeline_mode = #tpu.pipeline_mode<synchronous>, transform_indices = @transform_6, window_bounds = array<i64: 64, 1>}, {pipeline_mode = #tpu.pipeline_mode<synchronous>, transform_indices = @transform_7, window_bounds = array<i64: 3, 40, 192>}, {pipeline_mode = #tpu.pipeline_mode<synchronous>, transform_indices = @transform_8, window_bounds = array<i64: 40, 1>}, {pipeline_mode = #tpu.pipeline_mode<synchronous>, transform_indices = @transform_9, window_bounds = array<i64: 3, 24, 120>}, {pipeline_mode = #tpu.pipeline_mode<synchronous>, transform_indices = @transform_10, window_bounds = array<i64: 24, 1>}, {pipeline_mode = #tpu.pipeline_mode<synchronous>, transform_indices = @transform_11, window_bounds = array<i64: 3, 16, 72>}, {pipeline_mode = #tpu.pipeline_mode<synchronous>, transform_indices = @transform_12, window_bounds = array<i64: 16, 1>}, {pipeline_mode = #tpu.pipeline_mode<synchronous>, transform_indices = @transform_13, window_bounds = array<i64: 1, 1, 16>}, {pipeline_mode = #tpu.pipeline_mode<synchronous>, transform_indices = @transform_14, window_bounds = array<i64: 1, 1>}, {pipeline_mode = #tpu.pipeline_mode<synchronous>, transform_indices = @transform_15, window_bounds = array<i64: 4, 384, 102>}, {pipeline_mode = #tpu.pipeline_mode<synchronous>, transform_indices = @transform_16, window_bounds = array<i64: 80, 102>}, {pipeline_mode = #tpu.pipeline_mode<synchronous>, transform_indices = @transform_17, window_bounds = array<i64: 4, 80, 38>}, {pipeline_mode = #tpu.pipeline_mode<synchronous>, transform_indices = @transform_18, window_bounds = array<i64: 4, 24, 18>}, {pipeline_mode = #tpu.pipeline_mode<synchronous>, transform_indices = @transform_19, window_bounds = array<i64: 8, 4>}, {transform_indices = @transform_20, window_bounds = array<i64: 1, 1, 4>}]} {
    %c0 = arith.constant 0 : index
    %c0_0 = arith.constant 0 : index
    %c0_1 = arith.constant 0 : index
    %0 = vector.load %arg1[%c0, %c0_0, %c0_1] : memref<1x8x584xf32, #tpu.memory_space<vmem>>, vector<1x8x584xf32>
    %1 = vector.shape_cast %0 : vector<1x8x584xf32> to vector<8x584xf32>
    %2 = vector.extract_strided_slice %1 {offsets = [0, 0], sizes = [8, 384], strides = [1, 1]} : vector<8x584xf32> to vector<8x384xf32>
    %c0_2 = arith.constant 0 : index
    %c0_3 = arith.constant 0 : index
    %3 = vector.load %arg22[%c0_2, %c0_3] : memref<72x384xf32, #tpu.memory_space<vmem>>, vector<8x384xf32>
    tpu.vector_store %arg22[%c0_2, %c0_3], %2 {strides = array<i32>} : memref<72x384xf32, #tpu.memory_space<vmem>>, vector<8x384xf32>,
    %4 = vector.extract_strided_slice %1 {offsets = [0, 1], sizes = [8, 384], strides = [1, 1]} : vector<8x584xf32> to vector<8x384xf32>
    %c8 = arith.constant 8 : index
    %c0_4 = arith.constant 0 : index
    %5 = vector.load %arg22[%c8, %c0_4] : memref<72x384xf32, #tpu.memory_space<vmem>>, vector<8x384xf32>
    tpu.vector_store %arg22[%c8, %c0_4], %4 {strides = array<i32>} : memref<72x384xf32, #tpu.memory_space<vmem>>, vector<8x384xf32>,
    %6 = vector.extract_strided_slice %1 {offsets = [0, 2], sizes = [8, 384], strides = [1, 1]} : vector<8x584xf32> to vector<8x384xf32>
    %c16 = arith.constant 16 : index
    %c0_5 = arith.constant 0 : index
    %7 = vector.load %arg22[%c16, %c0_5] : memref<72x384xf32, #tpu.memory_space<vmem>>, vector<8x384xf32>
    tpu.vector_store %arg22[%c16, %c0_5], %6 {strides = array<i32>} : memref<72x384xf32, #tpu.memory_space<vmem>>, vector<8x384xf32>,
    %8 = vector.extract_strided_slice %1 {offsets = [0, 3], sizes = [8, 384], strides = [1, 1]} : vector<8x584xf32> to vector<8x384xf32>
    %c24 = arith.constant 24 : index
    %c0_6 = arith.constant 0 : index
    %9 = vector.load %arg22[%c24, %c0_6] : memref<72x384xf32, #tpu.memory_space<vmem>>, vector<8x384xf32>
    tpu.vector_store %arg22[%c24, %c0_6], %8 {strides = array<i32>} : memref<72x384xf32, #tpu.memory_space<vmem>>, vector<8x384xf32>,
    %10 = vector.extract_strided_slice %1 {offsets = [0, 4], sizes = [8, 384], strides = [1, 1]} : vector<8x584xf32> to vector<8x384xf32>
    %c32 = arith.constant 32 : index
    %c0_7 = arith.constant 0 : index
    %11 = vector.load %arg22[%c32, %c0_7] : memref<72x384xf32, #tpu.memory_space<vmem>>, vector<8x384xf32>
    tpu.vector_store %arg22[%c32, %c0_7], %10 {strides = array<i32>} : memref<72x384xf32, #tpu.memory_space<vmem>>, vector<8x384xf32>,
    %12 = vector.extract_strided_slice %1 {offsets = [0, 5], sizes = [8, 384], strides = [1, 1]} : vector<8x584xf32> to vector<8x384xf32>
    %c40 = arith.constant 40 : index
    %c0_8 = arith.constant 0 : index
    %13 = vector.load %arg22[%c40, %c0_8] : memref<72x384xf32, #tpu.memory_space<vmem>>, vector<8x384xf32>
    tpu.vector_store %arg22[%c40, %c0_8], %12 {strides = array<i32>} : memref<72x384xf32, #tpu.memory_space<vmem>>, vector<8x384xf32>,
    %14 = vector.extract_strided_slice %1 {offsets = [0, 6], sizes = [8, 384], strides = [1, 1]} : vector<8x584xf32> to vector<8x384xf32>
    %c48 = arith.constant 48 : index
    %c0_9 = arith.constant 0 : index
    %15 = vector.load %arg22[%c48, %c0_9] : memref<72x384xf32, #tpu.memory_space<vmem>>, vector<8x384xf32>
    tpu.vector_store %arg22[%c48, %c0_9], %14 {strides = array<i32>} : memref<72x384xf32, #tpu.memory_space<vmem>>, vector<8x384xf32>,
    %16 = vector.extract_strided_slice %1 {offsets = [0, 7], sizes = [8, 384], strides = [1, 1]} : vector<8x584xf32> to vector<8x384xf32>
    %c56 = arith.constant 56 : index
    %c0_10 = arith.constant 0 : index
    %17 = vector.load %arg22[%c56, %c0_10] : memref<72x384xf32, #tpu.memory_space<vmem>>, vector<8x384xf32>
    tpu.vector_store %arg22[%c56, %c0_10], %16 {strides = array<i32>} : memref<72x384xf32, #tpu.memory_space<vmem>>, vector<8x384xf32>,
    %18 = vector.extract_strided_slice %1 {offsets = [0, 8], sizes = [8, 384], strides = [1, 1]} : vector<8x584xf32> to vector<8x384xf32>
    %c64 = arith.constant 64 : index
    %c0_11 = arith.constant 0 : index
    %19 = vector.load %arg22[%c64, %c0_11] : memref<72x384xf32, #tpu.memory_space<vmem>>, vector<8x384xf32>
    tpu.vector_store %arg22[%c64, %c0_11], %18 {strides = array<i32>} : memref<72x384xf32, #tpu.memory_space<vmem>>, vector<8x384xf32>,
    %c0_12 = arith.constant 0 : index
    %c0_13 = arith.constant 0 : index
    %c0_14 = arith.constant 0 : index
    %20 = vector.load %arg2[%c0_12, %c0_13, %c0_14] : memref<9x40x72xf32, #tpu.memory_space<vmem>>, vector<1x40x72xf32>
    %21 = vector.shape_cast %20 : vector<1x40x72xf32> to vector<40x72xf32>
    %c0_15 = arith.constant 0 : index
    %c0_16 = arith.constant 0 : index
    %22 = vector.load %arg22[%c0_15, %c0_16] : memref<72x384xf32, #tpu.memory_space<vmem>>, vector<72x384xf32>
    %cst = arith.constant dense<0.000000e+00> : vector<40x384xf32>
    %23 = tpu.matmul %21, %22, %cst {dimension_numbers = #tpu.dot_dimension_numbers<[1], [0], [0], [1], [0, 0, 1, 1], [], []>} : vector<40x72xf32>, vector<72x384xf32>, vector<40x384xf32> -> vector<40x384xf32>
    %24 = vector.extract_strided_slice %1 {offsets = [0, 24], sizes = [8, 384], strides = [1, 1]} : vector<8x584xf32> to vector<8x384xf32>
    %c0_17 = arith.constant 0 : index
    %c0_18 = arith.constant 0 : index
    %25 = vector.load %arg22[%c0_17, %c0_18] : memref<72x384xf32, #tpu.memory_space<vmem>>, vector<8x384xf32>
    tpu.vector_store %arg22[%c0_17, %c0_18], %24 {strides = array<i32>} : memref<72x384xf32, #tpu.memory_space<vmem>>, vector<8x384xf32>,
    %26 = vector.extract_strided_slice %1 {offsets = [0, 25], sizes = [8, 384], strides = [1, 1]} : vector<8x584xf32> to vector<8x384xf32>
    %c8_19 = arith.constant 8 : index
    %c0_20 = arith.constant 0 : index
    %27 = vector.load %arg22[%c8_19, %c0_20] : memref<72x384xf32, #tpu.memory_space<vmem>>, vector<8x384xf32>
    tpu.vector_store %arg22[%c8_19, %c0_20], %26 {strides = array<i32>} : memref<72x384xf32, #tpu.memory_space<vmem>>, vector<8x384xf32>,
    %28 = vector.extract_strided_slice %1 {offsets = [0, 26], sizes = [8, 384], strides = [1, 1]} : vector<8x584xf32> to vector<8x384xf32>
    %c16_21 = arith.constant 16 : index
    %c0_22 = arith.constant 0 : index
    %29 = vector.load %arg22[%c16_21, %c0_22] : memref<72x384xf32, #tpu.memory_space<vmem>>, vector<8x384xf32>
    tpu.vector_store %arg22[%c16_21, %c0_22], %28 {strides = array<i32>} : memref<72x384xf32, #tpu.memory_space<vmem>>, vector<8x384xf32>,
    %30 = vector.extract_strided_slice %1 {offsets = [0, 27], sizes = [8, 384], strides = [1, 1]} : vector<8x584xf32> to vector<8x384xf32>
    %c24_23 = arith.constant 24 : index
    %c0_24 = arith.constant 0 : index
    %31 = vector.load %arg22[%c24_23, %c0_24] : memref<72x384xf32, #tpu.memory_space<vmem>>, vector<8x384xf32>
    tpu.vector_store %arg22[%c24_23, %c0_24], %30 {strides = array<i32>} : memref<72x384xf32, #tpu.memory_space<vmem>>, vector<8x384xf32>,
    %32 = vector.extract_strided_slice %1 {offsets = [0, 28], sizes = [8, 384], strides = [1, 1]} : vector<8x584xf32> to vector<8x384xf32>
    %c32_25 = arith.constant 32 : index
    %c0_26 = arith.constant 0 : index
    %33 = vector.load %arg22[%c32_25, %c0_26] : memref<72x384xf32, #tpu.memory_space<vmem>>, vector<8x384xf32>
    tpu.vector_store %arg22[%c32_25, %c0_26], %32 {strides = array<i32>} : memref<72x384xf32, #tpu.memory_space<vmem>>, vector<8x384xf32>,
    %34 = vector.extract_strided_slice %1 {offsets = [0, 29], sizes = [8, 384], strides = [1, 1]} : vector<8x584xf32> to vector<8x384xf32>
    %c40_27 = arith.constant 40 : index
    %c0_28 = arith.constant 0 : index
    %35 = vector.load %arg22[%c40_27, %c0_28] : memref<72x384xf32, #tpu.memory_space<vmem>>, vector<8x384xf32>
    tpu.vector_store %arg22[%c40_27, %c0_28], %34 {strides = array<i32>} : memref<72x384xf32, #tpu.memory_space<vmem>>, vector<8x384xf32>,
    %36 = vector.extract_strided_slice %1 {offsets = [0, 30], sizes = [8, 384], strides = [1, 1]} : vector<8x584xf32> to vector<8x384xf32>
    %c48_29 = arith.constant 48 : index
    %c0_30 = arith.constant 0 : index
    %37 = vector.load %arg22[%c48_29, %c0_30] : memref<72x384xf32, #tpu.memory_space<vmem>>, vector<8x384xf32>
    tpu.vector_store %arg22[%c48_29, %c0_30], %36 {strides = array<i32>} : memref<72x384xf32, #tpu.memory_space<vmem>>, vector<8x384xf32>,
    %38 = vector.extract_strided_slice %1 {offsets = [0, 31], sizes = [8, 384], strides = [1, 1]} : vector<8x584xf32> to vector<8x384xf32>
    %c56_31 = arith.constant 56 : index
    %c0_32 = arith.constant 0 : index
    %39 = vector.load %arg22[%c56_31, %c0_32] : memref<72x384xf32, #tpu.memory_space<vmem>>, vector<8x384xf32>
    tpu.vector_store %arg22[%c56_31, %c0_32], %38 {strides = array<i32>} : memref<72x384xf32, #tpu.memory_space<vmem>>, vector<8x384xf32>,
    %40 = vector.extract_strided_slice %1 {offsets = [0, 32], sizes = [8, 384], strides = [1, 1]} : vector<8x584xf32> to vector<8x384xf32>
    %c64_33 = arith.constant 64 : index
    %c0_34 = arith.constant 0 : index
    %41 = vector.load %arg22[%c64_33, %c0_34] : memref<72x384xf32, #tpu.memory_space<vmem>>, vector<8x384xf32>
    tpu.vector_store %arg22[%c64_33, %c0_34], %40 {strides = array<i32>} : memref<72x384xf32, #tpu.memory_space<vmem>>, vector<8x384xf32>,
    %c1 = arith.constant 1 : index
    %c0_35 = arith.constant 0 : index
    %c0_36 = arith.constant 0 : index
    %42 = vector.load %arg2[%c1, %c0_35, %c0_36] : memref<9x40x72xf32, #tpu.memory_space<vmem>>, vector<1x40x72xf32>
    %43 = vector.shape_cast %42 : vector<1x40x72xf32> to vector<40x72xf32>
    %c0_37 = arith.constant 0 : index
    %c0_38 = arith.constant 0 : index
    %44 = vector.load %arg22[%c0_37, %c0_38] : memref<72x384xf32, #tpu.memory_space<vmem>>, vector<72x384xf32>
    %cst_39 = arith.constant dense<0.000000e+00> : vector<40x384xf32>
    %45 = tpu.matmul %43, %44, %cst_39 {dimension_numbers = #tpu.dot_dimension_numbers<[1], [0], [0], [1], [0, 0, 1, 1], [], []>} : vector<40x72xf32>, vector<72x384xf32>, vector<40x384xf32> -> vector<40x384xf32>
    %46 = arith.addf %23, %45 : vector<40x384xf32>
    %47 = vector.extract_strided_slice %1 {offsets = [0, 48], sizes = [8, 384], strides = [1, 1]} : vector<8x584xf32> to vector<8x384xf32>
    %c0_40 = arith.constant 0 : index
    %c0_41 = arith.constant 0 : index
    %48 = vector.load %arg22[%c0_40, %c0_41] : memref<72x384xf32, #tpu.memory_space<vmem>>, vector<8x384xf32>
    tpu.vector_store %arg22[%c0_40, %c0_41], %47 {strides = array<i32>} : memref<72x384xf32, #tpu.memory_space<vmem>>, vector<8x384xf32>,
    %49 = vector.extract_strided_slice %1 {offsets = [0, 49], sizes = [8, 384], strides = [1, 1]} : vector<8x584xf32> to vector<8x384xf32>
    %c8_42 = arith.constant 8 : index
    %c0_43 = arith.constant 0 : index
    %50 = vector.load %arg22[%c8_42, %c0_43] : memref<72x384xf32, #tpu.memory_space<vmem>>, vector<8x384xf32>
    tpu.vector_store %arg22[%c8_42, %c0_43], %49 {strides = array<i32>} : memref<72x384xf32, #tpu.memory_space<vmem>>, vector<8x384xf32>,
    %51 = vector.extract_strided_slice %1 {offsets = [0, 50], sizes = [8, 384], strides = [1, 1]} : vector<8x584xf32> to vector<8x384xf32>
    %c16_44 = arith.constant 16 : index
    %c0_45 = arith.constant 0 : index
    %52 = vector.load %arg22[%c16_44, %c0_45] : memref<72x384xf32, #tpu.memory_space<vmem>>, vector<8x384xf32>
    tpu.vector_store %arg22[%c16_44, %c0_45], %51 {strides = array<i32>} : memref<72x384xf32, #tpu.memory_space<vmem>>, vector<8x384xf32>,
    %53 = vector.extract_strided_slice %1 {offsets = [0, 51], sizes = [8, 384], strides = [1, 1]} : vector<8x584xf32> to vector<8x384xf32>
    %c24_46 = arith.constant 24 : index
    %c0_47 = arith.constant 0 : index
    %54 = vector.load %arg22[%c24_46, %c0_47] : memref<72x384xf32, #tpu.memory_space<vmem>>, vector<8x384xf32>
    tpu.vector_store %arg22[%c24_46, %c0_47], %53 {strides = array<i32>} : memref<72x384xf32, #tpu.memory_space<vmem>>, vector<8x384xf32>,
    %55 = vector.extract_strided_slice %1 {offsets = [0, 52], sizes = [8, 384], strides = [1, 1]} : vector<8x584xf32> to vector<8x384xf32>
    %c32_48 = arith.constant 32 : index
    %c0_49 = arith.constant 0 : index
    %56 = vector.load %arg22[%c32_48, %c0_49] : memref<72x384xf32, #tpu.memory_space<vmem>>, vector<8x384xf32>
    tpu.vector_store %arg22[%c32_48, %c0_49], %55 {strides = array<i32>} : memref<72x384xf32, #tpu.memory_space<vmem>>, vector<8x384xf32>,
    %57 = vector.extract_strided_slice %1 {offsets = [0, 53], sizes = [8, 384], strides = [1, 1]} : vector<8x584xf32> to vector<8x384xf32>
    %c40_50 = arith.constant 40 : index
    %c0_51 = arith.constant 0 : index
    %58 = vector.load %arg22[%c40_50, %c0_51] : memref<72x384xf32, #tpu.memory_space<vmem>>, vector<8x384xf32>
    tpu.vector_store %arg22[%c40_50, %c0_51], %57 {strides = array<i32>} : memref<72x384xf32, #tpu.memory_space<vmem>>, vector<8x384xf32>,
    %59 = vector.extract_strided_slice %1 {offsets = [0, 54], sizes = [8, 384], strides = [1, 1]} : vector<8x584xf32> to vector<8x384xf32>
    %c48_52 = arith.constant 48 : index
    %c0_53 = arith.constant 0 : index
    %60 = vector.load %arg22[%c48_52, %c0_53] : memref<72x384xf32, #tpu.memory_space<vmem>>, vector<8x384xf32>
    tpu.vector_store %arg22[%c48_52, %c0_53], %59 {strides = array<i32>} : memref<72x384xf32, #tpu.memory_space<vmem>>, vector<8x384xf32>,
    %61 = vector.extract_strided_slice %1 {offsets = [0, 55], sizes = [8, 384], strides = [1, 1]} : vector<8x584xf32> to vector<8x384xf32>
    %c56_54 = arith.constant 56 : index
    %c0_55 = arith.constant 0 : index
    %62 = vector.load %arg22[%c56_54, %c0_55] : memref<72x384xf32, #tpu.memory_space<vmem>>, vector<8x384xf32>
    tpu.vector_store %arg22[%c56_54, %c0_55], %61 {strides = array<i32>} : memref<72x384xf32, #tpu.memory_space<vmem>>, vector<8x384xf32>,
    %63 = vector.extract_strided_slice %1 {offsets = [0, 56], sizes = [8, 384], strides = [1, 1]} : vector<8x584xf32> to vector<8x384xf32>
    %c64_56 = arith.constant 64 : index
    %c0_57 = arith.constant 0 : index
    %64 = vector.load %arg22[%c64_56, %c0_57] : memref<72x384xf32, #tpu.memory_space<vmem>>, vector<8x384xf32>
    tpu.vector_store %arg22[%c64_56, %c0_57], %63 {strides = array<i32>} : memref<72x384xf32, #tpu.memory_space<vmem>>, vector<8x384xf32>,
    %c2 = arith.constant 2 : index
    %c0_58 = arith.constant 0 : index
    %c0_59 = arith.constant 0 : index
    %65 = vector.load %arg2[%c2, %c0_58, %c0_59] : memref<9x40x72xf32, #tpu.memory_space<vmem>>, vector<1x40x72xf32>
    %66 = vector.shape_cast %65 : vector<1x40x72xf32> to vector<40x72xf32>
    %c0_60 = arith.constant 0 : index
    %c0_61 = arith.constant 0 : index
    %67 = vector.load %arg22[%c0_60, %c0_61] : memref<72x384xf32, #tpu.memory_space<vmem>>, vector<72x384xf32>
    %cst_62 = arith.constant dense<0.000000e+00> : vector<40x384xf32>
    %68 = tpu.matmul %66, %67, %cst_62 {dimension_numbers = #tpu.dot_dimension_numbers<[1], [0], [0], [1], [0, 0, 1, 1], [], []>} : vector<40x72xf32>, vector<72x384xf32>, vector<40x384xf32> -> vector<40x384xf32>
    %69 = arith.addf %46, %68 : vector<40x384xf32>
    %70 = vector.extract_strided_slice %1 {offsets = [0, 72], sizes = [8, 384], strides = [1, 1]} : vector<8x584xf32> to vector<8x384xf32>
    %c0_63 = arith.constant 0 : index
    %c0_64 = arith.constant 0 : index
    %71 = vector.load %arg22[%c0_63, %c0_64] : memref<72x384xf32, #tpu.memory_space<vmem>>, vector<8x384xf32>
    tpu.vector_store %arg22[%c0_63, %c0_64], %70 {strides = array<i32>} : memref<72x384xf32, #tpu.memory_space<vmem>>, vector<8x384xf32>,
    %72 = vector.extract_strided_slice %1 {offsets = [0, 73], sizes = [8, 384], strides = [1, 1]} : vector<8x584xf32> to vector<8x384xf32>
    %c8_65 = arith.constant 8 : index
    %c0_66 = arith.constant 0 : index
    %73 = vector.load %arg22[%c8_65, %c0_66] : memref<72x384xf32, #tpu.memory_space<vmem>>, vector<8x384xf32>
    tpu.vector_store %arg22[%c8_65, %c0_66], %72 {strides = array<i32>} : memref<72x384xf32, #tpu.memory_space<vmem>>, vector<8x384xf32>,
    %74 = vector.extract_strided_slice %1 {offsets = [0, 74], sizes = [8, 384], strides = [1, 1]} : vector<8x584xf32> to vector<8x384xf32>
    %c16_67 = arith.constant 16 : index
    %c0_68 = arith.constant 0 : index
    %75 = vector.load %arg22[%c16_67, %c0_68] : memref<72x384xf32, #tpu.memory_space<vmem>>, vector<8x384xf32>
    tpu.vector_store %arg22[%c16_67, %c0_68], %74 {strides = array<i32>} : memref<72x384xf32, #tpu.memory_space<vmem>>, vector<8x384xf32>,
    %76 = vector.extract_strided_slice %1 {offsets = [0, 75], sizes = [8, 384], strides = [1, 1]} : vector<8x584xf32> to vector<8x384xf32>
    %c24_69 = arith.constant 24 : index
    %c0_70 = arith.constant 0 : index
    %77 = vector.load %arg22[%c24_69, %c0_70] : memref<72x384xf32, #tpu.memory_space<vmem>>, vector<8x384xf32>
    tpu.vector_store %arg22[%c24_69, %c0_70], %76 {strides = array<i32>} : memref<72x384xf32, #tpu.memory_space<vmem>>, vector<8x384xf32>,
    %78 = vector.extract_strided_slice %1 {offsets = [0, 76], sizes = [8, 384], strides = [1, 1]} : vector<8x584xf32> to vector<8x384xf32>
    %c32_71 = arith.constant 32 : index
    %c0_72 = arith.constant 0 : index
    %79 = vector.load %arg22[%c32_71, %c0_72] : memref<72x384xf32, #tpu.memory_space<vmem>>, vector<8x384xf32>
    tpu.vector_store %arg22[%c32_71, %c0_72], %78 {strides = array<i32>} : memref<72x384xf32, #tpu.memory_space<vmem>>, vector<8x384xf32>,
    %80 = vector.extract_strided_slice %1 {offsets = [0, 77], sizes = [8, 384], strides = [1, 1]} : vector<8x584xf32> to vector<8x384xf32>
    %c40_73 = arith.constant 40 : index
    %c0_74 = arith.constant 0 : index
    %81 = vector.load %arg22[%c40_73, %c0_74] : memref<72x384xf32, #tpu.memory_space<vmem>>, vector<8x384xf32>
    tpu.vector_store %arg22[%c40_73, %c0_74], %80 {strides = array<i32>} : memref<72x384xf32, #tpu.memory_space<vmem>>, vector<8x384xf32>,
    %82 = vector.extract_strided_slice %1 {offsets = [0, 78], sizes = [8, 384], strides = [1, 1]} : vector<8x584xf32> to vector<8x384xf32>
    %c48_75 = arith.constant 48 : index
    %c0_76 = arith.constant 0 : index
    %83 = vector.load %arg22[%c48_75, %c0_76] : memref<72x384xf32, #tpu.memory_space<vmem>>, vector<8x384xf32>
    tpu.vector_store %arg22[%c48_75, %c0_76], %82 {strides = array<i32>} : memref<72x384xf32, #tpu.memory_space<vmem>>, vector<8x384xf32>,
    %84 = vector.extract_strided_slice %1 {offsets = [0, 79], sizes = [8, 384], strides = [1, 1]} : vector<8x584xf32> to vector<8x384xf32>
    %c56_77 = arith.constant 56 : index
    %c0_78 = arith.constant 0 : index
    %85 = vector.load %arg22[%c56_77, %c0_78] : memref<72x384xf32, #tpu.memory_space<vmem>>, vector<8x384xf32>
    tpu.vector_store %arg22[%c56_77, %c0_78], %84 {strides = array<i32>} : memref<72x384xf32, #tpu.memory_space<vmem>>, vector<8x384xf32>,
    %86 = vector.extract_strided_slice %1 {offsets = [0, 80], sizes = [8, 384], strides = [1, 1]} : vector<8x584xf32> to vector<8x384xf32>
    %c64_79 = arith.constant 64 : index
    %c0_80 = arith.constant 0 : index
    %87 = vector.load %arg22[%c64_79, %c0_80] : memref<72x384xf32, #tpu.memory_space<vmem>>, vector<8x384xf32>
    tpu.vector_store %arg22[%c64_79, %c0_80], %86 {strides = array<i32>} : memref<72x384xf32, #tpu.memory_space<vmem>>, vector<8x384xf32>,
    %c3 = arith.constant 3 : index
    %c0_81 = arith.constant 0 : index
    %c0_82 = arith.constant 0 : index
    %88 = vector.load %arg2[%c3, %c0_81, %c0_82] : memref<9x40x72xf32, #tpu.memory_space<vmem>>, vector<1x40x72xf32>
    %89 = vector.shape_cast %88 : vector<1x40x72xf32> to vector<40x72xf32>
    %c0_83 = arith.constant 0 : index
    %c0_84 = arith.constant 0 : index
    %90 = vector.load %arg22[%c0_83, %c0_84] : memref<72x384xf32, #tpu.memory_space<vmem>>, vector<72x384xf32>
    %cst_85 = arith.constant dense<0.000000e+00> : vector<40x384xf32>
    %91 = tpu.matmul %89, %90, %cst_85 {dimension_numbers = #tpu.dot_dimension_numbers<[1], [0], [0], [1], [0, 0, 1, 1], [], []>} : vector<40x72xf32>, vector<72x384xf32>, vector<40x384xf32> -> vector<40x384xf32>
    %92 = arith.addf %69, %91 : vector<40x384xf32>
    %93 = vector.extract_strided_slice %1 {offsets = [0, 96], sizes = [8, 384], strides = [1, 1]} : vector<8x584xf32> to vector<8x384xf32>
    %c0_86 = arith.constant 0 : index
    %c0_87 = arith.constant 0 : index
    %94 = vector.load %arg22[%c0_86, %c0_87] : memref<72x384xf32, #tpu.memory_space<vmem>>, vector<8x384xf32>
    tpu.vector_store %arg22[%c0_86, %c0_87], %93 {strides = array<i32>} : memref<72x384xf32, #tpu.memory_space<vmem>>, vector<8x384xf32>,
    %95 = vector.extract_strided_slice %1 {offsets = [0, 97], sizes = [8, 384], strides = [1, 1]} : vector<8x584xf32> to vector<8x384xf32>
    %c8_88 = arith.constant 8 : index
    %c0_89 = arith.constant 0 : index
    %96 = vector.load %arg22[%c8_88, %c0_89] : memref<72x384xf32, #tpu.memory_space<vmem>>, vector<8x384xf32>
    tpu.vector_store %arg22[%c8_88, %c0_89], %95 {strides = array<i32>} : memref<72x384xf32, #tpu.memory_space<vmem>>, vector<8x384xf32>,
    %97 = vector.extract_strided_slice %1 {offsets = [0, 98], sizes = [8, 384], strides = [1, 1]} : vector<8x584xf32> to vector<8x384xf32>
    %c16_90 = arith.constant 16 : index
    %c0_91 = arith.constant 0 : index
    %98 = vector.load %arg22[%c16_90, %c0_91] : memref<72x384xf32, #tpu.memory_space<vmem>>, vector<8x384xf32>
    tpu.vector_store %arg22[%c16_90, %c0_91], %97 {strides = array<i32>} : memref<72x384xf32, #tpu.memory_space<vmem>>, vector<8x384xf32>,
    %99 = vector.extract_strided_slice %1 {offsets = [0, 99], sizes = [8, 384], strides = [1, 1]} : vector<8x584xf32> to vector<8x384xf32>
    %c24_92 = arith.constant 24 : index
    %c0_93 = arith.constant 0 : index
    %100 = vector.load %arg22[%c24_92, %c0_93] : memref<72x384xf32, #tpu.memory_space<vmem>>, vector<8x384xf32>
    tpu.vector_store %arg22[%c24_92, %c0_93], %99 {strides = array<i32>} : memref<72x384xf32, #tpu.memory_space<vmem>>, vector<8x384xf32>,
    %101 = vector.extract_strided_slice %1 {offsets = [0, 100], sizes = [8, 384], strides = [1, 1]} : vector<8x584xf32> to vector<8x384xf32>
    %c32_94 = arith.constant 32 : index
    %c0_95 = arith.constant 0 : index
    %102 = vector.load %arg22[%c32_94, %c0_95] : memref<72x384xf32, #tpu.memory_space<vmem>>, vector<8x384xf32>
    tpu.vector_store %arg22[%c32_94, %c0_95], %101 {strides = array<i32>} : memref<72x384xf32, #tpu.memory_space<vmem>>, vector<8x384xf32>,
    %103 = vector.extract_strided_slice %1 {offsets = [0, 101], sizes = [8, 384], strides = [1, 1]} : vector<8x584xf32> to vector<8x384xf32>
    %c40_96 = arith.constant 40 : index
    %c0_97 = arith.constant 0 : index
    %104 = vector.load %arg22[%c40_96, %c0_97] : memref<72x384xf32, #tpu.memory_space<vmem>>, vector<8x384xf32>
    tpu.vector_store %arg22[%c40_96, %c0_97], %103 {strides = array<i32>} : memref<72x384xf32, #tpu.memory_space<vmem>>, vector<8x384xf32>,
    %105 = vector.extract_strided_slice %1 {offsets = [0, 102], sizes = [8, 384], strides = [1, 1]} : vector<8x584xf32> to vector<8x384xf32>
    %c48_98 = arith.constant 48 : index
    %c0_99 = arith.constant 0 : index
    %106 = vector.load %arg22[%c48_98, %c0_99] : memref<72x384xf32, #tpu.memory_space<vmem>>, vector<8x384xf32>
    tpu.vector_store %arg22[%c48_98, %c0_99], %105 {strides = array<i32>} : memref<72x384xf32, #tpu.memory_space<vmem>>, vector<8x384xf32>,
    %107 = vector.extract_strided_slice %1 {offsets = [0, 103], sizes = [8, 384], strides = [1, 1]} : vector<8x584xf32> to vector<8x384xf32>
    %c56_100 = arith.constant 56 : index
    %c0_101 = arith.constant 0 : index
    %108 = vector.load %arg22[%c56_100, %c0_101] : memref<72x384xf32, #tpu.memory_space<vmem>>, vector<8x384xf32>
    tpu.vector_store %arg22[%c56_100, %c0_101], %107 {strides = array<i32>} : memref<72x384xf32, #tpu.memory_space<vmem>>, vector<8x384xf32>,
    %109 = vector.extract_strided_slice %1 {offsets = [0, 104], sizes = [8, 384], strides = [1, 1]} : vector<8x584xf32> to vector<8x384xf32>
    %c64_102 = arith.constant 64 : index
    %c0_103 = arith.constant 0 : index
    %110 = vector.load %arg22[%c64_102, %c0_103] : memref<72x384xf32, #tpu.memory_space<vmem>>, vector<8x384xf32>
    tpu.vector_store %arg22[%c64_102, %c0_103], %109 {strides = array<i32>} : memref<72x384xf32, #tpu.memory_space<vmem>>, vector<8x384xf32>,
    %c4 = arith.constant 4 : index
    %c0_104 = arith.constant 0 : index
    %c0_105 = arith.constant 0 : index
    %111 = vector.load %arg2[%c4, %c0_104, %c0_105] : memref<9x40x72xf32, #tpu.memory_space<vmem>>, vector<1x40x72xf32>
    %112 = vector.shape_cast %111 : vector<1x40x72xf32> to vector<40x72xf32>
    %c0_106 = arith.constant 0 : index
    %c0_107 = arith.constant 0 : index
    %113 = vector.load %arg22[%c0_106, %c0_107] : memref<72x384xf32, #tpu.memory_space<vmem>>, vector<72x384xf32>
    %cst_108 = arith.constant dense<0.000000e+00> : vector<40x384xf32>
    %114 = tpu.matmul %112, %113, %cst_108 {dimension_numbers = #tpu.dot_dimension_numbers<[1], [0], [0], [1], [0, 0, 1, 1], [], []>} : vector<40x72xf32>, vector<72x384xf32>, vector<40x384xf32> -> vector<40x384xf32>
    %115 = arith.addf %92, %114 : vector<40x384xf32>
    %116 = vector.extract_strided_slice %1 {offsets = [0, 120], sizes = [8, 384], strides = [1, 1]} : vector<8x584xf32> to vector<8x384xf32>
    %c0_109 = arith.constant 0 : index
    %c0_110 = arith.constant 0 : index
    %117 = vector.load %arg22[%c0_109, %c0_110] : memref<72x384xf32, #tpu.memory_space<vmem>>, vector<8x384xf32>
    tpu.vector_store %arg22[%c0_109, %c0_110], %116 {strides = array<i32>} : memref<72x384xf32, #tpu.memory_space<vmem>>, vector<8x384xf32>,
    %118 = vector.extract_strided_slice %1 {offsets = [0, 121], sizes = [8, 384], strides = [1, 1]} : vector<8x584xf32> to vector<8x384xf32>
    %c8_111 = arith.constant 8 : index
    %c0_112 = arith.constant 0 : index
    %119 = vector.load %arg22[%c8_111, %c0_112] : memref<72x384xf32, #tpu.memory_space<vmem>>, vector<8x384xf32>
    tpu.vector_store %arg22[%c8_111, %c0_112], %118 {strides = array<i32>} : memref<72x384xf32, #tpu.memory_space<vmem>>, vector<8x384xf32>,
    %120 = vector.extract_strided_slice %1 {offsets = [0, 122], sizes = [8, 384], strides = [1, 1]} : vector<8x584xf32> to vector<8x384xf32>
    %c16_113 = arith.constant 16 : index
    %c0_114 = arith.constant 0 : index
    %121 = vector.load %arg22[%c16_113, %c0_114] : memref<72x384xf32, #tpu.memory_space<vmem>>, vector<8x384xf32>
    tpu.vector_store %arg22[%c16_113, %c0_114], %120 {strides = array<i32>} : memref<72x384xf32, #tpu.memory_space<vmem>>, vector<8x384xf32>,
    %122 = vector.extract_strided_slice %1 {offsets = [0, 123], sizes = [8, 384], strides = [1, 1]} : vector<8x584xf32> to vector<8x384xf32>
    %c24_115 = arith.constant 24 : index
    %c0_116 = arith.constant 0 : index
    %123 = vector.load %arg22[%c24_115, %c0_116] : memref<72x384xf32, #tpu.memory_space<vmem>>, vector<8x384xf32>
    tpu.vector_store %arg22[%c24_115, %c0_116], %122 {strides = array<i32>} : memref<72x384xf32, #tpu.memory_space<vmem>>, vector<8x384xf32>,
    %124 = vector.extract_strided_slice %1 {offsets = [0, 124], sizes = [8, 384], strides = [1, 1]} : vector<8x584xf32> to vector<8x384xf32>
    %c32_117 = arith.constant 32 : index
    %c0_118 = arith.constant 0 : index
    %125 = vector.load %arg22[%c32_117, %c0_118] : memref<72x384xf32, #tpu.memory_space<vmem>>, vector<8x384xf32>
    tpu.vector_store %arg22[%c32_117, %c0_118], %124 {strides = array<i32>} : memref<72x384xf32, #tpu.memory_space<vmem>>, vector<8x384xf32>,
    %126 = vector.extract_strided_slice %1 {offsets = [0, 125], sizes = [8, 384], strides = [1, 1]} : vector<8x584xf32> to vector<8x384xf32>
    %c40_119 = arith.constant 40 : index
    %c0_120 = arith.constant 0 : index
    %127 = vector.load %arg22[%c40_119, %c0_120] : memref<72x384xf32, #tpu.memory_space<vmem>>, vector<8x384xf32>
    tpu.vector_store %arg22[%c40_119, %c0_120], %126 {strides = array<i32>} : memref<72x384xf32, #tpu.memory_space<vmem>>, vector<8x384xf32>,
    %128 = vector.extract_strided_slice %1 {offsets = [0, 126], sizes = [8, 384], strides = [1, 1]} : vector<8x584xf32> to vector<8x384xf32>
    %c48_121 = arith.constant 48 : index
    %c0_122 = arith.constant 0 : index
    %129 = vector.load %arg22[%c48_121, %c0_122] : memref<72x384xf32, #tpu.memory_space<vmem>>, vector<8x384xf32>
    tpu.vector_store %arg22[%c48_121, %c0_122], %128 {strides = array<i32>} : memref<72x384xf32, #tpu.memory_space<vmem>>, vector<8x384xf32>,
    %130 = vector.extract_strided_slice %1 {offsets = [0, 127], sizes = [8, 384], strides = [1, 1]} : vector<8x584xf32> to vector<8x384xf32>
    %c56_123 = arith.constant 56 : index
    %c0_124 = arith.constant 0 : index
    %131 = vector.load %arg22[%c56_123, %c0_124] : memref<72x384xf32, #tpu.memory_space<vmem>>, vector<8x384xf32>
    tpu.vector_store %arg22[%c56_123, %c0_124], %130 {strides = array<i32>} : memref<72x384xf32, #tpu.memory_space<vmem>>, vector<8x384xf32>,
    %132 = vector.extract_strided_slice %1 {offsets = [0, 128], sizes = [8, 384], strides = [1, 1]} : vector<8x584xf32> to vector<8x384xf32>
    %c64_125 = arith.constant 64 : index
    %c0_126 = arith.constant 0 : index
    %133 = vector.load %arg22[%c64_125, %c0_126] : memref<72x384xf32, #tpu.memory_space<vmem>>, vector<8x384xf32>
    tpu.vector_store %arg22[%c64_125, %c0_126], %132 {strides = array<i32>} : memref<72x384xf32, #tpu.memory_space<vmem>>, vector<8x384xf32>,
    %c5 = arith.constant 5 : index
    %c0_127 = arith.constant 0 : index
    %c0_128 = arith.constant 0 : index
    %134 = vector.load %arg2[%c5, %c0_127, %c0_128] : memref<9x40x72xf32, #tpu.memory_space<vmem>>, vector<1x40x72xf32>
    %135 = vector.shape_cast %134 : vector<1x40x72xf32> to vector<40x72xf32>
    %c0_129 = arith.constant 0 : index
    %c0_130 = arith.constant 0 : index
    %136 = vector.load %arg22[%c0_129, %c0_130] : memref<72x384xf32, #tpu.memory_space<vmem>>, vector<72x384xf32>
    %cst_131 = arith.constant dense<0.000000e+00> : vector<40x384xf32>
    %137 = tpu.matmul %135, %136, %cst_131 {dimension_numbers = #tpu.dot_dimension_numbers<[1], [0], [0], [1], [0, 0, 1, 1], [], []>} : vector<40x72xf32>, vector<72x384xf32>, vector<40x384xf32> -> vector<40x384xf32>
    %138 = arith.addf %115, %137 : vector<40x384xf32>
    %139 = vector.extract_strided_slice %1 {offsets = [0, 144], sizes = [8, 384], strides = [1, 1]} : vector<8x584xf32> to vector<8x384xf32>
    %c0_132 = arith.constant 0 : index
    %c0_133 = arith.constant 0 : index
    %140 = vector.load %arg22[%c0_132, %c0_133] : memref<72x384xf32, #tpu.memory_space<vmem>>, vector<8x384xf32>
    tpu.vector_store %arg22[%c0_132, %c0_133], %139 {strides = array<i32>} : memref<72x384xf32, #tpu.memory_space<vmem>>, vector<8x384xf32>,
    %141 = vector.extract_strided_slice %1 {offsets = [0, 145], sizes = [8, 384], strides = [1, 1]} : vector<8x584xf32> to vector<8x384xf32>
    %c8_134 = arith.constant 8 : index
    %c0_135 = arith.constant 0 : index
    %142 = vector.load %arg22[%c8_134, %c0_135] : memref<72x384xf32, #tpu.memory_space<vmem>>, vector<8x384xf32>
    tpu.vector_store %arg22[%c8_134, %c0_135], %141 {strides = array<i32>} : memref<72x384xf32, #tpu.memory_space<vmem>>, vector<8x384xf32>,
    %143 = vector.extract_strided_slice %1 {offsets = [0, 146], sizes = [8, 384], strides = [1, 1]} : vector<8x584xf32> to vector<8x384xf32>
    %c16_136 = arith.constant 16 : index
    %c0_137 = arith.constant 0 : index
    %144 = vector.load %arg22[%c16_136, %c0_137] : memref<72x384xf32, #tpu.memory_space<vmem>>, vector<8x384xf32>
    tpu.vector_store %arg22[%c16_136, %c0_137], %143 {strides = array<i32>} : memref<72x384xf32, #tpu.memory_space<vmem>>, vector<8x384xf32>,
    %145 = vector.extract_strided_slice %1 {offsets = [0, 147], sizes = [8, 384], strides = [1, 1]} : vector<8x584xf32> to vector<8x384xf32>
    %c24_138 = arith.constant 24 : index
    %c0_139 = arith.constant 0 : index
    %146 = vector.load %arg22[%c24_138, %c0_139] : memref<72x384xf32, #tpu.memory_space<vmem>>, vector<8x384xf32>
    tpu.vector_store %arg22[%c24_138, %c0_139], %145 {strides = array<i32>} : memref<72x384xf32, #tpu.memory_space<vmem>>, vector<8x384xf32>,
    %147 = vector.extract_strided_slice %1 {offsets = [0, 148], sizes = [8, 384], strides = [1, 1]} : vector<8x584xf32> to vector<8x384xf32>
    %c32_140 = arith.constant 32 : index
    %c0_141 = arith.constant 0 : index
    %148 = vector.load %arg22[%c32_140, %c0_141] : memref<72x384xf32, #tpu.memory_space<vmem>>, vector<8x384xf32>
    tpu.vector_store %arg22[%c32_140, %c0_141], %147 {strides = array<i32>} : memref<72x384xf32, #tpu.memory_space<vmem>>, vector<8x384xf32>,
    %149 = vector.extract_strided_slice %1 {offsets = [0, 149], sizes = [8, 384], strides = [1, 1]} : vector<8x584xf32> to vector<8x384xf32>
    %c40_142 = arith.constant 40 : index
    %c0_143 = arith.constant 0 : index
    %150 = vector.load %arg22[%c40_142, %c0_143] : memref<72x384xf32, #tpu.memory_space<vmem>>, vector<8x384xf32>
    tpu.vector_store %arg22[%c40_142, %c0_143], %149 {strides = array<i32>} : memref<72x384xf32, #tpu.memory_space<vmem>>, vector<8x384xf32>,
    %151 = vector.extract_strided_slice %1 {offsets = [0, 150], sizes = [8, 384], strides = [1, 1]} : vector<8x584xf32> to vector<8x384xf32>
    %c48_144 = arith.constant 48 : index
    %c0_145 = arith.constant 0 : index
    %152 = vector.load %arg22[%c48_144, %c0_145] : memref<72x384xf32, #tpu.memory_space<vmem>>, vector<8x384xf32>
    tpu.vector_store %arg22[%c48_144, %c0_145], %151 {strides = array<i32>} : memref<72x384xf32, #tpu.memory_space<vmem>>, vector<8x384xf32>,
    %153 = vector.extract_strided_slice %1 {offsets = [0, 151], sizes = [8, 384], strides = [1, 1]} : vector<8x584xf32> to vector<8x384xf32>
    %c56_146 = arith.constant 56 : index
    %c0_147 = arith.constant 0 : index
    %154 = vector.load %arg22[%c56_146, %c0_147] : memref<72x384xf32, #tpu.memory_space<vmem>>, vector<8x384xf32>
    tpu.vector_store %arg22[%c56_146, %c0_147], %153 {strides = array<i32>} : memref<72x384xf32, #tpu.memory_space<vmem>>, vector<8x384xf32>,
    %155 = vector.extract_strided_slice %1 {offsets = [0, 152], sizes = [8, 384], strides = [1, 1]} : vector<8x584xf32> to vector<8x384xf32>
    %c64_148 = arith.constant 64 : index
    %c0_149 = arith.constant 0 : index
    %156 = vector.load %arg22[%c64_148, %c0_149] : memref<72x384xf32, #tpu.memory_space<vmem>>, vector<8x384xf32>
    tpu.vector_store %arg22[%c64_148, %c0_149], %155 {strides = array<i32>} : memref<72x384xf32, #tpu.memory_space<vmem>>, vector<8x384xf32>,
    %c6 = arith.constant 6 : index
    %c0_150 = arith.constant 0 : index
    %c0_151 = arith.constant 0 : index
    %157 = vector.load %arg2[%c6, %c0_150, %c0_151] : memref<9x40x72xf32, #tpu.memory_space<vmem>>, vector<1x40x72xf32>
    %158 = vector.shape_cast %157 : vector<1x40x72xf32> to vector<40x72xf32>
    %c0_152 = arith.constant 0 : index
    %c0_153 = arith.constant 0 : index
    %159 = vector.load %arg22[%c0_152, %c0_153] : memref<72x384xf32, #tpu.memory_space<vmem>>, vector<72x384xf32>
    %cst_154 = arith.constant dense<0.000000e+00> : vector<40x384xf32>
    %160 = tpu.matmul %158, %159, %cst_154 {dimension_numbers = #tpu.dot_dimension_numbers<[1], [0], [0], [1], [0, 0, 1, 1], [], []>} : vector<40x72xf32>, vector<72x384xf32>, vector<40x384xf32> -> vector<40x384xf32>
    %161 = arith.addf %138, %160 : vector<40x384xf32>
    %162 = vector.extract_strided_slice %1 {offsets = [0, 168], sizes = [8, 384], strides = [1, 1]} : vector<8x584xf32> to vector<8x384xf32>
    %c0_155 = arith.constant 0 : index
    %c0_156 = arith.constant 0 : index
    %163 = vector.load %arg22[%c0_155, %c0_156] : memref<72x384xf32, #tpu.memory_space<vmem>>, vector<8x384xf32>
    tpu.vector_store %arg22[%c0_155, %c0_156], %162 {strides = array<i32>} : memref<72x384xf32, #tpu.memory_space<vmem>>, vector<8x384xf32>,
    %164 = vector.extract_strided_slice %1 {offsets = [0, 169], sizes = [8, 384], strides = [1, 1]} : vector<8x584xf32> to vector<8x384xf32>
    %c8_157 = arith.constant 8 : index
    %c0_158 = arith.constant 0 : index
    %165 = vector.load %arg22[%c8_157, %c0_158] : memref<72x384xf32, #tpu.memory_space<vmem>>, vector<8x384xf32>
    tpu.vector_store %arg22[%c8_157, %c0_158], %164 {strides = array<i32>} : memref<72x384xf32, #tpu.memory_space<vmem>>, vector<8x384xf32>,
    %166 = vector.extract_strided_slice %1 {offsets = [0, 170], sizes = [8, 384], strides = [1, 1]} : vector<8x584xf32> to vector<8x384xf32>
    %c16_159 = arith.constant 16 : index
    %c0_160 = arith.constant 0 : index
    %167 = vector.load %arg22[%c16_159, %c0_160] : memref<72x384xf32, #tpu.memory_space<vmem>>, vector<8x384xf32>
    tpu.vector_store %arg22[%c16_159, %c0_160], %166 {strides = array<i32>} : memref<72x384xf32, #tpu.memory_space<vmem>>, vector<8x384xf32>,
    %168 = vector.extract_strided_slice %1 {offsets = [0, 171], sizes = [8, 384], strides = [1, 1]} : vector<8x584xf32> to vector<8x384xf32>
    %c24_161 = arith.constant 24 : index
    %c0_162 = arith.constant 0 : index
    %169 = vector.load %arg22[%c24_161, %c0_162] : memref<72x384xf32, #tpu.memory_space<vmem>>, vector<8x384xf32>
    tpu.vector_store %arg22[%c24_161, %c0_162], %168 {strides = array<i32>} : memref<72x384xf32, #tpu.memory_space<vmem>>, vector<8x384xf32>,
    %170 = vector.extract_strided_slice %1 {offsets = [0, 172], sizes = [8, 384], strides = [1, 1]} : vector<8x584xf32> to vector<8x384xf32>
    %c32_163 = arith.constant 32 : index
    %c0_164 = arith.constant 0 : index
    %171 = vector.load %arg22[%c32_163, %c0_164] : memref<72x384xf32, #tpu.memory_space<vmem>>, vector<8x384xf32>
    tpu.vector_store %arg22[%c32_163, %c0_164], %170 {strides = array<i32>} : memref<72x384xf32, #tpu.memory_space<vmem>>, vector<8x384xf32>,
    %172 = vector.extract_strided_slice %1 {offsets = [0, 173], sizes = [8, 384], strides = [1, 1]} : vector<8x584xf32> to vector<8x384xf32>
    %c40_165 = arith.constant 40 : index
    %c0_166 = arith.constant 0 : index
    %173 = vector.load %arg22[%c40_165, %c0_166] : memref<72x384xf32, #tpu.memory_space<vmem>>, vector<8x384xf32>
    tpu.vector_store %arg22[%c40_165, %c0_166], %172 {strides = array<i32>} : memref<72x384xf32, #tpu.memory_space<vmem>>, vector<8x384xf32>,
    %174 = vector.extract_strided_slice %1 {offsets = [0, 174], sizes = [8, 384], strides = [1, 1]} : vector<8x584xf32> to vector<8x384xf32>
    %c48_167 = arith.constant 48 : index
    %c0_168 = arith.constant 0 : index
    %175 = vector.load %arg22[%c48_167, %c0_168] : memref<72x384xf32, #tpu.memory_space<vmem>>, vector<8x384xf32>
    tpu.vector_store %arg22[%c48_167, %c0_168], %174 {strides = array<i32>} : memref<72x384xf32, #tpu.memory_space<vmem>>, vector<8x384xf32>,
    %176 = vector.extract_strided_slice %1 {offsets = [0, 175], sizes = [8, 384], strides = [1, 1]} : vector<8x584xf32> to vector<8x384xf32>
    %c56_169 = arith.constant 56 : index
    %c0_170 = arith.constant 0 : index
    %177 = vector.load %arg22[%c56_169, %c0_170] : memref<72x384xf32, #tpu.memory_space<vmem>>, vector<8x384xf32>
    tpu.vector_store %arg22[%c56_169, %c0_170], %176 {strides = array<i32>} : memref<72x384xf32, #tpu.memory_space<vmem>>, vector<8x384xf32>,
    %178 = vector.extract_strided_slice %1 {offsets = [0, 176], sizes = [8, 384], strides = [1, 1]} : vector<8x584xf32> to vector<8x384xf32>
    %c64_171 = arith.constant 64 : index
    %c0_172 = arith.constant 0 : index
    %179 = vector.load %arg22[%c64_171, %c0_172] : memref<72x384xf32, #tpu.memory_space<vmem>>, vector<8x384xf32>
    tpu.vector_store %arg22[%c64_171, %c0_172], %178 {strides = array<i32>} : memref<72x384xf32, #tpu.memory_space<vmem>>, vector<8x384xf32>,
    %c7 = arith.constant 7 : index
    %c0_173 = arith.constant 0 : index
    %c0_174 = arith.constant 0 : index
    %180 = vector.load %arg2[%c7, %c0_173, %c0_174] : memref<9x40x72xf32, #tpu.memory_space<vmem>>, vector<1x40x72xf32>
    %181 = vector.shape_cast %180 : vector<1x40x72xf32> to vector<40x72xf32>
    %c0_175 = arith.constant 0 : index
    %c0_176 = arith.constant 0 : index
    %182 = vector.load %arg22[%c0_175, %c0_176] : memref<72x384xf32, #tpu.memory_space<vmem>>, vector<72x384xf32>
    %cst_177 = arith.constant dense<0.000000e+00> : vector<40x384xf32>
    %183 = tpu.matmul %181, %182, %cst_177 {dimension_numbers = #tpu.dot_dimension_numbers<[1], [0], [0], [1], [0, 0, 1, 1], [], []>} : vector<40x72xf32>, vector<72x384xf32>, vector<40x384xf32> -> vector<40x384xf32>
    %184 = arith.addf %161, %183 : vector<40x384xf32>
    %185 = vector.extract_strided_slice %1 {offsets = [0, 192], sizes = [8, 384], strides = [1, 1]} : vector<8x584xf32> to vector<8x384xf32>
    %c0_178 = arith.constant 0 : index
    %c0_179 = arith.constant 0 : index
    %186 = vector.load %arg22[%c0_178, %c0_179] : memref<72x384xf32, #tpu.memory_space<vmem>>, vector<8x384xf32>
    tpu.vector_store %arg22[%c0_178, %c0_179], %185 {strides = array<i32>} : memref<72x384xf32, #tpu.memory_space<vmem>>, vector<8x384xf32>,
    %187 = vector.extract_strided_slice %1 {offsets = [0, 193], sizes = [8, 384], strides = [1, 1]} : vector<8x584xf32> to vector<8x384xf32>
    %c8_180 = arith.constant 8 : index
    %c0_181 = arith.constant 0 : index
    %188 = vector.load %arg22[%c8_180, %c0_181] : memref<72x384xf32, #tpu.memory_space<vmem>>, vector<8x384xf32>
    tpu.vector_store %arg22[%c8_180, %c0_181], %187 {strides = array<i32>} : memref<72x384xf32, #tpu.memory_space<vmem>>, vector<8x384xf32>,
    %189 = vector.extract_strided_slice %1 {offsets = [0, 194], sizes = [8, 384], strides = [1, 1]} : vector<8x584xf32> to vector<8x384xf32>
    %c16_182 = arith.constant 16 : index
    %c0_183 = arith.constant 0 : index
    %190 = vector.load %arg22[%c16_182, %c0_183] : memref<72x384xf32, #tpu.memory_space<vmem>>, vector<8x384xf32>
    tpu.vector_store %arg22[%c16_182, %c0_183], %189 {strides = array<i32>} : memref<72x384xf32, #tpu.memory_space<vmem>>, vector<8x384xf32>,
    %191 = vector.extract_strided_slice %1 {offsets = [0, 195], sizes = [8, 384], strides = [1, 1]} : vector<8x584xf32> to vector<8x384xf32>
    %c24_184 = arith.constant 24 : index
    %c0_185 = arith.constant 0 : index
    %192 = vector.load %arg22[%c24_184, %c0_185] : memref<72x384xf32, #tpu.memory_space<vmem>>, vector<8x384xf32>
    tpu.vector_store %arg22[%c24_184, %c0_185], %191 {strides = array<i32>} : memref<72x384xf32, #tpu.memory_space<vmem>>, vector<8x384xf32>,
    %193 = vector.extract_strided_slice %1 {offsets = [0, 196], sizes = [8, 384], strides = [1, 1]} : vector<8x584xf32> to vector<8x384xf32>
    %c32_186 = arith.constant 32 : index
    %c0_187 = arith.constant 0 : index
    %194 = vector.load %arg22[%c32_186, %c0_187] : memref<72x384xf32, #tpu.memory_space<vmem>>, vector<8x384xf32>
    tpu.vector_store %arg22[%c32_186, %c0_187], %193 {strides = array<i32>} : memref<72x384xf32, #tpu.memory_space<vmem>>, vector<8x384xf32>,
    %195 = vector.extract_strided_slice %1 {offsets = [0, 197], sizes = [8, 384], strides = [1, 1]} : vector<8x584xf32> to vector<8x384xf32>
    %c40_188 = arith.constant 40 : index
    %c0_189 = arith.constant 0 : index
    %196 = vector.load %arg22[%c40_188, %c0_189] : memref<72x384xf32, #tpu.memory_space<vmem>>, vector<8x384xf32>
    tpu.vector_store %arg22[%c40_188, %c0_189], %195 {strides = array<i32>} : memref<72x384xf32, #tpu.memory_space<vmem>>, vector<8x384xf32>,
    %197 = vector.extract_strided_slice %1 {offsets = [0, 198], sizes = [8, 384], strides = [1, 1]} : vector<8x584xf32> to vector<8x384xf32>
    %c48_190 = arith.constant 48 : index
    %c0_191 = arith.constant 0 : index
    %198 = vector.load %arg22[%c48_190, %c0_191] : memref<72x384xf32, #tpu.memory_space<vmem>>, vector<8x384xf32>
    tpu.vector_store %arg22[%c48_190, %c0_191], %197 {strides = array<i32>} : memref<72x384xf32, #tpu.memory_space<vmem>>, vector<8x384xf32>,
    %199 = vector.extract_strided_slice %1 {offsets = [0, 199], sizes = [8, 384], strides = [1, 1]} : vector<8x584xf32> to vector<8x384xf32>
    %c56_192 = arith.constant 56 : index
    %c0_193 = arith.constant 0 : index
    %200 = vector.load %arg22[%c56_192, %c0_193] : memref<72x384xf32, #tpu.memory_space<vmem>>, vector<8x384xf32>
    tpu.vector_store %arg22[%c56_192, %c0_193], %199 {strides = array<i32>} : memref<72x384xf32, #tpu.memory_space<vmem>>, vector<8x384xf32>,
    %201 = vector.extract_strided_slice %1 {offsets = [0, 200], sizes = [8, 384], strides = [1, 1]} : vector<8x584xf32> to vector<8x384xf32>
    %c64_194 = arith.constant 64 : index
    %c0_195 = arith.constant 0 : index
    %202 = vector.load %arg22[%c64_194, %c0_195] : memref<72x384xf32, #tpu.memory_space<vmem>>, vector<8x384xf32>
    tpu.vector_store %arg22[%c64_194, %c0_195], %201 {strides = array<i32>} : memref<72x384xf32, #tpu.memory_space<vmem>>, vector<8x384xf32>,
    %c8_196 = arith.constant 8 : index
    %c0_197 = arith.constant 0 : index
    %c0_198 = arith.constant 0 : index
    %203 = vector.load %arg2[%c8_196, %c0_197, %c0_198] : memref<9x40x72xf32, #tpu.memory_space<vmem>>, vector<1x40x72xf32>
    %204 = vector.shape_cast %203 : vector<1x40x72xf32> to vector<40x72xf32>
    %c0_199 = arith.constant 0 : index
    %c0_200 = arith.constant 0 : index
    %205 = vector.load %arg22[%c0_199, %c0_200] : memref<72x384xf32, #tpu.memory_space<vmem>>, vector<72x384xf32>
    %cst_201 = arith.constant dense<0.000000e+00> : vector<40x384xf32>
    %206 = tpu.matmul %204, %205, %cst_201 {dimension_numbers = #tpu.dot_dimension_numbers<[1], [0], [0], [1], [0, 0, 1, 1], [], []>} : vector<40x72xf32>, vector<72x384xf32>, vector<40x384xf32> -> vector<40x384xf32>
    %207 = arith.addf %184, %206 : vector<40x384xf32>
    %c0_202 = arith.constant 0 : index
    %c0_203 = arith.constant 0 : index
    %208 = vector.load %arg3[%c0_202, %c0_203] : memref<40x1xf32, #tpu.memory_space<vmem>>, vector<40x1xf32>
    %209 = vector.broadcast %208 : vector<40x1xf32> to vector<40x384xf32>
    %210 = arith.addf %207, %209 : vector<40x384xf32>
    %cst_204 = arith.constant 0.000000e+00 : f32
    %211 = vector.broadcast %cst_204 : f32 to vector<40x384xf32>
    %212 = arith.maximumf %210, %211 : vector<40x384xf32>
    %c0_205 = arith.constant 0 : index
    %c0_206 = arith.constant 0 : index
    %c0_207 = arith.constant 0 : index
    %213 = vector.load %arg16[%c0_205, %c0_206, %c0_207] : memref<4x384x102xf32, #tpu.memory_space<vmem>>, vector<1x384x102xf32>
    %214 = vector.shape_cast %213 : vector<1x384x102xf32> to vector<384x102xf32>
    %cst_208 = arith.constant dense<0.000000e+00> : vector<40x102xf32>
    %215 = tpu.matmul %212, %214, %cst_208 {dimension_numbers = #tpu.dot_dimension_numbers<[1], [0], [0], [1], [0, 0, 1, 1], [], []>} : vector<40x384xf32>, vector<384x102xf32>, vector<40x102xf32> -> vector<40x102xf32>
    %c1_209 = arith.constant 1 : index
    %c0_210 = arith.constant 0 : index
    %c0_211 = arith.constant 0 : index
    %216 = vector.load %arg16[%c1_209, %c0_210, %c0_211] : memref<4x384x102xf32, #tpu.memory_space<vmem>>, vector<1x384x102xf32>
    %217 = vector.shape_cast %216 : vector<1x384x102xf32> to vector<384x102xf32>
    %cst_212 = arith.constant dense<0.000000e+00> : vector<40x102xf32>
    %218 = tpu.matmul %212, %217, %cst_212 {dimension_numbers = #tpu.dot_dimension_numbers<[1], [0], [0], [1], [0, 0, 1, 1], [], []>} : vector<40x384xf32>, vector<384x102xf32>, vector<40x102xf32> -> vector<40x102xf32>
    %219 = arith.maximumf %215, %218 : vector<40x102xf32>
    %c2_213 = arith.constant 2 : index
    %c0_214 = arith.constant 0 : index
    %c0_215 = arith.constant 0 : index
    %220 = vector.load %arg16[%c2_213, %c0_214, %c0_215] : memref<4x384x102xf32, #tpu.memory_space<vmem>>, vector<1x384x102xf32>
    %221 = vector.shape_cast %220 : vector<1x384x102xf32> to vector<384x102xf32>
    %cst_216 = arith.constant dense<0.000000e+00> : vector<40x102xf32>
    %222 = tpu.matmul %212, %221, %cst_216 {dimension_numbers = #tpu.dot_dimension_numbers<[1], [0], [0], [1], [0, 0, 1, 1], [], []>} : vector<40x384xf32>, vector<384x102xf32>, vector<40x102xf32> -> vector<40x102xf32>
    %223 = arith.maximumf %219, %222 : vector<40x102xf32>
    %c3_217 = arith.constant 3 : index
    %c0_218 = arith.constant 0 : index
    %c0_219 = arith.constant 0 : index
    %224 = vector.load %arg16[%c3_217, %c0_218, %c0_219] : memref<4x384x102xf32, #tpu.memory_space<vmem>>, vector<1x384x102xf32>
    %225 = vector.shape_cast %224 : vector<1x384x102xf32> to vector<384x102xf32>
    %cst_220 = arith.constant dense<0.000000e+00> : vector<40x102xf32>
    %226 = tpu.matmul %212, %225, %cst_220 {dimension_numbers = #tpu.dot_dimension_numbers<[1], [0], [0], [1], [0, 0, 1, 1], [], []>} : vector<40x384xf32>, vector<384x102xf32>, vector<40x102xf32> -> vector<40x102xf32>
    %227 = arith.maximumf %223, %226 : vector<40x102xf32>
    %228 = vector.extract_strided_slice %227 {offsets = [0, 0], sizes = [40, 80], strides = [1, 1]} : vector<40x102xf32> to vector<40x80xf32>
    %c0_221 = arith.constant 0 : index
    %c0_222 = arith.constant 0 : index
    %229 = vector.load %arg23[%c0_221, %c0_222] : memref<120x80xf32, #tpu.memory_space<vmem>>, vector<40x80xf32>
    tpu.vector_store %arg23[%c0_221, %c0_222], %228 {strides = array<i32>} : memref<120x80xf32, #tpu.memory_space<vmem>>, vector<40x80xf32>,
    %230 = vector.extract_strided_slice %227 {offsets = [0, 1], sizes = [40, 80], strides = [1, 1]} : vector<40x102xf32> to vector<40x80xf32>
    %c40_223 = arith.constant 40 : index
    %c0_224 = arith.constant 0 : index
    %231 = vector.load %arg23[%c40_223, %c0_224] : memref<120x80xf32, #tpu.memory_space<vmem>>, vector<40x80xf32>
    tpu.vector_store %arg23[%c40_223, %c0_224], %230 {strides = array<i32>} : memref<120x80xf32, #tpu.memory_space<vmem>>, vector<40x80xf32>,
    %232 = vector.extract_strided_slice %227 {offsets = [0, 2], sizes = [40, 80], strides = [1, 1]} : vector<40x102xf32> to vector<40x80xf32>
    %c80 = arith.constant 80 : index
    %c0_225 = arith.constant 0 : index
    %233 = vector.load %arg23[%c80, %c0_225] : memref<120x80xf32, #tpu.memory_space<vmem>>, vector<40x80xf32>
    tpu.vector_store %arg23[%c80, %c0_225], %232 {strides = array<i32>} : memref<120x80xf32, #tpu.memory_space<vmem>>, vector<40x80xf32>,
    %c0_226 = arith.constant 0 : index
    %c0_227 = arith.constant 0 : index
    %c0_228 = arith.constant 0 : index
    %234 = vector.load %arg4[%c0_226, %c0_227, %c0_228] : memref<3x40x120xf32, #tpu.memory_space<vmem>>, vector<1x40x120xf32>
    %235 = vector.shape_cast %234 : vector<1x40x120xf32> to vector<40x120xf32>
    %c0_229 = arith.constant 0 : index
    %c0_230 = arith.constant 0 : index
    %236 = vector.load %arg23[%c0_229, %c0_230] : memref<120x80xf32, #tpu.memory_space<vmem>>, vector<120x80xf32>
    %cst_231 = arith.constant dense<0.000000e+00> : vector<40x80xf32>
    %237 = tpu.matmul %235, %236, %cst_231 {dimension_numbers = #tpu.dot_dimension_numbers<[1], [0], [0], [1], [0, 0, 1, 1], [], []>} : vector<40x120xf32>, vector<120x80xf32>, vector<40x80xf32> -> vector<40x80xf32>
    %238 = vector.extract_strided_slice %227 {offsets = [0, 10], sizes = [40, 80], strides = [1, 1]} : vector<40x102xf32> to vector<40x80xf32>
    %c0_232 = arith.constant 0 : index
    %c0_233 = arith.constant 0 : index
    %239 = vector.load %arg23[%c0_232, %c0_233] : memref<120x80xf32, #tpu.memory_space<vmem>>, vector<40x80xf32>
    tpu.vector_store %arg23[%c0_232, %c0_233], %238 {strides = array<i32>} : memref<120x80xf32, #tpu.memory_space<vmem>>, vector<40x80xf32>,
    %240 = vector.extract_strided_slice %227 {offsets = [0, 11], sizes = [40, 80], strides = [1, 1]} : vector<40x102xf32> to vector<40x80xf32>
    %c40_234 = arith.constant 40 : index
    %c0_235 = arith.constant 0 : index
    %241 = vector.load %arg23[%c40_234, %c0_235] : memref<120x80xf32, #tpu.memory_space<vmem>>, vector<40x80xf32>
    tpu.vector_store %arg23[%c40_234, %c0_235], %240 {strides = array<i32>} : memref<120x80xf32, #tpu.memory_space<vmem>>, vector<40x80xf32>,
    %242 = vector.extract_strided_slice %227 {offsets = [0, 12], sizes = [40, 80], strides = [1, 1]} : vector<40x102xf32> to vector<40x80xf32>
    %c80_236 = arith.constant 80 : index
    %c0_237 = arith.constant 0 : index
    %243 = vector.load %arg23[%c80_236, %c0_237] : memref<120x80xf32, #tpu.memory_space<vmem>>, vector<40x80xf32>
    tpu.vector_store %arg23[%c80_236, %c0_237], %242 {strides = array<i32>} : memref<120x80xf32, #tpu.memory_space<vmem>>, vector<40x80xf32>,
    %c1_238 = arith.constant 1 : index
    %c0_239 = arith.constant 0 : index
    %c0_240 = arith.constant 0 : index
    %244 = vector.load %arg4[%c1_238, %c0_239, %c0_240] : memref<3x40x120xf32, #tpu.memory_space<vmem>>, vector<1x40x120xf32>
    %245 = vector.shape_cast %244 : vector<1x40x120xf32> to vector<40x120xf32>
    %c0_241 = arith.constant 0 : index
    %c0_242 = arith.constant 0 : index
    %246 = vector.load %arg23[%c0_241, %c0_242] : memref<120x80xf32, #tpu.memory_space<vmem>>, vector<120x80xf32>
    %cst_243 = arith.constant dense<0.000000e+00> : vector<40x80xf32>
    %247 = tpu.matmul %245, %246, %cst_243 {dimension_numbers = #tpu.dot_dimension_numbers<[1], [0], [0], [1], [0, 0, 1, 1], [], []>} : vector<40x120xf32>, vector<120x80xf32>, vector<40x80xf32> -> vector<40x80xf32>
    %248 = arith.addf %237, %247 : vector<40x80xf32>
    %249 = vector.extract_strided_slice %227 {offsets = [0, 20], sizes = [40, 80], strides = [1, 1]} : vector<40x102xf32> to vector<40x80xf32>
    %c0_244 = arith.constant 0 : index
    %c0_245 = arith.constant 0 : index
    %250 = vector.load %arg23[%c0_244, %c0_245] : memref<120x80xf32, #tpu.memory_space<vmem>>, vector<40x80xf32>
    tpu.vector_store %arg23[%c0_244, %c0_245], %249 {strides = array<i32>} : memref<120x80xf32, #tpu.memory_space<vmem>>, vector<40x80xf32>,
    %251 = vector.extract_strided_slice %227 {offsets = [0, 21], sizes = [40, 80], strides = [1, 1]} : vector<40x102xf32> to vector<40x80xf32>
    %c40_246 = arith.constant 40 : index
    %c0_247 = arith.constant 0 : index
    %252 = vector.load %arg23[%c40_246, %c0_247] : memref<120x80xf32, #tpu.memory_space<vmem>>, vector<40x80xf32>
    tpu.vector_store %arg23[%c40_246, %c0_247], %251 {strides = array<i32>} : memref<120x80xf32, #tpu.memory_space<vmem>>, vector<40x80xf32>,
    %253 = vector.extract_strided_slice %227 {offsets = [0, 22], sizes = [40, 80], strides = [1, 1]} : vector<40x102xf32> to vector<40x80xf32>
    %c80_248 = arith.constant 80 : index
    %c0_249 = arith.constant 0 : index
    %254 = vector.load %arg23[%c80_248, %c0_249] : memref<120x80xf32, #tpu.memory_space<vmem>>, vector<40x80xf32>
    tpu.vector_store %arg23[%c80_248, %c0_249], %253 {strides = array<i32>} : memref<120x80xf32, #tpu.memory_space<vmem>>, vector<40x80xf32>,
    %c2_250 = arith.constant 2 : index
    %c0_251 = arith.constant 0 : index
    %c0_252 = arith.constant 0 : index
    %255 = vector.load %arg4[%c2_250, %c0_251, %c0_252] : memref<3x40x120xf32, #tpu.memory_space<vmem>>, vector<1x40x120xf32>
    %256 = vector.shape_cast %255 : vector<1x40x120xf32> to vector<40x120xf32>
    %c0_253 = arith.constant 0 : index
    %c0_254 = arith.constant 0 : index
    %257 = vector.load %arg23[%c0_253, %c0_254] : memref<120x80xf32, #tpu.memory_space<vmem>>, vector<120x80xf32>
    %cst_255 = arith.constant dense<0.000000e+00> : vector<40x80xf32>
    %258 = tpu.matmul %256, %257, %cst_255 {dimension_numbers = #tpu.dot_dimension_numbers<[1], [0], [0], [1], [0, 0, 1, 1], [], []>} : vector<40x120xf32>, vector<120x80xf32>, vector<40x80xf32> -> vector<40x80xf32>
    %259 = arith.addf %248, %258 : vector<40x80xf32>
    %c0_256 = arith.constant 0 : index
    %c0_257 = arith.constant 0 : index
    %260 = vector.load %arg5[%c0_256, %c0_257] : memref<40x1xf32, #tpu.memory_space<vmem>>, vector<40x1xf32>
    %261 = vector.broadcast %260 : vector<40x1xf32> to vector<40x80xf32>
    %262 = arith.addf %259, %261 : vector<40x80xf32>
    %cst_258 = arith.constant 0.000000e+00 : f32
    %263 = vector.broadcast %cst_258 : f32 to vector<40x80xf32>
    %264 = arith.maximumf %262, %263 : vector<40x80xf32>
    %c0_259 = arith.constant 0 : index
    %c0_260 = arith.constant 0 : index
    %265 = vector.load %arg17[%c0_259, %c0_260] : memref<80x102xf32, #tpu.memory_space<vmem>>, vector<80x102xf32>
    %cst_261 = arith.constant dense<0.000000e+00> : vector<40x102xf32>
    %266 = tpu.matmul %264, %265, %cst_261 {dimension_numbers = #tpu.dot_dimension_numbers<[1], [0], [0], [1], [0, 0, 1, 1], [], []>} : vector<40x80xf32>, vector<80x102xf32>, vector<40x102xf32> -> vector<40x102xf32>
    %267 = vector.extract_strided_slice %266 {offsets = [0, 0], sizes = [40, 80], strides = [1, 1]} : vector<40x102xf32> to vector<40x80xf32>
    %c0_262 = arith.constant 0 : index
    %c0_263 = arith.constant 0 : index
    %268 = vector.load %arg23[%c0_262, %c0_263] : memref<120x80xf32, #tpu.memory_space<vmem>>, vector<40x80xf32>
    tpu.vector_store %arg23[%c0_262, %c0_263], %267 {strides = array<i32>} : memref<120x80xf32, #tpu.memory_space<vmem>>, vector<40x80xf32>,
    %269 = vector.extract_strided_slice %266 {offsets = [0, 1], sizes = [40, 80], strides = [1, 1]} : vector<40x102xf32> to vector<40x80xf32>
    %c40_264 = arith.constant 40 : index
    %c0_265 = arith.constant 0 : index
    %270 = vector.load %arg23[%c40_264, %c0_265] : memref<120x80xf32, #tpu.memory_space<vmem>>, vector<40x80xf32>
    tpu.vector_store %arg23[%c40_264, %c0_265], %269 {strides = array<i32>} : memref<120x80xf32, #tpu.memory_space<vmem>>, vector<40x80xf32>,
    %271 = vector.extract_strided_slice %266 {offsets = [0, 2], sizes = [40, 80], strides = [1, 1]} : vector<40x102xf32> to vector<40x80xf32>
    %c80_266 = arith.constant 80 : index
    %c0_267 = arith.constant 0 : index
    %272 = vector.load %arg23[%c80_266, %c0_267] : memref<120x80xf32, #tpu.memory_space<vmem>>, vector<40x80xf32>
    tpu.vector_store %arg23[%c80_266, %c0_267], %271 {strides = array<i32>} : memref<120x80xf32, #tpu.memory_space<vmem>>, vector<40x80xf32>,
    %c0_268 = arith.constant 0 : index
    %c0_269 = arith.constant 0 : index
    %c0_270 = arith.constant 0 : index
    %273 = vector.load %arg6[%c0_268, %c0_269, %c0_270] : memref<3x64x120xf32, #tpu.memory_space<vmem>>, vector<1x64x120xf32>
    %274 = vector.shape_cast %273 : vector<1x64x120xf32> to vector<64x120xf32>
    %c0_271 = arith.constant 0 : index
    %c0_272 = arith.constant 0 : index
    %275 = vector.load %arg23[%c0_271, %c0_272] : memref<120x80xf32, #tpu.memory_space<vmem>>, vector<120x80xf32>
    %cst_273 = arith.constant dense<0.000000e+00> : vector<64x80xf32>
    %276 = tpu.matmul %274, %275, %cst_273 {dimension_numbers = #tpu.dot_dimension_numbers<[1], [0], [0], [1], [0, 0, 1, 1], [], []>} : vector<64x120xf32>, vector<120x80xf32>, vector<64x80xf32> -> vector<64x80xf32>
    %277 = vector.extract_strided_slice %266 {offsets = [0, 10], sizes = [40, 80], strides = [1, 1]} : vector<40x102xf32> to vector<40x80xf32>
    %c0_274 = arith.constant 0 : index
    %c0_275 = arith.constant 0 : index
    %278 = vector.load %arg23[%c0_274, %c0_275] : memref<120x80xf32, #tpu.memory_space<vmem>>, vector<40x80xf32>
    tpu.vector_store %arg23[%c0_274, %c0_275], %277 {strides = array<i32>} : memref<120x80xf32, #tpu.memory_space<vmem>>, vector<40x80xf32>,
    %279 = vector.extract_strided_slice %266 {offsets = [0, 11], sizes = [40, 80], strides = [1, 1]} : vector<40x102xf32> to vector<40x80xf32>
    %c40_276 = arith.constant 40 : index
    %c0_277 = arith.constant 0 : index
    %280 = vector.load %arg23[%c40_276, %c0_277] : memref<120x80xf32, #tpu.memory_space<vmem>>, vector<40x80xf32>
    tpu.vector_store %arg23[%c40_276, %c0_277], %279 {strides = array<i32>} : memref<120x80xf32, #tpu.memory_space<vmem>>, vector<40x80xf32>,
    %281 = vector.extract_strided_slice %266 {offsets = [0, 12], sizes = [40, 80], strides = [1, 1]} : vector<40x102xf32> to vector<40x80xf32>
    %c80_278 = arith.constant 80 : index
    %c0_279 = arith.constant 0 : index
    %282 = vector.load %arg23[%c80_278, %c0_279] : memref<120x80xf32, #tpu.memory_space<vmem>>, vector<40x80xf32>
    tpu.vector_store %arg23[%c80_278, %c0_279], %281 {strides = array<i32>} : memref<120x80xf32, #tpu.memory_space<vmem>>, vector<40x80xf32>,
    %c1_280 = arith.constant 1 : index
    %c0_281 = arith.constant 0 : index
    %c0_282 = arith.constant 0 : index
    %283 = vector.load %arg6[%c1_280, %c0_281, %c0_282] : memref<3x64x120xf32, #tpu.memory_space<vmem>>, vector<1x64x120xf32>
    %284 = vector.shape_cast %283 : vector<1x64x120xf32> to vector<64x120xf32>
    %c0_283 = arith.constant 0 : index
    %c0_284 = arith.constant 0 : index
    %285 = vector.load %arg23[%c0_283, %c0_284] : memref<120x80xf32, #tpu.memory_space<vmem>>, vector<120x80xf32>
    %cst_285 = arith.constant dense<0.000000e+00> : vector<64x80xf32>
    %286 = tpu.matmul %284, %285, %cst_285 {dimension_numbers = #tpu.dot_dimension_numbers<[1], [0], [0], [1], [0, 0, 1, 1], [], []>} : vector<64x120xf32>, vector<120x80xf32>, vector<64x80xf32> -> vector<64x80xf32>
    %287 = arith.addf %276, %286 : vector<64x80xf32>
    %288 = vector.extract_strided_slice %266 {offsets = [0, 20], sizes = [40, 80], strides = [1, 1]} : vector<40x102xf32> to vector<40x80xf32>
    %c0_286 = arith.constant 0 : index
    %c0_287 = arith.constant 0 : index
    %289 = vector.load %arg23[%c0_286, %c0_287] : memref<120x80xf32, #tpu.memory_space<vmem>>, vector<40x80xf32>
    tpu.vector_store %arg23[%c0_286, %c0_287], %288 {strides = array<i32>} : memref<120x80xf32, #tpu.memory_space<vmem>>, vector<40x80xf32>,
    %290 = vector.extract_strided_slice %266 {offsets = [0, 21], sizes = [40, 80], strides = [1, 1]} : vector<40x102xf32> to vector<40x80xf32>
    %c40_288 = arith.constant 40 : index
    %c0_289 = arith.constant 0 : index
    %291 = vector.load %arg23[%c40_288, %c0_289] : memref<120x80xf32, #tpu.memory_space<vmem>>, vector<40x80xf32>
    tpu.vector_store %arg23[%c40_288, %c0_289], %290 {strides = array<i32>} : memref<120x80xf32, #tpu.memory_space<vmem>>, vector<40x80xf32>,
    %292 = vector.extract_strided_slice %266 {offsets = [0, 22], sizes = [40, 80], strides = [1, 1]} : vector<40x102xf32> to vector<40x80xf32>
    %c80_290 = arith.constant 80 : index
    %c0_291 = arith.constant 0 : index
    %293 = vector.load %arg23[%c80_290, %c0_291] : memref<120x80xf32, #tpu.memory_space<vmem>>, vector<40x80xf32>
    tpu.vector_store %arg23[%c80_290, %c0_291], %292 {strides = array<i32>} : memref<120x80xf32, #tpu.memory_space<vmem>>, vector<40x80xf32>,
    %c2_292 = arith.constant 2 : index
    %c0_293 = arith.constant 0 : index
    %c0_294 = arith.constant 0 : index
    %294 = vector.load %arg6[%c2_292, %c0_293, %c0_294] : memref<3x64x120xf32, #tpu.memory_space<vmem>>, vector<1x64x120xf32>
    %295 = vector.shape_cast %294 : vector<1x64x120xf32> to vector<64x120xf32>
    %c0_295 = arith.constant 0 : index
    %c0_296 = arith.constant 0 : index
    %296 = vector.load %arg23[%c0_295, %c0_296] : memref<120x80xf32, #tpu.memory_space<vmem>>, vector<120x80xf32>
    %cst_297 = arith.constant dense<0.000000e+00> : vector<64x80xf32>
    %297 = tpu.matmul %295, %296, %cst_297 {dimension_numbers = #tpu.dot_dimension_numbers<[1], [0], [0], [1], [0, 0, 1, 1], [], []>} : vector<64x120xf32>, vector<120x80xf32>, vector<64x80xf32> -> vector<64x80xf32>
    %298 = arith.addf %287, %297 : vector<64x80xf32>
    %c0_298 = arith.constant 0 : index
    %c0_299 = arith.constant 0 : index
    %299 = vector.load %arg7[%c0_298, %c0_299] : memref<64x1xf32, #tpu.memory_space<vmem>>, vector<64x1xf32>
    %300 = vector.broadcast %299 : vector<64x1xf32> to vector<64x80xf32>
    %301 = arith.addf %298, %300 : vector<64x80xf32>
    %cst_300 = arith.constant 0.000000e+00 : f32
    %302 = vector.broadcast %cst_300 : f32 to vector<64x80xf32>
    %303 = arith.maximumf %301, %302 : vector<64x80xf32>
    %c0_301 = arith.constant 0 : index
    %c0_302 = arith.constant 0 : index
    %304 = vector.load %arg17[%c0_301, %c0_302] : memref<80x102xf32, #tpu.memory_space<vmem>>, vector<80x102xf32>
    %cst_303 = arith.constant dense<0.000000e+00> : vector<64x102xf32>
    %305 = tpu.matmul %303, %304, %cst_303 {dimension_numbers = #tpu.dot_dimension_numbers<[1], [0], [0], [1], [0, 0, 1, 1], [], []>} : vector<64x80xf32>, vector<80x102xf32>, vector<64x102xf32> -> vector<64x102xf32>
    %306 = vector.extract_strided_slice %305 {offsets = [0, 0], sizes = [64, 80], strides = [1, 1]} : vector<64x102xf32> to vector<64x80xf32>
    %c0_304 = arith.constant 0 : index
    %c0_305 = arith.constant 0 : index
    %307 = vector.load %arg24[%c0_304, %c0_305] : memref<192x80xf32, #tpu.memory_space<vmem>>, vector<64x80xf32>
    tpu.vector_store %arg24[%c0_304, %c0_305], %306 {strides = array<i32>} : memref<192x80xf32, #tpu.memory_space<vmem>>, vector<64x80xf32>,
    %308 = vector.extract_strided_slice %305 {offsets = [0, 1], sizes = [64, 80], strides = [1, 1]} : vector<64x102xf32> to vector<64x80xf32>
    %c64_306 = arith.constant 64 : index
    %c0_307 = arith.constant 0 : index
    %309 = vector.load %arg24[%c64_306, %c0_307] : memref<192x80xf32, #tpu.memory_space<vmem>>, vector<64x80xf32>
    tpu.vector_store %arg24[%c64_306, %c0_307], %308 {strides = array<i32>} : memref<192x80xf32, #tpu.memory_space<vmem>>, vector<64x80xf32>,
    %310 = vector.extract_strided_slice %305 {offsets = [0, 2], sizes = [64, 80], strides = [1, 1]} : vector<64x102xf32> to vector<64x80xf32>
    %c128 = arith.constant 128 : index
    %c0_308 = arith.constant 0 : index
    %311 = vector.load %arg24[%c128, %c0_308] : memref<192x80xf32, #tpu.memory_space<vmem>>, vector<64x80xf32>
    tpu.vector_store %arg24[%c128, %c0_308], %310 {strides = array<i32>} : memref<192x80xf32, #tpu.memory_space<vmem>>, vector<64x80xf32>,
    %c0_309 = arith.constant 0 : index
    %c0_310 = arith.constant 0 : index
    %c0_311 = arith.constant 0 : index
    %312 = vector.load %arg8[%c0_309, %c0_310, %c0_311] : memref<3x40x192xf32, #tpu.memory_space<vmem>>, vector<1x40x192xf32>
    %313 = vector.shape_cast %312 : vector<1x40x192xf32> to vector<40x192xf32>
    %c0_312 = arith.constant 0 : index
    %c0_313 = arith.constant 0 : index
    %314 = vector.load %arg24[%c0_312, %c0_313] : memref<192x80xf32, #tpu.memory_space<vmem>>, vector<192x80xf32>
    %cst_314 = arith.constant dense<0.000000e+00> : vector<40x80xf32>
    %315 = tpu.matmul %313, %314, %cst_314 {dimension_numbers = #tpu.dot_dimension_numbers<[1], [0], [0], [1], [0, 0, 1, 1], [], []>} : vector<40x192xf32>, vector<192x80xf32>, vector<40x80xf32> -> vector<40x80xf32>
    %316 = vector.extract_strided_slice %305 {offsets = [0, 10], sizes = [64, 80], strides = [1, 1]} : vector<64x102xf32> to vector<64x80xf32>
    %c0_315 = arith.constant 0 : index
    %c0_316 = arith.constant 0 : index
    %317 = vector.load %arg24[%c0_315, %c0_316] : memref<192x80xf32, #tpu.memory_space<vmem>>, vector<64x80xf32>
    tpu.vector_store %arg24[%c0_315, %c0_316], %316 {strides = array<i32>} : memref<192x80xf32, #tpu.memory_space<vmem>>, vector<64x80xf32>,
    %318 = vector.extract_strided_slice %305 {offsets = [0, 11], sizes = [64, 80], strides = [1, 1]} : vector<64x102xf32> to vector<64x80xf32>
    %c64_317 = arith.constant 64 : index
    %c0_318 = arith.constant 0 : index
    %319 = vector.load %arg24[%c64_317, %c0_318] : memref<192x80xf32, #tpu.memory_space<vmem>>, vector<64x80xf32>
    tpu.vector_store %arg24[%c64_317, %c0_318], %318 {strides = array<i32>} : memref<192x80xf32, #tpu.memory_space<vmem>>, vector<64x80xf32>,
    %320 = vector.extract_strided_slice %305 {offsets = [0, 12], sizes = [64, 80], strides = [1, 1]} : vector<64x102xf32> to vector<64x80xf32>
    %c128_319 = arith.constant 128 : index
    %c0_320 = arith.constant 0 : index
    %321 = vector.load %arg24[%c128_319, %c0_320] : memref<192x80xf32, #tpu.memory_space<vmem>>, vector<64x80xf32>
    tpu.vector_store %arg24[%c128_319, %c0_320], %320 {strides = array<i32>} : memref<192x80xf32, #tpu.memory_space<vmem>>, vector<64x80xf32>,
    %c1_321 = arith.constant 1 : index
    %c0_322 = arith.constant 0 : index
    %c0_323 = arith.constant 0 : index
    %322 = vector.load %arg8[%c1_321, %c0_322, %c0_323] : memref<3x40x192xf32, #tpu.memory_space<vmem>>, vector<1x40x192xf32>
    %323 = vector.shape_cast %322 : vector<1x40x192xf32> to vector<40x192xf32>
    %c0_324 = arith.constant 0 : index
    %c0_325 = arith.constant 0 : index
    %324 = vector.load %arg24[%c0_324, %c0_325] : memref<192x80xf32, #tpu.memory_space<vmem>>, vector<192x80xf32>
    %cst_326 = arith.constant dense<0.000000e+00> : vector<40x80xf32>
    %325 = tpu.matmul %323, %324, %cst_326 {dimension_numbers = #tpu.dot_dimension_numbers<[1], [0], [0], [1], [0, 0, 1, 1], [], []>} : vector<40x192xf32>, vector<192x80xf32>, vector<40x80xf32> -> vector<40x80xf32>
    %326 = arith.addf %315, %325 : vector<40x80xf32>
    %327 = vector.extract_strided_slice %305 {offsets = [0, 20], sizes = [64, 80], strides = [1, 1]} : vector<64x102xf32> to vector<64x80xf32>
    %c0_327 = arith.constant 0 : index
    %c0_328 = arith.constant 0 : index
    %328 = vector.load %arg24[%c0_327, %c0_328] : memref<192x80xf32, #tpu.memory_space<vmem>>, vector<64x80xf32>
    tpu.vector_store %arg24[%c0_327, %c0_328], %327 {strides = array<i32>} : memref<192x80xf32, #tpu.memory_space<vmem>>, vector<64x80xf32>,
    %329 = vector.extract_strided_slice %305 {offsets = [0, 21], sizes = [64, 80], strides = [1, 1]} : vector<64x102xf32> to vector<64x80xf32>
    %c64_329 = arith.constant 64 : index
    %c0_330 = arith.constant 0 : index
    %330 = vector.load %arg24[%c64_329, %c0_330] : memref<192x80xf32, #tpu.memory_space<vmem>>, vector<64x80xf32>
    tpu.vector_store %arg24[%c64_329, %c0_330], %329 {strides = array<i32>} : memref<192x80xf32, #tpu.memory_space<vmem>>, vector<64x80xf32>,
    %331 = vector.extract_strided_slice %305 {offsets = [0, 22], sizes = [64, 80], strides = [1, 1]} : vector<64x102xf32> to vector<64x80xf32>
    %c128_331 = arith.constant 128 : index
    %c0_332 = arith.constant 0 : index
    %332 = vector.load %arg24[%c128_331, %c0_332] : memref<192x80xf32, #tpu.memory_space<vmem>>, vector<64x80xf32>
    tpu.vector_store %arg24[%c128_331, %c0_332], %331 {strides = array<i32>} : memref<192x80xf32, #tpu.memory_space<vmem>>, vector<64x80xf32>,
    %c2_333 = arith.constant 2 : index
    %c0_334 = arith.constant 0 : index
    %c0_335 = arith.constant 0 : index
    %333 = vector.load %arg8[%c2_333, %c0_334, %c0_335] : memref<3x40x192xf32, #tpu.memory_space<vmem>>, vector<1x40x192xf32>
    %334 = vector.shape_cast %333 : vector<1x40x192xf32> to vector<40x192xf32>
    %c0_336 = arith.constant 0 : index
    %c0_337 = arith.constant 0 : index
    %335 = vector.load %arg24[%c0_336, %c0_337] : memref<192x80xf32, #tpu.memory_space<vmem>>, vector<192x80xf32>
    %cst_338 = arith.constant dense<0.000000e+00> : vector<40x80xf32>
    %336 = tpu.matmul %334, %335, %cst_338 {dimension_numbers = #tpu.dot_dimension_numbers<[1], [0], [0], [1], [0, 0, 1, 1], [], []>} : vector<40x192xf32>, vector<192x80xf32>, vector<40x80xf32> -> vector<40x80xf32>
    %337 = arith.addf %326, %336 : vector<40x80xf32>
    %c0_339 = arith.constant 0 : index
    %c0_340 = arith.constant 0 : index
    %338 = vector.load %arg9[%c0_339, %c0_340] : memref<40x1xf32, #tpu.memory_space<vmem>>, vector<40x1xf32>
    %339 = vector.broadcast %338 : vector<40x1xf32> to vector<40x80xf32>
    %340 = arith.addf %337, %339 : vector<40x80xf32>
    %cst_341 = arith.constant 0.000000e+00 : f32
    %341 = vector.broadcast %cst_341 : f32 to vector<40x80xf32>
    %342 = arith.maximumf %340, %341 : vector<40x80xf32>
    %c0_342 = arith.constant 0 : index
    %c0_343 = arith.constant 0 : index
    %c0_344 = arith.constant 0 : index
    %343 = vector.load %arg18[%c0_342, %c0_343, %c0_344] : memref<4x80x38xf32, #tpu.memory_space<vmem>>, vector<1x80x38xf32>
    %344 = vector.shape_cast %343 : vector<1x80x38xf32> to vector<80x38xf32>
    %cst_345 = arith.constant dense<0.000000e+00> : vector<40x38xf32>
    %345 = tpu.matmul %342, %344, %cst_345 {dimension_numbers = #tpu.dot_dimension_numbers<[1], [0], [0], [1], [0, 0, 1, 1], [], []>} : vector<40x80xf32>, vector<80x38xf32>, vector<40x38xf32> -> vector<40x38xf32>
    %c1_346 = arith.constant 1 : index
    %c0_347 = arith.constant 0 : index
    %c0_348 = arith.constant 0 : index
    %346 = vector.load %arg18[%c1_346, %c0_347, %c0_348] : memref<4x80x38xf32, #tpu.memory_space<vmem>>, vector<1x80x38xf32>
    %347 = vector.shape_cast %346 : vector<1x80x38xf32> to vector<80x38xf32>
    %cst_349 = arith.constant dense<0.000000e+00> : vector<40x38xf32>
    %348 = tpu.matmul %342, %347, %cst_349 {dimension_numbers = #tpu.dot_dimension_numbers<[1], [0], [0], [1], [0, 0, 1, 1], [], []>} : vector<40x80xf32>, vector<80x38xf32>, vector<40x38xf32> -> vector<40x38xf32>
    %349 = arith.maximumf %345, %348 : vector<40x38xf32>
    %c2_350 = arith.constant 2 : index
    %c0_351 = arith.constant 0 : index
    %c0_352 = arith.constant 0 : index
    %350 = vector.load %arg18[%c2_350, %c0_351, %c0_352] : memref<4x80x38xf32, #tpu.memory_space<vmem>>, vector<1x80x38xf32>
    %351 = vector.shape_cast %350 : vector<1x80x38xf32> to vector<80x38xf32>
    %cst_353 = arith.constant dense<0.000000e+00> : vector<40x38xf32>
    %352 = tpu.matmul %342, %351, %cst_353 {dimension_numbers = #tpu.dot_dimension_numbers<[1], [0], [0], [1], [0, 0, 1, 1], [], []>} : vector<40x80xf32>, vector<80x38xf32>, vector<40x38xf32> -> vector<40x38xf32>
    %353 = arith.maximumf %349, %352 : vector<40x38xf32>
    %c3_354 = arith.constant 3 : index
    %c0_355 = arith.constant 0 : index
    %c0_356 = arith.constant 0 : index
    %354 = vector.load %arg18[%c3_354, %c0_355, %c0_356] : memref<4x80x38xf32, #tpu.memory_space<vmem>>, vector<1x80x38xf32>
    %355 = vector.shape_cast %354 : vector<1x80x38xf32> to vector<80x38xf32>
    %cst_357 = arith.constant dense<0.000000e+00> : vector<40x38xf32>
    %356 = tpu.matmul %342, %355, %cst_357 {dimension_numbers = #tpu.dot_dimension_numbers<[1], [0], [0], [1], [0, 0, 1, 1], [], []>} : vector<40x80xf32>, vector<80x38xf32>, vector<40x38xf32> -> vector<40x38xf32>
    %357 = arith.maximumf %353, %356 : vector<40x38xf32>
    %358 = vector.extract_strided_slice %357 {offsets = [0, 0], sizes = [40, 24], strides = [1, 1]} : vector<40x38xf32> to vector<40x24xf32>
    %c0_358 = arith.constant 0 : index
    %c0_359 = arith.constant 0 : index
    %359 = vector.load %arg25[%c0_358, %c0_359] : memref<120x24xf32, #tpu.memory_space<vmem>>, vector<40x24xf32>
    tpu.vector_store %arg25[%c0_358, %c0_359], %358 {strides = array<i32>} : memref<120x24xf32, #tpu.memory_space<vmem>>, vector<40x24xf32>,
    %360 = vector.extract_strided_slice %357 {offsets = [0, 1], sizes = [40, 24], strides = [1, 1]} : vector<40x38xf32> to vector<40x24xf32>
    %c40_360 = arith.constant 40 : index
    %c0_361 = arith.constant 0 : index
    %361 = vector.load %arg25[%c40_360, %c0_361] : memref<120x24xf32, #tpu.memory_space<vmem>>, vector<40x24xf32>
    tpu.vector_store %arg25[%c40_360, %c0_361], %360 {strides = array<i32>} : memref<120x24xf32, #tpu.memory_space<vmem>>, vector<40x24xf32>,
    %362 = vector.extract_strided_slice %357 {offsets = [0, 2], sizes = [40, 24], strides = [1, 1]} : vector<40x38xf32> to vector<40x24xf32>
    %c80_362 = arith.constant 80 : index
    %c0_363 = arith.constant 0 : index
    %363 = vector.load %arg25[%c80_362, %c0_363] : memref<120x24xf32, #tpu.memory_space<vmem>>, vector<40x24xf32>
    tpu.vector_store %arg25[%c80_362, %c0_363], %362 {strides = array<i32>} : memref<120x24xf32, #tpu.memory_space<vmem>>, vector<40x24xf32>,
    %c0_364 = arith.constant 0 : index
    %c0_365 = arith.constant 0 : index
    %c0_366 = arith.constant 0 : index
    %364 = vector.load %arg10[%c0_364, %c0_365, %c0_366] : memref<3x24x120xf32, #tpu.memory_space<vmem>>, vector<1x24x120xf32>
    %365 = vector.shape_cast %364 : vector<1x24x120xf32> to vector<24x120xf32>
    %c0_367 = arith.constant 0 : index
    %c0_368 = arith.constant 0 : index
    %366 = vector.load %arg25[%c0_367, %c0_368] : memref<120x24xf32, #tpu.memory_space<vmem>>, vector<120x24xf32>
    %cst_369 = arith.constant dense<0.000000e+00> : vector<24x24xf32>
    %367 = tpu.matmul %365, %366, %cst_369 {dimension_numbers = #tpu.dot_dimension_numbers<[1], [0], [0], [1], [0, 0, 1, 1], [], []>} : vector<24x120xf32>, vector<120x24xf32>, vector<24x24xf32> -> vector<24x24xf32>
    %368 = vector.extract_strided_slice %357 {offsets = [0, 6], sizes = [40, 24], strides = [1, 1]} : vector<40x38xf32> to vector<40x24xf32>
    %c0_370 = arith.constant 0 : index
    %c0_371 = arith.constant 0 : index
    %369 = vector.load %arg25[%c0_370, %c0_371] : memref<120x24xf32, #tpu.memory_space<vmem>>, vector<40x24xf32>
    tpu.vector_store %arg25[%c0_370, %c0_371], %368 {strides = array<i32>} : memref<120x24xf32, #tpu.memory_space<vmem>>, vector<40x24xf32>,
    %370 = vector.extract_strided_slice %357 {offsets = [0, 7], sizes = [40, 24], strides = [1, 1]} : vector<40x38xf32> to vector<40x24xf32>
    %c40_372 = arith.constant 40 : index
    %c0_373 = arith.constant 0 : index
    %371 = vector.load %arg25[%c40_372, %c0_373] : memref<120x24xf32, #tpu.memory_space<vmem>>, vector<40x24xf32>
    tpu.vector_store %arg25[%c40_372, %c0_373], %370 {strides = array<i32>} : memref<120x24xf32, #tpu.memory_space<vmem>>, vector<40x24xf32>,
    %372 = vector.extract_strided_slice %357 {offsets = [0, 8], sizes = [40, 24], strides = [1, 1]} : vector<40x38xf32> to vector<40x24xf32>
    %c80_374 = arith.constant 80 : index
    %c0_375 = arith.constant 0 : index
    %373 = vector.load %arg25[%c80_374, %c0_375] : memref<120x24xf32, #tpu.memory_space<vmem>>, vector<40x24xf32>
    tpu.vector_store %arg25[%c80_374, %c0_375], %372 {strides = array<i32>} : memref<120x24xf32, #tpu.memory_space<vmem>>, vector<40x24xf32>,
    %c1_376 = arith.constant 1 : index
    %c0_377 = arith.constant 0 : index
    %c0_378 = arith.constant 0 : index
    %374 = vector.load %arg10[%c1_376, %c0_377, %c0_378] : memref<3x24x120xf32, #tpu.memory_space<vmem>>, vector<1x24x120xf32>
    %375 = vector.shape_cast %374 : vector<1x24x120xf32> to vector<24x120xf32>
    %c0_379 = arith.constant 0 : index
    %c0_380 = arith.constant 0 : index
    %376 = vector.load %arg25[%c0_379, %c0_380] : memref<120x24xf32, #tpu.memory_space<vmem>>, vector<120x24xf32>
    %cst_381 = arith.constant dense<0.000000e+00> : vector<24x24xf32>
    %377 = tpu.matmul %375, %376, %cst_381 {dimension_numbers = #tpu.dot_dimension_numbers<[1], [0], [0], [1], [0, 0, 1, 1], [], []>} : vector<24x120xf32>, vector<120x24xf32>, vector<24x24xf32> -> vector<24x24xf32>
    %378 = arith.addf %367, %377 : vector<24x24xf32>
    %379 = vector.extract_strided_slice %357 {offsets = [0, 12], sizes = [40, 24], strides = [1, 1]} : vector<40x38xf32> to vector<40x24xf32>
    %c0_382 = arith.constant 0 : index
    %c0_383 = arith.constant 0 : index
    %380 = vector.load %arg25[%c0_382, %c0_383] : memref<120x24xf32, #tpu.memory_space<vmem>>, vector<40x24xf32>
    tpu.vector_store %arg25[%c0_382, %c0_383], %379 {strides = array<i32>} : memref<120x24xf32, #tpu.memory_space<vmem>>, vector<40x24xf32>,
    %381 = vector.extract_strided_slice %357 {offsets = [0, 13], sizes = [40, 24], strides = [1, 1]} : vector<40x38xf32> to vector<40x24xf32>
    %c40_384 = arith.constant 40 : index
    %c0_385 = arith.constant 0 : index
    %382 = vector.load %arg25[%c40_384, %c0_385] : memref<120x24xf32, #tpu.memory_space<vmem>>, vector<40x24xf32>
    tpu.vector_store %arg25[%c40_384, %c0_385], %381 {strides = array<i32>} : memref<120x24xf32, #tpu.memory_space<vmem>>, vector<40x24xf32>,
    %383 = vector.extract_strided_slice %357 {offsets = [0, 14], sizes = [40, 24], strides = [1, 1]} : vector<40x38xf32> to vector<40x24xf32>
    %c80_386 = arith.constant 80 : index
    %c0_387 = arith.constant 0 : index
    %384 = vector.load %arg25[%c80_386, %c0_387] : memref<120x24xf32, #tpu.memory_space<vmem>>, vector<40x24xf32>
    tpu.vector_store %arg25[%c80_386, %c0_387], %383 {strides = array<i32>} : memref<120x24xf32, #tpu.memory_space<vmem>>, vector<40x24xf32>,
    %c2_388 = arith.constant 2 : index
    %c0_389 = arith.constant 0 : index
    %c0_390 = arith.constant 0 : index
    %385 = vector.load %arg10[%c2_388, %c0_389, %c0_390] : memref<3x24x120xf32, #tpu.memory_space<vmem>>, vector<1x24x120xf32>
    %386 = vector.shape_cast %385 : vector<1x24x120xf32> to vector<24x120xf32>
    %c0_391 = arith.constant 0 : index
    %c0_392 = arith.constant 0 : index
    %387 = vector.load %arg25[%c0_391, %c0_392] : memref<120x24xf32, #tpu.memory_space<vmem>>, vector<120x24xf32>
    %cst_393 = arith.constant dense<0.000000e+00> : vector<24x24xf32>
    %388 = tpu.matmul %386, %387, %cst_393 {dimension_numbers = #tpu.dot_dimension_numbers<[1], [0], [0], [1], [0, 0, 1, 1], [], []>} : vector<24x120xf32>, vector<120x24xf32>, vector<24x24xf32> -> vector<24x24xf32>
    %389 = arith.addf %378, %388 : vector<24x24xf32>
    %c0_394 = arith.constant 0 : index
    %c0_395 = arith.constant 0 : index
    %390 = vector.load %arg11[%c0_394, %c0_395] : memref<24x1xf32, #tpu.memory_space<vmem>>, vector<24x1xf32>
    %391 = vector.broadcast %390 : vector<24x1xf32> to vector<24x24xf32>
    %392 = arith.addf %389, %391 : vector<24x24xf32>
    %cst_396 = arith.constant 0.000000e+00 : f32
    %393 = vector.broadcast %cst_396 : f32 to vector<24x24xf32>
    %394 = arith.maximumf %392, %393 : vector<24x24xf32>
    %c0_397 = arith.constant 0 : index
    %c0_398 = arith.constant 0 : index
    %c0_399 = arith.constant 0 : index
    %395 = vector.load %arg19[%c0_397, %c0_398, %c0_399] : memref<4x24x18xf32, #tpu.memory_space<vmem>>, vector<1x24x18xf32>
    %396 = vector.shape_cast %395 : vector<1x24x18xf32> to vector<24x18xf32>
    %cst_400 = arith.constant dense<0.000000e+00> : vector<24x18xf32>
    %397 = tpu.matmul %394, %396, %cst_400 {dimension_numbers = #tpu.dot_dimension_numbers<[1], [0], [0], [1], [0, 0, 1, 1], [], []>} : vector<24x24xf32>, vector<24x18xf32>, vector<24x18xf32> -> vector<24x18xf32>
    %c1_401 = arith.constant 1 : index
    %c0_402 = arith.constant 0 : index
    %c0_403 = arith.constant 0 : index
    %398 = vector.load %arg19[%c1_401, %c0_402, %c0_403] : memref<4x24x18xf32, #tpu.memory_space<vmem>>, vector<1x24x18xf32>
    %399 = vector.shape_cast %398 : vector<1x24x18xf32> to vector<24x18xf32>
    %cst_404 = arith.constant dense<0.000000e+00> : vector<24x18xf32>
    %400 = tpu.matmul %394, %399, %cst_404 {dimension_numbers = #tpu.dot_dimension_numbers<[1], [0], [0], [1], [0, 0, 1, 1], [], []>} : vector<24x24xf32>, vector<24x18xf32>, vector<24x18xf32> -> vector<24x18xf32>
    %401 = arith.maximumf %397, %400 : vector<24x18xf32>
    %c2_405 = arith.constant 2 : index
    %c0_406 = arith.constant 0 : index
    %c0_407 = arith.constant 0 : index
    %402 = vector.load %arg19[%c2_405, %c0_406, %c0_407] : memref<4x24x18xf32, #tpu.memory_space<vmem>>, vector<1x24x18xf32>
    %403 = vector.shape_cast %402 : vector<1x24x18xf32> to vector<24x18xf32>
    %cst_408 = arith.constant dense<0.000000e+00> : vector<24x18xf32>
    %404 = tpu.matmul %394, %403, %cst_408 {dimension_numbers = #tpu.dot_dimension_numbers<[1], [0], [0], [1], [0, 0, 1, 1], [], []>} : vector<24x24xf32>, vector<24x18xf32>, vector<24x18xf32> -> vector<24x18xf32>
    %405 = arith.maximumf %401, %404 : vector<24x18xf32>
    %c3_409 = arith.constant 3 : index
    %c0_410 = arith.constant 0 : index
    %c0_411 = arith.constant 0 : index
    %406 = vector.load %arg19[%c3_409, %c0_410, %c0_411] : memref<4x24x18xf32, #tpu.memory_space<vmem>>, vector<1x24x18xf32>
    %407 = vector.shape_cast %406 : vector<1x24x18xf32> to vector<24x18xf32>
    %cst_412 = arith.constant dense<0.000000e+00> : vector<24x18xf32>
    %408 = tpu.matmul %394, %407, %cst_412 {dimension_numbers = #tpu.dot_dimension_numbers<[1], [0], [0], [1], [0, 0, 1, 1], [], []>} : vector<24x24xf32>, vector<24x18xf32>, vector<24x18xf32> -> vector<24x18xf32>
    %409 = arith.maximumf %405, %408 : vector<24x18xf32>
    %410 = vector.extract_strided_slice %409 {offsets = [0, 0], sizes = [24, 8], strides = [1, 1]} : vector<24x18xf32> to vector<24x8xf32>
    %c0_413 = arith.constant 0 : index
    %c0_414 = arith.constant 0 : index
    %411 = vector.load %arg26[%c0_413, %c0_414] : memref<72x8xf32, #tpu.memory_space<vmem>>, vector<24x8xf32>
    tpu.vector_store %arg26[%c0_413, %c0_414], %410 {strides = array<i32>} : memref<72x8xf32, #tpu.memory_space<vmem>>, vector<24x8xf32>,
    %412 = vector.extract_strided_slice %409 {offsets = [0, 1], sizes = [24, 8], strides = [1, 1]} : vector<24x18xf32> to vector<24x8xf32>
    %c24_415 = arith.constant 24 : index
    %c0_416 = arith.constant 0 : index
    %413 = vector.load %arg26[%c24_415, %c0_416] : memref<72x8xf32, #tpu.memory_space<vmem>>, vector<24x8xf32>
    tpu.vector_store %arg26[%c24_415, %c0_416], %412 {strides = array<i32>} : memref<72x8xf32, #tpu.memory_space<vmem>>, vector<24x8xf32>,
    %414 = vector.extract_strided_slice %409 {offsets = [0, 2], sizes = [24, 8], strides = [1, 1]} : vector<24x18xf32> to vector<24x8xf32>
    %c48_417 = arith.constant 48 : index
    %c0_418 = arith.constant 0 : index
    %415 = vector.load %arg26[%c48_417, %c0_418] : memref<72x8xf32, #tpu.memory_space<vmem>>, vector<24x8xf32>
    tpu.vector_store %arg26[%c48_417, %c0_418], %414 {strides = array<i32>} : memref<72x8xf32, #tpu.memory_space<vmem>>, vector<24x8xf32>,
    %c0_419 = arith.constant 0 : index
    %c0_420 = arith.constant 0 : index
    %c0_421 = arith.constant 0 : index
    %416 = vector.load %arg12[%c0_419, %c0_420, %c0_421] : memref<3x16x72xf32, #tpu.memory_space<vmem>>, vector<1x16x72xf32>
    %417 = vector.shape_cast %416 : vector<1x16x72xf32> to vector<16x72xf32>
    %c0_422 = arith.constant 0 : index
    %c0_423 = arith.constant 0 : index
    %418 = vector.load %arg26[%c0_422, %c0_423] : memref<72x8xf32, #tpu.memory_space<vmem>>, vector<72x8xf32>
    %cst_424 = arith.constant dense<0.000000e+00> : vector<16x8xf32>
    %419 = tpu.matmul %417, %418, %cst_424 {dimension_numbers = #tpu.dot_dimension_numbers<[1], [0], [0], [1], [0, 0, 1, 1], [], []>} : vector<16x72xf32>, vector<72x8xf32>, vector<16x8xf32> -> vector<16x8xf32>
    %420 = vector.extract_strided_slice %409 {offsets = [0, 4], sizes = [24, 8], strides = [1, 1]} : vector<24x18xf32> to vector<24x8xf32>
    %c0_425 = arith.constant 0 : index
    %c0_426 = arith.constant 0 : index
    %421 = vector.load %arg26[%c0_425, %c0_426] : memref<72x8xf32, #tpu.memory_space<vmem>>, vector<24x8xf32>
    tpu.vector_store %arg26[%c0_425, %c0_426], %420 {strides = array<i32>} : memref<72x8xf32, #tpu.memory_space<vmem>>, vector<24x8xf32>,
    %422 = vector.extract_strided_slice %409 {offsets = [0, 5], sizes = [24, 8], strides = [1, 1]} : vector<24x18xf32> to vector<24x8xf32>
    %c24_427 = arith.constant 24 : index
    %c0_428 = arith.constant 0 : index
    %423 = vector.load %arg26[%c24_427, %c0_428] : memref<72x8xf32, #tpu.memory_space<vmem>>, vector<24x8xf32>
    tpu.vector_store %arg26[%c24_427, %c0_428], %422 {strides = array<i32>} : memref<72x8xf32, #tpu.memory_space<vmem>>, vector<24x8xf32>,
    %424 = vector.extract_strided_slice %409 {offsets = [0, 6], sizes = [24, 8], strides = [1, 1]} : vector<24x18xf32> to vector<24x8xf32>
    %c48_429 = arith.constant 48 : index
    %c0_430 = arith.constant 0 : index
    %425 = vector.load %arg26[%c48_429, %c0_430] : memref<72x8xf32, #tpu.memory_space<vmem>>, vector<24x8xf32>
    tpu.vector_store %arg26[%c48_429, %c0_430], %424 {strides = array<i32>} : memref<72x8xf32, #tpu.memory_space<vmem>>, vector<24x8xf32>,
    %c1_431 = arith.constant 1 : index
    %c0_432 = arith.constant 0 : index
    %c0_433 = arith.constant 0 : index
    %426 = vector.load %arg12[%c1_431, %c0_432, %c0_433] : memref<3x16x72xf32, #tpu.memory_space<vmem>>, vector<1x16x72xf32>
    %427 = vector.shape_cast %426 : vector<1x16x72xf32> to vector<16x72xf32>
    %c0_434 = arith.constant 0 : index
    %c0_435 = arith.constant 0 : index
    %428 = vector.load %arg26[%c0_434, %c0_435] : memref<72x8xf32, #tpu.memory_space<vmem>>, vector<72x8xf32>
    %cst_436 = arith.constant dense<0.000000e+00> : vector<16x8xf32>
    %429 = tpu.matmul %427, %428, %cst_436 {dimension_numbers = #tpu.dot_dimension_numbers<[1], [0], [0], [1], [0, 0, 1, 1], [], []>} : vector<16x72xf32>, vector<72x8xf32>, vector<16x8xf32> -> vector<16x8xf32>
    %430 = arith.addf %419, %429 : vector<16x8xf32>
    %431 = vector.extract_strided_slice %409 {offsets = [0, 8], sizes = [24, 8], strides = [1, 1]} : vector<24x18xf32> to vector<24x8xf32>
    %c0_437 = arith.constant 0 : index
    %c0_438 = arith.constant 0 : index
    %432 = vector.load %arg26[%c0_437, %c0_438] : memref<72x8xf32, #tpu.memory_space<vmem>>, vector<24x8xf32>
    tpu.vector_store %arg26[%c0_437, %c0_438], %431 {strides = array<i32>} : memref<72x8xf32, #tpu.memory_space<vmem>>, vector<24x8xf32>,
    %433 = vector.extract_strided_slice %409 {offsets = [0, 9], sizes = [24, 8], strides = [1, 1]} : vector<24x18xf32> to vector<24x8xf32>
    %c24_439 = arith.constant 24 : index
    %c0_440 = arith.constant 0 : index
    %434 = vector.load %arg26[%c24_439, %c0_440] : memref<72x8xf32, #tpu.memory_space<vmem>>, vector<24x8xf32>
    tpu.vector_store %arg26[%c24_439, %c0_440], %433 {strides = array<i32>} : memref<72x8xf32, #tpu.memory_space<vmem>>, vector<24x8xf32>,
    %435 = vector.extract_strided_slice %409 {offsets = [0, 10], sizes = [24, 8], strides = [1, 1]} : vector<24x18xf32> to vector<24x8xf32>
    %c48_441 = arith.constant 48 : index
    %c0_442 = arith.constant 0 : index
    %436 = vector.load %arg26[%c48_441, %c0_442] : memref<72x8xf32, #tpu.memory_space<vmem>>, vector<24x8xf32>
    tpu.vector_store %arg26[%c48_441, %c0_442], %435 {strides = array<i32>} : memref<72x8xf32, #tpu.memory_space<vmem>>, vector<24x8xf32>,
    %c2_443 = arith.constant 2 : index
    %c0_444 = arith.constant 0 : index
    %c0_445 = arith.constant 0 : index
    %437 = vector.load %arg12[%c2_443, %c0_444, %c0_445] : memref<3x16x72xf32, #tpu.memory_space<vmem>>, vector<1x16x72xf32>
    %438 = vector.shape_cast %437 : vector<1x16x72xf32> to vector<16x72xf32>
    %c0_446 = arith.constant 0 : index
    %c0_447 = arith.constant 0 : index
    %439 = vector.load %arg26[%c0_446, %c0_447] : memref<72x8xf32, #tpu.memory_space<vmem>>, vector<72x8xf32>
    %cst_448 = arith.constant dense<0.000000e+00> : vector<16x8xf32>
    %440 = tpu.matmul %438, %439, %cst_448 {dimension_numbers = #tpu.dot_dimension_numbers<[1], [0], [0], [1], [0, 0, 1, 1], [], []>} : vector<16x72xf32>, vector<72x8xf32>, vector<16x8xf32> -> vector<16x8xf32>
    %441 = arith.addf %430, %440 : vector<16x8xf32>
    %c0_449 = arith.constant 0 : index
    %c0_450 = arith.constant 0 : index
    %442 = vector.load %arg13[%c0_449, %c0_450] : memref<16x1xf32, #tpu.memory_space<vmem>>, vector<16x1xf32>
    %443 = vector.broadcast %442 : vector<16x1xf32> to vector<16x8xf32>
    %444 = arith.addf %441, %443 : vector<16x8xf32>
    %cst_451 = arith.constant 0.000000e+00 : f32
    %445 = vector.broadcast %cst_451 : f32 to vector<16x8xf32>
    %446 = arith.maximumf %444, %445 : vector<16x8xf32>
    %c0_452 = arith.constant 0 : index
    %c0_453 = arith.constant 0 : index
    %447 = vector.load %arg20[%c0_452, %c0_453] : memref<8x4xf32, #tpu.memory_space<vmem>>, vector<8x4xf32>
    %cst_454 = arith.constant dense<0.000000e+00> : vector<16x4xf32>
    %448 = tpu.matmul %446, %447, %cst_454 {dimension_numbers = #tpu.dot_dimension_numbers<[1], [0], [0], [1], [0, 0, 1, 1], [], []>} : vector<16x8xf32>, vector<8x4xf32>, vector<16x4xf32> -> vector<16x4xf32>
    %c0_455 = arith.constant 0 : index
    %c0_456 = arith.constant 0 : index
    %c0_457 = arith.constant 0 : index
    %449 = vector.load %arg14[%c0_455, %c0_456, %c0_457] : memref<1x1x16xf32, #tpu.memory_space<vmem>>, vector<1x1x16xf32>
    %450 = vector.shape_cast %449 : vector<1x1x16xf32> to vector<1x16xf32>
    %cst_458 = arith.constant dense<0.000000e+00> : vector<1x4xf32>
    %451 = tpu.matmul %450, %448, %cst_458 {dimension_numbers = #tpu.dot_dimension_numbers<[1], [0], [0], [1], [0, 0, 1, 1], [], []>} : vector<1x16xf32>, vector<16x4xf32>, vector<1x4xf32> -> vector<1x4xf32>
    %c0_459 = arith.constant 0 : index
    %c0_460 = arith.constant 0 : index
    %452 = vector.load %arg15[%c0_459, %c0_460] : memref<1x1xf32, #tpu.memory_space<vmem>>, vector<1x1xf32>
    %453 = vector.broadcast %452 : vector<1x1xf32> to vector<1x4xf32>
    %454 = arith.addf %451, %453 : vector<1x4xf32>
    %c0_461 = arith.constant 0 : index
    %c0_462 = arith.constant 0 : index
    %c0_463 = arith.constant 0 : index
    %455 = vector.load %arg21[%c0_461, %c0_462, %c0_463] : memref<1x1x4xf32, #tpu.memory_space<vmem>>, vector<1x1x4xf32>
    %456 = vector.shape_cast %455 : vector<1x1x4xf32> to vector<1x4xf32>
    %457 = vector.shape_cast %454 : vector<1x4xf32> to vector<1x1x4xf32>
    tpu.vector_store %arg21[%c0_461, %c0_462, %c0_463], %457 {strides = array<i32>} : memref<1x1x4xf32, #tpu.memory_space<vmem>>, vector<1x1x4xf32>,
    return
  }
  func.func @transform_0(%arg0: i32) -> (i32, i32, i32) {
    %c0_i32 = arith.constant 0 : i32
    %c0_i32_0 = arith.constant 0 : i32
    %c0_i32_1 = arith.constant 0 : i32
    return %arg0, %c0_i32, %c0_i32_0 : i32, i32, i32
  }
  func.func @transform_1(%arg0: i32) -> (i32, i32, i32) {
    %c0_i32 = arith.constant 0 : i32
    %c0_i32_0 = arith.constant 0 : i32
    %c0_i32_1 = arith.constant 0 : i32
    %c0_i32_2 = arith.constant 0 : i32
    return %c0_i32, %c0_i32_0, %c0_i32_1 : i32, i32, i32
  }
  func.func @transform_2(%arg0: i32) -> (i32, i32) {
    %c0_i32 = arith.constant 0 : i32
    %c0_i32_0 = arith.constant 0 : i32
    %c0_i32_1 = arith.constant 0 : i32
    return %c0_i32, %c0_i32_0 : i32, i32
  }
  func.func @transform_3(%arg0: i32) -> (i32, i32, i32) {
    %c0_i32 = arith.constant 0 : i32
    %c0_i32_0 = arith.constant 0 : i32
    %c0_i32_1 = arith.constant 0 : i32
    %c0_i32_2 = arith.constant 0 : i32
    return %c0_i32, %c0_i32_0, %c0_i32_1 : i32, i32, i32
  }
  func.func @transform_4(%arg0: i32) -> (i32, i32) {
    %c0_i32 = arith.constant 0 : i32
    %c0_i32_0 = arith.constant 0 : i32
    %c0_i32_1 = arith.constant 0 : i32
    return %c0_i32, %c0_i32_0 : i32, i32
  }
  func.func @transform_5(%arg0: i32) -> (i32, i32, i32) {
    %c0_i32 = arith.constant 0 : i32
    %c0_i32_0 = arith.constant 0 : i32
    %c0_i32_1 = arith.constant 0 : i32
    %c0_i32_2 = arith.constant 0 : i32
    return %c0_i32, %c0_i32_0, %c0_i32_1 : i32, i32, i32
  }
  func.func @transform_6(%arg0: i32) -> (i32, i32) {
    %c0_i32 = arith.constant 0 : i32
    %c0_i32_0 = arith.constant 0 : i32
    %c0_i32_1 = arith.constant 0 : i32
    return %c0_i32, %c0_i32_0 : i32, i32
  }
  func.func @transform_7(%arg0: i32) -> (i32, i32, i32) {
    %c0_i32 = arith.constant 0 : i32
    %c0_i32_0 = arith.constant 0 : i32
    %c0_i32_1 = arith.constant 0 : i32
    %c0_i32_2 = arith.constant 0 : i32
    return %c0_i32, %c0_i32_0, %c0_i32_1 : i32, i32, i32
  }
  func.func @transform_8(%arg0: i32) -> (i32, i32) {
    %c0_i32 = arith.constant 0 : i32
    %c0_i32_0 = arith.constant 0 : i32
    %c0_i32_1 = arith.constant 0 : i32
    return %c0_i32, %c0_i32_0 : i32, i32
  }
  func.func @transform_9(%arg0: i32) -> (i32, i32, i32) {
    %c0_i32 = arith.constant 0 : i32
    %c0_i32_0 = arith.constant 0 : i32
    %c0_i32_1 = arith.constant 0 : i32
    %c0_i32_2 = arith.constant 0 : i32
    return %c0_i32, %c0_i32_0, %c0_i32_1 : i32, i32, i32
  }
  func.func @transform_10(%arg0: i32) -> (i32, i32) {
    %c0_i32 = arith.constant 0 : i32
    %c0_i32_0 = arith.constant 0 : i32
    %c0_i32_1 = arith.constant 0 : i32
    return %c0_i32, %c0_i32_0 : i32, i32
  }
  func.func @transform_11(%arg0: i32) -> (i32, i32, i32) {
    %c0_i32 = arith.constant 0 : i32
    %c0_i32_0 = arith.constant 0 : i32
    %c0_i32_1 = arith.constant 0 : i32
    %c0_i32_2 = arith.constant 0 : i32
    return %c0_i32, %c0_i32_0, %c0_i32_1 : i32, i32, i32
  }
  func.func @transform_12(%arg0: i32) -> (i32, i32) {
    %c0_i32 = arith.constant 0 : i32
    %c0_i32_0 = arith.constant 0 : i32
    %c0_i32_1 = arith.constant 0 : i32
    return %c0_i32, %c0_i32_0 : i32, i32
  }
  func.func @transform_13(%arg0: i32) -> (i32, i32, i32) {
    %c0_i32 = arith.constant 0 : i32
    %c0_i32_0 = arith.constant 0 : i32
    %c0_i32_1 = arith.constant 0 : i32
    %c0_i32_2 = arith.constant 0 : i32
    return %c0_i32, %c0_i32_0, %c0_i32_1 : i32, i32, i32
  }
  func.func @transform_14(%arg0: i32) -> (i32, i32) {
    %c0_i32 = arith.constant 0 : i32
    %c0_i32_0 = arith.constant 0 : i32
    %c0_i32_1 = arith.constant 0 : i32
    return %c0_i32, %c0_i32_0 : i32, i32
  }
  func.func @transform_15(%arg0: i32) -> (i32, i32, i32) {
    %c0_i32 = arith.constant 0 : i32
    %c0_i32_0 = arith.constant 0 : i32
    %c0_i32_1 = arith.constant 0 : i32
    %c0_i32_2 = arith.constant 0 : i32
    return %c0_i32, %c0_i32_0, %c0_i32_1 : i32, i32, i32
  }
  func.func @transform_16(%arg0: i32) -> (i32, i32) {
    %c0_i32 = arith.constant 0 : i32
    %c0_i32_0 = arith.constant 0 : i32
    %c0_i32_1 = arith.constant 0 : i32
    return %c0_i32, %c0_i32_0 : i32, i32
  }
  func.func @transform_17(%arg0: i32) -> (i32, i32, i32) {
    %c0_i32 = arith.constant 0 : i32
    %c0_i32_0 = arith.constant 0 : i32
    %c0_i32_1 = arith.constant 0 : i32
    %c0_i32_2 = arith.constant 0 : i32
    return %c0_i32, %c0_i32_0, %c0_i32_1 : i32, i32, i32
  }
  func.func @transform_18(%arg0: i32) -> (i32, i32, i32) {
    %c0_i32 = arith.constant 0 : i32
    %c0_i32_0 = arith.constant 0 : i32
    %c0_i32_1 = arith.constant 0 : i32
    %c0_i32_2 = arith.constant 0 : i32
    return %c0_i32, %c0_i32_0, %c0_i32_1 : i32, i32, i32
  }
  func.func @transform_19(%arg0: i32) -> (i32, i32) {
    %c0_i32 = arith.constant 0 : i32
    %c0_i32_0 = arith.constant 0 : i32
    %c0_i32_1 = arith.constant 0 : i32
    return %c0_i32, %c0_i32_0 : i32, i32
  }
  func.func @transform_20(%arg0: i32) -> (i32, i32, i32) {
    %c0_i32 = arith.constant 0 : i32
    %c0_i32_0 = arith.constant 0 : i32
    %c0_i32_1 = arith.constant 0 : i32
    return %arg0, %c0_i32, %c0_i32_0 : i32, i32, i32
  }
}

</mosaic_0001>

<bundles_post_ra>
// kernel: _lambda_.1
= control target key start
LH: loop header
LB: loop body
LE: loop exit
PB: predicated region body
PF: predicated region fallthrough
CT: control target
= control target key end

     0   :  { %s12497_s0 = inlined_call_operand.vmem [shape: f32[2,8,584], index: 0, kind: input, shape index: {}]   ;;  %s12498_s1 = inlined_call_operand.vmem [shape: f32[9,40,72], index: 1, kind: input, shape index: {}]   ;;  %s12499_s2 = inlined_call_operand.hbm [shape: f32[40,1], index: 2, kind: input, shape index: {}]   ;;  %s12500_s3 = inlined_call_operand.hbm [shape: f32[3,40,120], index: 3, kind: input, shape index: {}]   ;;  %s12501_s4 = inlined_call_operand.hbm [shape: f32[40,1], index: 4, kind: input, shape index: {}]   ;;  %s12502_s5 = inlined_call_operand.vmem [shape: f32[3,64,120], index: 5, kind: input, shape index: {}]   ;;  %s12503_s6 = inlined_call_operand.hbm [shape: f32[64,1], index: 6, kind: input, shape index: {}]   ;;  %s12504_s7 = inlined_call_operand.vmem [shape: f32[3,40,192], index: 7, kind: input, shape index: {}]   ;;  %s12505_s8 = inlined_call_operand.hbm [shape: f32[40,1], index: 8, kind: input, shape index: {}]   ;;  %s12506_s9 = inlined_call_operand.hbm [shape: f32[3,24,120], index: 9, kind: input, shape index: {}]   ;;  %s12507_s10 = inlined_call_operand.hbm [shape: f32[24,1], index: 10, kind: input, shape index: {}]   ;;  %s12508_s11 = inlined_call_operand.hbm [shape: f32[3,16,72], index: 11, kind: input, shape index: {}]   ;;  %s12509_s12 = inlined_call_operand.hbm [shape: f32[16,1], index: 12, kind: input, shape index: {}]   ;;  %s12510_s13 = inlined_call_operand.vmem [shape: f32[1,1,16], index: 13, kind: input, shape index: {}]   ;;  %s12511_s14 = inlined_call_operand.<no memory space> [shape: f32[1,1], index: 14, kind: input, shape index: {}]   ;;  %s12512_s15 = inlined_call_operand.hbm [shape: f32[4,384,102], index: 15, kind: input, shape index: {}]   ;;  %s12513_s16 = inlined_call_operand.hbm [shape: f32[80,102], index: 16, kind: input, shape index: {}]   ;;  %s12514_s17 = inlined_call_operand.vmem [shape: f32[4,80,38], index: 17, kind: input, shape index: {}]   ;;  %s12515_s18 = inlined_call_operand.hbm [shape: f32[4,24,18], index: 18, kind: input, shape index: {}]   ;;  %s12516_s19 = inlined_call_operand.hbm [shape: f32[8,4], index: 19, kind: input, shape index: {}]   ;;  %s12517_s20 = inlined_call_operand.vmem [shape: f32[2,1,4], index: 20, kind: output, shape index: {}]  }
   0x1   :  { %12544 = sst [smem:[#allocation93_spill]] %s12497_s0  ;;  %v25_v0 = vstv %s12511_s14 }
   0x2   :  { %12545 = sst [smem:[#allocation94_spill]] %s12498_s1  ;;  %26 = vst [vmem:[#allocation7] sm:$0x1] %v25_v0 }
   0x3   :  { %12546 = sst [smem:[#allocation95_spill]] %s12499_s2 }
   0x4   :  { %12547 = sst [smem:[#allocation96_spill]] %s12500_s3 }
   0x5   :  { %12548 = sst [smem:[#allocation97_spill]] %s12501_s4 }
   0x6   :  { %12549 = sst [smem:[#allocation98_spill]] %s12503_s6 }
   0x7   :  { %12550 = sst [smem:[#allocation99_spill]] %s12506_s9 }
   0x8   :  { %12551 = sst [smem:[#allocation100_spill]] %s12508_s11 }
   0x9   :  { %12552 = sst [smem:[#allocation101_spill]] %s12512_s15 }
   0xa   :  { %27 = vsyncpa [#allocation9], 0 }
   0xb   :  { %28 = vsyncpa [#allocation11], 0 }
   0xc   :  { %29 = vsyncpa [#allocation14], 0 }
   0xd   :  { %30 = vsyncpa [#allocation17], 0 }
   0xe   :  { %31 = vsyncpa [#allocation20], 0 }
   0xf   :  { %32 = vsyncpa [#allocation23], 0 }
  0x10   :  { %33 = vsyncpa [#allocation26], 0  ;;  %s9206_s23 = smov 0  }
  0x11 LB: > { %s9212_s24 = sadd.s32 4294967295, %s8998_s23   ;;  %p7193_p0 = scmp.ge.s32.totalorder %s8998_s23, 1  ;;  %s8998_s23 = sphi %s9206_s23, %s39_s23  }
  0x12   : > { %p495_p1 = scmp.lt.s32.totalorder %s8998_s23, 3  ;;  %p7677_p2 = scmp.eq.s32.totalorder %s9212_s24, 0 }
  0x13   : > { %s12553_s25 = sld [smem:[#allocation96_spill]]  ;;  %s9000_s29 = smov [#allocation10]  }
  0x14   : > { %p9220_p3 = pnand %p7193_p0, %p495_p1  ;;  %s12555_s6 = sld [smem:[#allocation98_spill]] }
  0x15   : > { %s525_s30 = sshll.u32 %s9000_s29, 4  ;;  %s9001_s21 = smov [#allocation13]   ;;  %s526_s30 = int_to_ptr.vmem [resolvable:$true] %s525_s30 }
  0x16   : > { %p7637_p4 = pneg %p9220_p3  ;;  %s556_s1 = sshll.u32 %s9001_s21, 4  ;;  %s557_s1 = int_to_ptr.vmem [resolvable:$true] %s556_s1 }
  0x17   : > { %s12557_s9 = sld [smem:[#allocation99_spill]]  ;;  %s9003_s27 = smov 8  }
  0x18   : > { %p9231_p5 = pnand %p7677_p2, %p7637_p4  ;;  %s9004_s28 = smov [#allocation16]  }
  0x19   : > { %s523_s3 = sshll.u32 %s12553_s25, 4  ;;  %s9002_s25 = smov 128   ;;  %s524_s3 = int_to_ptr.hbm [resolvable:$true] %s523_s3 }
  0x1a   : > { %s554_s4 = sshll.u32 %s12555_s6, 4  ;;  %s587_s29 = sshll.u32 %s9004_s28, 4  ;;  %s555_s4 = int_to_ptr.hbm [resolvable:$true] %s554_s4  ;;  %s588_s29 = int_to_ptr.vmem [resolvable:$true] %s587_s29 }
  0x1b   : > { %7643 = dma.hbm_to_vmem [thread:$0]  (!%p9231_p5), %s524_s3, 1920, %s526_s30, [#allocation11], %s9002_s25, %s9002_s25, %s9003_s27  }
  0x1c   : > { %7649 = dma.hbm_to_vmem [thread:$0]  (!%p9231_p5), %s555_s4, 1024, %s557_s1, [#allocation14], %s9002_s25, %s9002_s25, %s9003_s27  }
  0x1d   : > { %s585_s2 = sshll.u32 %s12557_s9, 4  ;;  %s12558_s11 = sld [smem:[#allocation100_spill]]  ;;  %s586_s2 = int_to_ptr.hbm [resolvable:$true] %s585_s2 }
  0x1e   : > { %7655 = dma.hbm_to_vmem [thread:$0]  (!%p9231_p5), %s586_s2, 1152, %s588_s29, [#allocation17], %s9002_s25, %s9002_s25, %s9003_s27  }
  0x1f   : > { %s12559_s15 = sld [smem:[#allocation101_spill]]  ;;  %s9005_s4 = smov [#allocation19]  }
  0x20   : > { %s615_s1 = sshll.u32 %s9005_s4, 4  ;;  %s9006_s28 = smov [#allocation22]   ;;  %s616_s1 = int_to_ptr.vmem [resolvable:$true] %s615_s1 }
  0x21   : > { %s649_s21 = sshll.u32 %s9006_s28, 4  ;;  %s678_s2 = sshll.u32 %s12515_s18, 4  ;;  %s650_s21 = int_to_ptr.vmem [resolvable:$true] %s649_s21  ;;  %s679_s2 = int_to_ptr.hbm [resolvable:$true] %s678_s2 }
  0x22   : > { %s12560_s30 = sld [smem:[#allocation95_spill]]  ;;  %s9008_s9 = smov [#allocation8]  }
  0x23   : > { %s613_s14 = sshll.u32 %s12558_s11, 4  ;;  %s9007_s11 = smov [#allocation25]   ;;  %s614_s14 = int_to_ptr.hbm [resolvable:$true] %s613_s14 }
  0x24   : > { %7661 = dma.hbm_to_vmem [thread:$0]  (!%p9231_p5), %s614_s14, 768, %s616_s1, [#allocation20], %s9002_s25, %s9002_s25, %s9003_s27  }
  0x25   : > { %s647_s6 = sshll.u32 %s12559_s15, 4  ;;  %s680_s14 = sshll.u32 %s9007_s11, 4  ;;  %s648_s6 = int_to_ptr.hbm [resolvable:$true] %s647_s6  ;;  %s681_s14 = int_to_ptr.vmem [resolvable:$true] %s680_s14 }
  0x26   : > { %7667 = dma.hbm_to_vmem [thread:$0]  (!%p9231_p5), %s648_s6, 24576, %s650_s21, [#allocation23], %s9002_s25, %s9002_s25, %s9003_s27  }
  0x27   : > { %7673 = dma.hbm_to_vmem [thread:$0]  (!%p9231_p5), %s679_s2, 1536, %s681_s14, [#allocation26], %s9002_s25, %s9002_s25, %s9003_s27  }
  0x28   : > { %s509_s4 = sshll.u32 %s12560_s30, 4  ;;  %s511_s1 = sshll.u32 %s9008_s9, 4  ;;  %s510_s4 = int_to_ptr.hbm [resolvable:$true] %s509_s4  ;;  %s512_s1 = int_to_ptr.vmem [resolvable:$true] %s511_s1 }
  0x29   : > { %s12561_s15 = sld [smem:[#allocation97_spill]]  ;;  %s571_s29 = sshll.u32 %s12505_s8, 4  ;;  %s572_s29 = int_to_ptr.hbm [resolvable:$true] %s571_s29 }
  0x2a   : > { %7640 = dma.hbm_to_vmem [thread:$0]  (!%p9231_p5), %s510_s4, 640, %s512_s1, [#allocation9], %s9002_s25, %s9002_s25, %s9003_s27  }
  0x2b   : > { %s9009_s3 = smov [#allocation12]   ;;  %s599_s4 = sshll.u32 %s12507_s10, 4  ;;  %s600_s4 = int_to_ptr.hbm [resolvable:$true] %s599_s4 }
  0x2c   : > { %s539_s2 = sshll.u32 %s9009_s3, 4  ;;  %s627_s22 = sshll.u32 %s12509_s12, 4  ;;  %s540_s2 = int_to_ptr.vmem [resolvable:$true] %s539_s2  ;;  %s628_s22 = int_to_ptr.hbm [resolvable:$true] %s627_s22 }
  0x2d   : > { %s9011_s11 = smov [#allocation18]   ;;  %s9012_s21 = smov [#allocation21]  }
  0x2e   : > { %s629_s3 = sshll.u32 %s9012_s21, 4  ;;  %s693_s9 = sshll.u32 %s12516_s19, 4  ;;  %s630_s3 = int_to_ptr.vmem [resolvable:$true] %s629_s3  ;;  %s694_s9 = int_to_ptr.hbm [resolvable:$true] %s693_s9 }
  0x2f   : > { %s537_s6 = sshll.u32 %s12561_s15, 4  ;;  %s9010_s15 = smov [#allocation15]   ;;  %s538_s6 = int_to_ptr.hbm [resolvable:$true] %s537_s6 }
  0x30   : > { %7646 = dma.hbm_to_vmem [thread:$0]  (!%p9231_p5), %s538_s6, 640, %s540_s2, [#allocation11], %s9002_s25, %s9002_s25, %s9003_s27  }
  0x31   : > { %s573_s30 = sshll.u32 %s9010_s15, 4  ;;  %s601_s6 = sshll.u32 %s9011_s11, 4  ;;  %s574_s30 = int_to_ptr.vmem [resolvable:$true] %s573_s30  ;;  %s602_s6 = int_to_ptr.vmem [resolvable:$true] %s601_s6 }
  0x32   : > { %7652 = dma.hbm_to_vmem [thread:$0]  (!%p9231_p5), %s572_s29, 640, %s574_s30, [#allocation14], %s9002_s25, %s9002_s25, %s9003_s27  }
  0x33   : > { %7658 = dma.hbm_to_vmem [thread:$0]  (!%p9231_p5), %s600_s4, 384, %s602_s6, [#allocation17], %s9002_s25, %s9002_s25, %s9003_s27  }
  0x34   : > { %s661_s29 = sshll.u32 %s12513_s16, 4  ;;  %s9013_s1 = smov [#allocation24]   ;;  %s662_s29 = int_to_ptr.hbm [resolvable:$true] %s661_s29 }
  0x35   : > { %7664 = dma.hbm_to_vmem [thread:$0]  (!%p9231_p5), %s628_s22, 256, %s630_s3, [#allocation20], %s9002_s25, %s9002_s25, %s9003_s27  }
  0x36   : > { %s663_s4 = sshll.u32 %s9013_s1, 4  ;;  %s9014_s28 = smov [#allocation27]   ;;  %s664_s4 = int_to_ptr.vmem [resolvable:$true] %s663_s4 }
  0x37   : > { %7670 = dma.hbm_to_vmem [thread:$0]  (!%p9231_p5), %s662_s29, 1280, %s664_s4, [#allocation23], %s9002_s25, %s9002_s25, %s9003_s27  }
  0x38   : > { %s695_s11 = sshll.u32 %s9014_s28, 4  ;;  %716 = sbr.rel (%p9220_p3) target bundleno = 3621 (0xe25), region = 100  ;;  %s696_s11 = int_to_ptr.vmem [resolvable:$true] %s695_s11 }
  0x39   : > { %7676 = dma.hbm_to_vmem [thread:$0]  (!%p9231_p5), %s694_s9, 128, %s696_s11, [#allocation26]  }
  0x3d   : > { %8969 = dma.done.wait (%p7677_p2), [#allocation9], 640  }
  0x3e   : > { %8971 = vsyncadd (%p7677_p2), [#allocation9], 4294966656 }
  0x3f   : > { %8973 = dma.done.wait (%p7677_p2), [#allocation11], 2560  }
  0x40   : > { %8975 = vsyncadd (%p7677_p2), [#allocation11], 4294964736 }
  0x41   : > { %8977 = dma.done.wait (%p7677_p2), [#allocation14], 1664  }
  0x42   : > { %8979 = vsyncadd (%p7677_p2), [#allocation14], 4294965632 }
  0x43   : > { %8981 = dma.done.wait (%p7677_p2), [#allocation17], 1536  }
  0x44   : > { %8983 = vsyncadd (%p7677_p2), [#allocation17], 4294965760 }
  0x45   : > { %8985 = dma.done.wait (%p7677_p2), [#allocation20], 1024  }
  0x46   : > { %8987 = vsyncadd (%p7677_p2), [#allocation20], 4294966272 }
  0x47   : > { %8989 = dma.done.wait (%p7677_p2), [#allocation23], 25856  }
  0x48   : > { %8991 = vsyncadd (%p7677_p2), [#allocation23], 4294941440 }
  0x49   : > { %8993 = dma.done.wait (%p7677_p2), [#allocation26], 1664  }
  0x4a   : > { %8995 = vsyncadd (%p7677_p2), [#allocation26], 4294965632  ;;  %p833_p6 = scmp.lt.s32.totalorder %s9212_s24, 1  ;;  %s12562_s27 = sld [smem:[#allocation93_spill]]  ;;  %vm1181_vm0 = vcmask 785408   ;;  %vm1163_vm1 = vcmask 793600  }
  0x4b   : > { %s9015_s6 = smov 98   ;;  %s9016_s21 = smov 97   ;;  %vm1145_vm2 = vcmask 801792   ;;  %vm1127_vm3 = vcmask 809984   ;;  %vm1109_vm4 = vcmask 818176   ;;  %vm1091_vm5 = vcmask 826368  }
  0x4c   : > { %s12700_s24 = smov (!%p833_p6, %s9212_s24), 1  ;;  %s9017_s3 = smov 96   ;;  %vm1073_vm6 = vcmask 834560   ;;  %vm1055_vm7 = vcmask 842752   ;;  %vm1037_vm8 = vcmask 850944   ;;  %vm987_vm9 = vcmask 982016  }
  0x4d   : > { %s7584_s26 = smul.u32 40, %s12700_s24  ;;  %s9018_s2 = smov 100   ;;  %vm969_vm10 = vcmask 990208   ;;  %vm951_vm11 = vcmask 998400   ;;  %vm933_vm12 = vcmask 1006592   ;;  %vm1224_vm13 = vcmask 588800  }
  0x4e   : > { %s9019_s15 = smov 99   ;;  %s9020_s29 = smov 101   ;;  %vm915_vm14 = vcmask 1014784   ;;  %vm1581_vm15 = vcmask 596992  }
  0x4f   : > { %s9021_s30 = smov 103   ;;  %s9022_s14 = smov 102  }
  0x50   : > { %s9368_s22 = scalar_lea.vmem %s12562_s27, %s7584_s26  ;;  %s9023_s9 = smov 104  }
  0x51   : > { %v9371_v1 = vld [vmem:[%s9368_s22] sm:$0xff]  ;;  %v9374_v2 = vld [vmem:[%s9368_s22 + $0x8] sm:$0xff]  ;;  %v9383_v4 = vld [vmem:[%s9368_s22 + $0x10] sm:$0xff]  ;;  %s12525_s1 = smov 120   ;;  %s12527_s4 = smov 121  }
  0x52   : > { %v9378_v3 = vpack.i.bf16 %v9374_v2, %v9371_v1  ;;  %v9386_v5 = vld [vmem:[%s9368_s22 + $0x18] sm:$0xff]  ;;  %s12523_s28 = smov 122   ;;  %s9027_s11 = smov 72   ;;  %v9470_v17 = vpack.i.bf16 %v9383_v4, %v9374_v2 }
  0x53   : > { %v9391_v6 = vpack.i.bf16 %v9386_v5, %v9383_v4  ;;  %s12521_s26 = smov 123   ;;  %s9029_s0 = smov 73   ;;  %v9505_v47 = vpack.i.bf16 %v9386_v5, %v9371_v1 }
  0x54   : > { %7830 = vrot.lane.b32.xlu2 %v9378_v3, %s9015_s6  ;;  %7820 = vrot.lane.b32.xlu1 %v9378_v3, %s9016_s21  ;;  %s12519_s25 = smov 124   ;;  %s9031_s27 = smov 74  }
  0x55   : > { %7810 = vrot.lane.b32.xlu0 %v9378_v3, %s9017_s3 }
  0x5c   : > { %7835 = vrot.lane.b32.xlu2 %v9391_v6, %s9015_s6  ;;  %7825 = vrot.lane.b32.xlu1 %v9391_v6, %s9016_s21  ;;  %s9032_s6 = smov 125   ;;  %s9033_s21 = smov 75  }
  0x5d   : > { %7815 = vrot.lane.b32.xlu0 %v9391_v6, %s9017_s3  ;;  %s9034_s3 = smov 126  }
  0x64   : > { %7850 = vrot.lane.b32.xlu2 %v9378_v3, %s9018_s2  ;;  %7845 = vrot.lane.b32.xlu1 %v9391_v6, %s9019_s15 }
  0x65   : > { %7840 = vrot.lane.b32.xlu0 %v9378_v3, %s9019_s15  ;;  %s9036_s15 = smov 127  }
  0x6c   : > { %7865 = vrot.lane.b32.xlu2 %v9391_v6, %s9020_s29  ;;  %7860 = vrot.lane.b32.xlu1 %v9378_v3, %s9020_s29  ;;  %s9037_s29 = smov 77  }
  0x6d   : > { %7855 = vrot.lane.b32.xlu0 %v9391_v6, %s9018_s2  ;;  %s9035_s2 = smov 76  }
  0x74   : > { %7880 = vrot.lane.b32.xlu2 %v9378_v3, %s9021_s30  ;;  %7875 = vrot.lane.b32.xlu1 %v9391_v6, %s9022_s14 }
  0x75   : > { %7870 = vrot.lane.b32.xlu0 %v9378_v3, %s9022_s14  ;;  %s9039_s14 = smov 78  }
  0x7c   : > { %7895 = vrot.lane.b32.xlu2 %v9391_v6, %s9023_s9  ;;  %7890 = vrot.lane.b32.xlu1 %v9378_v3, %s9023_s9 }
  0x7d   : > { %7885 = vrot.lane.b32.xlu0 %v9391_v6, %s9021_s30  ;;  %s9038_s30 = smov 79  }
  0x84   : > { %7910 = vrot.lane.b32.xlu2 %v9391_v6, %s12525_s1  ;;  %7905 = vrot.lane.b32.xlu1 %v9378_v3, %s12527_s4 }
  0x85   : > { %7900 = vrot.lane.b32.xlu0 %v9378_v3, %s12525_s1  ;;  %s9078_s1 = smov 84  }
  0x8c   : > { %7925 = vrot.lane.b32.xlu2 %v9391_v6, %s12527_s4  ;;  %7920 = vrot.lane.b32.xlu1 %v9378_v3, %s12523_s28  ;;  %s9073_s4 = smov 111  }
  0x8d   : > { %7915 = vrot.lane.b32.xlu0 %v9378_v3, %s9027_s11 }
  0x94   : > { %7940 = vrot.lane.b32.xlu2 %v9391_v6, %s12523_s28  ;;  %7935 = vrot.lane.b32.xlu1 %v9378_v3, %s12521_s26  ;;  %s9065_s28 = smov 5  }
  0x95   : > { %7930 = vrot.lane.b32.xlu0 %v9378_v3, %s9029_s0 }
  0x9c   : > { %7955 = vrot.lane.b32.xlu2 %v9391_v6, %s12521_s26  ;;  %7950 = vrot.lane.b32.xlu1 %v9378_v3, %s12519_s25  ;;  %s9070_s26 = smov 109  }
  0x9d   : > { %7945 = vrot.lane.b32.xlu0 %v9378_v3, %s9031_s27 }
  0xa4   : > { %7970 = vrot.lane.b32.xlu2 %v9391_v6, %s12519_s25  ;;  %7965 = vrot.lane.b32.xlu1 %v9378_v3, %s9032_s6  ;;  %s9063_s25 = smov 4  }
  0xa5   : > { %7960 = vrot.lane.b32.xlu0 %v9378_v3, %s9033_s21 }
  0xac   : > { %7985 = vrot.lane.b32.xlu2 %v9391_v6, %s9032_s6  ;;  %7980 = vrot.lane.b32.xlu1 %v9378_v3, %s9034_s3  ;;  %s9040_s6 = smov 80  }
  0xad   : > { %7975 = vrot.lane.b32.xlu0 %v9378_v3, %s9035_s2 }
  0xae   : > { %v9443_v7 = vpop.permute.xlu2 %7830 }
  0xaf   : > { %v7833_v18 = vunpack.i.h.bf16 %v9443_v7  ;;  %v7832_v19 = vunpack.i.l.bf16 %v9443_v7 }
  0xb1   : > { %v1146_v24 = vsel %vm1145_vm2, %v7832_v19, %v7833_v18 }
  0xb4   : > { %8000 = vrot.lane.b32.xlu2 %v9391_v6, %s9034_s3  ;;  %7995 = vrot.lane.b32.xlu1 %v9378_v3, %s9036_s15 }
  0xb5   : > { %7990 = vrot.lane.b32.xlu0 %v9378_v3, %s9037_s29 }
  0xb6   : > { %v9451_v8 = vpop.permute.xlu2 %7835 }
  0xb7   : > { %v7837_v30 = vunpack.i.l.bf16 %v9451_v8  ;;  %v7838_v33 = vunpack.i.h.bf16 %v9451_v8 }
  0xb9   : > { %v1147_v40 = vsel %vm1145_vm2, %v7833_v18, %v7837_v30  ;;  %v1148_v44 = vsel %vm1145_vm2, %v7837_v30, %v7838_v33  ;;  %vm879_vm2 = vcmask 1031168  }
  0xbc   : > { %8015 = vrot.lane.b32.xlu2 %v9378_v3, %s9038_s30  ;;  %8010 = vrot.lane.b32.xlu1 %v9391_v6, %s9036_s15 }
  0xbd   : > { %8005 = vrot.lane.b32.xlu0 %v9378_v3, %s9039_s14 }
  0xbe   : > { %v9459_v9 = vpop.permute.xlu2 %7850 }
  0xbf   : > { %v7853_v36 = vunpack.i.h.bf16 %v9459_v9  ;;  %v7852_v37 = vunpack.i.l.bf16 %v9459_v9 }
  0xc1   : > { %v1110_v51 = vsel %vm1109_vm4, %v7852_v37, %v7853_v36 }
  0xc4   : > { %8030 = vrot.lane.b32.xlu2 %v9391_v6, %s9029_s0  ;;  %8025 = vrot.lane.b32.xlu1 %v9391_v6, %s9027_s11  ;;  %s9041_s11 = smov 49   ;;  %s9042_s0 = smov 48  }
  0xc5   : > { %8020 = vrot.lane.b32.xlu0 %v9378_v3, %s9040_s6 }
  0xc6   : > { %v9466_v10 = vpop.permute.xlu2 %7865  ;;  %v7821_v11 = vpop.permute.xlu1 %7820 }
  0xc7   : > { %v7823_v12 = vunpack.i.h.bf16 %v7821_v11  ;;  %v7822_v13 = vunpack.i.l.bf16 %v7821_v11  ;;  %v7811_v14 = vpop.permute.xlu0 %7810  ;;  %v7867_v52 = vunpack.i.l.bf16 %v9466_v10  ;;  %v7868_v55 = vunpack.i.h.bf16 %v9466_v10 }
  0xc8   : > { %v7813_v15 = vunpack.i.h.bf16 %v7811_v14  ;;  %v7812_v16 = vunpack.i.l.bf16 %v7811_v14 }
  0xc9   : > { %v1164_v21 = vsel %vm1163_vm1, %v7822_v13, %v7823_v12  ;;  %v1094_v2 = vsel %vm1091_vm5, %v7867_v52, %v7868_v55 }
  0xca   : > { %v1182_v20 = vsel %vm1181_vm0, %v7812_v16, %v7813_v15 }
  0xcb   : > { %1247 = vmatpush.msra.mxu0 %v1182_v20 }
  0xcc   : > { %8045 = vrot.lane.b32.xlu2 %v9470_v17, %s9041_s11  ;;  %8040 = vrot.lane.b32.xlu1 %v9391_v6, %s9031_s27  ;;  %s9043_s27 = smov 50  }
  0xcd   : > { %8035 = vrot.lane.b32.xlu0 %v9470_v17, %s9042_s0  ;;  %1248 = vmatpush.msra.mxu0 %v1164_v21 }
  0xce   : > { %v9482_v22 = vpop.permute.xlu2 %7880  ;;  %v7826_v23 = vpop.permute.xlu1 %7825 }
  0xcf   : > { %v7828_v25 = vunpack.i.h.bf16 %v7826_v23  ;;  %v7816_v26 = vpop.permute.xlu0 %7815  ;;  %1249 = vmatpush.msra.mxu0 %v1146_v24  ;;  %v7827_v27 = vunpack.i.l.bf16 %v7826_v23  ;;  %v7883_v4 = vunpack.i.h.bf16 %v9482_v22  ;;  %v7882_v5 = vunpack.i.l.bf16 %v9482_v22 }
  0xd0   : > { %v7818_v28 = vunpack.i.h.bf16 %v7816_v26  ;;  %v7817_v29 = vunpack.i.l.bf16 %v7816_v26 }
  0xd1   : > { %v1166_v34 = vsel %vm1163_vm1, %v7827_v27, %v7828_v25  ;;  %v1165_v35 = vsel %vm1163_vm1, %v7823_v12, %v7827_v27  ;;  %v1056_v18 = vsel %vm1055_vm7, %v7882_v5, %v7883_v4  ;;  %vm1563_vm1 = vcmask 605184  }
  0xd2   : > { %v1183_v31 = vsel %vm1181_vm0, %v7813_v15, %v7817_v29  ;;  %v1184_v32 = vsel %vm1181_vm0, %v7817_v29, %v7818_v28  ;;  %vm897_vm0 = vcmask 1022976  }
  0xd3   : > { %1279 = vmatpush.msra.mxu1 %v1183_v31  ;;  %1311 = vmatpush.msra.mxu2 %v1184_v32 }
  0xd4   : > { %8060 = vrot.lane.b32.xlu2 %v9391_v6, %s9035_s2  ;;  %8055 = vrot.lane.b32.xlu1 %v9470_v17, %s9043_s27  ;;  %s9045_s2 = smov 52  }
  0xd5   : > { %8050 = vrot.lane.b32.xlu0 %v9391_v6, %s9033_s21  ;;  %1280 = vmatpush.msra.mxu1 %v1165_v35  ;;  %s9044_s21 = smov 51  }
  0xd6   : > { %1312 = vmatpush.msra.mxu2 %v1166_v34  ;;  %v9499_v38 = vpop.permute.xlu2 %7895  ;;  %v7846_v39 = vpop.permute.xlu1 %7845 }
  0xd7   : > { %v7848_v41 = vunpack.i.h.bf16 %v7846_v39  ;;  %v7847_v42 = vunpack.i.l.bf16 %v7846_v39  ;;  %v7841_v43 = vpop.permute.xlu0 %7840  ;;  %1281 = vmatpush.msra.mxu1 %v1147_v40  ;;  %v7897_v19 = vunpack.i.l.bf16 %v9499_v38  ;;  %v7898_v22 = vunpack.i.h.bf16 %v9499_v38 }
  0xd8   : > { %v7843_v45 = vunpack.i.h.bf16 %v7841_v43  ;;  %v7842_v46 = vunpack.i.l.bf16 %v7841_v43  ;;  %1313 = vmatpush.msra.mxu2 %v1148_v44 }
  0xd9   : > { %v1130_v48 = vsel %vm1127_vm3, %v7847_v42, %v7848_v41  ;;  %v9555_v37 = vsel %vm1037_vm8, %v7897_v19, %v7898_v22 }
  0xda   : > { %v1128_v49 = vsel %vm1127_vm3, %v7842_v46, %v7843_v45  ;;  %v1129_v50 = vsel %vm1127_vm3, %v7843_v45, %v7847_v42  ;;  %1314 = vmatpush.msra.mxu2 %v1130_v48  ;;  %vm1545_vm3 = vcmask 613376  }
  0xdb   : > { %1250 = vmatpush.msra.mxu0 %v1128_v49  ;;  %1282 = vmatpush.msra.mxu1 %v1129_v50 }
  0xdc   : > { %8075 = vrot.lane.b32.xlu2 %v9391_v6, %s9037_s29  ;;  %8070 = vrot.lane.b32.xlu1 %v9505_v47, %s9042_s0  ;;  %s9046_s29 = smov 53   ;;  %s9052_s0 = smov 25  }
  0xdd   : > { %8065 = vrot.lane.b32.xlu0 %v9470_v17, %s9044_s21  ;;  %1251 = vmatpush.msra.mxu0 %v1110_v51 }
  0xde   : > { %v9515_v53 = vpop.permute.xlu2 %7910  ;;  %v7861_v54 = vpop.permute.xlu1 %7860 }
  0xdf   : > { %v7863_v56 = vunpack.i.h.bf16 %v7861_v54  ;;  %v7862_v57 = vunpack.i.l.bf16 %v7861_v54  ;;  %v7856_v58 = vpop.permute.xlu0 %7855  ;;  %v7913_v23 = vunpack.i.h.bf16 %v9515_v53  ;;  %v7912_v29 = vunpack.i.l.bf16 %v9515_v53 }
  0xe0   : > { %v7858_v59 = vunpack.i.h.bf16 %v7856_v58  ;;  %v7857_v60 = vunpack.i.l.bf16 %v7856_v58 }
  0xe1   : > { %v1092_v61 = vsel %vm1091_vm5, %v7862_v57, %v7863_v56  ;;  %v1093_v0 = vsel %vm1091_vm5, %v7863_v56, %v7867_v52  ;;  %v990_v39 = vsel %vm987_vm9, %v7912_v29, %v7913_v23  ;;  %vm861_vm5 = vcmask 1039360  }
  0xe2   : > { %v1111_v62 = vsel %vm1109_vm4, %v7853_v36, %v7857_v60  ;;  %v1112_v63 = vsel %vm1109_vm4, %v7857_v60, %v7858_v59  ;;  %1252 = vmatpush.msra.mxu0 %v1092_v61  ;;  %vm1527_vm4 = vcmask 621568  }
  0xe3   : > { %1283 = vmatpush.msra.mxu1 %v1111_v62  ;;  %1315 = vmatpush.msra.mxu2 %v1112_v63 }
  0xe4   : > { %8090 = vrot.lane.b32.xlu2 %v9391_v6, %s9039_s14  ;;  %8085 = vrot.lane.b32.xlu1 %v9505_v47, %s9041_s11  ;;  %s9048_s14 = smov 56   ;;  %s9049_s11 = smov 55  }
  0xe5   : > { %8080 = vrot.lane.b32.xlu0 %v9470_v17, %s9045_s2  ;;  %1284 = vmatpush.msra.mxu1 %v1093_v0 }
  0xe6   : > { %1316 = vmatpush.msra.mxu2 %v1094_v2  ;;  %v9528_v7 = vpop.permute.xlu2 %7925  ;;  %v7876_v8 = vpop.permute.xlu1 %7875 }
  0xe7   : > { %v7878_v9 = vunpack.i.h.bf16 %v7876_v8  ;;  %v7877_v10 = vunpack.i.l.bf16 %v7876_v8  ;;  %v7871_v11 = vpop.permute.xlu0 %7870  ;;  %v7928_v30 = vunpack.i.h.bf16 %v9528_v7  ;;  %v7927_v35 = vunpack.i.l.bf16 %v9528_v7 }
  0xe8   : > { %v7873_v12 = vunpack.i.h.bf16 %v7871_v11  ;;  %v7872_v13 = vunpack.i.l.bf16 %v7871_v11 }
  0xe9   : > { %v1076_v14 = vsel %vm1073_vm6, %v7877_v10, %v7878_v9  ;;  %v972_v41 = vsel %vm969_vm10, %v7927_v35, %v7928_v30 }
  0xea   : > { %v1074_v15 = vsel %vm1073_vm6, %v7872_v13, %v7873_v12  ;;  %v1075_v16 = vsel %vm1073_vm6, %v7873_v12, %v7877_v10  ;;  %1317 = vmatpush.msra.mxu2 %v1076_v14  ;;  %vm1509_vm6 = vcmask 629760  }
  0xeb   : > { %1253 = vmatpush.msra.mxu0 %v1074_v15  ;;  %1285 = vmatpush.msra.mxu1 %v1075_v16 }
  0xec   : > { %8105 = vrot.lane.b32.xlu2 %v9391_v6, %s9038_s30  ;;  %8100 = vrot.lane.b32.xlu1 %v9505_v47, %s9043_s27  ;;  %s9047_s30 = smov 54   ;;  %s9055_s27 = smov 28  }
  0xed   : > { %8095 = vrot.lane.b32.xlu0 %v9470_v17, %s9046_s29  ;;  %1254 = vmatpush.msra.mxu0 %v1056_v18 }
  0xee   : > { %v9538_v20 = vpop.permute.xlu2 %7940  ;;  %v7891_v21 = vpop.permute.xlu1 %7890 }
  0xef   : > { %v7893_v24 = vunpack.i.h.bf16 %v7891_v21  ;;  %v7892_v25 = vunpack.i.l.bf16 %v7891_v21  ;;  %v7886_v26 = vpop.permute.xlu0 %7885  ;;  %v7943_v36 = vunpack.i.h.bf16 %v9538_v20  ;;  %v7942_v40 = vunpack.i.l.bf16 %v9538_v20 }
  0xf0   : > { %v7888_v27 = vunpack.i.h.bf16 %v7886_v26  ;;  %v7887_v28 = vunpack.i.l.bf16 %v7886_v26 }
  0xf1   : > { %v1038_v31 = vsel %vm1037_vm8, %v7892_v25, %v7893_v24  ;;  %v9548_v34 = vsel %vm1037_vm8, %v7893_v24, %v7897_v19  ;;  %v954_v49 = vsel %vm951_vm11, %v7942_v40, %v7943_v36 }
  0xf2   : > { %v1057_v32 = vsel %vm1055_vm7, %v7883_v4, %v7887_v28  ;;  %v1058_v33 = vsel %vm1055_vm7, %v7887_v28, %v7888_v27  ;;  %1255 = vmatpush.msra.mxu0 %v1038_v31  ;;  %vm1491_vm7 = vcmask 637952  }
  0xf3   : > { %1286 = vmatpush.msra.mxu1 %v1057_v32  ;;  %1318 = vmatpush.msra.mxu2 %v1058_v33 }
  0xf4   : > { %8120 = vrot.lane.b32.xlu2 %v9391_v6, %s9040_s6  ;;  %8115 = vrot.lane.b32.xlu1 %v9505_v47, %s9044_s21  ;;  %s12563_s21 = sld [smem:[#allocation94_spill]] }
  0xf5   : > { %8110 = vrot.lane.b32.xlu0 %v9470_v17, %s9047_s30  ;;  %1287 = vmatpush.msra.mxu1 %v9548_v34 }
  0xf6   : > { %1319 = vmatpush.msra.mxu2 %v9555_v37  ;;  %v9568_v42 = vpop.permute.xlu2 %7955  ;;  %v7906_v43 = vpop.permute.xlu1 %7905 }
  0xf7   : > { %1422 = vmatpush.msrb.mxu1 %v990_v39  ;;  %v7958_v44 = vunpack.i.h.bf16 %v9568_v42  ;;  %v7908_v45 = vunpack.i.h.bf16 %v7906_v43  ;;  %v7907_v46 = vunpack.i.l.bf16 %v7906_v43  ;;  %v7901_v48 = vpop.permute.xlu0 %7900  ;;  %v7957_v52 = vunpack.i.l.bf16 %v9568_v42 }
  0xf8   : > { %v7903_v50 = vunpack.i.h.bf16 %v7901_v48  ;;  %v7902_v51 = vunpack.i.l.bf16 %v7901_v48 }
  0xf9   : > { %1423 = vmatpush.msrb.mxu1 %v972_v41  ;;  %v970_v55 = vsel %vm969_vm10, %v7907_v46, %v7908_v45  ;;  %v971_v56 = vsel %vm969_vm10, %v7908_v45, %v7927_v35  ;;  %v936_v57 = vsel %vm933_vm12, %v7957_v52, %v7958_v44  ;;  %vm1473_vm10 = vcmask 646144  }
  0xfa   : > { %v988_v53 = vsel %vm987_vm9, %v7902_v51, %v7903_v50  ;;  %v989_v54 = vsel %vm987_vm9, %v7903_v50, %v7912_v29  ;;  %v7223_v19 = vld [vmem:[%s12563_s21 + $0x28] sm:$0xff] }
  0xfb   : > { %1424 = vmatpush.msrb.mxu1 %v954_v49  ;;  %1358 = vmatpush.msra.mxu3 %v988_v53  ;;  %v7225_v49 = vld [vmem:[%s12563_s21 + $0x38] sm:$0xff] }
  0xfc   : > { %1390 = vmatpush.msrb.mxu0 %v989_v54  ;;  %8135 = vrot.lane.b32.xlu2 %v9470_v17, %s9048_s14 }
  0xfd   : > { %8130 = vrot.lane.b32.xlu1 %v9505_v47, %s9045_s2  ;;  %8125 = vrot.lane.b32.xlu0 %v9470_v17, %s9049_s11  ;;  %s9050_s2 = smov 24  }
  0xfe   : > { %1359 = vmatpush.msra.mxu3 %v970_v55  ;;  %1391 = vmatpush.msrb.mxu0 %v971_v56  ;;  %v9583_v58 = vpop.permute.xlu2 %7970  ;;  %v7921_v59 = vpop.permute.xlu1 %7920 }
  0xff   : > { %1425 = vmatpush.msrb.mxu1 %v936_v57  ;;  %v7973_v60 = vunpack.i.h.bf16 %v9583_v58  ;;  %v7972_v61 = vunpack.i.l.bf16 %v9583_v58  ;;  %v7923_v62 = vunpack.i.h.bf16 %v7921_v59  ;;  %v7922_v63 = vunpack.i.l.bf16 %v7921_v59  ;;  %v9587_v0 = vpop.permute.xlu0 %7915  ;;  %7238 = vmatmul.msk.f32.vlgmr.msra.gmra.mxu2 %vm1224_vm13, %v7223_v19 }
 0x100   : > { %v7918_v2 = vunpack.i.h.bf16 %v9587_v0  ;;  %v7917_v4 = vunpack.i.l.bf16 %v9587_v0  ;;  %7228 = vmatmul.msk.f32.vlgmr.msra.gmra.mxu0 %vm1224_vm13, %v7223_v19  ;;  %7233 = vmatmul.msk.f32.vlgmr.msra.gmra.mxu1 %vm1224_vm13, %v7223_v19  ;;  %v999_v0 = vld [vmem:[%s12563_s21 + $0x10] sm:$0xff] }
 0x101   : > { %v952_v17 = vsel %vm951_vm11, %v7922_v63, %v7923_v62  ;;  %v953_v5 = vsel %vm951_vm11, %v7923_v62, %v7942_v40  ;;  %v918_v7 = vsel %vm915_vm14, %v7972_v61, %v7973_v60  ;;  %v7226_v60 = vld [vmem:[%s12563_s21 + $0x40] sm:$0xff]  ;;  %vm1455_vm11 = vcmask 654336  }
 0x102   : > { %v1599_v8 = vsel %vm1224_vm13, %v7917_v4, %v7918_v2  ;;  %1360 = vmatpush.msra.mxu3 %v952_v17  ;;  %1392 = vmatpush.msrb.mxu0 %v953_v5 }
 0x103   : > { %1663 = vmatpush.msrb.mxu2 %v1599_v8  ;;  %1426 = vmatpush.msrb.mxu1 %v918_v7 }
 0x104   : > { %8150 = vrot.lane.b32.xlu2 %v9505_v47, %s9049_s11  ;;  %s9051_s11 = smov 26  }
 0x105   : > { %8145 = vrot.lane.b32.xlu1 %v9505_v47, %s9047_s30  ;;  %8140 = vrot.lane.b32.xlu0 %v9505_v47, %s9046_s29  ;;  %s9053_s29 = smov 27   ;;  %s9058_s30 = smov 31  }
 0x106   : > { %v9602_v9 = vpop.permute.xlu2 %7985  ;;  %v7936_v10 = vpop.permute.xlu1 %7935 }
 0x107   : > { %v7988_v11 = vunpack.i.h.bf16 %v9602_v9  ;;  %v7987_v12 = vunpack.i.l.bf16 %v9602_v9  ;;  %v7938_v13 = vunpack.i.h.bf16 %v7936_v10  ;;  %v7937_v14 = vunpack.i.l.bf16 %v7936_v10  ;;  %v9606_v15 = vpop.permute.xlu0 %7930 }
 0x108   : > { %v7933_v16 = vunpack.i.h.bf16 %v9606_v15  ;;  %v7932_v18 = vunpack.i.l.bf16 %v9606_v15 }
 0x109   : > { %v934_v20 = vsel %vm933_vm12, %v7937_v14, %v7938_v13  ;;  %v935_v21 = vsel %vm933_vm12, %v7938_v13, %v7957_v52  ;;  %v900_v23 = vsel %vm897_vm0, %v7987_v12, %v7988_v11  ;;  %v7227_v11 = vld [vmem:[%s12563_s21 + $0x48] sm:$0xff]  ;;  %v997_v14 = vld [vmem:[%s12563_s21] sm:$0xff]  ;;  %vm1919_vm12 = vcmask 392192  }
 0x10a   : > { %v1582_v24 = vsel %vm1581_vm15, %v7932_v18, %v7933_v16  ;;  %1361 = vmatpush.msra.mxu3 %v934_v20  ;;  %1393 = vmatpush.msrb.mxu0 %v935_v21 }
 0x10b   : > { %1664 = vmatpush.msrb.mxu2 %v1582_v24  ;;  %1427 = vmatpush.msrb.mxu1 %v900_v23 }
 0x10c   : > { %8165 = vrot.lane.b32.xlu2 %v9391_v6, %s9050_s2 }
 0x10d   : > { %8160 = vrot.lane.b32.xlu1 %v9378_v3, %s9050_s2  ;;  %8155 = vrot.lane.b32.xlu0 %v9505_v47, %s9048_s14  ;;  %v7224_v47 = vld [vmem:[%s12563_s21 + $0x30] sm:$0xff]  ;;  %s9060_s2 = smov 1  }
 0x10e   : > { %v8001_v25 = vpop.permute.xlu2 %8000  ;;  %v7951_v26 = vpop.permute.xlu1 %7950  ;;  %7239 = vmatmul.msk.f32.gmra.mxu2 %vm1224_vm13, %v7224_v47  ;;  %7229 = vmatmul.msk.f32.gmra.mxu0 %vm1224_vm13, %v7224_v47 }
 0x10f   : > { %v8003_v27 = vunpack.i.h.bf16 %v8001_v25  ;;  %v8002_v28 = vunpack.i.l.bf16 %v8001_v25  ;;  %v7953_v29 = vunpack.i.h.bf16 %v7951_v26  ;;  %v7952_v30 = vunpack.i.l.bf16 %v7951_v26  ;;  %v9626_v31 = vpop.permute.xlu0 %7945  ;;  %7234 = vmatmul.msk.f32.gmra.mxu1 %vm1224_vm13, %v7224_v47 }
 0x110   : > { %v7948_v32 = vunpack.i.h.bf16 %v9626_v31  ;;  %v7947_v33 = vunpack.i.l.bf16 %v9626_v31  ;;  %v9821_v31 = vld [vmem:[%s12563_s21 + $0x18] sm:$0xff] }
 0x111   : > { %v916_v35 = vsel %vm915_vm14, %v7952_v30, %v7953_v29  ;;  %v917_v36 = vsel %vm915_vm14, %v7953_v29, %v7972_v61  ;;  %v882_v39 = vsel %vm879_vm2, %v8002_v28, %v8003_v27  ;;  %vm1901_vm14 = vcmask 400384  }
 0x112   : > { %v1564_v40 = vsel %vm1563_vm1, %v7947_v33, %v7948_v32  ;;  %1362 = vmatpush.msra.mxu3 %v916_v35  ;;  %1394 = vmatpush.msrb.mxu0 %v917_v36  ;;  %v998_v33 = vld [vmem:[%s12563_s21 + $0x8] sm:$0xff] }
 0x113   : > { %1665 = vmatpush.msrb.mxu2 %v1564_v40  ;;  %1428 = vmatpush.msrb.mxu1 %v882_v39  ;;  %v9735_v36 = vld [vmem:[%s9368_s22 + $0x8] sm:$0xff] }
 0x114   : > { %8180 = vrot.lane.b32.xlu2 %v9378_v3, %s9051_s11 }
 0x115   : > { %8175 = vrot.lane.b32.xlu1 %v9391_v6, %s9052_s0  ;;  %8170 = vrot.lane.b32.xlu0 %v9378_v3, %s9052_s0  ;;  %s9061_s0 = smov 3  }
 0x116   : > { %v9645_v41 = vpop.permute.xlu2 %8015  ;;  %v7966_v42 = vpop.permute.xlu1 %7965  ;;  %7240 = vmatmul.msk.f32.gmra.mxu2 %vm1224_vm13, %v7225_v49  ;;  %7230 = vmatmul.msk.f32.gmra.mxu0 %vm1224_vm13, %v7225_v49 }
 0x117   : > { %v7968_v43 = vunpack.i.h.bf16 %v7966_v42  ;;  %v7967_v44 = vunpack.i.l.bf16 %v7966_v42  ;;  %v9647_v45 = vpop.permute.xlu0 %7960  ;;  %7235 = vmatmul.msk.f32.gmra.mxu1 %vm1224_vm13, %v7225_v49  ;;  %v8018_v18 = vunpack.i.h.bf16 %v9645_v41  ;;  %v8017_v19 = vunpack.i.l.bf16 %v9645_v41 }
 0x118   : > { %v7963_v46 = vunpack.i.h.bf16 %v9647_v45  ;;  %v7962_v48 = vunpack.i.l.bf16 %v9647_v45 }
 0x119   : > { %v898_v50 = vsel %vm897_vm0, %v7967_v44, %v7968_v43  ;;  %v899_v51 = vsel %vm897_vm0, %v7968_v43, %v7987_v12  ;;  %v1474_v30 = vsel %vm1473_vm10, %v8017_v19, %v8018_v18  ;;  %v9747_v44 = vld [vmem:[%s9368_s22 + $0x10] sm:$0xff]  ;;  %vm1865_vm0 = vcmask 416768  }
 0x11a   : > { %v1546_v52 = vsel %vm1545_vm3, %v7962_v48, %v7963_v46  ;;  %1363 = vmatpush.msra.mxu3 %v898_v50  ;;  %1395 = vmatpush.msrb.mxu0 %v899_v51 }
 0x11b   : > { %1666 = vmatpush.msrb.mxu2 %v1546_v52 }
 0x11c   : > { %8195 = vrot.lane.b32.xlu2 %v9391_v6, %s9053_s29 }
 0x11d   : > { %8190 = vrot.lane.b32.xlu1 %v9378_v3, %s9053_s29  ;;  %8185 = vrot.lane.b32.xlu0 %v9391_v6, %s9051_s11  ;;  %s9054_s11 = smov 29   ;;  %s9057_s29 = smov 32  }
 0x11e   : > { %v9665_v53 = vpop.permute.xlu2 %8030  ;;  %v7981_v54 = vpop.permute.xlu1 %7980  ;;  %7241 = vmatmul.msk.f32.gmra.mxu2 %vm1224_vm13, %v7226_v60  ;;  %7231 = vmatmul.msk.f32.gmra.mxu0 %vm1224_vm13, %v7226_v60 }
 0x11f   : > { %v7983_v55 = vunpack.i.h.bf16 %v7981_v54  ;;  %v7982_v56 = vunpack.i.l.bf16 %v7981_v54  ;;  %v9667_v57 = vpop.permute.xlu0 %7975  ;;  %7236 = vmatmul.msk.f32.gmra.mxu1 %vm1224_vm13, %v7226_v60  ;;  %v8033_v39 = vunpack.i.h.bf16 %v9665_v53  ;;  %v8032_v48 = vunpack.i.l.bf16 %v9665_v53  ;;  %v9760_v54 = vld [vmem:[%s9368_s22 + $0x18] sm:$0xff] }
 0x120   : > { %v7978_v58 = vunpack.i.h.bf16 %v9667_v57  ;;  %v7977_v59 = vunpack.i.l.bf16 %v9667_v57 }
 0x121   : > { %v880_v61 = vsel %vm879_vm2, %v7982_v56, %v7983_v55  ;;  %v881_v62 = vsel %vm879_vm2, %v7983_v55, %v8002_v28  ;;  %v9764_v55 = vpack.i.bf16 %v9760_v54, %v9747_v44  ;;  %v1584_v56 = vsel %vm1581_vm15, %v8032_v48, %v8033_v39 }
 0x122   : > { %v1528_v63 = vsel %vm1527_vm4, %v7977_v59, %v7978_v58  ;;  %1364 = vmatpush.msra.mxu3 %v880_v61  ;;  %1396 = vmatpush.msrb.mxu0 %v881_v62  ;;  %v9783_v59 = vld [vmem:[%s12563_s21 + $0x50] sm:$0xff]  ;;  %vm1829_vm2 = vcmask 433152  }
 0x123   : > { %1667 = vmatpush.msrb.mxu2 %v1528_v63 }
 0x124   : > { %8210 = vrot.lane.b32.xlu2 %v9378_v3, %s9054_s11 }
 0x125   : > { %8205 = vrot.lane.b32.xlu1 %v9391_v6, %s9055_s27  ;;  %8200 = vrot.lane.b32.xlu0 %v9378_v3, %s9055_s27  ;;  %s9056_s27 = smov 30  }
 0x126   : > { %v9685_v4 = vpop.permute.xlu2 %8045  ;;  %v7996_v17 = vpop.permute.xlu1 %7995  ;;  %7242 = vmatmul.msk.f32.gmra.mxu2 %vm1224_vm13, %v7227_v11  ;;  %7232 = vmatmul.msk.f32.gmra.mxu0 %vm1224_vm13, %v7227_v11 }
 0x127   : > { %v7998_v5 = vunpack.i.h.bf16 %v7996_v17  ;;  %v7997_v7 = vunpack.i.l.bf16 %v7996_v17  ;;  %v9687_v8 = vpop.permute.xlu0 %7990  ;;  %7237 = vmatmul.msk.f32.gmra.mxu1 %vm1224_vm13, %v7227_v11  ;;  %v8048_v60 = vunpack.i.h.bf16 %v9685_v4  ;;  %v8047_v61 = vunpack.i.l.bf16 %v9685_v4  ;;  %v9975_v4 = vld [vmem:[%s12563_s21 + $0x70] sm:$0xff] }
 0x128   : > { %v7993_v9 = vunpack.i.h.bf16 %v9687_v8  ;;  %v7992_v10 = vunpack.i.l.bf16 %v9687_v8 }
 0x129   : > { %v862_v12 = vsel %vm861_vm5, %v7997_v7, %v7998_v5 }
 0x12a   : > { %v1510_v13 = vsel %vm1509_vm6, %v7992_v10, %v7993_v9  ;;  %1365 = vmatpush.msra.mxu3 %v862_v12  ;;  %v9801_v10 = vpack.i.bf16 %v9747_v44, %v9735_v36 }
 0x12b   : > { %1668 = vmatpush.msrb.mxu2 %v1510_v13 }
 0x12c   : > { %8225 = vrot.lane.b32.xlu2 %v9391_v6, %s9056_s27  ;;  %1366 = vmatpush.msra.mxu3 %v9371_v1 }
 0x12d   : > { %8220 = vrot.lane.b32.xlu1 %v9378_v3, %s9056_s27  ;;  %8215 = vrot.lane.b32.xlu0 %v9391_v6, %s9054_s11  ;;  %s9059_s11 = smov 2   ;;  %s9062_s27 = smov 105  }
 0x12e   : > { %v9709_v20 = vpop.permute.xlu2 %8060  ;;  %v8011_v21 = vpop.permute.xlu1 %8010  ;;  %7243 = vmatmul.msk.f32.vlgmr.msra.gmra.mxu3 %vm1224_vm13, %v997_v14 }
 0x12f   : > { %v8013_v23 = vunpack.i.h.bf16 %v8011_v21  ;;  %v8012_v24 = vunpack.i.l.bf16 %v8011_v21  ;;  %v9713_v25 = vpop.permute.xlu0 %8005 }
 0x130   : > { %v8008_v26 = vunpack.i.h.bf16 %v9713_v25  ;;  %v8007_v1 = vunpack.i.l.bf16 %v9713_v25 }
 0x131   : > { %v863_v27 = vsel %vm861_vm5, %v7998_v5, %v8012_v24  ;;  %v864_v28 = vsel %vm861_vm5, %v8012_v24, %v8013_v23  ;;  %v8063_v23 = vunpack.i.h.bf16 %v9709_v20  ;;  %vm1775_vm5 = vcmask 457728  }
 0x132   : > { %1397 = vmatpush.msrb.mxu0 %v863_v27  ;;  %v1492_v29 = vsel %vm1491_vm7, %v8007_v1, %v8008_v26  ;;  %1429 = vmatpush.msrb.mxu1 %v864_v28  ;;  %v8062_v28 = vunpack.i.l.bf16 %v9709_v20 }
 0x133   : > { %1669 = vmatpush.msrb.mxu2 %v1492_v29 }
 0x134   : > { %8240 = vrot.lane.b32.xlu2 %v9378_v3, %s9057_s29  ;;  %1398 = vmatpush.msrb.mxu0 %v9735_v36  ;;  %v1529_v45 = vsel %vm1527_vm4, %v7978_v58, %v8062_v28 }
 0x135   : > { %8235 = vrot.lane.b32.xlu1 %v9391_v6, %s9058_s30  ;;  %8230 = vrot.lane.b32.xlu0 %v9378_v3, %s9058_s30  ;;  %v8568_v6 = vld [vmem:[%s9368_s22] sm:$0xff]  ;;  %s12529_s30 = smov 108  }
 0x136   : > { %1670 = vmatpush.msrb.mxu2 %v1474_v30  ;;  %v9732_v47 = vpop.permute.xlu2 %8075  ;;  %v8026_v35 = vpop.permute.xlu1 %8025  ;;  %7244 = vmatmul.msk.f32.gmra.mxu3 %vm1224_vm13, %v998_v33  ;;  %v9744_v3 = vpack.i.bf16 %v9735_v36, %v8568_v6  ;;  %v1530_v6 = vsel %vm1527_vm4, %v8062_v28, %v8063_v23  ;;  %vm1793_vm4 = vcmask 449536  }
 0x137   : > { %v8028_v40 = vunpack.i.h.bf16 %v8026_v35  ;;  %v8027_v42 = vunpack.i.l.bf16 %v8026_v35  ;;  %v9740_v43 = vpop.permute.xlu0 %8020  ;;  %1430 = vmatpush.msrb.mxu1 %v9747_v44  ;;  %7248 = vmatmul.msk.f32.vlgmr.msrb.gmra.mxu0 %vm1224_vm13, %v997_v14  ;;  %v8077_v39 = vunpack.i.l.bf16 %v9732_v47 }
 0x138   : > { %v8023_v49 = vunpack.i.h.bf16 %v9740_v43  ;;  %v8022_v50 = vunpack.i.l.bf16 %v9740_v43  ;;  %7253 = vmatmul.msk.f32.vlgmr.msrb.gmra.mxu1 %vm1224_vm13, %v997_v14  ;;  %v1903_v14 = vsel %vm1901_vm14, %v8047_v61, %v8048_v60 }
 0x139   : > { %v1600_v51 = vsel %vm1224_vm13, %v7918_v2, %v8027_v42  ;;  %v1601_v52 = vsel %vm1224_vm13, %v8027_v42, %v8028_v40  ;;  %v1583_v2 = vsel %vm1581_vm15, %v7933_v16, %v8032_v48  ;;  %vm1883_vm15 = vcmask 408576   ;;  %v9864_v48 = vld [vmem:[%s12563_s21 + $0x20] sm:$0xff] }
 0x13a   : > { %v1456_v53 = vsel %vm1455_vm11, %v8022_v50, %v8023_v49  ;;  %1695 = vmatpush.msrb.mxu3 %v1600_v51  ;;  %1727 = vmatpush.msra.mxu0 %v1601_v52  ;;  %v1511_v57 = vsel %vm1509_vm6, %v7993_v9, %v8077_v39 }
 0x13b   : > { %1671 = vmatpush.msrb.mxu2 %v1456_v53 }
 0x13c   : > { %8255 = vrot.lane.b32.xlu2 %v9744_v3, %s9059_s11  ;;  %1696 = vmatpush.msrb.mxu3 %v1583_v2 }
 0x13d   : > { %8250 = vrot.lane.b32.xlu1 %v9744_v3, %s9060_s2  ;;  %8245 = vrot.lane.b32.xlu0 %v9764_v55, %s9057_s29  ;;  %s9064_s29 = smov 106  }
 0x13e   : > { %1728 = vmatpush.msra.mxu0 %v1584_v56  ;;  %v9789_v62 = vpop.permute.xlu2 %8090  ;;  %v8041_v63 = vpop.permute.xlu1 %8040  ;;  %7245 = vmatmul.msk.f32.gmra.mxu3 %vm1224_vm13, %v999_v0 }
 0x13f   : > { %v8043_v15 = vunpack.i.h.bf16 %v8041_v63  ;;  %v8042_v16 = vunpack.i.l.bf16 %v8041_v63  ;;  %v9792_v17 = vpop.permute.xlu0 %8035  ;;  %7263 = vmatmul.msk.f32.vlgmr.msrb.gmra.mxu2 %vm1224_vm13, %v9783_v59  ;;  %7249 = vmatmul.msk.f32.gmra.mxu0 %vm1224_vm13, %v998_v33  ;;  %v8093_v42 = vunpack.i.h.bf16 %v9789_v62 }
 0x140   : > { %v8038_v5 = vunpack.i.h.bf16 %v9792_v17  ;;  %v8037_v7 = vunpack.i.l.bf16 %v9792_v17  ;;  %7254 = vmatmul.msk.f32.gmra.mxu1 %vm1224_vm13, %v998_v33  ;;  %v8078_v33 = vunpack.i.h.bf16 %v9732_v47  ;;  %v8092_v47 = vunpack.i.l.bf16 %v9789_v62 }
 0x141   : > { %v1565_v11 = vsel %vm1563_vm1, %v7948_v32, %v8042_v16  ;;  %v1566_v12 = vsel %vm1563_vm1, %v8042_v16, %v8043_v15  ;;  %v9830_v32 = vld [vmem:[%s12563_s21 + $0x58] sm:$0xff]  ;;  %vm1847_vm1 = vcmask 424960  }
 0x142   : > { %1697 = vmatpush.msrb.mxu3 %v1565_v11  ;;  %v1921_v13 = vsel %vm1919_vm12, %v8037_v7, %v8038_v5  ;;  %1729 = vmatpush.msra.mxu0 %v1566_v12  ;;  %v1512_v50 = vsel %vm1509_vm6, %v8077_v39, %v8078_v33  ;;  %v1494_v2 = vsel %vm1491_vm7, %v8092_v47, %v8093_v42  ;;  %vm2240_vm6 = vcmask 195584  }
 0x143   : > { %2016 = vmatpush.msra.mxu2 %v1921_v13  ;;  %v1493_v63 = vsel %vm1491_vm7, %v8008_v26, %v8092_v47  ;;  %vm2222_vm7 = vcmask 203776  }
 0x144   : > { %8270 = vrot.lane.b32.xlu2 %v9744_v3, %s9061_s0 }
 0x145   : > { %8265 = vrot.lane.b32.xlu1 %v9801_v10, %s9062_s27  ;;  %8260 = vrot.lane.b32.xlu0 %v9764_v55, %s9060_s2  ;;  %s9072_s2 = smov 110  }
 0x146   : > { %2017 = vmatpush.msra.mxu2 %v1903_v14  ;;  %v9834_v19 = vpop.permute.xlu2 %8105  ;;  %v9836_v21 = vpop.permute.xlu1 %8055  ;;  %7246 = vmatmul.msk.f32.gmra.mxu3 %vm1224_vm13, %v9821_v31 }
 0x147   : > { %v8058_v24 = vunpack.i.h.bf16 %v9836_v21  ;;  %v8057_v1 = vunpack.i.l.bf16 %v9836_v21  ;;  %v8051_v27 = vpop.permute.xlu0 %8050  ;;  %7264 = vmatmul.msk.f32.gmra.mxu2 %vm1224_vm13, %v9830_v32  ;;  %7250 = vmatmul.msk.f32.gmra.mxu0 %vm1224_vm13, %v999_v0  ;;  %v8107_v51 = vunpack.i.l.bf16 %v9834_v19  ;;  %v8108_v58 = vunpack.i.h.bf16 %v9834_v19 }
 0x148   : > { %v8053_v29 = vunpack.i.h.bf16 %v8051_v27  ;;  %v8052_v30 = vunpack.i.l.bf16 %v8051_v27  ;;  %7255 = vmatmul.msk.f32.gmra.mxu1 %vm1224_vm13, %v999_v0 }
 0x149   : > { %v1885_v35 = vsel %vm1883_vm15, %v8057_v1, %v8058_v24  ;;  %v1475_v12 = vsel %vm1473_vm10, %v8018_v18, %v8107_v51  ;;  %v1476_v26 = vsel %vm1473_vm10, %v8107_v51, %v8108_v58  ;;  %v9929_v18 = vld [vmem:[%s12563_s21 + $0x68] sm:$0xff]  ;;  %vm2204_vm10 = vcmask 211968  }
 0x14a   : > { %v1547_v40 = vsel %vm1545_vm3, %v7963_v46, %v8052_v30  ;;  %v1548_v20 = vsel %vm1545_vm3, %v8052_v30, %v8053_v29  ;;  %2018 = vmatpush.msra.mxu2 %v1885_v35  ;;  %v9877_v46 = vld [vmem:[%s12563_s21 + $0x60] sm:$0xff]  ;;  %vm1811_vm3 = vcmask 441344  }
 0x14b   : > { %1698 = vmatpush.msrb.mxu3 %v1547_v40  ;;  %1730 = vmatpush.msra.mxu0 %v1548_v20 }
 0x14c   : > { %8285 = vrot.lane.b32.xlu2 %v9744_v3, %s9063_s25 }
 0x14d   : > { %8280 = vrot.lane.b32.xlu1 %v9801_v10, %s9064_s29  ;;  %8275 = vrot.lane.b32.xlu0 %v9764_v55, %s9059_s11  ;;  %s9066_s11 = smov 107  }
 0x14e   : > { %1699 = vmatpush.msrb.mxu3 %v1529_v45  ;;  %1731 = vmatpush.msra.mxu0 %v1530_v6  ;;  %v9883_v52 = vpop.permute.xlu2 %8120  ;;  %v8071_v53 = vpop.permute.xlu1 %8070 }
 0x14f   : > { %7247 = vmatmul.msk.f32.gmra.mxu3 %vm1224_vm13, %v9864_v48  ;;  %v8072_v56 = vunpack.i.l.bf16 %v8071_v53  ;;  %v9891_v0 = vpop.permute.xlu0 %8065  ;;  %7265 = vmatmul.msk.f32.gmra.mxu2 %vm1224_vm13, %v9877_v46  ;;  %v8122_v62 = vunpack.i.l.bf16 %v9883_v52  ;;  %v12536_v15 = vunpack.i.h.bf16 %v9883_v52  ;;  %v8073_v16 = vunpack.i.h.bf16 %v8071_v53 }
 0x150   : > { %1700 = vmatpush.msrb.mxu3 %v1511_v57  ;;  %v8068_v8 = vunpack.i.h.bf16 %v9891_v0  ;;  %v8067_v9 = vunpack.i.l.bf16 %v9891_v0  ;;  %1732 = vmatpush.msra.mxu0 %v1512_v50 }
 0x151   : > { %7256 = vmatmul.msk.f32.gmra.mxu1 %vm1224_vm13, %v9821_v31  ;;  %v1920_v11 = vsel %vm1919_vm12, %v8072_v56, %v8037_v7  ;;  %v9924_v41 = vsel %vm1455_vm11, %v8023_v49, %v8122_v62  ;;  %v1922_v7 = vsel %vm1919_vm12, %v8038_v5, %v8073_v16  ;;  %v9940_v43 = vsel %vm1455_vm11, %v8122_v62, %v12536_v15 }
 0x152   : > { %1701 = vmatpush.msrb.mxu3 %v1493_v63  ;;  %1984 = vmatpush.msra.mxu1 %v1920_v11  ;;  %v1867_v25 = vsel %vm1865_vm0, %v8067_v9, %v8068_v8  ;;  %vm2186_vm12 = vcmask 220160  }
 0x153   : > { %1733 = vmatpush.msra.mxu0 %v1494_v2  ;;  %2019 = vmatpush.msra.mxu2 %v1867_v25 }
 0x154   : > { %1702 = vmatpush.msrb.mxu3 %v1475_v12  ;;  %8300 = vrot.lane.b32.xlu2 %v9744_v3, %s9065_s28 }
 0x155   : > { %8295 = vrot.lane.b32.xlu1 %v9801_v10, %s9066_s11  ;;  %8290 = vrot.lane.b32.xlu0 %v9764_v55, %s9061_s0  ;;  %s9067_s0 = smov 6  }
 0x156   : > { %1703 = vmatpush.msrb.mxu3 %v9924_v41  ;;  %v9942_v49 = vpop.permute.xlu2 %8135  ;;  %v8086_v13 = vpop.permute.xlu1 %8085  ;;  %1734 = vmatpush.msra.mxu0 %v1476_v26  ;;  %v7278_v26 = vld [vmem:[%s12563_s21 + $0x78] sm:$0xff] }
 0x157   : > { %v8088_v14 = vunpack.i.h.bf16 %v8086_v13  ;;  %v8087_v19 = vunpack.i.l.bf16 %v8086_v13  ;;  %v9944_v23 = vpop.permute.xlu0 %8080  ;;  %7268 = vmatmul.msk.f32.vlgmr.msrb.gmra.mxu3 %vm1224_vm13, %v9783_v59  ;;  %7266 = vmatmul.msk.f32.gmra.mxu2 %vm1224_vm13, %v9929_v18  ;;  %v8137_v57 = vunpack.i.l.bf16 %v9942_v49 }
 0x158   : > { %2048 = vmatpush.msra.mxu3 %v1922_v7  ;;  %v8083_v17 = vunpack.i.h.bf16 %v9944_v23  ;;  %v8082_v5 = vunpack.i.l.bf16 %v9944_v23  ;;  %1735 = vmatpush.msra.mxu0 %v9940_v43  ;;  %v10071_v7 = vld [vmem:[%s9368_s22 + $0x20] sm:$0xff] }
 0x159   : > { %7257 = vmatmul.msk.f32.gmra.mxu1 %vm1224_vm13, %v9864_v48  ;;  %v1902_v27 = vsel %vm1901_vm14, %v8087_v19, %v8047_v61  ;;  %v1904_v28 = vsel %vm1901_vm14, %v8048_v60, %v8088_v14  ;;  %7251 = vmatmul.msk.f32.gmra.mxu0 %vm1224_vm13, %v9821_v31  ;;  %vm2168_vm14 = vcmask 228352  }
 0x15a   : > { %1985 = vmatpush.msra.mxu1 %v1902_v27  ;;  %v1849_v29 = vsel %vm1847_vm1, %v8082_v5, %v8083_v17  ;;  %2049 = vmatpush.msra.mxu3 %v1904_v28  ;;  %v10080_v27 = vpack.i.bf16 %v10071_v7, %v9760_v54 }
 0x15b   : > { %2020 = vmatpush.msra.mxu2 %v1849_v29 }
 0x15c   : > { %8315 = vrot.lane.b32.xlu2 %v9744_v3, %s9067_s0 }
 0x15d   : > { %8310 = vrot.lane.b32.xlu1 %v9801_v10, %s12529_s30  ;;  %8305 = vrot.lane.b32.xlu0 %v9764_v55, %s9063_s25  ;;  %s9069_s25 = smov 7  }
 0x15e   : > { %v9979_v60 = vpop.permute.xlu2 %8150  ;;  %v8101_v61 = vpop.permute.xlu1 %8100 }
 0x15f   : > { %v8103_v31 = vunpack.i.h.bf16 %v8101_v61  ;;  %v8102_v30 = vunpack.i.l.bf16 %v8101_v61  ;;  %v9981_v33 = vpop.permute.xlu0 %8095  ;;  %7269 = vmatmul.msk.f32.gmra.mxu3 %vm1224_vm13, %v9830_v32  ;;  %7267 = vmatmul.msk.f32.gmra.mxu2 %vm1224_vm13, %v9975_v4  ;;  %v8152_v29 = vunpack.i.l.bf16 %v9979_v60 }
 0x160   : > { %v8098_v35 = vunpack.i.h.bf16 %v9981_v33  ;;  %v8097_v39 = vunpack.i.l.bf16 %v9981_v33 }
 0x161   : > { %v1884_v40 = vsel %vm1883_vm15, %v8102_v30, %v8057_v1  ;;  %v1886_v20 = vsel %vm1883_vm15, %v8058_v24, %v8103_v31  ;;  %7252 = vmatmul.msk.f32.gmra.mxu0 %vm1224_vm13, %v9864_v48  ;;  %v8153_v30 = vunpack.i.h.bf16 %v9979_v60  ;;  %vm2150_vm15 = vcmask 236544  }
 0x162   : > { %1986 = vmatpush.msra.mxu1 %v1884_v40  ;;  %v1831_v42 = vsel %vm1829_vm2, %v8097_v39, %v8098_v35  ;;  %2050 = vmatpush.msra.mxu3 %v1886_v20  ;;  %v7279_v40 = vld [vmem:[%s12563_s21 + $0x80] sm:$0xff] }
 0x163   : > { %2021 = vmatpush.msra.mxu2 %v1831_v42 }
 0x164   : > { %8330 = vrot.lane.b32.xlu2 %v9744_v3, %s9069_s25 }
 0x165   : > { %8325 = vrot.lane.b32.xlu1 %v9801_v10, %s9070_s26  ;;  %8320 = vrot.lane.b32.xlu0 %v9764_v55, %s9065_s28  ;;  %s9071_s28 = smov 8  }
 0x166   : > { %v10008_v21 = vpop.permute.xlu2 %8165  ;;  %v8116_v24 = vpop.permute.xlu1 %8115 }
 0x167   : > { %v8118_v1 = vunpack.i.h.bf16 %v8116_v24  ;;  %v8117_v6 = vunpack.i.l.bf16 %v8116_v24  ;;  %v10010_v48 = vpop.permute.xlu0 %8110  ;;  %7270 = vmatmul.msk.f32.gmra.mxu3 %vm1224_vm13, %v9877_v46 }
 0x168   : > { %v8113_v47 = vunpack.i.h.bf16 %v10010_v48  ;;  %v8112_v45 = vunpack.i.l.bf16 %v10010_v48 }
 0x169   : > { %v1866_v50 = vsel %vm1865_vm0, %v8117_v6, %v8067_v9  ;;  %v1868_v51 = vsel %vm1865_vm0, %v8068_v8, %v8118_v1  ;;  %7273 = vmatmul.msk.f32.vlgmr.msra.gmra.mxu0 %vm1224_vm13, %v9783_v59  ;;  %v8138_v59 = vunpack.i.h.bf16 %v9942_v49  ;;  %v8167_v8 = vunpack.i.l.bf16 %v10008_v21 }
 0x16a   : > { %1987 = vmatpush.msra.mxu1 %v1866_v50  ;;  %v1813_v53 = vsel %vm1811_vm3, %v8112_v45, %v8113_v47  ;;  %2051 = vmatpush.msra.mxu3 %v1868_v51  ;;  %vm2132_vm0 = vcmask 244736  }
 0x16b   : > { %2022 = vmatpush.msra.mxu2 %v1813_v53  ;;  %v10056_v25 = vsel %vm1775_vm5, %v8137_v57, %v8138_v59 }
 0x16c   : > { %8345 = vrot.lane.b32.xlu2 %v9744_v3, %s9071_s28  ;;  %v8168_v3 = vunpack.i.h.bf16 %v10008_v21 }
 0x16d   : > { %8340 = vrot.lane.b32.xlu1 %v9801_v10, %s9072_s2  ;;  %8335 = vrot.lane.b32.xlu0 %v9764_v55, %s9067_s0  ;;  %s9075_s0 = smov 81  }
 0x16e   : > { %v10036_v58 = vpop.permute.xlu2 %8180 }
 0x16f   : > { %v8131_v56 = vpop.permute.xlu1 %8130  ;;  %v8126_v62 = vpop.permute.xlu0 %8125  ;;  %7271 = vmatmul.msk.f32.gmra.mxu3 %vm1224_vm13, %v9929_v18  ;;  %v8183_v51 = vunpack.i.h.bf16 %v10036_v58  ;;  %v8182_v53 = vunpack.i.l.bf16 %v10036_v58 }
 0x170   : > { %v8133_v0 = vunpack.i.h.bf16 %v8131_v56  ;;  %v8132_v2 = vunpack.i.l.bf16 %v8131_v56  ;;  %v8128_v9 = vunpack.i.h.bf16 %v8126_v62  ;;  %v8127_v63 = vunpack.i.l.bf16 %v8126_v62 }
 0x171   : > { %7274 = vmatmul.msk.f32.gmra.mxu0 %vm1224_vm13, %v9830_v32  ;;  %v2243_v32 = vsel %vm2240_vm6, %v8167_v8, %v8168_v3  ;;  %v2205_v58 = vsel %vm2204_vm10, %v8182_v53, %v8183_v51 }
 0x172   : > { %v1848_v16 = vsel %vm1847_vm1, %v8132_v2, %v8082_v5  ;;  %v1850_v11 = vsel %vm1847_vm1, %v8083_v17, %v8133_v0  ;;  %v1795_v12 = vsel %vm1793_vm4, %v8127_v63, %v8128_v9  ;;  %vm2114_vm1 = vcmask 252928  }
 0x173   : > { %1988 = vmatpush.msra.mxu1 %v1848_v16  ;;  %2052 = vmatpush.msra.mxu3 %v1850_v11 }
 0x174   : > { %2023 = vmatpush.msra.mxu2 %v1795_v12  ;;  %8360 = vrot.lane.b32.xlu2 %v9764_v55, %s9071_s28  ;;  %s9074_s28 = smov 112  }
 0x175   : > { %8355 = vrot.lane.b32.xlu1 %v9801_v10, %s9073_s4  ;;  %8350 = vrot.lane.b32.xlu0 %v9764_v55, %s9069_s25  ;;  %s9086_s25 = smov 60  }
 0x176   : > { %2024 = vmatpush.msra.mxu2 %v10056_v25  ;;  %v10073_v13 = vpop.permute.xlu2 %8195 }
 0x177   : > { %v8146_v14 = vpop.permute.xlu1 %8145  ;;  %7288 = vmatmul.msk.f32.vlgmr.msra.gmra.mxu2 %vm1224_vm13, %v7278_v26  ;;  %v8141_v19 = vpop.permute.xlu0 %8140  ;;  %7272 = vmatmul.msk.f32.gmra.mxu3 %vm1224_vm13, %v9975_v4  ;;  %v8197_v16 = vunpack.i.l.bf16 %v10073_v13 }
 0x178   : > { %2369 = vmatpush.msrb.mxu2 %v2243_v32  ;;  %v8147_v23 = vunpack.i.l.bf16 %v8146_v14  ;;  %v8143_v17 = vunpack.i.h.bf16 %v8141_v19  ;;  %v8142_v5 = vunpack.i.l.bf16 %v8141_v19  ;;  %v8148_v28 = vunpack.i.h.bf16 %v8146_v14 }
 0x179   : > { %7275 = vmatmul.msk.f32.gmra.mxu0 %vm1224_vm13, %v9877_v46  ;;  %v8198_v32 = vunpack.i.h.bf16 %v10073_v13 }
 0x17a   : > { %v1830_v61 = vsel %vm1829_vm2, %v8142_v5, %v8097_v39  ;;  %v1832_v31 = vsel %vm1829_vm2, %v8098_v35, %v8143_v17  ;;  %v1812_v46 = vsel %vm1811_vm3, %v8147_v23, %v8112_v45  ;;  %v1814_v60 = vsel %vm1811_vm3, %v8113_v47, %v8148_v28 }
 0x17b   : > { %1989 = vmatpush.msra.mxu1 %v1830_v61  ;;  %2053 = vmatpush.msra.mxu3 %v1832_v31  ;;  %v1794_v39 = vsel %vm1793_vm4, %v8152_v29, %v8127_v63  ;;  %v10171_v23 = vpack.i.bf16 %v10071_v7, %v9735_v36  ;;  %v2189_v13 = vsel %vm2186_vm12, %v8197_v16, %v8198_v32  ;;  %vm2096_vm2 = vcmask 261120  }
 0x17c   : > { %2860 = vrot.lane.b32.xlu2 %v10071_v7, %s9023_s9  ;;  %s9076_s9 = smov 83   ;;  %vm2543_vm3 = vcmask 7168  }
 0x17d   : > { %8370 = vrot.lane.b32.xlu1 %v10080_v27, %s9062_s27  ;;  %8365 = vrot.lane.b32.xlu0 %v9801_v10, %s9074_s28  ;;  %v1796_v10 = vsel %vm1793_vm4, %v8128_v9, %v8153_v30  ;;  %v7281_v9 = vld [vmem:[%s12563_s21 + $0x90] sm:$0xff]  ;;  %s9077_s27 = smov 82   ;;  %vm2525_vm4 = vcmask 15360  }
 0x17e   : > { %1990 = vmatpush.msra.mxu1 %v1812_v46  ;;  %2054 = vmatpush.msra.mxu3 %v1814_v60  ;;  %v10107_v33 = vpop.permute.xlu2 %8210 }
 0x17f   : > { %v8161_v35 = vpop.permute.xlu1 %8160  ;;  %7289 = vmatmul.msk.f32.gmra.mxu2 %vm1224_vm13, %v7279_v40  ;;  %v10111_v24 = vpop.permute.xlu0 %8155  ;;  %v8213_v30 = vunpack.i.h.bf16 %v10107_v33 }
 0x180   : > { %v8163_v20 = vunpack.i.h.bf16 %v8161_v35  ;;  %v8162_v42 = vunpack.i.l.bf16 %v8161_v35  ;;  %1991 = vmatpush.msra.mxu1 %v1794_v39  ;;  %v12531_v1 = vunpack.i.h.bf16 %v10111_v24  ;;  %v8157_v6 = vunpack.i.l.bf16 %v10111_v24  ;;  %2055 = vmatpush.msra.mxu3 %v1796_v10 }
 0x181   : > { %7276 = vmatmul.msk.f32.gmra.mxu0 %vm1224_vm13, %v9929_v18  ;;  %v7280_v18 = vld [vmem:[%s12563_s21 + $0x88] sm:$0xff] }
 0x182   : > { %v2241_v48 = vsel %vm2240_vm6, %v8162_v42, %v8163_v20  ;;  %v1776_v47 = vsel %vm1775_vm5, %v8157_v6, %v8137_v57  ;;  %v10127_v45 = vsel %vm1775_vm5, %v8138_v59, %v12531_v1  ;;  %v2242_v50 = vsel %vm2240_vm6, %v8163_v20, %v8167_v8 }
 0x183   : > { %2305 = vmatpush.msrb.mxu0 %v2241_v48  ;;  %1992 = vmatpush.msra.mxu1 %v1776_v47 }
 0x184   : > { %2056 = vmatpush.msra.mxu3 %v10127_v45  ;;  %7283 = vmatmul.msk.f32.vlgmr.msra.gmra.mxu1 %vm1224_vm13, %v7278_v26 }
 0x185   : > { %7293 = vmatmul.msk.f32.vlgmr.msra.gmra.mxu3 %vm1224_vm13, %v7278_v26  ;;  %8385 = vrot.lane.b32.xlu2 %v10080_v27, %s9066_s11 }
 0x186   : > { %8380 = vrot.lane.b32.xlu1 %v9764_v55, %s9075_s0  ;;  %8375 = vrot.lane.b32.xlu0 %v10080_v27, %s9064_s29  ;;  %v10144_v49 = vpop.permute.xlu2 %8225 }
 0x187   : > { %2337 = vmatpush.msrb.mxu1 %v2242_v50  ;;  %v8176_v21 = vpop.permute.xlu1 %8175  ;;  %v8171_v56 = vpop.permute.xlu0 %8170  ;;  %7290 = vmatmul.msk.f32.gmra.mxu2 %vm1224_vm13, %v7280_v18  ;;  %v8227_v50 = vunpack.i.l.bf16 %v10144_v49  ;;  %v8228_v53 = vunpack.i.h.bf16 %v10144_v49 }
 0x188   : > { %v8178_v59 = vunpack.i.h.bf16 %v8176_v21  ;;  %v8177_v57 = vunpack.i.l.bf16 %v8176_v21  ;;  %2611 = vmatpush.msrb.mxu3 %v9735_v36  ;;  %v8173_v0 = vunpack.i.h.bf16 %v8171_v56  ;;  %v8172_v2 = vunpack.i.l.bf16 %v8171_v56  ;;  %v7282_v36 = vld [vmem:[%s12563_s21 + $0x98] sm:$0xff] }
 0x189   : > { %7277 = vmatmul.msk.f32.gmra.mxu0 %vm1224_vm13, %v9975_v4 }
 0x18a   : > { %v2225_v62 = vsel %vm2222_vm7, %v8177_v57, %v8178_v59  ;;  %v2223_v3 = vsel %vm2222_vm7, %v8172_v2, %v8173_v0  ;;  %v2224_v8 = vsel %vm2222_vm7, %v8173_v0, %v8177_v57  ;;  %vm2507_vm7 = vcmask 23552  }
 0x18b   : > { %2370 = vmatpush.msrb.mxu2 %v2225_v62  ;;  %2306 = vmatpush.msrb.mxu0 %v2223_v3  ;;  %v2135_v3 = vsel %vm2132_vm0, %v8227_v50, %v8228_v53 }
 0x18c   : > { %2338 = vmatpush.msrb.mxu1 %v2224_v8 }
 0x18d   : > { %7284 = vmatmul.msk.f32.gmra.mxu1 %vm1224_vm13, %v7279_v40  ;;  %7294 = vmatmul.msk.f32.gmra.mxu3 %vm1224_vm13, %v7279_v40  ;;  %v8212_v40 = vunpack.i.l.bf16 %v10107_v33 }
 0x18e   : > { %8400 = vrot.lane.b32.xlu2 %v9764_v55, %s9076_s9  ;;  %8395 = vrot.lane.b32.xlu1 %v10080_v27, %s12529_s30  ;;  %v10164_v4 = vpop.permute.xlu2 %8240  ;;  %s9079_s30 = smov 85  }
 0x18f   : > { %8390 = vrot.lane.b32.xlu0 %v9764_v55, %s9077_s27  ;;  %2307 = vmatpush.msrb.mxu0 %v2205_v58  ;;  %v8191_v63 = vpop.permute.xlu1 %8190  ;;  %v8186_v26 = vpop.permute.xlu0 %8185  ;;  %v2151_v48 = vsel %vm2150_vm15, %v8212_v40, %v8213_v30  ;;  %v8243_v58 = vunpack.i.h.bf16 %v10164_v4 }
 0x190   : > { %v8193_v11 = vunpack.i.h.bf16 %v8191_v63  ;;  %v8192_v12 = vunpack.i.l.bf16 %v8191_v63  ;;  %7291 = vmatmul.msk.f32.gmra.mxu2 %vm1224_vm13, %v7281_v9  ;;  %v8188_v14 = vunpack.i.h.bf16 %v8186_v26  ;;  %v8187_v19 = vunpack.i.l.bf16 %v8186_v26 }
 0x192   : > { %v2187_v17 = vsel %vm2186_vm12, %v8192_v12, %v8193_v11  ;;  %v2206_v5 = vsel %vm2204_vm10, %v8183_v51, %v8187_v19  ;;  %v2207_v28 = vsel %vm2204_vm10, %v8187_v19, %v8188_v14  ;;  %v2188_v29 = vsel %vm2186_vm12, %v8193_v11, %v8197_v16 }
 0x193   : > { %2308 = vmatpush.msrb.mxu0 %v2187_v17  ;;  %2339 = vmatpush.msrb.mxu1 %v2206_v5  ;;  %v7298_v5 = vld [vmem:[%s12563_s21 + $0xa0] sm:$0xff]  ;;  %vm2850_vm10 = vcmask 859136   ;;  %vm2489_vm12 = vcmask 31744  }
 0x194   : > { %2371 = vmatpush.msrb.mxu2 %v2207_v28 }
 0x195   : > { %7285 = vmatmul.msk.f32.gmra.mxu1 %vm1224_vm13, %v7280_v18  ;;  %7295 = vmatmul.msk.f32.gmra.mxu3 %vm1224_vm13, %v7280_v18 }
 0x196   : > { %8415 = vrot.lane.b32.xlu2 %v10171_v23, %s9075_s0  ;;  %8410 = vrot.lane.b32.xlu1 %v9764_v55, %s9078_s1  ;;  %v10189_v61 = vpop.permute.xlu2 %8255  ;;  %s9081_s0 = smov 87  }
 0x197   : > { %8405 = vrot.lane.b32.xlu0 %v10080_v27, %s9070_s26  ;;  %2340 = vmatpush.msrb.mxu1 %v2188_v29  ;;  %v8206_v31 = vpop.permute.xlu1 %8205  ;;  %v8201_v35 = vpop.permute.xlu0 %8200  ;;  %s9080_s26 = smov 86  }
 0x198   : > { %2372 = vmatpush.msrb.mxu2 %v2189_v13  ;;  %v8208_v46 = vunpack.i.h.bf16 %v8206_v31  ;;  %v8207_v60 = vunpack.i.l.bf16 %v8206_v31  ;;  %v8203_v39 = vunpack.i.h.bf16 %v8201_v35  ;;  %v8202_v20 = vunpack.i.l.bf16 %v8201_v35 }
 0x199   : > { %7292 = vmatmul.msk.f32.gmra.mxu2 %vm1224_vm13, %v7282_v36  ;;  %v8258_v31 = vunpack.i.h.bf16 %v10189_v61 }
 0x19a   : > { %v2171_v42 = vsel %vm2168_vm14, %v8207_v60, %v8208_v46  ;;  %v2169_v10 = vsel %vm2168_vm14, %v8202_v20, %v8203_v39  ;;  %v2170_v6 = vsel %vm2168_vm14, %v8203_v39, %v8207_v60  ;;  %vm2471_vm14 = vcmask 39936  }
 0x19b   : > { %2373 = vmatpush.msrb.mxu2 %v2171_v42  ;;  %2309 = vmatpush.msrb.mxu0 %v2169_v10  ;;  %v7299_v42 = vld [vmem:[%s12563_s21 + $0xa8] sm:$0xff] }
 0x19c   : > { %2341 = vmatpush.msrb.mxu1 %v2170_v6 }
 0x19d   : > { %7286 = vmatmul.msk.f32.gmra.mxu1 %vm1224_vm13, %v7281_v9  ;;  %7296 = vmatmul.msk.f32.gmra.mxu3 %vm1224_vm13, %v7281_v9  ;;  %v8242_v9 = vunpack.i.l.bf16 %v10164_v4 }
 0x19e   : > { %8430 = vrot.lane.b32.xlu2 %v10171_v23, %s9077_s27  ;;  %8425 = vrot.lane.b32.xlu1 %v9764_v55, %s9079_s30  ;;  %v10203_v33 = vpop.permute.xlu2 %8270  ;;  %s9082_s27 = smov 88  }
 0x19f   : > { %8420 = vrot.lane.b32.xlu0 %v10080_v27, %s9072_s2  ;;  %2310 = vmatpush.msrb.mxu0 %v2151_v48  ;;  %v8221_v47 = vpop.permute.xlu1 %8220  ;;  %v8216_v51 = vpop.permute.xlu0 %8215  ;;  %v2097_v17 = vsel %vm2096_vm2, %v8242_v9, %v8243_v58  ;;  %v8273_v60 = vunpack.i.h.bf16 %v10203_v33  ;;  %v8272_v35 = vunpack.i.l.bf16 %v10203_v33  ;;  %v7302_v33 = vld [vmem:[%s12563_s21 + $0xc0] sm:$0xff]  ;;  %s9089_s2 = smov 63  }
 0x1a0   : > { %v8223_v18 = vunpack.i.h.bf16 %v8221_v47  ;;  %v8222_v21 = vunpack.i.l.bf16 %v8221_v47  ;;  %v8218_v59 = vunpack.i.h.bf16 %v8216_v51  ;;  %v8217_v57 = vunpack.i.l.bf16 %v8216_v51  ;;  %v10295_v9 = vpop.f32.mrf.mxu0 }
 0x1a2   : > { %v2133_v56 = vsel %vm2132_vm0, %v8222_v21, %v8223_v18  ;;  %v2152_v0 = vsel %vm2150_vm15, %v8213_v30, %v8217_v57  ;;  %v2153_v2 = vsel %vm2150_vm15, %v8217_v57, %v8218_v59  ;;  %v2134_v62 = vsel %vm2132_vm0, %v8223_v18, %v8227_v50  ;;  %v8571_v59 = vld [vmem:[%s9368_s22 + $0x8] sm:$0xff] }
 0x1a3   : > { %2311 = vmatpush.msrb.mxu0 %v2133_v56  ;;  %2342 = vmatpush.msrb.mxu1 %v2152_v0  ;;  %v8257_v30 = vunpack.i.l.bf16 %v10189_v61  ;;  %v2508_v50 = vsel %vm2507_vm7, %v8272_v35, %v8273_v60  ;;  %v8479_v57 = vpack.i.bf16 %v10071_v7, %v8571_v59  ;;  %vm2453_vm15 = vcmask 48128   ;;  %v7301_v61 = vld [vmem:[%s12563_s21 + $0xb8] sm:$0xff] }
 0x1a4   : > { %2374 = vmatpush.msrb.mxu2 %v2153_v2  ;;  %vm2832_vm0 = vcmask 867328  }
 0x1a5   : > { %7287 = vmatmul.msk.f32.gmra.mxu1 %vm1224_vm13, %v7282_v36  ;;  %7297 = vmatmul.msk.f32.gmra.mxu3 %vm1224_vm13, %v7282_v36 }
 0x1a6   : > { %8445 = vrot.lane.b32.xlu2 %v10171_v23, %s9076_s9  ;;  %8440 = vrot.lane.b32.xlu1 %v9764_v55, %s9080_s26  ;;  %v10220_v49 = vpop.permute.xlu2 %8285 }
 0x1a7   : > { %8435 = vrot.lane.b32.xlu0 %v10080_v27, %s9073_s4  ;;  %2343 = vmatpush.msrb.mxu1 %v2134_v62  ;;  %v8236_v8 = vpop.permute.xlu1 %8235  ;;  %v8231_v11 = vpop.permute.xlu0 %8230  ;;  %v8288_v10 = vunpack.i.h.bf16 %v10220_v49  ;;  %v8287_v6 = vunpack.i.l.bf16 %v10220_v49  ;;  %s9095_s4 = smov 114  }
 0x1a8   : > { %2375 = vmatpush.msrb.mxu2 %v2135_v3  ;;  %v8238_v63 = vunpack.i.h.bf16 %v8236_v8  ;;  %v8237_v16 = vunpack.i.l.bf16 %v8236_v8  ;;  %v8233_v12 = vunpack.i.h.bf16 %v8231_v11  ;;  %v8232_v26 = vunpack.i.l.bf16 %v8231_v11  ;;  %v7300_v8 = vld [vmem:[%s12563_s21 + $0xb0] sm:$0xff] }
 0x1a9   : > { %v2490_v0 = vsel %vm2489_vm12, %v8287_v6, %v8288_v10 }
 0x1aa   : > { %v2117_v32 = vsel %vm2114_vm1, %v8237_v16, %v8238_v63  ;;  %v2115_v14 = vsel %vm2114_vm1, %v8232_v26, %v8233_v12  ;;  %v2116_v19 = vsel %vm2114_vm1, %v8233_v12, %v8237_v16  ;;  %vm2435_vm1 = vcmask 56320  }
 0x1ab   : > { %2376 = vmatpush.msrb.mxu2 %v2117_v32  ;;  %2312 = vmatpush.msrb.mxu0 %v2115_v14 }
 0x1ac   : > { %2344 = vmatpush.msrb.mxu1 %v2116_v19 }
 0x1ad   : > { %2313 = vmatpush.msrb.mxu0 %v2097_v17  ;;  %v10313_v17 = vpop.f32.mrf.mxu1 }
 0x1ae   : > { %8460 = vrot.lane.b32.xlu2 %v10171_v23, %s9078_s1  ;;  %8455 = vrot.lane.b32.xlu1 %v9764_v55, %s9081_s0  ;;  %v10234_v4 = vpop.permute.xlu2 %8300 }
 0x1af   : > { %8450 = vrot.lane.b32.xlu0 %v10080_v27, %s9074_s28  ;;  %v8251_v28 = vpop.permute.xlu1 %8250  ;;  %7303 = vmatmul.msk.f32.vlgmr.msrb.gmra.mxu0 %vm1224_vm13, %v7298_v5  ;;  %v8246_v36 = vpop.permute.xlu0 %8245  ;;  %v8302_v21 = vunpack.i.l.bf16 %v10234_v4  ;;  %s9085_s28 = smov 58  }
 0x1b0   : > { %v8253_v29 = vunpack.i.h.bf16 %v8251_v28  ;;  %v8252_v13 = vunpack.i.l.bf16 %v8251_v28  ;;  %v8248_v40 = vunpack.i.h.bf16 %v8246_v36  ;;  %v8247_v46 = vunpack.i.l.bf16 %v8246_v36  ;;  %2643 = vmatpush.msra.mxu0 %v9747_v44 }
 0x1b1   : > { %v2526_v44 = vsel %vm2525_vm4, %v8257_v30, %v8258_v31 }
 0x1b2   : > { %v2544_v27 = vsel %vm2543_vm3, %v8252_v13, %v8253_v29  ;;  %v2098_v39 = vsel %vm2096_vm2, %v8243_v58, %v8247_v46  ;;  %v2099_v20 = vsel %vm2096_vm2, %v8247_v46, %v8248_v40  ;;  %v8572_v13 = vld [vmem:[%s9368_s22 + $0x18] sm:$0xff]  ;;  %v8573_v46 = vld [vmem:[%s9368_s22 + $0x10] sm:$0xff]  ;;  %s9083_s22 = smov 57   ;;  %vm2417_vm2 = vcmask 64512  }
 0x1b3   : > { %2612 = vmatpush.msrb.mxu3 %v2544_v27  ;;  %2345 = vmatpush.msrb.mxu1 %v2098_v39  ;;  %v10320_v36 = vpack.i.bf16 %v10071_v7, %v8572_v13  ;;  %v10327_v27 = vpack.i.bf16 %v8573_v46, %v8571_v59 }
 0x1b4   : > { %2377 = vmatpush.msrb.mxu2 %v2099_v20  ;;  %7308 = vmatmul.msk.f32.vlgmr.msrb.gmra.mxu1 %vm1224_vm13, %v7298_v5 }
 0x1b5   : > { %7313 = vmatmul.msk.f32.vlgmr.msrb.gmra.mxu2 %vm1224_vm13, %v7298_v5  ;;  %2613 = vmatpush.msrb.mxu3 %v2526_v44 }
 0x1b6   : > { %2922 = vmatpush.msra.mxu2 %v9548_v34  ;;  %8475 = vrot.lane.b32.xlu2 %v10171_v23, %s9080_s26  ;;  %v10262_v48 = vpop.permute.xlu2 %8315  ;;  %s12693_s26 = smov 108  }
 0x1b7   : > { %8470 = vrot.lane.b32.xlu1 %v10171_v23, %s9079_s30  ;;  %8465 = vrot.lane.b32.xlu0 %v9764_v55, %s9082_s27  ;;  %v10264_v47 = vpop.permute.xlu1 %8265  ;;  %v8261_v18 = vpop.permute.xlu0 %8260  ;;  %v8303_v55 = vunpack.i.h.bf16 %v10234_v4  ;;  %v8318_v2 = vunpack.i.h.bf16 %v10262_v48  ;;  %v8317_v62 = vunpack.i.l.bf16 %v10262_v48  ;;  %s9092_s30 = smov 116  }
 0x1b8   : > { %7304 = vmatmul.msk.f32.gmra.mxu0 %vm1224_vm13, %v7299_v42  ;;  %v8268_v34 = vunpack.i.h.bf16 %v10264_v47  ;;  %v8267_v23 = vunpack.i.l.bf16 %v10264_v47  ;;  %v8263_v51 = vunpack.i.h.bf16 %v8261_v18  ;;  %v8262_v53 = vunpack.i.l.bf16 %v8261_v18  ;;  %2675 = vmatpush.msra.mxu1 %v9760_v54  ;;  %v10352_v18 = vpop.f32.mrf.mxu0 }
 0x1b9   : > { %2614 = vmatpush.msrb.mxu3 %v2508_v50  ;;  %v2472_v58 = vsel %vm2471_vm14, %v8302_v21, %v8303_v55  ;;  %v2454_v11 = vsel %vm2453_vm15, %v8317_v62, %v8318_v2  ;;  %v10369_v62 = vld [vmem:[%s12563_s21 + $0xc8] sm:$0xff] }
 0x1ba   : > { %v2851_v56 = vsel %vm2850_vm10, %v8267_v23, %v8268_v34  ;;  %v2545_v3 = vsel %vm2543_vm3, %v8253_v29, %v8262_v53  ;;  %v2546_v54 = vsel %vm2543_vm3, %v8262_v53, %v8263_v51  ;;  %vm2814_vm3 = vcmask 875520  }
 0x1bb   : > { %2923 = vmatpush.msra.mxu2 %v2851_v56  ;;  %2644 = vmatpush.msra.mxu0 %v2545_v3 }
 0x1bc   : > { %2676 = vmatpush.msra.mxu1 %v2546_v54  ;;  %2615 = vmatpush.msrb.mxu3 %v2490_v0 }
 0x1bd   : > { %7309 = vmatmul.msk.f32.gmra.mxu1 %vm1224_vm13, %v7299_v42  ;;  %7314 = vmatmul.msk.f32.gmra.mxu2 %vm1224_vm13, %v7299_v42 }
 0x1be   : > { %3170 = vrot.lane.b32.xlu2 %v10071_v7, %s9040_s6  ;;  %v10301_v63 = vpop.permute.xlu2 %8330  ;;  %2616 = vmatpush.msrb.mxu3 %v2472_v58 }
 0x1bf   : > { %3026 = vrot.lane.b32.xlu1 %v8571_v59, %s9082_s27  ;;  %8480 = vrot.lane.b32.xlu0 %v8479_v57, %s9081_s0  ;;  %v10303_v16 = vpop.permute.xlu1 %8280  ;;  %v8333_v12 = vunpack.i.h.bf16 %v10301_v63  ;;  %v8332_v26 = vunpack.i.l.bf16 %v10301_v63  ;;  %v8276_v19 = vpop.permute.xlu0 %8275  ;;  %s9084_s0 = smov 59  }
 0x1c0   : > { %7305 = vmatmul.msk.f32.gmra.mxu0 %vm1224_vm13, %v7300_v8  ;;  %v8283_v32 = vunpack.i.h.bf16 %v10303_v16  ;;  %v8282_v14 = vunpack.i.l.bf16 %v10303_v16  ;;  %v8278_v5 = vunpack.i.h.bf16 %v8276_v19  ;;  %v8277_v28 = vunpack.i.l.bf16 %v8276_v19  ;;  %2617 = vmatpush.msrb.mxu3 %v2454_v11  ;;  %v10360_v57 = vpop.f32.mrf.mxu1  ;;  %v10395_v19 = vpop.f32.mrf.mxu0 }
 0x1c1   : > { %v2436_v35 = vsel %vm2435_vm1, %v8332_v26, %v8333_v12 }
 0x1c2   : > { %v2833_v29 = vsel %vm2832_vm0, %v8282_v14, %v8283_v32  ;;  %v2527_v30 = vsel %vm2525_vm4, %v8258_v31, %v8277_v28  ;;  %v2528_v40 = vsel %vm2525_vm4, %v8277_v28, %v8278_v5  ;;  %v10337_v31 = vpop.f32.mrf.mxu2  ;;  %2618 = vmatpush.msrb.mxu3 %v2436_v35  ;;  %vm2796_vm4 = vcmask 883712  }
 0x1c3   : > { %2924 = vmatpush.msra.mxu2 %v2833_v29  ;;  %2645 = vmatpush.msra.mxu0 %v2527_v30  ;;  %v10404_v29 = vld [vmem:[%s12563_s21 + $0xd0] sm:$0xff] }
 0x1c4   : > { %2677 = vmatpush.msra.mxu1 %v2528_v40 }
 0x1c5   : > { %7310 = vmatmul.msk.f32.gmra.mxu1 %vm1224_vm13, %v7300_v8  ;;  %7315 = vmatmul.msk.f32.gmra.mxu2 %vm1224_vm13, %v7300_v8 }
 0x1c6   : > { %8490 = vrot.lane.b32.xlu2 %v10320_v36, %s9083_s22  ;;  %v10343_v39 = vpop.permute.xlu2 %8345 }
 0x1c7   : > { %8485 = vrot.lane.b32.xlu1 %v10327_v27, %s9083_s22  ;;  %3480 = vrot.lane.b32.xlu0 %v10071_v7, %s9048_s14  ;;  %v10345_v20 = vpop.permute.xlu1 %8295  ;;  %v8348_v44 = vunpack.i.h.bf16 %v10343_v39  ;;  %v8347_v42 = vunpack.i.l.bf16 %v10343_v39  ;;  %v8291_v23 = vpop.permute.xlu0 %8290  ;;  %s9087_s22 = smov 62   ;;  %s9088_s14 = smov 61  }
 0x1c8   : > { %7306 = vmatmul.msk.f32.gmra.mxu0 %vm1224_vm13, %v7301_v61  ;;  %v8298_v6 = vunpack.i.h.bf16 %v10345_v20  ;;  %v8297_v50 = vunpack.i.l.bf16 %v10345_v20  ;;  %v8293_v21 = vunpack.i.h.bf16 %v8291_v23  ;;  %v8292_v51 = vunpack.i.l.bf16 %v8291_v23  ;;  %v10406_v13 = vpop.f32.mrf.mxu1 }
 0x1c9   : > { %v2418_v53 = vsel %vm2417_vm2, %v8347_v42, %v8348_v44 }
 0x1ca   : > { %v2815_v59 = vsel %vm2814_vm3, %v8297_v50, %v8298_v6  ;;  %2619 = vmatpush.msrb.mxu3 %v2418_v53  ;;  %v2509_v56 = vsel %vm2507_vm7, %v8273_v60, %v8292_v51  ;;  %v2510_v0 = vsel %vm2507_vm7, %v8292_v51, %v8293_v21  ;;  %v10390_v11 = vpop.f32.mrf.mxu2  ;;  %vm2778_vm7 = vcmask 891904   ;;  %v10434_v51 = vld [vmem:[%s12563_s21 + $0xd8] sm:$0xff]  ;;  %v10436_v53 = vpop.f32.mrf.mxu0 }
 0x1cb   : > { %2925 = vmatpush.msra.mxu2 %v2815_v59  ;;  %2646 = vmatpush.msra.mxu0 %v2509_v56 }
 0x1cc   : > { %2678 = vmatpush.msra.mxu1 %v2510_v0  ;;  %7323 = vmatmul.msk.f32.vlgmr.msrb.gmra.mxu3 %vm1224_vm13, %v10369_v62 }
 0x1cd   : > { %7311 = vmatmul.msk.f32.gmra.mxu1 %vm1224_vm13, %v7301_v61  ;;  %7316 = vmatmul.msk.f32.gmra.mxu2 %vm1224_vm13, %v7301_v61 }
 0x1ce   : > { %8505 = vrot.lane.b32.xlu2 %v10327_v27, %s9084_s0  ;;  %2954 = vmatpush.msra.mxu3 %v9555_v37  ;;  %v10382_v60 = vpop.permute.xlu2 %8360 }
 0x1cf   : > { %8500 = vrot.lane.b32.xlu1 %v10320_v36, %s9085_s28  ;;  %v10384_v3 = vpop.permute.xlu1 %8310  ;;  %8495 = vrot.lane.b32.xlu0 %v10327_v27, %s9085_s28  ;;  %v8306_v58 = vpop.permute.xlu0 %8305  ;;  %s9090_s28 = smov 64  }
 0x1d0   : > { %7307 = vmatmul.msk.f32.gmra.mxu0 %vm1224_vm13, %v7302_v33  ;;  %v8313_v54 = vunpack.i.h.bf16 %v10384_v3  ;;  %v8312_v8 = vunpack.i.l.bf16 %v10384_v3  ;;  %v8308_v37 = vunpack.i.h.bf16 %v8306_v58  ;;  %v8307_v26 = vunpack.i.l.bf16 %v8306_v58  ;;  %v10441_v4 = vpop.f32.mrf.mxu1 }
 0x1d1   : > { %12564 = vst [vmem:[#allocation35_spill] sm:$0xff] %v10441_v4 }
 0x1d2   : > { %v2797_v14 = vsel %vm2796_vm4, %v8312_v8, %v8313_v54  ;;  %v2491_v5 = vsel %vm2489_vm12, %v8288_v10, %v8307_v26  ;;  %v2492_v28 = vsel %vm2489_vm12, %v8307_v26, %v8308_v37  ;;  %v10425_v50 = vpop.f32.mrf.mxu2  ;;  %vm2760_vm12 = vcmask 900096   ;;  %v10469_v48 = vpop.f32.mrf.mxu0 }
 0x1d3   : > { %2926 = vmatpush.msra.mxu2 %v2797_v14  ;;  %2647 = vmatpush.msra.mxu0 %v2491_v5  ;;  %v10461_v5 = vld [vmem:[%s12563_s21 + $0xe0] sm:$0xff] }
 0x1d4   : > { %2679 = vmatpush.msra.mxu1 %v2492_v28  ;;  %7324 = vmatmul.msk.f32.gmra.mxu3 %vm1224_vm13, %v10404_v29 }
 0x1d5   : > { %7312 = vmatmul.msk.f32.gmra.mxu1 %vm1224_vm13, %v7302_v33  ;;  %7317 = vmatmul.msk.f32.gmra.mxu2 %vm1224_vm13, %v7302_v33 }
 0x1d6   : > { %8520 = vrot.lane.b32.xlu2 %v10320_v36, %s9086_s25  ;;  %v10414_v49 = vpop.permute.xlu2 %2860 }
 0x1d7   : > { %8515 = vrot.lane.b32.xlu1 %v10327_v27, %s9086_s25  ;;  %v10416_v10 = vpop.permute.xlu1 %8325  ;;  %8510 = vrot.lane.b32.xlu0 %v10320_v36, %s9084_s0  ;;  %v8321_v46 = vpop.permute.xlu0 %8320 }
 0x1d8   : > { %v8328_v30 = vunpack.i.h.bf16 %v10416_v10  ;;  %v8327_v40 = vunpack.i.l.bf16 %v10416_v10  ;;  %v8323_v35 = vunpack.i.h.bf16 %v8321_v46  ;;  %v8322_v61 = vunpack.i.l.bf16 %v8321_v46 }
 0x1da   : > { %v2779_v42 = vsel %vm2778_vm7, %v8327_v40, %v8328_v30  ;;  %v2473_v23 = vsel %vm2471_vm14, %v8303_v55, %v8322_v61  ;;  %v2474_v21 = vsel %vm2471_vm14, %v8322_v61, %v8323_v35  ;;  %v10463_v28 = vpop.f32.mrf.mxu2  ;;  %vm2742_vm14 = vcmask 908288  }
 0x1db   : > { %2927 = vmatpush.msra.mxu2 %v2779_v42  ;;  %2648 = vmatpush.msra.mxu0 %v2473_v23  ;;  %v8363_v40 = vunpack.i.h.bf16 %v10382_v60  ;;  %v10481_v23 = vpop.f32.mrf.mxu3 }
 0x1dc   : > { %2680 = vmatpush.msra.mxu1 %v2474_v21  ;;  %7325 = vmatmul.msk.f32.gmra.mxu3 %vm1224_vm13, %v10434_v51  ;;  %v8362_v21 = vunpack.i.l.bf16 %v10382_v60 }
 0x1de   : > { %8535 = vrot.lane.b32.xlu2 %v10327_v27, %s9087_s22  ;;  %v2420_v60 = vsel %vm2417_vm2, %v8362_v21, %v8363_v40  ;;  %v2862_v40 = vsel %vm1037_vm8, %v7898_v22, %v10414_v49  ;;  %vm3160_vm8 = vcmask 662528  }
 0x1df   : > { %8530 = vrot.lane.b32.xlu1 %v10320_v36, %s9088_s14  ;;  %v10444_v55 = vpop.permute.xlu1 %8340  ;;  %8525 = vrot.lane.b32.xlu0 %v10327_v27, %s9088_s14  ;;  %v10447_v59 = vpop.permute.xlu2 %8385  ;;  %s9094_s14 = smov 118  }
 0x1e0   : > { %v8343_v56 = vunpack.i.h.bf16 %v10444_v55  ;;  %v8342_v0 = vunpack.i.l.bf16 %v10444_v55  ;;  %v8336_v33 = vpop.permute.xlu0 %8335 }
 0x1e1   : > { %v8338_v8 = vunpack.i.h.bf16 %v8336_v33  ;;  %v8337_v58 = vunpack.i.l.bf16 %v8336_v33 }
 0x1e2   : > { %v2761_v37 = vsel %vm2760_vm12, %v8342_v0, %v8343_v56  ;;  %v10484_v0 = vpop.f32.mrf.mxu1  ;;  %v10504_v63 = vpop.f32.mrf.mxu2 }
 0x1e3   : > { %v2455_v26 = vsel %vm2453_vm15, %v8318_v2, %v8337_v58  ;;  %v2456_v14 = vsel %vm2453_vm15, %v8337_v58, %v8338_v8  ;;  %2928 = vmatpush.msra.mxu2 %v2761_v37  ;;  %12565 = vst [vmem:[#allocation36_spill] sm:$0xff] %v10484_v0  ;;  %vm2724_vm15 = vcmask 916480  }
 0x1e4   : > { %2649 = vmatpush.msra.mxu0 %v2455_v26  ;;  %2681 = vmatpush.msra.mxu1 %v2456_v14  ;;  %v10496_v26 = vld [vmem:[%s12563_s21 + $0xe8] sm:$0xff]  ;;  %v2419_v14 = vsel %vm2417_vm2, %v8348_v44, %v8362_v21  ;;  %12566 = vst [vmem:[#allocation37_spill] sm:$0xff] %v10504_v63  ;;  %v10532_v21 = vld [vmem:[%s12563_s21 + $0xf0] sm:$0xff] }
 0x1e5   : > { %7326 = vmatmul.msk.f32.gmra.mxu3 %vm1224_vm13, %v10461_v5 }
 0x1e6   : > { %8545 = vrot.lane.b32.xlu2 %v10327_v27, %s9089_s2 }
 0x1e7   : > { %3032 = vrot.lane.b32.xlu1 %v10071_v7, %s9082_s27  ;;  %v10473_v2 = vpop.permute.xlu1 %8355  ;;  %8540 = vrot.lane.b32.xlu0 %v10320_v36, %s9087_s22  ;;  %s9093_s22 = smov 117   ;;  %s12695_s27 = smov 120  }
 0x1e8   : > { %v10477_v46 = vpop.permute.xlu2 %8400  ;;  %v8358_v35 = vunpack.i.h.bf16 %v10473_v2  ;;  %v8357_v61 = vunpack.i.l.bf16 %v10473_v2  ;;  %v8351_v42 = vpop.permute.xlu0 %8350 }
 0x1e9   : > { %v8353_v7 = vunpack.i.h.bf16 %v8351_v42  ;;  %v8352_v33 = vunpack.i.l.bf16 %v8351_v42 }
 0x1ea   : > { %v2743_v8 = vsel %vm2742_vm14, %v8357_v61, %v8358_v35 }
 0x1eb   : > { %v2437_v58 = vsel %vm2435_vm1, %v8333_v12, %v8352_v33  ;;  %v2438_v37 = vsel %vm2435_vm1, %v8352_v33, %v8353_v7  ;;  %2929 = vmatpush.msra.mxu2 %v2743_v8  ;;  %v10536_v7 = vpop.f32.mrf.mxu3  ;;  %v10538_v33 = vpop.f32.mrf.mxu1  ;;  %vm3106_vm1 = vcmask 687104  }
 0x1ec   : > { %2650 = vmatpush.msra.mxu0 %v2437_v58  ;;  %2682 = vmatpush.msra.mxu1 %v2438_v37 }
 0x1ed   : > { %7327 = vmatmul.msk.f32.gmra.mxu3 %vm1224_vm13, %v10496_v26 }
 0x1ee   : > { %2651 = vmatpush.msra.mxu0 %v2419_v14  ;;  %2683 = vmatpush.msra.mxu1 %v2420_v60  ;;  %v10558_v60 = vpop.f32.mrf.mxu2  ;;  %v8387_v14 = vunpack.i.l.bf16 %v10447_v59 }
 0x1ef   : > { %8555 = vrot.lane.b32.xlu1 %v10327_v27, %s9090_s28  ;;  %v8371_v12 = vpop.permute.xlu1 %8370  ;;  %8550 = vrot.lane.b32.xlu0 %v10320_v36, %s9089_s2  ;;  %v10523_v27 = vpop.f32.mrf.mxu0  ;;  %s12694_s2 = smov 121  }
 0x1f0   : > { %7328 = vmatmul.msk.f32.vlgmr.msra.gmra.mxu0 %vm1224_vm13, %v10369_v62  ;;  %v10515_v39 = vpop.permute.xlu2 %8415  ;;  %v8373_v44 = vunpack.i.h.bf16 %v8371_v12  ;;  %v8372_v61 = vunpack.i.l.bf16 %v8371_v12  ;;  %v10517_v42 = vpop.permute.xlu0 %8365  ;;  %7333 = vmatmul.msk.f32.vlgmr.msra.gmra.mxu1 %vm1224_vm13, %v10369_v62  ;;  %v2816_v16 = vsel %vm2814_vm3, %v8298_v6, %v8387_v14 }
 0x1f1   : > { %2986 = vmatpush.msrb.mxu0 %v2862_v40  ;;  %v12537_v38 = vunpack.i.h.bf16 %v10517_v42  ;;  %v8367_v22 = vunpack.i.l.bf16 %v10517_v42  ;;  %3232 = vmatpush.msrb.mxu1 %v9924_v41  ;;  %v8417_v47 = vunpack.i.l.bf16 %v10515_v39 }
 0x1f2   : > { %v2852_v49 = vsel %vm2850_vm10, %v8268_v34, %v8372_v61  ;;  %v2853_v62 = vsel %vm2850_vm10, %v8372_v61, %v8373_v44  ;;  %8560 = vrot.lane.b32.xlu2 %v10320_v36, %s9090_s28  ;;  %v8388_v34 = vunpack.i.h.bf16 %v10447_v59  ;;  %v10564_v44 = vld [vmem:[%s12563_s21 + $0xf8] sm:$0xff]  ;;  %vm3124_vm10 = vcmask 678912   ;;  %s840_s28 = scalar_lea.vmem %s12517_s20, %s12700_s24 }
 0x1f3   : > { %v2725_v41 = vsel %vm2724_vm15, %v8367_v22, %v12537_v38  ;;  %2955 = vmatpush.msra.mxu3 %v2852_v49  ;;  %2987 = vmatpush.msrb.mxu0 %v2853_v62 }
 0x1f4   : > { %2930 = vmatpush.msra.mxu2 %v2725_v41  ;;  %v2817_v62 = vsel %vm2814_vm3, %v8387_v14, %v8388_v34  ;;  %v10577_v41 = vpop.f32.mrf.mxu3  ;;  %vm3088_vm3 = vcmask 695296  }
 0x1f5   : > { %7343 = vmatmul.msk.f32.vlgmr.msra.gmra.mxu2 %vm1224_vm13, %v10532_v21 }
 0x1f6   : > { %3264 = vmatpush.msrb.mxu2 %v9940_v43 }
 0x1f7   : > { %v10570_v22 = vpop.f32.mrf.mxu0 }
 0x1f8   : > { %7329 = vmatmul.msk.f32.gmra.mxu0 %vm1224_vm13, %v10404_v29  ;;  %v10550_v36 = vpop.permute.xlu2 %8430  ;;  %v10552_v8 = vpop.permute.xlu1 %8380  ;;  %7334 = vmatmul.msk.f32.gmra.mxu1 %vm1224_vm13, %v10404_v29 }
 0x1f9   : > { %v12535_v58 = vunpack.i.h.bf16 %v10552_v8  ;;  %v8382_v37 = vunpack.i.l.bf16 %v10552_v8  ;;  %v8376_v43 = vpop.permute.xlu0 %8375  ;;  %v8432_v34 = vunpack.i.l.bf16 %v10550_v36 }
 0x1fa   : > { %v8378_v12 = vunpack.i.h.bf16 %v8376_v43  ;;  %v8377_v40 = vunpack.i.l.bf16 %v8376_v43  ;;  %v10579_v43 = vpop.f32.mrf.mxu1 }
 0x1fb   : > { %v3161_v61 = vsel %vm3160_vm8, %v8417_v47, %v8382_v37  ;;  %v3162_v29 = vsel %vm3160_vm8, %v8382_v37, %v12535_v58  ;;  %v8402_v47 = vunpack.i.l.bf16 %v10477_v46 }
 0x1fc   : > { %v2834_v49 = vsel %vm2832_vm0, %v8283_v32, %v8377_v40  ;;  %v2835_v59 = vsel %vm2832_vm0, %v8377_v40, %v8378_v12  ;;  %3233 = vmatpush.msrb.mxu1 %v3161_v61  ;;  %3265 = vmatpush.msrb.mxu2 %v3162_v29  ;;  %v12532_v32 = vunpack.i.h.bf16 %v10477_v46  ;;  %vm3142_vm0 = vcmask 670720  }
 0x1fd   : > { %2956 = vmatpush.msra.mxu3 %v2834_v49  ;;  %2988 = vmatpush.msrb.mxu0 %v2835_v59  ;;  %v10606_v59 = vld [vmem:[%s12563_s21 + $0x100] sm:$0xff] }
 0x1fe   : > { %7344 = vmatmul.msk.f32.gmra.mxu2 %vm1224_vm13, %v10564_v44 }
 0x1ff   : > { %2957 = vmatpush.msra.mxu3 %v2816_v16  ;;  %2989 = vmatpush.msrb.mxu0 %v2817_v62  ;;  %v3126_v62 = vsel %vm3124_vm10, %v8402_v47, %v12532_v32  ;;  %v10612_v16 = vpop.f32.mrf.mxu2  ;;  %v10619_v1 = vpop.f32.mrf.mxu0 }
 0x200   : > { %7330 = vmatmul.msk.f32.gmra.mxu0 %vm1224_vm13, %v10434_v51  ;;  %v10591_v37 = vpop.permute.xlu2 %8445  ;;  %v8396_v12 = vpop.permute.xlu1 %8395  ;;  %7335 = vmatmul.msk.f32.gmra.mxu1 %vm1224_vm13, %v10434_v51 }
 0x201   : > { %v8447_v20 = vunpack.i.l.bf16 %v10591_v37  ;;  %v8398_v6 = vunpack.i.h.bf16 %v8396_v12  ;;  %v8397_v14 = vunpack.i.l.bf16 %v8396_v12  ;;  %v10596_v40 = vpop.permute.xlu0 %8390 }
 0x202   : > { %v12533_v61 = vunpack.i.h.bf16 %v10596_v40  ;;  %v8392_v29 = vunpack.i.l.bf16 %v10596_v40 }
 0x203   : > { %v2798_v49 = vsel %vm2796_vm4, %v8313_v54, %v8397_v14  ;;  %v2799_v51 = vsel %vm2796_vm4, %v8397_v14, %v8398_v6  ;;  %v3125_v54 = vsel %vm3124_vm10, %v8447_v20, %v8402_v47  ;;  %v10623_v6 = vpop.f32.mrf.mxu3  ;;  %v10625_v14 = vpop.f32.mrf.mxu1  ;;  %vm3070_vm4 = vcmask 703488  }
 0x204   : > { %2958 = vmatpush.msra.mxu3 %v2798_v49  ;;  %v3143_v12 = vsel %vm3142_vm0, %v8432_v34, %v8392_v29  ;;  %v3144_v3 = vsel %vm3142_vm0, %v8392_v29, %v12533_v61  ;;  %2990 = vmatpush.msrb.mxu0 %v2799_v51 }
 0x205   : > { %3234 = vmatpush.msrb.mxu1 %v3143_v12  ;;  %3266 = vmatpush.msrb.mxu2 %v3144_v3  ;;  %v10641_v3 = vld [vmem:[%s12563_s21 + $0x108] sm:$0xff] }
 0x206   : > { %7345 = vmatmul.msk.f32.gmra.mxu2 %vm1224_vm13, %v10606_v59 }
 0x207   : > { %3235 = vmatpush.msrb.mxu1 %v3125_v54  ;;  %3267 = vmatpush.msrb.mxu2 %v3126_v62 }
 0x208   : > { %7331 = vmatmul.msk.f32.gmra.mxu0 %vm1224_vm13, %v10461_v5  ;;  %v10629_v34 = vpop.permute.xlu2 %8460  ;;  %v10631_v29 = vpop.permute.xlu1 %8410  ;;  %7336 = vmatmul.msk.f32.gmra.mxu1 %vm1224_vm13, %v10461_v5 }
 0x209   : > { %v8462_v47 = vunpack.i.l.bf16 %v10629_v34  ;;  %v12534_v20 = vunpack.i.h.bf16 %v10631_v29  ;;  %v8412_v49 = vunpack.i.l.bf16 %v10631_v29  ;;  %v8406_v51 = vpop.permute.xlu0 %8405 }
 0x20a   : > { %v8408_v12 = vunpack.i.h.bf16 %v8406_v51  ;;  %v8407_v62 = vunpack.i.l.bf16 %v8406_v51  ;;  %v10651_v51 = vpop.f32.mrf.mxu2 }
 0x20b   : > { %v3107_v54 = vsel %vm3106_vm1, %v8462_v47, %v8412_v49  ;;  %v3108_v5 = vsel %vm3106_vm1, %v8412_v49, %v12534_v20  ;;  %v10655_v47 = vpop.f32.mrf.mxu0 }
 0x20c   : > { %v2780_v32 = vsel %vm2778_vm7, %v8328_v30, %v8407_v62  ;;  %v2781_v61 = vsel %vm2778_vm7, %v8407_v62, %v8408_v12  ;;  %3236 = vmatpush.msrb.mxu1 %v3107_v54  ;;  %3268 = vmatpush.msrb.mxu2 %v3108_v5  ;;  %12567 = vst [vmem:[#allocation38_spill] sm:$0xff] %v10655_v47  ;;  %v10667_v12 = vpop.f32.mrf.mxu1  ;;  %v10672_v5 = vld [vmem:[%s12563_s21 + $0x110] sm:$0xff]  ;;  %vm3052_vm7 = vcmask 711680  }
 0x20d   : > { %2959 = vmatpush.msra.mxu3 %v2780_v32  ;;  %2991 = vmatpush.msrb.mxu0 %v2781_v61  ;;  %v10665_v61 = vpop.f32.mrf.mxu3 }
 0x20e   : > { %7346 = vmatmul.msk.f32.gmra.mxu2 %vm1224_vm13, %v10641_v3 }
 0x210   : > { %7332 = vmatmul.msk.f32.gmra.mxu0 %vm1224_vm13, %v10496_v26  ;;  %v10659_v49 = vpop.permute.xlu1 %8425  ;;  %7337 = vmatmul.msk.f32.gmra.mxu1 %vm1224_vm13, %v10496_v26 }
 0x211   : > { %v12538_v10 = vunpack.i.h.bf16 %v10659_v49  ;;  %v12539_v30 = vunpack.i.l.bf16 %v10659_v49  ;;  %v8421_v32 = vpop.permute.xlu0 %8420 }
 0x212   : > { %v8423_v62 = vunpack.i.h.bf16 %v8421_v32  ;;  %v8422_v54 = vunpack.i.l.bf16 %v8421_v32  ;;  %v10683_v32 = vpop.permute.xlu2 %8475  ;;  %v10687_v15 = vpop.f32.mrf.mxu2 }
 0x213   : > { %v3090_v26 = vsel %vm3088_vm3, %v12539_v30, %v12538_v10  ;;  %12568 = vst [vmem:[#allocation39_spill] sm:$0xff] %v10687_v15  ;;  %v10693_v30 = vpop.f32.mrf.mxu0 }
 0x214   : > { %v2762_v20 = vsel %vm2760_vm12, %v8343_v56, %v8422_v54  ;;  %v2763_v58 = vsel %vm2760_vm12, %v8422_v54, %v8423_v62  ;;  %3269 = vmatpush.msrb.mxu2 %v3090_v26  ;;  %12569 = vst [vmem:[#allocation40_spill] sm:$0xff] %v10693_v30  ;;  %v10702_v26 = vpop.f32.mrf.mxu1  ;;  %vm3034_vm12 = vcmask 719872  }
 0x215   : > { %2960 = vmatpush.msra.mxu3 %v2762_v20  ;;  %2992 = vmatpush.msrb.mxu0 %v2763_v58  ;;  %v10700_v54 = vpop.f32.mrf.mxu3  ;;  %12570 = vst [vmem:[#allocation41_spill] sm:$0xff] %v10702_v26 }
 0x216   : > { %7347 = vmatmul.msk.f32.gmra.mxu2 %vm1224_vm13, %v10672_v5 }
 0x218   : > { %v10689_v38 = vpop.permute.xlu1 %8440 }
 0x219   : > { %v12540_v10 = vunpack.i.h.bf16 %v10689_v38  ;;  %v12541_v55 = vunpack.i.l.bf16 %v10689_v38  ;;  %v8436_v56 = vpop.permute.xlu0 %8435 }
 0x21a   : > { %v8438_v62 = vunpack.i.h.bf16 %v8436_v56  ;;  %v8437_v20 = vunpack.i.l.bf16 %v8436_v56  ;;  %v3171_v56 = vpop.permute.xlu2 %3170  ;;  %v10712_v47 = vpop.f32.mrf.mxu2 }
 0x21b   : > { %v3072_v58 = vsel %vm3070_vm4, %v12541_v55, %v12540_v10  ;;  %12571 = vst [vmem:[#allocation42_spill] sm:$0xff] %v10712_v47  ;;  %v8433_v47 = vunpack.i.h.bf16 %v10550_v36 }
 0x21c   : > { %v2744_v63 = vsel %vm2742_vm14, %v8358_v35, %v8437_v20  ;;  %v2745_v0 = vsel %vm2742_vm14, %v8437_v20, %v8438_v62  ;;  %3270 = vmatpush.msrb.mxu2 %v3072_v58  ;;  %v12572_v62 = vunpack.i.h.bf16 %v10517_v42  ;;  %v10729_v4 = vpop.f32.mrf.mxu1  ;;  %v8448_v42 = vunpack.i.h.bf16 %v10591_v37 }
 0x21d   : > { %2961 = vmatpush.msra.mxu3 %v2744_v63  ;;  %2993 = vmatpush.msrb.mxu0 %v2745_v0  ;;  %v8418_v0 = vunpack.i.h.bf16 %v10515_v39  ;;  %v10720_v63 = vpop.f32.mrf.mxu0  ;;  %vm3470_vm14 = vcmask 465920  }
 0x220   : > { %v10708_v30 = vpop.permute.xlu1 %8455 }
 0x221   : > { %v12542_v15 = vunpack.i.h.bf16 %v10708_v30  ;;  %v8457_v10 = vunpack.i.l.bf16 %v10708_v30  ;;  %v8451_v55 = vpop.permute.xlu0 %8450 }
 0x222   : > { %v8453_v26 = vunpack.i.h.bf16 %v8451_v55  ;;  %v8452_v2 = vunpack.i.l.bf16 %v8451_v55  ;;  %v10726_v55 = vpop.f32.mrf.mxu3 }
 0x223   : > { %v3054_v35 = vsel %vm3052_vm7, %v8457_v10, %v12542_v15  ;;  %v12573_v15 = vunpack.i.h.bf16 %v9883_v52 }
 0x224   : > { %v2726_v20 = vsel %vm2724_vm15, %v12572_v62, %v8452_v2  ;;  %v2727_v58 = vsel %vm2724_vm15, %v8452_v2, %v8453_v26  ;;  %3271 = vmatpush.msrb.mxu2 %v3054_v35  ;;  %v12574_v26 = vunpack.i.h.bf16 %v10552_v8  ;;  %v10743_v2 = vpop.permute.xlu2 %8490  ;;  %v8463_v8 = vunpack.i.h.bf16 %v10629_v34  ;;  %v10754_v62 = vpop.f32.mrf.mxu2  ;;  %v10768_v34 = vld [vmem:[%s12563_s21 + $0x118] sm:$0xff] }
 0x225   : > { %2962 = vmatpush.msra.mxu3 %v2726_v20  ;;  %2994 = vmatpush.msrb.mxu0 %v2727_v58  ;;  %v3172_v39 = vsel %vm1455_vm11, %v12573_v15, %v3171_v56  ;;  %v12576_v20 = vunpack.i.h.bf16 %v10477_v46  ;;  %v8478_v46 = vunpack.i.h.bf16 %v10683_v32  ;;  %vm3434_vm15 = vcmask 482304  }
 0x226   : > { %7348 = vmatmul.msk.f32.vlgmr.msra.gmra.mxu3 %vm1224_vm13, %v10532_v21  ;;  %7353 = vmatmul.msk.f32.vlgmr.msrb.gmra.mxu0 %vm1224_vm13, %v10532_v21  ;;  %v3163_v36 = vsel %vm3160_vm8, %v12574_v26, %v8418_v0  ;;  %v8477_v0 = vunpack.i.l.bf16 %v10683_v32  ;;  %v12581_v32 = vunpack.i.h.bf16 %v10659_v49  ;;  %vm3416_vm8 = vcmask 490496  }
 0x227   : > { %3296 = vmatpush.msrb.mxu3 %v3172_v39  ;;  %3542 = vmatpush.msra.mxu0 %v10056_v25  ;;  %v12575_v25 = vunpack.i.h.bf16 %v10596_v40  ;;  %v3127_v58 = vsel %vm3124_vm10, %v12576_v20, %v8448_v42  ;;  %v12577_v39 = vunpack.i.l.bf16 %v10659_v49  ;;  %v12579_v42 = vunpack.i.h.bf16 %v10631_v29  ;;  %v10787_v20 = vpop.f32.mrf.mxu1 }
 0x228   : > { %v12583_v49 = vunpack.i.h.bf16 %v10708_v30  ;;  %v8492_v30 = vunpack.i.l.bf16 %v10743_v2  ;;  %vm3398_vm10 = vcmask 498688  }
 0x229   : > { %3297 = vmatpush.msrb.mxu3 %v3163_v36  ;;  %v8471_v52 = vpop.permute.xlu1 %8470  ;;  %v10745_v15 = vpop.permute.xlu0 %8465  ;;  %v3145_v37 = vsel %vm3142_vm0, %v12575_v25, %v8433_v47  ;;  %vm3380_vm0 = vcmask 506880  }
 0x22a   : > { %v8472_v56 = vunpack.i.l.bf16 %v8471_v52  ;;  %v12543_v35 = vunpack.i.h.bf16 %v10745_v15  ;;  %v8467_v21 = vunpack.i.l.bf16 %v10745_v15  ;;  %v8473_v47 = vunpack.i.h.bf16 %v8471_v52  ;;  %v10770_v36 = vpop.f32.mrf.mxu0 }
 0x22b   : > { %3298 = vmatpush.msrb.mxu3 %v3145_v37  ;;  %12578 = vst [vmem:[#allocation43_spill] sm:$0xff] %v10770_v36  ;;  %v3109_v52 = vsel %vm3106_vm1, %v12579_v42, %v8463_v8  ;;  %v10785_v37 = vpop.f32.mrf.mxu3  ;;  %vm3362_vm1 = vcmask 515072   ;;  %v3729_v36 = vld [vmem:[#allocation22 + $0xb8] sm:$0xff] }
 0x22c   : > { %v3089_v26 = vsel %vm3088_vm3, %v8472_v56, %v12577_v39  ;;  %v3036_v40 = vsel %vm3034_vm12, %v8467_v21, %v12543_v35  ;;  %v12580_v56 = vunpack.i.l.bf16 %v10689_v38  ;;  %v10792_v8 = vpop.permute.xlu2 %8505 }
 0x22d   : > { %3299 = vmatpush.msrb.mxu3 %v3127_v58  ;;  %3237 = vmatpush.msrb.mxu1 %v3089_v26 }
 0x22e   : > { %3272 = vmatpush.msrb.mxu2 %v3036_v40  ;;  %7349 = vmatmul.msk.f32.gmra.mxu3 %vm1224_vm13, %v10564_v44  ;;  %v3071_v25 = vsel %vm3070_vm4, %v8477_v0, %v12580_v56  ;;  %v12582_v40 = vunpack.i.h.bf16 %v10689_v38  ;;  %v10808_v56 = vpop.f32.mrf.mxu2 }
 0x22f   : > { %7354 = vmatmul.msk.f32.gmra.mxu0 %vm1224_vm13, %v10564_v44  ;;  %7368 = vmatmul.msk.f32.vlgmr.msrb.gmra.mxu2 %vm1224_vm13, %v10768_v34  ;;  %v3091_v44 = vsel %vm3088_vm3, %v12581_v32, %v8473_v47  ;;  %vm3344_vm3 = vcmask 523264  }
 0x230   : > { %3300 = vmatpush.msrb.mxu3 %v3109_v52  ;;  %3238 = vmatpush.msrb.mxu1 %v3071_v25  ;;  %v3073_v0 = vsel %vm3070_vm4, %v12582_v40, %v8478_v46  ;;  %v10806_v52 = vld [vmem:[%s12563_s21 + $0x120] sm:$0xff] }
 0x231   : > { %v3027_v58 = vpop.permute.xlu1 %3026  ;;  %v8481_v39 = vpop.permute.xlu0 %8480 }
 0x232   : > { %3301 = vmatpush.msrb.mxu3 %v3091_v44  ;;  %v8483_v29 = vunpack.i.h.bf16 %v8481_v39  ;;  %v8482_v26 = vunpack.i.l.bf16 %v8481_v39  ;;  %v3035_v38 = vsel %vm3034_vm12, %v3027_v58, %v8467_v21  ;;  %v10817_v46 = vpop.f32.mrf.mxu0  ;;  %v10823_v44 = vpop.f32.mrf.mxu1 }
 0x233   : > { %12584 = vst [vmem:[#allocation44_spill] sm:$0xff] %v10817_v46  ;;  %v10829_v39 = vpop.f32.mrf.mxu3 }
 0x234   : > { %3302 = vmatpush.msrb.mxu3 %v3073_v0  ;;  %v3053_v42 = vsel %vm3052_vm7, %v8482_v26, %v8457_v10  ;;  %v3055_v47 = vsel %vm3052_vm7, %v12583_v49, %v8483_v29  ;;  %v8493_v10 = vunpack.i.h.bf16 %v10743_v2  ;;  %12585 = vst [vmem:[#allocation45_spill] sm:$0xff] %v10823_v44  ;;  %v12586_v2 = vunpack.i.h.bf16 %v10111_v24  ;;  %v8521_v0 = vpop.permute.xlu2 %8520 }
 0x235   : > { %3239 = vmatpush.msrb.mxu1 %v3053_v42  ;;  %12587 = vst [vmem:[#allocation46_spill] sm:$0xff] %v10829_v39  ;;  %v10834_v42 = vld [vmem:[%s12563_s21 + $0x128] sm:$0xff]  ;;  %v8508_v49 = vunpack.i.h.bf16 %v10792_v8  ;;  %v3860_v39 = vld [vmem:[#allocation22 + $0x1c8] sm:$0xff] }
 0x236   : > { %3303 = vmatpush.msrb.mxu3 %v3055_v47  ;;  %v3473_v29 = vsel %vm3470_vm14, %v8492_v30, %v8493_v10  ;;  %v10840_v24 = vpop.f32.mrf.mxu2  ;;  %v8507_v47 = vunpack.i.l.bf16 %v10792_v8  ;;  %v10857_v8 = vld [vmem:[%s12563_s21 + $0x130] sm:$0xff] }
 0x237   : > { %7350 = vmatmul.msk.f32.gmra.mxu3 %vm1224_vm13, %v10606_v59  ;;  %7355 = vmatmul.msk.f32.gmra.mxu0 %vm1224_vm13, %v10606_v59  ;;  %12588 = vst [vmem:[#allocation47_spill] sm:$0xff] %v10840_v24 }
 0x238   : > { %7369 = vmatmul.msk.f32.gmra.mxu2 %vm1224_vm13, %v10806_v52  ;;  %3240 = vmatpush.msrb.mxu1 %v3035_v38 }
 0x239   : > { %7363 = vmatmul.msk.f32.vlgmr.msrb.gmra.mxu1 %vm1224_vm13, %v10768_v34  ;;  %v8486_v25 = vpop.permute.xlu1 %8485  ;;  %v3481_v32 = vpop.permute.xlu0 %3480 }
 0x23a   : > { %3574 = vmatpush.msra.mxu1 %v10127_v45  ;;  %v8488_v59 = vunpack.i.h.bf16 %v8486_v25  ;;  %v8487_v21 = vunpack.i.l.bf16 %v8486_v25  ;;  %v3482_v58 = vsel %vm1775_vm5, %v12586_v2, %v3481_v32  ;;  %v10848_v38 = vpop.f32.mrf.mxu0  ;;  %vm3452_vm5 = vcmask 474112  }
 0x23b   : > { %3606 = vmatpush.msra.mxu2 %v3482_v58  ;;  %12589 = vst [vmem:[#allocation48_spill] sm:$0xff] %v10848_v38  ;;  %v10852_v2 = vpop.f32.mrf.mxu3  ;;  %v10880_v38 = vld [vmem:[%s12563_s21 + $0x138] sm:$0xff] }
 0x23c   : > { %v3471_v26 = vsel %vm3470_vm14, %v8487_v21, %v8488_v59  ;;  %v3472_v40 = vsel %vm3470_vm14, %v8488_v59, %v8492_v30  ;;  %v10850_v59 = vpop.f32.mrf.mxu1  ;;  %12591 = vst [vmem:[#allocation50_spill] sm:$0xff] %v10852_v2 }
 0x23d   : > { %3543 = vmatpush.msra.mxu0 %v3471_v26  ;;  %3575 = vmatpush.msra.mxu1 %v3472_v40  ;;  %12590 = vst [vmem:[#allocation49_spill] sm:$0xff] %v10850_v59  ;;  %v3435_v26 = vsel %vm3434_vm15, %v8507_v47, %v8508_v49  ;;  %v10860_v40 = vpop.permute.xlu2 %8535  ;;  %v8522_v47 = vunpack.i.l.bf16 %v8521_v0 }
 0x23e   : > { %3607 = vmatpush.msra.mxu2 %v3473_v29 }
 0x23f   : > { %7351 = vmatmul.msk.f32.gmra.mxu3 %vm1224_vm13, %v10641_v3  ;;  %7356 = vmatmul.msk.f32.gmra.mxu0 %vm1224_vm13, %v10641_v3 }
 0x240   : > { %7370 = vmatmul.msk.f32.gmra.mxu2 %vm1224_vm13, %v10834_v42 }
 0x241   : > { %7364 = vmatmul.msk.f32.gmra.mxu1 %vm1224_vm13, %v10806_v52  ;;  %v8501_v45 = vpop.permute.xlu1 %8500  ;;  %v8496_v25 = vpop.permute.xlu0 %8495 }
 0x242   : > { %v8503_v10 = vunpack.i.h.bf16 %v8501_v45  ;;  %v8502_v30 = vunpack.i.l.bf16 %v8501_v45  ;;  %v8498_v3 = vunpack.i.h.bf16 %v8496_v25  ;;  %v8497_v32 = vunpack.i.l.bf16 %v8496_v25 }
 0x244   : > { %v3455_v21 = vsel %vm3452_vm5, %v8502_v30, %v8503_v10  ;;  %v3453_v58 = vsel %vm3452_vm5, %v8497_v32, %v8498_v3  ;;  %v3454_v29 = vsel %vm3452_vm5, %v8498_v3, %v8502_v30  ;;  %v10870_v10 = vpop.f32.mrf.mxu2  ;;  %v8523_v32 = vunpack.i.h.bf16 %v8521_v0  ;;  %v10883_v2 = vpop.f32.mrf.mxu1 }
 0x245   : > { %3608 = vmatpush.msra.mxu2 %v3455_v21  ;;  %3544 = vmatpush.msra.mxu0 %v3453_v58  ;;  %12592 = vst [vmem:[#allocation51_spill] sm:$0xff] %v10870_v10 }
 0x246   : > { %3576 = vmatpush.msra.mxu1 %v3454_v29  ;;  %v10872_v29 = vpop.f32.mrf.mxu0  ;;  %12594 = vst [vmem:[#allocation53_spill] sm:$0xff] %v10883_v2  ;;  %v3419_v0 = vsel %vm3416_vm8, %v8522_v47, %v8523_v32 }
 0x247   : > { %7352 = vmatmul.msk.f32.gmra.mxu3 %vm1224_vm13, %v10672_v5  ;;  %7357 = vmatmul.msk.f32.gmra.mxu0 %vm1224_vm13, %v10672_v5  ;;  %12593 = vst [vmem:[#allocation52_spill] sm:$0xff] %v10872_v29  ;;  %v9091_v29 = vmov 0  }
 0x248   : > { %7371 = vmatmul.msk.f32.gmra.mxu2 %vm1224_vm13, %v10857_v8  ;;  %3545 = vmatpush.msra.mxu0 %v3435_v26 }
 0x249   : > { %7365 = vmatmul.msk.f32.gmra.mxu1 %vm1224_vm13, %v10834_v42  ;;  %v8516_v45 = vpop.permute.xlu1 %8515  ;;  %v8511_v3 = vpop.permute.xlu0 %8510  ;;  %8564 = vset.pattern.permute.xlu0 %v9091_v29 }
 0x24a   : > { %v8518_v30 = vunpack.i.h.bf16 %v8516_v45  ;;  %v8517_v25 = vunpack.i.l.bf16 %v8516_v45  ;;  %v8513_v21 = vunpack.i.h.bf16 %v8511_v3  ;;  %v8512_v58 = vunpack.i.l.bf16 %v8511_v3  ;;  %v10886_v3 = vpop.f32.mrf.mxu3  ;;  %8565 = vset.pattern.permute.xlu1 %v9091_v29  ;;  %8566 = vset.pattern.permute.xlu2 %v9091_v29 }
 0x24c   : > { %v3417_v5 = vsel %vm3416_vm8, %v8517_v25, %v8518_v30  ;;  %v3436_v26 = vsel %vm3434_vm15, %v8508_v49, %v8512_v58  ;;  %v3437_v35 = vsel %vm3434_vm15, %v8512_v58, %v8513_v21  ;;  %v3418_v45 = vsel %vm3416_vm8, %v8518_v30, %v8522_v47  ;;  %v10890_v49 = vpop.permute.xlu2 %8545  ;;  %v3646_v58 = vld [vmem:[#allocation8] sm:$0xff]  ;;  %v10898_v2 = vpop.f32.mrf.mxu2 }
 0x24d   : > { %3546 = vmatpush.msra.mxu0 %v3417_v5  ;;  %3577 = vmatpush.msra.mxu1 %v3436_v26  ;;  %v8538_v30 = vunpack.i.h.bf16 %v10860_v40  ;;  %v8537_v21 = vunpack.i.l.bf16 %v10860_v40  ;;  %12595 = vst [vmem:[#allocation54_spill] sm:$0xff] %v10898_v2 }
 0x24e   : > { %3609 = vmatpush.msra.mxu2 %v3437_v35  ;;  %v10900_v10 = vpop.f32.mrf.mxu0  ;;  %3653 = vperm.xlu0 %8564, %v3646_v58  }
 0x24f   : > { %3578 = vmatpush.msra.mxu1 %v3418_v45  ;;  %v8548_v45 = vunpack.i.h.bf16 %v10890_v49  ;;  %v3381_v46 = vsel %vm3380_vm0, %v8537_v21, %v8538_v30 }
 0x250   : > { %7372 = vmatmul.msk.f32.gmra.mxu2 %vm1224_vm13, %v10880_v38 }
 0x251   : > { %3610 = vmatpush.msra.mxu2 %v3419_v0  ;;  %7366 = vmatmul.msk.f32.gmra.mxu1 %vm1224_vm13, %v10857_v8  ;;  %v8531_v25 = vpop.permute.xlu1 %8530  ;;  %v8526_v32 = vpop.permute.xlu0 %8525  ;;  %v8547_v0 = vunpack.i.l.bf16 %v10890_v49 }
 0x252   : > { %v8533_v35 = vunpack.i.h.bf16 %v8531_v25  ;;  %v8532_v47 = vunpack.i.l.bf16 %v8531_v25  ;;  %v8528_v5 = vunpack.i.h.bf16 %v8526_v32  ;;  %v8527_v26 = vunpack.i.l.bf16 %v8526_v32  ;;  %v3647_v25 = vld [vmem:[#allocation8 + $0x8] sm:$0xff]  ;;  %v10906_v49 = vpop.f32.mrf.mxu1 }
 0x253   : > { %3658 = vperm.xlu1 %8565, %v3647_v25   ;;  %v3363_v2 = vsel %vm3362_vm1, %v8547_v0, %v8548_v45 }
 0x254   : > { %v3401_v40 = vsel %vm3398_vm10, %v8532_v47, %v8533_v35  ;;  %v3399_v59 = vsel %vm3398_vm10, %v8527_v26, %v8528_v5  ;;  %v3400_v32 = vsel %vm3398_vm10, %v8528_v5, %v8532_v47  ;;  %v10909_v35 = vpop.f32.mrf.mxu3  ;;  %v12597_v47 = vunpack.i.h.bf16 %v10745_v15  ;;  %v8561_v15 = vpop.permute.xlu2 %8560 }
 0x255   : > { %3611 = vmatpush.msra.mxu2 %v3401_v40  ;;  %3547 = vmatpush.msra.mxu0 %v3399_v59  ;;  %12596 = vst [vmem:[#allocation55_spill] sm:$0xff] %v10909_v35  ;;  %v10916_v59 = vpop.f32.mrf.mxu2  ;;  %v3862_v35 = vld [vmem:[#allocation22 + $0x1d8] sm:$0xff] }
 0x256   : > { %3579 = vmatpush.msra.mxu1 %v3400_v32  ;;  %v10922_v25 = vpop.f32.mrf.mxu0 }
 0x257   : > { %3548 = vmatpush.msra.mxu0 %v3381_v46  ;;  %v3649_v46 = vld [vmem:[#allocation8 + $0x18] sm:$0xff] }
 0x259   : > { %7367 = vmatmul.msk.f32.gmra.mxu1 %vm1224_vm13, %v10880_v38  ;;  %v3033_v29 = vpop.permute.xlu1 %3032  ;;  %v8541_v58 = vpop.permute.xlu0 %8540  ;;  %3549 = vmatpush.msra.mxu0 %v3363_v2 }
 0x25a   : > { %v3037_v21 = vsel %vm3034_vm12, %v12597_v47, %v3033_v29  ;;  %v8543_v5 = vunpack.i.h.bf16 %v8541_v58  ;;  %v8542_v26 = vunpack.i.l.bf16 %v8541_v58  ;;  %v10924_v2 = vpop.f32.mrf.mxu1  ;;  %v8563_v29 = vunpack.i.h.bf16 %v8561_v15 }
 0x25b   : > { %3304 = vmatpush.msrb.mxu3 %v3037_v21  ;;  %3668 = vperm.xlu1 %8565, %v3649_v46   ;;  %v8562_v58 = vunpack.i.l.bf16 %v8561_v15 }
 0x25c   : > { %7373 = vmatmul.msk.f32.vlgmr.msrb.gmra.mxu3 %vm1224_vm13, %v10768_v34  ;;  %v3382_v0 = vsel %vm3380_vm0, %v8538_v30, %v8542_v26  ;;  %v3383_v40 = vsel %vm3380_vm0, %v8542_v26, %v8543_v5  ;;  %v10926_v24 = vpop.f32.mrf.mxu3  ;;  %v7378_v26 = vld [vmem:[%s12563_s21 + $0x140] sm:$0xff] }
 0x25d   : > { %3580 = vmatpush.msra.mxu1 %v3382_v0  ;;  %3612 = vmatpush.msra.mxu2 %v3383_v40  ;;  %12598 = vst [vmem:[#allocation56_spill] sm:$0xff] %v10926_v24  ;;  %v3347_v15 = vsel %vm3344_vm3, %v8562_v58, %v8563_v29 }
 0x261   : > { %v8556_v32 = vpop.permute.xlu1 %8555  ;;  %v8551_v34 = vpop.permute.xlu0 %8550 }
 0x262   : > { %v8558_v47 = vunpack.i.h.bf16 %v8556_v32  ;;  %v8557_v21 = vunpack.i.l.bf16 %v8556_v32  ;;  %v8553_v30 = vunpack.i.h.bf16 %v8551_v34  ;;  %v8552_v44 = vunpack.i.l.bf16 %v8551_v34  ;;  %v10938_v32 = vpop.f32.mrf.mxu2 }
 0x263   : > { %12599 = vst [vmem:[#allocation57_spill] sm:$0xff] %v10938_v32  ;;  %v3865_v32 = vld [vmem:[#allocation22 + $0x1f0] sm:$0xff] }
 0x264   : > { %7374 = vmatmul.msk.f32.gmra.mxu3 %vm1224_vm13, %v10806_v52  ;;  %v3345_v5 = vsel %vm3344_vm3, %v8557_v21, %v8558_v47  ;;  %v3364_v46 = vsel %vm3362_vm1, %v8548_v45, %v8552_v44  ;;  %v3365_v0 = vsel %vm3362_vm1, %v8552_v44, %v8553_v30  ;;  %v3346_v40 = vsel %vm3344_vm3, %v8558_v47, %v8562_v58  ;;  %v10941_v52 = vpop.f32.mrf.mxu0  ;;  %v10945_v45 = vpop.f32.mrf.mxu1  ;;  %v7379_v44 = vld [vmem:[%s12563_s21 + $0x148] sm:$0xff] }
 0x265   : > { %3550 = vmatpush.msra.mxu0 %v3345_v5  ;;  %3581 = vmatpush.msra.mxu1 %v3364_v46  ;;  %12600 = vst [vmem:[#allocation58_spill] sm:$0xff] %v10941_v52  ;;  %v10952_v29 = vpop.f32.mrf.mxu3  ;;  %v3648_v21 = vld [vmem:[#allocation8 + $0x10] sm:$0xff]  ;;  %v3717_v52 = vld [vmem:[#allocation22 + $0x58] sm:$0xff] }
 0x266   : > { %3613 = vmatpush.msra.mxu2 %v3365_v0  ;;  %7383 = vmatmul.msk.f32.vlgmr.msra.gmra.mxu0 %vm1224_vm13, %v7378_v26  ;;  %12601 = vst [vmem:[#allocation59_spill] sm:$0xff] %v10945_v45  ;;  %v3866_v45 = vld [vmem:[#allocation22 + $0x1f8] sm:$0xff] }
 0x267   : > { %3582 = vmatpush.msra.mxu1 %v3346_v40  ;;  %12602 = vst [vmem:[#allocation60_spill] sm:$0xff] %v10952_v29  ;;  %3663 = vperm.xlu2 %8566, %v3648_v21  }
 0x268   : > { %3614 = vmatpush.msra.mxu2 %v3347_v15  ;;  %7388 = vmatmul.msk.f32.vlgmr.msra.gmra.mxu1 %vm1224_vm13, %v7378_v26 }
 0x269   : > { %7393 = vmatmul.msk.f32.vlgmr.msra.gmra.mxu2 %vm1224_vm13, %v7378_v26  ;;  %v3650_v26 = vld [vmem:[#allocation8 + $0x20] sm:$0xff] }
 0x26a   : > { %v10955_v58 = vpop.f32.mrf.mxu2  ;;  %3899 = vmatpush.msrb.mxu2 %v3866_v45 }
 0x26b   : > { %12603 = vst [vmem:[#allocation61_spill] sm:$0xff] %v10955_v58 }
 0x26c   : > { %7375 = vmatmul.msk.f32.gmra.mxu3 %vm1224_vm13, %v10834_v42  ;;  %v10959_v47 = vpop.f32.mrf.mxu0  ;;  %v10961_v34 = vpop.f32.mrf.mxu1  ;;  %v7380_v42 = vld [vmem:[%s12563_s21 + $0x150] sm:$0xff]  ;;  %3900 = vmatpush.msrb.mxu2 %v3865_v32 }
 0x26d   : > { %12604 = vst [vmem:[#allocation62_spill] sm:$0xff] %v10959_v47  ;;  %v10968_v30 = vpop.f32.mrf.mxu3 }
 0x26e   : > { %7384 = vmatmul.msk.f32.gmra.mxu0 %vm1224_vm13, %v7379_v44  ;;  %12605 = vst [vmem:[#allocation63_spill] sm:$0xff] %v10961_v34 }
 0x26f   : > { %12606 = vst [vmem:[#allocation64_spill] sm:$0xff] %v10968_v30  ;;  %3673 = vperm.xlu2 %8566, %v3650_v26  }
 0x270   : > { %7389 = vmatmul.msk.f32.gmra.mxu1 %vm1224_vm13, %v7379_v44 }
 0x271   : > { %7394 = vmatmul.msk.f32.gmra.mxu2 %vm1224_vm13, %v7379_v44 }
 0x272   : > { %v10973_v5 = vpop.f32.mrf.mxu2 }
 0x273   : > { %12607 = vst [vmem:[#allocation65_spill] sm:$0xff] %v10973_v5 }
 0x274   : > { %7376 = vmatmul.msk.f32.gmra.mxu3 %vm1224_vm13, %v10857_v8  ;;  %v10975_v46 = vpop.f32.mrf.mxu0  ;;  %v7381_v8 = vld [vmem:[%s12563_s21 + $0x158] sm:$0xff]  ;;  %v10982_v0 = vpop.f32.mrf.mxu1 }
 0x275   : > { %12608 = vst [vmem:[#allocation66_spill] sm:$0xff] %v10975_v46  ;;  %v10984_v40 = vpop.f32.mrf.mxu3 }
 0x276   : > { %7385 = vmatmul.msk.f32.gmra.mxu0 %vm1224_vm13, %v7380_v42  ;;  %12609 = vst [vmem:[#allocation67_spill] sm:$0xff] %v10982_v0 }
 0x278   : > { %7390 = vmatmul.msk.f32.gmra.mxu1 %vm1224_vm13, %v7380_v42 }
 0x279   : > { %7395 = vmatmul.msk.f32.gmra.mxu2 %vm1224_vm13, %v7380_v42 }
 0x27a   : > { %v10989_v15 = vpop.f32.mrf.mxu2 }
 0x27b   : > { %12610 = vst [vmem:[#allocation68_spill] sm:$0xff] %v10989_v15 }
 0x27c   : > { %7377 = vmatmul.msk.f32.gmra.mxu3 %vm1224_vm13, %v10880_v38  ;;  %v10991_v44 = vpop.f32.mrf.mxu0  ;;  %v7382_v38 = vld [vmem:[%s12563_s21 + $0x160] sm:$0xff]  ;;  %v10996_v21 = vpop.f32.mrf.mxu1 }
 0x27d   : > { %v10999_v42 = vpop.f32.mrf.mxu3 }
 0x27e   : > { %7386 = vmatmul.msk.f32.gmra.mxu0 %vm1224_vm13, %v7381_v8 }
 0x280   : > { %7391 = vmatmul.msk.f32.gmra.mxu1 %vm1224_vm13, %v7381_v8 }
 0x281   : > { %7396 = vmatmul.msk.f32.gmra.mxu2 %vm1224_vm13, %v7381_v8 }
 0x282   : > { %v11003_v26 = vpop.f32.mrf.mxu2 }
 0x284   : > { %v11005_v8 = vpop.f32.mrf.mxu0  ;;  %v11007_v15 = vpop.f32.mrf.mxu1 }
 0x285   : > { %12611 = vst [vmem:[#allocation69_spill] sm:$0xff] %v11005_v8  ;;  %v11009_v30 = vpop.f32.mrf.mxu3  ;;  %v3858_v8 = vld [vmem:[#allocation22 + $0x1b8] sm:$0xff] }
 0x286   : > { %7387 = vmatmul.msk.f32.gmra.mxu0 %vm1224_vm13, %v7382_v38  ;;  %12612 = vst [vmem:[#allocation70_spill] sm:$0xff] %v11007_v15 }
 0x287   : > { %12613 = vst [vmem:[#allocation71_spill] sm:$0xff] %v11009_v30  ;;  %v3721_v30 = vld [vmem:[#allocation22 + $0x78] sm:$0xff] }
 0x288   : > { %7392 = vmatmul.msk.f32.gmra.mxu1 %vm1224_vm13, %v7382_v38  ;;  %3754 = vmatpush.msra.mxu3 %v3721_v30  ;;  %v3863_v30 = vld [vmem:[#allocation22 + $0x1e0] sm:$0xff] }
 0x289   : > { %7397 = vmatmul.msk.f32.gmra.mxu2 %vm1224_vm13, %v7382_v38 }
 0x28a   : > { %v11011_v0 = vpop.f32.mrf.mxu2 }
 0x28b   : > { %12614 = vst [vmem:[#allocation72_spill] sm:$0xff] %v11011_v0  ;;  %v3713_v0 = vld [vmem:[#allocation22 + $0x38] sm:$0xff] }
 0x28c   : > { %v11013_v5 = vpop.f32.mrf.mxu0  ;;  %v11015_v46 = vpop.f32.mrf.mxu1 }
 0x28d   : > { %12615 = vst [vmem:[#allocation73_spill] sm:$0xff] %v11013_v5  ;;  %v11017_v29 = vpop.f32.mrf.mxu3 }
 0x28e   : > { %12616 = vst [vmem:[#allocation74_spill] sm:$0xff] %v11015_v46  ;;  %v3720_v46 = vld [vmem:[#allocation22 + $0x70] sm:$0xff] }
 0x28f   : > { %12617 = vst [vmem:[#allocation75_spill] sm:$0xff] %v11017_v29  ;;  %v3737_v29 = vld [vmem:[#allocation22 + $0xf8] sm:$0xff]  ;;  %3755 = vmatpush.msra.mxu3 %v3720_v46  ;;  %v3734_v46 = vld [vmem:[#allocation22 + $0xe0] sm:$0xff] }
 0x290   : > { %3786 = vmatpush.msrb.mxu0 %v3737_v29  ;;  %v3753_v29 = vld [vmem:[#allocation22 + $0x178] sm:$0xff] }
 0x291   : > { %3818 = vmatpush.msrb.mxu1 %v3753_v29  ;;  %v3750_v29 = vld [vmem:[#allocation22 + $0x160] sm:$0xff] }
 0x292   : > { %v11019_v34 = vpop.f32.mrf.mxu2 }
 0x293   : > { %12618 = vst [vmem:[#allocation76_spill] sm:$0xff] %v11019_v34 }
 0x294   : > { %v11021_v58 = vpop.f32.mrf.mxu0  ;;  %v11023_v38 = vpop.f32.mrf.mxu1 }
 0x295   : > { %12619 = vst [vmem:[#allocation77_spill] sm:$0xff] %v11021_v58  ;;  %v11025_v47 = vpop.f32.mrf.mxu3  ;;  %v3736_v58 = vld [vmem:[#allocation22 + $0xf0] sm:$0xff] }
 0x296   : > { %12620 = vst [vmem:[#allocation78_spill] sm:$0xff] %v11023_v38  ;;  %v3719_v38 = vld [vmem:[#allocation22 + $0x68] sm:$0xff]  ;;  %3787 = vmatpush.msrb.mxu0 %v3736_v58  ;;  %v3716_v58 = vld [vmem:[#allocation22 + $0x50] sm:$0xff] }
 0x297   : > { %12621 = vst [vmem:[#allocation79_spill] sm:$0xff] %v11025_v47  ;;  %v3864_v47 = vld [vmem:[#allocation22 + $0x1e8] sm:$0xff]  ;;  %3756 = vmatpush.msra.mxu3 %v3719_v38  ;;  %v3752_v38 = vld [vmem:[#allocation22 + $0x170] sm:$0xff] }
 0x298   : > { %3901 = vmatpush.msrb.mxu2 %v3864_v47  ;;  %v3733_v47 = vld [vmem:[#allocation22 + $0xd8] sm:$0xff]  ;;  %3819 = vmatpush.msrb.mxu1 %v3752_v38 }
 0x29a   : > { %v11027_v24 = vpop.f32.mrf.mxu2  ;;  %3902 = vmatpush.msrb.mxu2 %v3863_v30  ;;  %v3751_v30 = vld [vmem:[#allocation22 + $0x168] sm:$0xff] }
 0x29b   : > { %12622 = vst [vmem:[#allocation80_spill] sm:$0xff] %v11027_v24  ;;  %v3735_v24 = vld [vmem:[#allocation22 + $0xe8] sm:$0xff]  ;;  %3820 = vmatpush.msrb.mxu1 %v3751_v30  ;;  %v3728_v30 = vld [vmem:[#allocation22 + $0xb0] sm:$0xff] }
 0x29c   : > { %v11029_v15 = vpop.f32.mrf.mxu0  ;;  %v11031_v5 = vpop.f32.mrf.mxu1  ;;  %3788 = vmatpush.msrb.mxu0 %v3735_v24  ;;  %3903 = vmatpush.msrb.mxu2 %v3862_v35  ;;  %v3861_v24 = vld [vmem:[#allocation22 + $0x1d0] sm:$0xff]  ;;  %v3859_v35 = vld [vmem:[#allocation22 + $0x1c0] sm:$0xff] }
 0x29d   : > { %12623 = vst [vmem:[#allocation81_spill] sm:$0xff] %v11029_v15  ;;  %v3718_v15 = vld [vmem:[#allocation22 + $0x60] sm:$0xff]  ;;  %3821 = vmatpush.msrb.mxu1 %v3750_v29  ;;  %v3856_v29 = vld [vmem:[#allocation22 + $0x1a8] sm:$0xff] }
 0x29e   : > { %12624 = vst [vmem:[#allocation82_spill] sm:$0xff] %v11031_v5  ;;  %3757 = vmatpush.msra.mxu3 %v3718_v15  ;;  %3789 = vmatpush.msrb.mxu0 %v3734_v46  ;;  %v3715_v15 = vld [vmem:[#allocation22 + $0x48] sm:$0xff] }
 0x29f   : > { %3904 = vmatpush.msrb.mxu2 %v3861_v24  ;;  %v3731_v46 = vld [vmem:[#allocation22 + $0xc8] sm:$0xff]  ;;  %v3712_v24 = vld [vmem:[#allocation22 + $0x30] sm:$0xff] }
 0x2a0   : > { %3758 = vmatpush.msra.mxu3 %v3717_v52  ;;  %3790 = vmatpush.msrb.mxu0 %v3733_v47  ;;  %v3749_v47 = vld [vmem:[#allocation22 + $0x158] sm:$0xff] }
 0x2a1   : > { %3905 = vmatpush.msrb.mxu2 %v3860_v39  ;;  %3822 = vmatpush.msrb.mxu1 %v3749_v47 }
 0x2a2   : > { %v11035_v45 = vpop.f32.mrf.mxu2  ;;  %3759 = vmatpush.msra.mxu3 %v3716_v58  ;;  %v3730_v58 = vld [vmem:[#allocation22 + $0xc0] sm:$0xff] }
 0x2a3   : > { %12625 = vst [vmem:[#allocation83_spill] sm:$0xff] %v11035_v45  ;;  %v3732_v45 = vld [vmem:[#allocation22 + $0xd0] sm:$0xff]  ;;  %3906 = vmatpush.msrb.mxu2 %v3859_v35  ;;  %v3727_v35 = vld [vmem:[#allocation22 + $0xa8] sm:$0xff] }
 0x2a4   : > { %v11037_v5 = vpop.f32.mrf.mxu0  ;;  %3760 = vmatpush.msra.mxu3 %v3715_v15  ;;  %3791 = vmatpush.msrb.mxu0 %v3732_v45  ;;  %v3748_v45 = vld [vmem:[#allocation22 + $0x150] sm:$0xff] }
 0x2a5   : > { %12626 = vst [vmem:[#allocation84_spill] sm:$0xff] %v11037_v5  ;;  %v3714_v5 = vld [vmem:[#allocation22 + $0x40] sm:$0xff]  ;;  %v3857_v15 = vld [vmem:[#allocation22 + $0x1b0] sm:$0xff]  ;;  %3907 = vmatpush.msrb.mxu2 %v3858_v8  ;;  %3823 = vmatpush.msrb.mxu1 %v3748_v45  ;;  %v3854_v45 = vld [vmem:[#allocation22 + $0x198] sm:$0xff] }
 0x2a6   : > { %3761 = vmatpush.msra.mxu3 %v3714_v5  ;;  %3792 = vmatpush.msrb.mxu0 %v3731_v46  ;;  %v3711_v5 = vld [vmem:[#allocation22 + $0x28] sm:$0xff]  ;;  %v3726_v8 = vld [vmem:[#allocation22 + $0xa0] sm:$0xff] }
 0x2a7   : > { %3908 = vmatpush.msrb.mxu2 %v3857_v15  ;;  %v3747_v46 = vld [vmem:[#allocation22 + $0x148] sm:$0xff] }
 0x2a8   : > { %3762 = vmatpush.msra.mxu3 %v3713_v0  ;;  %3793 = vmatpush.msrb.mxu0 %v3730_v58  ;;  %v3710_v0 = vld [vmem:[#allocation22 + $0x20] sm:$0xff] }
 0x2a9   : > { %v11033_v34 = vpop.f32.mrf.mxu3  ;;  %3824 = vmatpush.msrb.mxu1 %v3747_v46  ;;  %3909 = vmatpush.msrb.mxu2 %v3856_v29  ;;  %v3746_v58 = vld [vmem:[#allocation22 + $0x140] sm:$0xff]  ;;  %v3744_v46 = vld [vmem:[#allocation22 + $0x130] sm:$0xff] }
 0x2aa   : > { %3763 = vmatpush.msra.mxu3 %v3712_v24  ;;  %3794 = vmatpush.msrb.mxu0 %v3729_v36  ;;  %v3709_v36 = vld [vmem:[#allocation22 + $0x18] sm:$0xff]  ;;  %v3853_v29 = vld [vmem:[#allocation22 + $0x190] sm:$0xff] }
 0x2ab   : > { %3825 = vmatpush.msrb.mxu1 %v3746_v58  ;;  %v3745_v24 = vld [vmem:[#allocation22 + $0x138] sm:$0xff]  ;;  %v3743_v58 = vld [vmem:[#allocation22 + $0x128] sm:$0xff] }
 0x2ac   : > { %3764 = vmatpush.msra.mxu3 %v3711_v5  ;;  %3795 = vmatpush.msrb.mxu0 %v3728_v30  ;;  %v3708_v5 = vld [vmem:[#allocation22 + $0x10] sm:$0xff]  ;;  %v3725_v30 = vld [vmem:[#allocation22 + $0x98] sm:$0xff] }
 0x2ad   : > { %3826 = vmatpush.msrb.mxu1 %v3745_v24  ;;  %v3706_v24 = vld [vmem:[#allocation22] sm:$0xff] }
 0x2ae   : > { %3765 = vmatpush.msra.mxu3 %v3710_v0  ;;  %3796 = vmatpush.msrb.mxu0 %v3727_v35  ;;  %v3724_v35 = vld [vmem:[#allocation22 + $0x90] sm:$0xff] }
 0x2af   : > { %3827 = vmatpush.msrb.mxu1 %v3744_v46  ;;  %v3741_v46 = vld [vmem:[#allocation22 + $0x118] sm:$0xff] }
 0x2b0   : > { %3766 = vmatpush.msra.mxu3 %v3709_v36  ;;  %3797 = vmatpush.msrb.mxu0 %v3726_v8  ;;  %v3852_v36 = vld [vmem:[#allocation22 + $0x188] sm:$0xff] }
 0x2b1   : > { %v11041_v52 = vpop.f32.mrf.mxu3  ;;  %3828 = vmatpush.msrb.mxu1 %v3743_v58  ;;  %v3739_v58 = vld [vmem:[#allocation22 + $0x108] sm:$0xff] }
 0x2b2   : > { %12627 = vst [vmem:[#allocation85_spill] sm:$0xff] %v11041_v52  ;;  %v11043_v38 = vpop.f32.mrf.mxu2  ;;  %v11045_v52 = vpop.f32.mrf.mxu0  ;;  %3767 = vmatpush.msra.mxu3 %v3708_v5  ;;  %3798 = vmatpush.msrb.mxu0 %v3725_v30  ;;  %v3851_v5 = vld [vmem:[#allocation22 + $0x180] sm:$0xff] }
 0x2b3   : > { %12628 = vst [vmem:[#allocation86_spill] sm:$0xff] %v11045_v52  ;;  %v3855_v52 = vld [vmem:[#allocation22 + $0x1a0] sm:$0xff] }
 0x2b4   : > { %3910 = vmatpush.msrb.mxu2 %v3855_v52  ;;  %v3707_v52 = vld [vmem:[#allocation22 + $0x8] sm:$0xff]  ;;  %3799 = vmatpush.msrb.mxu0 %v3724_v35  ;;  %v3722_v30 = vld [vmem:[#allocation22 + $0x80] sm:$0xff] }
 0x2b5   : > { %3768 = vmatpush.msra.mxu3 %v3707_v52  ;;  %v3740_v52 = vld [vmem:[#allocation22 + $0x110] sm:$0xff] }
 0x2b6   : > { %v11039_v32 = vpop.f32.mrf.mxu1  ;;  %3911 = vmatpush.msrb.mxu2 %v3854_v45  ;;  %v3723_v45 = vld [vmem:[#allocation22 + $0x88] sm:$0xff] }
 0x2b7   : > { %3769 = vmatpush.msra.mxu3 %v3706_v24  ;;  %3800 = vmatpush.msrb.mxu0 %v3723_v45  ;;  %v4032_v45 = vld [vmem:[#allocation22 + $0x3f8] sm:$0xff] }
 0x2b8   : > { %3912 = vmatpush.msrb.mxu2 %v3853_v29 }
 0x2b9   : > { %3801 = vmatpush.msrb.mxu0 %v3722_v30  ;;  %v1401_v30 = vadd.f32 %v10523_v27, %v10313_v17  ;;  %v3896_v27 = vld [vmem:[#allocation22 + $0x2e8] sm:$0xff] }
 0x2ba   : > { %v11049_v47 = vpop.f32.mrf.mxu3  ;;  %v11053_v0 = vpop.f32.mrf.mxu0  ;;  %3913 = vmatpush.msrb.mxu2 %v3852_v36 }
 0x2bb   : > { %12629 = vst [vmem:[#allocation87_spill] sm:$0xff] %v11049_v47  ;;  %v11051_v15 = vpop.f32.mrf.mxu2  ;;  %v3742_v47 = vld [vmem:[#allocation22 + $0x120] sm:$0xff] }
 0x2bc   : > { %12630 = vst [vmem:[#allocation88_spill] sm:$0xff] %v11053_v0  ;;  %3829 = vmatpush.msrb.mxu1 %v3742_v47  ;;  %3914 = vmatpush.msrb.mxu2 %v3851_v5  ;;  %v3738_v0 = vld [vmem:[#allocation22 + $0x100] sm:$0xff]  ;;  %v3882_v47 = vld [vmem:[#allocation22 + $0x278] sm:$0xff]  ;;  %v1369_v5 = vadd.f32 %v10481_v23, %v10295_v9  ;;  %v1753_v9 = vadd.f32 %v10700_v54, %v1401_v30 }
 0x2bd   : > { %3931 = vmatpush.msrb.mxu3 %v3882_v47  ;;  %v3879_v23 = vld [vmem:[#allocation22 + $0x260] sm:$0xff]  ;;  %v1404_v54 = vadd.f32 %v10570_v22, %v10360_v57  ;;  %v3878_v30 = vld [vmem:[#allocation22 + $0x258] sm:$0xff]  ;;  %v11100_v22 = vadd.f32 %v10625_v14, %v10425_v50  ;;  %v11116_v14 = vadd.f32 %v10667_v12, %v10463_v28  ;;  %v12636_v28 = vld [vmem:[#allocation38_spill] sm:$0xff] }
 0x2be   : > { %v11047_v39 = vpop.f32.mrf.mxu1  ;;  %3830 = vmatpush.msrb.mxu1 %v3741_v46  ;;  %4081 = vmatpush.msra.mxu2 %v4032_v45  ;;  %v3881_v46 = vld [vmem:[#allocation22 + $0x270] sm:$0xff]  ;;  %v4029_v47 = vld [vmem:[#allocation22 + $0x3e0] sm:$0xff]  ;;  %v1372_v45 = vadd.f32 %v10536_v7, %v10352_v18  ;;  %v4016_v18 = vld [vmem:[#allocation22 + $0x378] sm:$0xff]  ;;  %v2074_v7 = vadd.f32 %v10754_v62, %v1753_v9 }
 0x2bf   : > { %3932 = vmatpush.msrb.mxu3 %v3881_v46  ;;  %v3895_v46 = vld [vmem:[#allocation22 + $0x2e0] sm:$0xff]  ;;  %v4028_v57 = vld [vmem:[#allocation22 + $0x3d8] sm:$0xff]  ;;  %v4015_v62 = vld [vmem:[#allocation22 + $0x370] sm:$0xff]  ;;  %v1756_v50 = vadd.f32 %v10726_v55, %v1404_v54 }
 0x2c0   : > { %3831 = vmatpush.msrb.mxu1 %v3740_v52  ;;  %v3898_v52 = vld [vmem:[#allocation22 + $0x2f8] sm:$0xff] }
 0x2c1   : > { %3963 = vmatpush.msra.mxu0 %v3898_v52  ;;  %v12635_v55 = vld [vmem:[#allocation35_spill] sm:$0xff] }
 0x2c2   : > { %v11057_v29 = vpop.f32.mrf.mxu3  ;;  %v11061_v36 = vpop.f32.mrf.mxu0  ;;  %3832 = vmatpush.msrb.mxu1 %v3739_v58  ;;  %v3880_v58 = vld [vmem:[#allocation22 + $0x268] sm:$0xff]  ;;  %v1410_v12 = vadd.f32 %v12636_v28, %v12635_v55 }
 0x2c3   : > { %12631 = vst [vmem:[#allocation89_spill] sm:$0xff] %v11057_v29  ;;  %v11059_v35 = vpop.f32.mrf.mxu2  ;;  %v4031_v29 = vld [vmem:[#allocation22 + $0x3f0] sm:$0xff]  ;;  %3933 = vmatpush.msrb.mxu3 %v3880_v58 }
 0x2c4   : > { %12632 = vst [vmem:[#allocation90_spill] sm:$0xff] %v11059_v35  ;;  %3833 = vmatpush.msrb.mxu1 %v3738_v0  ;;  %4082 = vmatpush.msra.mxu2 %v4031_v29  ;;  %v3897_v0 = vld [vmem:[#allocation22 + $0x2f0] sm:$0xff] }
 0x2c5   : > { %12633 = vst [vmem:[#allocation91_spill] sm:$0xff] %v11061_v36  ;;  %v4030_v36 = vld [vmem:[#allocation22 + $0x3e8] sm:$0xff]  ;;  %3964 = vmatpush.msra.mxu0 %v3897_v0  ;;  %3934 = vmatpush.msrb.mxu3 %v3879_v23  ;;  %v3875_v23 = vld [vmem:[#allocation22 + $0x240] sm:$0xff] }
 0x2c6   : > { %v11055_v8 = vpop.f32.mrf.mxu1  ;;  %4083 = vmatpush.msra.mxu2 %v4030_v36  ;;  %4049 = vmatpush.msra.mxu1 %v4016_v18 }
 0x2c7   : > { %3965 = vmatpush.msra.mxu0 %v3896_v27  ;;  %3935 = vmatpush.msrb.mxu3 %v3878_v30  ;;  %v3892_v27 = vld [vmem:[#allocation22 + $0x2c8] sm:$0xff] }
 0x2c8   : > { %4084 = vmatpush.msra.mxu2 %v4029_v47  ;;  %4050 = vmatpush.msra.mxu1 %v4015_v62  ;;  %v3873_v62 = vld [vmem:[#allocation22 + $0x230] sm:$0xff] }
 0x2c9   : > { %3966 = vmatpush.msra.mxu0 %v3895_v46 }
 0x2ca   : > { %v11069_v35 = vpop.f32.mrf.mxu3  ;;  %v11086_v36 = vpop.f32.mrf.mxu0  ;;  %4085 = vmatpush.msra.mxu2 %v4028_v57  ;;  %v12638_v57 = vld [vmem:[#allocation36_spill] sm:$0xff] }
 0x2cb   : > { %v11073_v17 = vpop.f32.mrf.mxu2 }
 0x2ce   : > { %v11063_v24 = vpop.f32.mrf.mxu1 }
 0x2cf   : > { %12634 = vst [vmem:[#allocation92_spill] sm:$0xff] %v11063_v24  ;;  %v1752_v24 = vadd.f32 %v10558_v60, %v1369_v5  ;;  %v1433_v60 = vadd.f32 %v10538_v33, %v10337_v31  ;;  %v11084_v5 = vadd.f32 %v10579_v43, %v10390_v11  ;;  %v1378_v11 = vadd.f32 %v10623_v6, %v10436_v53 }
 0x2d0   : > { %v11096_v33 = vadd.f32 %v10619_v1, %v10406_v13  ;;  %v4027_v1 = vld [vmem:[#allocation22 + $0x3d0] sm:$0xff]  ;;  %v11111_v13 = vadd.f32 %v10665_v61, %v10469_v48  ;;  %v4026_v48 = vld [vmem:[#allocation22 + $0x3c8] sm:$0xff] }
 0x2d1   : > { %v2073_v29 = vadd.f32 %v10729_v4, %v1752_v24  ;;  %v1375_v4 = vadd.f32 %v10577_v41, %v10395_v19  ;;  %v3877_v19 = vld [vmem:[#allocation22 + $0x250] sm:$0xff]  ;;  %v3894_v41 = vld [vmem:[#allocation22 + $0x2d8] sm:$0xff]  ;;  %v2395_v24 = vadd.f32 %v10906_v49, %v2074_v7  ;;  %4086 = vmatpush.msra.mxu2 %v4027_v1  ;;  %v1754_v52 = vadd.f32 %v10720_v63, %v1433_v60  ;;  %v4013_v63 = vld [vmem:[#allocation22 + $0x360] sm:$0xff] }
 0x2d2   : > { %3936 = vmatpush.msrb.mxu3 %v3877_v19  ;;  %3967 = vmatpush.msra.mxu0 %v3894_v41  ;;  %v3893_v49 = vld [vmem:[#allocation22 + $0x2d0] sm:$0xff] }
 0x2d3   : > { %v2394_v31 = vadd.f32 %v10900_v10, %v2073_v29  ;;  %v1755_v10 = vadd.f32 %v10612_v16, %v1372_v45  ;;  %v3876_v16 = vld [vmem:[#allocation22 + $0x248] sm:$0xff]  ;;  %v2701_v58 = vadd.f32 %v10991_v44, %v2395_v24  ;;  %v11122_v61 = vadd.f32 %v10651_v51, %v1375_v4  ;;  %4087 = vmatpush.msra.mxu2 %v4026_v48  ;;  %v11130_v45 = vpop.permute.xlu0 %3653  ;;  %v4025_v51 = vld [vmem:[#allocation22 + $0x3c0] sm:$0xff]  ;;  %v12637_v29 = vld [vmem:[#allocation39_spill] sm:$0xff]  ;;  %v11137_v30 = vpop.f32.mrf.mxu2 }
 0x2d4   : > { %3937 = vmatpush.msrb.mxu3 %v3876_v16  ;;  %3968 = vmatpush.msra.mxu0 %v3893_v49  ;;  %v2075_v44 = vadd.f32 %v10886_v3, %v1754_v52  ;;  %v11133_v60 = vadd.f32 %v12637_v29, %v1378_v11  ;;  %v3874_v3 = vld [vmem:[#allocation22 + $0x238] sm:$0xff]  ;;  %v4023_v1 = vld [vmem:[#allocation22 + $0x3b0] sm:$0xff]  ;;  %v12641_v16 = vld [vmem:[#allocation69_spill] sm:$0xff] }
 0x2d5   : > { %v2700_v53 = vadd.f32 %v10984_v40, %v2394_v31  ;;  %v4014_v40 = vld [vmem:[#allocation22 + $0x368] sm:$0xff]  ;;  %v2076_v9 = vadd.f32 %v10787_v20, %v1755_v10  ;;  %v2077_v20 = vadd.f32 %v10808_v56, %v1756_v50  ;;  %4088 = vmatpush.msra.mxu2 %v4025_v51  ;;  %v4024_v31 = vld [vmem:[#allocation22 + $0x3b8] sm:$0xff]  ;;  %v12639_v56 = vld [vmem:[#allocation40_spill] sm:$0xff]  ;;  %v1759_v50 = vadd.f32 %v10785_v37, %v11096_v33 }
 0x2d6   : > { %v11102_v43 = vpop.f32.mrf.mxu1  ;;  %4051 = vmatpush.msra.mxu1 %v4014_v40  ;;  %3938 = vmatpush.msrb.mxu3 %v3875_v23  ;;  %v2396_v18 = vadd.f32 %v10916_v59, %v2075_v44  ;;  %v11143_v11 = vadd.f32 %v12639_v56, %v12638_v57  ;;  %v3890_v10 = vld [vmem:[#allocation22 + $0x2b8] sm:$0xff]  ;;  %v4011_v59 = vld [vmem:[#allocation22 + $0x350] sm:$0xff]  ;;  %v3872_v40 = vld [vmem:[#allocation22 + $0x228] sm:$0xff] }
 0x2d7   : > { %v3011_v0 = vadd.f32 %v11003_v26, %v2700_v53  ;;  %v3012_v26 = vadd.f32 %v11033_v34, %v2701_v58  ;;  %3969 = vmatpush.msra.mxu0 %v3892_v27  ;;  %v2397_v54 = vadd.f32 %v10922_v25, %v2076_v9  ;;  %v3891_v34 = vld [vmem:[#allocation22 + $0x2c0] sm:$0xff]  ;;  %v2398_v25 = vadd.f32 %v10924_v2, %v2077_v20  ;;  %v12640_v2 = vld [vmem:[#allocation43_spill] sm:$0xff]  ;;  %v3889_v52 = vld [vmem:[#allocation22 + $0x2b0] sm:$0xff] }
 0x2d8   : > { %4052 = vmatpush.msra.mxu1 %v4013_v63  ;;  %3939 = vmatpush.msrb.mxu3 %v3874_v3  ;;  %v4010_v58 = vld [vmem:[#allocation22 + $0x348] sm:$0xff]  ;;  %v12643_v48 = vld [vmem:[#allocation84_spill] sm:$0xff]  ;;  %v12645_v27 = vld [vmem:[#allocation55_spill] sm:$0xff] }
 0x2d9   : > { %v3321_v47 = vadd.f32 %v11039_v32, %v3011_v0  ;;  %v4012_v32 = vld [vmem:[#allocation22 + $0x358] sm:$0xff]  ;;  %v3322_v4 = vadd.f32 %v11043_v38, %v3012_v26  ;;  %3970 = vmatpush.msra.mxu0 %v3891_v34  ;;  %v2703_v19 = vadd.f32 %v10999_v42, %v2397_v54  ;;  %4089 = vmatpush.msra.mxu2 %v4024_v31  ;;  %v4022_v37 = vld [vmem:[#allocation22 + $0x3a8] sm:$0xff]  ;;  %v4009_v29 = vld [vmem:[#allocation22 + $0x340] sm:$0xff] }
 0x2da   : > { %4053 = vmatpush.msra.mxu1 %v4012_v32  ;;  %v2702_v38 = vadd.f32 %v10996_v21, %v2396_v18  ;;  %3940 = vmatpush.msrb.mxu3 %v3873_v62  ;;  %v1757_v42 = vadd.f32 %v12640_v2, %v11084_v5  ;;  %v2704_v49 = vadd.f32 %v12641_v16, %v2398_v25  ;;  %v12642_v21 = vld [vmem:[#allocation72_spill] sm:$0xff]  ;;  %v12644_v5 = vld [vmem:[#allocation46_spill] sm:$0xff]  ;;  %v12646_v44 = vld [vmem:[#allocation45_spill] sm:$0xff]  ;;  %v11182_v2 = vpop.permute.xlu1 %3658 }
 0x2db   : > { %3971 = vmatpush.msra.mxu0 %v3890_v10  ;;  %4090 = vmatpush.msra.mxu2 %v4023_v1  ;;  %v3014_v0 = vadd.f32 %v12642_v21, %v2703_v19  ;;  %v11162_v33 = vadd.f32 %v12644_v5, %v1410_v12  ;;  %v2079_v26 = vadd.f32 %v12646_v44, %v11122_v61  ;;  %v3888_v51 = vld [vmem:[#allocation22 + $0x2a8] sm:$0xff]  ;;  %v4021_v12 = vld [vmem:[#allocation22 + $0x3a0] sm:$0xff]  ;;  %v12648_v32 = vld [vmem:[#allocation47_spill] sm:$0xff] }
 0x2dc   : > { %4054 = vmatpush.msra.mxu1 %v4011_v59  ;;  %v3013_v55 = vadd.f32 %v12643_v48, %v2702_v38  ;;  %3941 = vmatpush.msrb.mxu3 %v3872_v40  ;;  %v2078_v63 = vadd.f32 %v12645_v27, %v1757_v42  ;;  %v12647_v20 = vld [vmem:[#allocation85_spill] sm:$0xff]  ;;  %v2080_v61 = vadd.f32 %v12648_v32, %v1759_v50  ;;  %v12649_v18 = vld [vmem:[#allocation58_spill] sm:$0xff]  ;;  %v3887_v25 = vld [vmem:[#allocation22 + $0x2a0] sm:$0xff] }
 0x2dd   : > { %3972 = vmatpush.msra.mxu0 %v3889_v52  ;;  %4091 = vmatpush.msra.mxu2 %v4022_v37  ;;  %v3015_v54 = vadd.f32 %v12647_v20, %v2704_v49  ;;  %v4020_v10 = vld [vmem:[#allocation22 + $0x398] sm:$0xff]  ;;  %v12653_v1 = vld [vmem:[#allocation70_spill] sm:$0xff]  ;;  %v12656_v37 = vld [vmem:[#allocation76_spill] sm:$0xff] }
 0x2de   : > { %4055 = vmatpush.msra.mxu1 %v4010_v58  ;;  %v12651_v59 = vld [vmem:[#allocation59_spill] sm:$0xff]  ;;  %v3869_v16 = vld [vmem:[#allocation22 + $0x210] sm:$0xff]  ;;  %v3868_v27 = vld [vmem:[#allocation22 + $0x208] sm:$0xff] }
 0x2df   : > { %v11107_v6 = vpop.f32.mrf.mxu3  ;;  %3973 = vmatpush.msra.mxu0 %v3888_v51  ;;  %v3325_v19 = vadd.f32 %v11051_v15, %v3015_v54  ;;  %v2401_v38 = vadd.f32 %v12651_v59, %v2080_v61  ;;  %4092 = vmatpush.msra.mxu2 %v4021_v12  ;;  %v3886_v49 = vld [vmem:[#allocation22 + $0x298] sm:$0xff]  ;;  %v4007_v15 = vld [vmem:[#allocation22 + $0x330] sm:$0xff]  ;;  %v12659_v20 = vld [vmem:[#allocation56_spill] sm:$0xff] }
 0x2e0   : > { %v3323_v3 = vadd.f32 %v11107_v6, %v3013_v55  ;;  %v4008_v6 = vld [vmem:[#allocation22 + $0x338] sm:$0xff]  ;;  %4056 = vmatpush.msra.mxu1 %v4009_v29  ;;  %v4019_v21 = vld [vmem:[#allocation22 + $0x390] sm:$0xff]  ;;  %v12655_v55 = vld [vmem:[#allocation73_spill] sm:$0xff] }
 0x2e1   : > { %3974 = vmatpush.msra.mxu0 %v3887_v25  ;;  %4093 = vmatpush.msra.mxu2 %v4020_v10  ;;  %v3885_v51 = vld [vmem:[#allocation22 + $0x290] sm:$0xff]  ;;  %v4006_v12 = vld [vmem:[#allocation22 + $0x328] sm:$0xff]  ;;  %v12661_v32 = vld [vmem:[#allocation87_spill] sm:$0xff] }
 0x2e2   : > { %4057 = vmatpush.msra.mxu1 %v4008_v6  ;;  %v12664_v6 = vld [vmem:[#allocation61_spill] sm:$0xff]  ;;  %v12665_v10 = vld [vmem:[#allocation90_spill] sm:$0xff] }
 0x2e3   : > { %v3552_v46 = vpop.f32.mrf.mxu0  ;;  %3975 = vmatpush.msra.mxu0 %v3886_v49  ;;  %4094 = vmatpush.msra.mxu2 %v4019_v21 }
 0x2e4   : > { %v3631_v7 = vadd.f32 %v3552_v46, %v3321_v47  ;;  %v3871_v47 = vld [vmem:[#allocation22 + $0x220] sm:$0xff]  ;;  %v3324_v46 = vadd.f32 %v11047_v39, %v3014_v0  ;;  %v3870_v39 = vld [vmem:[#allocation22 + $0x218] sm:$0xff]  ;;  %4058 = vmatpush.msra.mxu1 %v4007_v15  ;;  %v3664_v15 = vpop.permute.xlu2 %3663 }
 0x2e5   : > { %v3584_v41 = vpop.f32.mrf.mxu1  ;;  %3942 = vmatpush.msrb.mxu3 %v3871_v47  ;;  %v12654_v0 = vld [vmem:[#allocation44_spill] sm:$0xff]  ;;  %3976 = vmatpush.msra.mxu0 %v3885_v51 }
 0x2e6   : > { %v3676_v24 = vadd.f32 %v11130_v45, %v3631_v7  ;;  %v3632_v53 = vadd.f32 %v3584_v41, %v3322_v4  ;;  %v2400_v4 = vadd.f32 %v12649_v18, %v2079_v26  ;;  %v12650_v7 = vld [vmem:[#allocation57_spill] sm:$0xff]  ;;  %v1760_v48 = vadd.f32 %v12654_v0, %v11100_v22  ;;  %v12658_v22 = vld [vmem:[#allocation42_spill] sm:$0xff]  ;;  %4059 = vmatpush.msra.mxu1 %v4006_v12  ;;  %v12673_v51 = vld [vmem:[#allocation88_spill] sm:$0xff] }
 0x2e7   : > { %v11159_v23 = vpop.f32.mrf.mxu3  ;;  %v2399_v31 = vadd.f32 %v12650_v7, %v2078_v63  ;;  %3943 = vmatpush.msrb.mxu3 %v3870_v39  ;;  %v12657_v63 = vld [vmem:[#allocation86_spill] sm:$0xff]  ;;  %v1764_v29 = vadd.f32 %v12658_v22, %v11111_v13  ;;  %v4018_v13 = vld [vmem:[#allocation22 + $0x388] sm:$0xff] }
 0x2e8   : > { %v11156_v28 = vmax.f32 %v3676_v24, 0.0  ;;  %v3677_v9 = vadd.f32 %v11130_v45, %v3632_v53  ;;  %v12652_v24 = vld [vmem:[#allocation71_spill] sm:$0xff]  ;;  %v2081_v54 = vadd.f32 %v12659_v20, %v1760_v48  ;;  %v12663_v39 = vld [vmem:[#allocation62_spill] sm:$0xff]  ;;  %4095 = vmatpush.msra.mxu2 %v4018_v13 }
 0x2e9   : > { %v2706_v53 = vadd.f32 %v12652_v24, %v2400_v4  ;;  %v2705_v50 = vadd.f32 %v12653_v1, %v2399_v31  ;;  %3944 = vmatpush.msrb.mxu3 %v3869_v16  ;;  %v12668_v16 = vld [vmem:[#allocation74_spill] sm:$0xff] }
 0x2ea   : > { %v11170_v34 = vmax.f32 %v3677_v9, 0.0  ;;  %3770 = vmatmul.f32.vlgmr.msra.gmra.mxu3 %v11156_v28  ;;  %3915 = vmatmul.f32.vlgmr.msrb.gmra.mxu2 %v11156_v28  ;;  %v2707_v9 = vadd.f32 %v12655_v55, %v2401_v38  ;;  %v12669_v55 = vld [vmem:[#allocation50_spill] sm:$0xff] }
 0x2eb   : > { %v3555_v57 = vpop.f32.mrf.mxu0  ;;  %v3017_v5 = vadd.f32 %v12656_v37, %v2706_v53  ;;  %v3016_v44 = vadd.f32 %v12657_v63, %v2705_v50  ;;  %3945 = vmatpush.msrb.mxu3 %v3868_v27  ;;  %v4017_v53 = vld [vmem:[#allocation22 + $0x380] sm:$0xff]  ;;  %v12667_v50 = vld [vmem:[#allocation75_spill] sm:$0xff]  ;;  %v12671_v27 = vld [vmem:[#allocation77_spill] sm:$0xff] }
 0x2ec   : > { %v3616_v56 = vpop.f32.mrf.mxu2  ;;  %v3634_v41 = vadd.f32 %v3555_v57, %v3324_v46  ;;  %3802 = vmatmul.f32.vlgmr.msrb.gmra.mxu0 %v11170_v34  ;;  %v12660_v46 = vld [vmem:[#allocation49_spill] sm:$0xff]  ;;  %v3018_v61 = vadd.f32 %v12661_v32, %v2707_v9  ;;  %v3867_v57 = vld [vmem:[#allocation22 + $0x200] sm:$0xff]  ;;  %v1765_v9 = vadd.f32 %v12669_v55, %v11143_v11  ;;  %4096 = vmatpush.msra.mxu2 %v4017_v53  ;;  %v11245_v53 = vpop.permute.xlu1 %3668 }
 0x2ed   : > { %v3633_v62 = vadd.f32 %v3616_v56, %v3323_v3  ;;  %v3587_v42 = vpop.f32.mrf.mxu1  ;;  %v2082_v3 = vadd.f32 %v12660_v46, %v11133_v60  ;;  %v3327_v18 = vadd.f32 %v11055_v8, %v3017_v5  ;;  %v3326_v4 = vadd.f32 %v11159_v23, %v3016_v44  ;;  %v12662_v60 = vld [vmem:[#allocation51_spill] sm:$0xff]  ;;  %3946 = vmatpush.msrb.mxu3 %v3867_v57  ;;  %v12670_v37 = vld [vmem:[#allocation48_spill] sm:$0xff]  ;;  %v4003_v46 = vld [vmem:[#allocation22 + $0x310] sm:$0xff] }
 0x2ee   : > { %v3679_v40 = vadd.f32 %v11182_v2, %v3634_v41  ;;  %v3635_v58 = vadd.f32 %v3587_v42, %v3325_v19  ;;  %v2083_v56 = vadd.f32 %v12662_v60, %v11162_v33  ;;  %v2402_v19 = vadd.f32 %v12664_v6, %v2081_v54  ;;  %v3884_v41 = vld [vmem:[#allocation22 + $0x288] sm:$0xff]  ;;  %v12666_v33 = vld [vmem:[#allocation63_spill] sm:$0xff]  ;;  %v12672_v44 = vld [vmem:[#allocation80_spill] sm:$0xff] }
 0x2ef   : > { %v3678_v52 = vadd.f32 %v11130_v45, %v3633_v62  ;;  %v3312_v31 = vpop.f32.mrf.mxu3  ;;  %v2403_v25 = vadd.f32 %v12663_v39, %v2082_v3  ;;  %v4005_v62 = vld [vmem:[#allocation22 + $0x320] sm:$0xff]  ;;  %v3328_v59 = vadd.f32 %v12665_v10, %v3018_v61  ;;  %3977 = vmatpush.msra.mxu0 %v3884_v41  ;;  %v1763_v5 = vadd.f32 %v12670_v37, %v11116_v14  ;;  %v12674_v3 = vld [vmem:[#allocation37_spill] sm:$0xff]  ;;  %v12680_v6 = vld [vmem:[#allocation54_spill] sm:$0xff] }
 0x2f0   : > { %v11191_v26 = vmax.f32 %v3679_v40, 0.0  ;;  %v3680_v45 = vadd.f32 %v11182_v2, %v3635_v58  ;;  %v2404_v1 = vadd.f32 %v12666_v33, %v2083_v56  ;;  %v2708_v49 = vadd.f32 %v12668_v16, %v2402_v19  ;;  %v4004_v58 = vld [vmem:[#allocation22 + $0x318] sm:$0xff]  ;;  %4060 = vmatpush.msra.mxu1 %v4005_v62  ;;  %v12675_v11 = vld [vmem:[#allocation41_spill] sm:$0xff]  ;;  %v12676_v32 = vld [vmem:[#allocation60_spill] sm:$0xff] }
 0x2f1   : > { %v11193_v47 = vmax.f32 %v3678_v52, 0.0  ;;  %v2709_v42 = vadd.f32 %v12667_v50, %v2403_v25  ;;  %v3883_v52 = vld [vmem:[#allocation22 + $0x280] sm:$0xff]  ;;  %v1445_v12 = vadd.f32 %v12675_v11, %v12674_v3  ;;  %v2084_v14 = vadd.f32 %v12676_v32, %v1763_v5  ;;  %v12677_v61 = vld [vmem:[#allocation53_spill] sm:$0xff]  ;;  %v4047_v50 = vld [vmem:[#allocation22 + $0x470] sm:$0xff] }
 0x2f2   : > { %v11204_v7 = vmax.f32 %v3680_v45, 0.0  ;;  %3773 = vmatmul.f32.gmra.mxu3 %v11191_v26  ;;  %3918 = vmatmul.f32.gmra.mxu2 %v11191_v26  ;;  %v2710_v63 = vadd.f32 %v12671_v27, %v2404_v1  ;;  %v3019_v22 = vadd.f32 %v12673_v51, %v2708_v49  ;;  %v12679_v57 = vld [vmem:[#allocation92_spill] sm:$0xff]  ;;  %v4002_v25 = vld [vmem:[#allocation22 + $0x308] sm:$0xff]  ;;  %v2086_v19 = vadd.f32 %v12680_v6, %v1765_v9  ;;  %v4197_v16 = vld [vmem:[#allocation22 + $0x5f0] sm:$0xff] }
 0x2f3   : > { %3834 = vmatmul.f32.vlgmr.msrb.gmra.mxu1 %v11193_v47  ;;  %v3558_v8 = vpop.f32.mrf.mxu0  ;;  %v3020_v45 = vadd.f32 %v12672_v44, %v2709_v42  ;;  %3978 = vmatpush.msra.mxu0 %v3883_v52  ;;  %v12682_v41 = vld [vmem:[#allocation65_spill] sm:$0xff]  ;;  %v4166_v42 = vld [vmem:[#allocation22 + $0x4f8] sm:$0xff]  ;;  %v4165_v9 = vld [vmem:[#allocation22 + $0x4f0] sm:$0xff] }
 0x2f4   : > { %v3619_v23 = vpop.f32.mrf.mxu2  ;;  %v3637_v38 = vadd.f32 %v3558_v8, %v3327_v18  ;;  %3805 = vmatmul.f32.gmra.mxu0 %v11204_v7  ;;  %4061 = vmatpush.msra.mxu1 %v4004_v58  ;;  %v2085_v18 = vadd.f32 %v12677_v61, %v1764_v29  ;;  %v3329_v56 = vadd.f32 %v3312_v31, %v3019_v22  ;;  %v12681_v8 = vld [vmem:[#allocation66_spill] sm:$0xff]  ;;  %v4048_v31 = vld [vmem:[#allocation22 + $0x478] sm:$0xff]  ;;  %v12686_v44 = vld [vmem:[#allocation52_spill] sm:$0xff] }
 0x2f5   : > { %v3636_v24 = vadd.f32 %v3619_v23, %v3326_v4  ;;  %v3590_v40 = vpop.f32.mrf.mxu1  ;;  %v12678_v4 = vld [vmem:[#allocation89_spill] sm:$0xff]  ;;  %v3330_v60 = vadd.f32 %v12679_v57, %v3020_v45  ;;  %v2405_v62 = vadd.f32 %v12682_v41, %v2084_v14  ;;  %4113 = vmatpush.msra.mxu3 %v4048_v31  ;;  %v12683_v49 = vld [vmem:[#allocation67_spill] sm:$0xff]  ;;  %4199 = vmatpush.msrb.mxu0 %v4166_v42  ;;  %v4045_v61 = vld [vmem:[#allocation22 + $0x460] sm:$0xff] }
 0x2f6   : > { %v3682_v21 = vadd.f32 %v3664_v15, %v3637_v38  ;;  %v3638_v48 = vadd.f32 %v3590_v40, %v3328_v59  ;;  %v3021_v13 = vadd.f32 %v12678_v4, %v2710_v63  ;;  %v2406_v23 = vadd.f32 %v12681_v8, %v2085_v18  ;;  %4062 = vmatpush.msra.mxu1 %v4003_v46  ;;  %v4001_v59 = vld [vmem:[#allocation22 + $0x300] sm:$0xff]  ;;  %v4198_v38 = vld [vmem:[#allocation22 + $0x5f8] sm:$0xff]  ;;  %v4196_v63 = vld [vmem:[#allocation22 + $0x5e8] sm:$0xff] }
 0x2f7   : > { %v3681_v0 = vadd.f32 %v11182_v2, %v3636_v24  ;;  %v2407_v40 = vadd.f32 %v12683_v49, %v2086_v19  ;;  %v12684_v52 = vld [vmem:[#allocation79_spill] sm:$0xff]  ;;  %4263 = vmatpush.msrb.mxu2 %v4198_v38  ;;  %4114 = vmatpush.msra.mxu3 %v4047_v50  ;;  %v1766_v45 = vadd.f32 %v12686_v44, %v1445_v12  ;;  %v12687_v51 = vld [vmem:[#allocation81_spill] sm:$0xff]  ;;  %v12690_v18 = vld [vmem:[#allocation64_spill] sm:$0xff] }
 0x2f8   : > { %v11226_v20 = vmax.f32 %v3682_v21, 0.0  ;;  %v3683_v2 = vadd.f32 %v3664_v15, %v3638_v48  ;;  %v3331_v24 = vadd.f32 %v11073_v17, %v3021_v13  ;;  %v2712_v58 = vadd.f32 %v12684_v52, %v2406_v23  ;;  %v12685_v21 = vld [vmem:[#allocation78_spill] sm:$0xff]  ;;  %v3315_v48 = vpop.f32.mrf.mxu3  ;;  %4063 = vmatpush.msra.mxu1 %v4002_v25  ;;  %v4046_v17 = vld [vmem:[#allocation22 + $0x468] sm:$0xff]  ;;  %v12689_v3 = vld [vmem:[#allocation91_spill] sm:$0xff]  ;;  %4200 = vmatpush.msrb.mxu0 %v4165_v9 }
 0x2f9   : > { %v11228_v54 = vmax.f32 %v3681_v0, 0.0  ;;  %v2711_v0 = vadd.f32 %v12685_v21, %v2405_v62  ;;  %v2713_v22 = vadd.f32 %v12687_v51, %v2407_v40  ;;  %4264 = vmatpush.msrb.mxu2 %v4197_v16  ;;  %4115 = vmatpush.msra.mxu3 %v4046_v17  ;;  %v2087_v4 = vadd.f32 %v12690_v18, %v1766_v45  ;;  %v4195_v12 = vld [vmem:[#allocation22 + $0x5e0] sm:$0xff]  ;;  %v4164_v25 = vld [vmem:[#allocation22 + $0x4e8] sm:$0xff]  ;;  %v4044_v41 = vld [vmem:[#allocation22 + $0x458] sm:$0xff] }
 0x2fa   : > { %v11236_v39 = vmax.f32 %v3683_v2, 0.0  ;;  %3776 = vmatmul.f32.gmra.mxu3 %v11226_v20  ;;  %3921 = vmatmul.f32.gmra.mxu2 %v11226_v20  ;;  %v12688_v2 = vld [vmem:[#allocation83_spill] sm:$0xff]  ;;  %v12691_v6 = vld [vmem:[#allocation68_spill] sm:$0xff]  ;;  %v4043_v31 = vld [vmem:[#allocation22 + $0x450] sm:$0xff] }
 0x2fb   : > { %3837 = vmatmul.f32.gmra.mxu1 %v11228_v54  ;;  %v3561_v29 = vpop.f32.mrf.mxu0  ;;  %v3023_v46 = vadd.f32 %v12688_v2, %v2712_v58  ;;  %v3022_v11 = vadd.f32 %v12689_v3, %v2711_v0  ;;  %4265 = vmatpush.msrb.mxu2 %v4196_v63  ;;  %v3024_v13 = vadd.f32 %v11069_v35, %v2713_v22  ;;  %v4182_v62 = vld [vmem:[#allocation22 + $0x578] sm:$0xff]  ;;  %v12692_v38 = vld [vmem:[#allocation82_spill] sm:$0xff]  ;;  %v4042_v52 = vld [vmem:[#allocation22 + $0x448] sm:$0xff] }
 0x2fc   : > { %v3622_v10 = vpop.f32.mrf.mxu2  ;;  %v3640_v33 = vadd.f32 %v3561_v29, %v3330_v60  ;;  %3808 = vmatmul.f32.gmra.mxu0 %v11236_v39  ;;  %4064 = vmatpush.msra.mxu1 %v4001_v59  ;;  %v2408_v19 = vadd.f32 %v12691_v6, %v2087_v4  ;;  %v4194_v59 = vld [vmem:[#allocation22 + $0x5d8] sm:$0xff]  ;;  %v4181_v50 = vld [vmem:[#allocation22 + $0x570] sm:$0xff]  ;;  %v4160_v63 = vld [vmem:[#allocation22 + $0x4c8] sm:$0xff] }
 0x2fd   : > { %v3639_v1 = vadd.f32 %v3622_v10, %v3329_v56  ;;  %v3593_v55 = vpop.f32.mrf.mxu1  ;;  %v3333_v57 = vadd.f32 %v11102_v43, %v3023_v46  ;;  %v3332_v60 = vadd.f32 %v3315_v48, %v3022_v11  ;;  %4116 = vmatpush.msra.mxu3 %v4045_v61  ;;  %v3334_v35 = vadd.f32 %v11137_v30, %v3024_v13  ;;  %v4163_v10 = vld [vmem:[#allocation22 + $0x4e0] sm:$0xff]  ;;  %v4193_v42 = vld [vmem:[#allocation22 + $0x5d0] sm:$0xff]  ;;  %v4162_v40 = vld [vmem:[#allocation22 + $0x4d8] sm:$0xff] }
 0x2fe   : > { %v3685_v37 = vadd.f32 %v11245_v53, %v3640_v33  ;;  %v3641_v27 = vadd.f32 %v3593_v55, %v3331_v24  ;;  %4266 = vmatpush.msrb.mxu2 %v4195_v12  ;;  %v2714_v24 = vadd.f32 %v12692_v38, %v2408_v19  ;;  %v3674_v33 = vpop.permute.xlu2 %3673  ;;  %4201 = vmatpush.msrb.mxu0 %v4164_v25  ;;  %v4161_v17 = vld [vmem:[#allocation22 + $0x4d0] sm:$0xff]  ;;  %v4179_v44 = vld [vmem:[#allocation22 + $0x560] sm:$0xff]  ;;  %v4040_v22 = vld [vmem:[#allocation22 + $0x438] sm:$0xff] }
 0x2ff   : > { %v3684_v5 = vadd.f32 %v3664_v15, %v3639_v1  ;;  %4117 = vmatpush.msra.mxu3 %v4044_v41  ;;  %4231 = vmatpush.msrb.mxu1 %v4182_v62  ;;  %v4191_v51 = vld [vmem:[#allocation22 + $0x5c0] sm:$0xff]  ;;  %v4178_v46 = vld [vmem:[#allocation22 + $0x558] sm:$0xff]  ;;  %v4177_v4 = vld [vmem:[#allocation22 + $0x550] sm:$0xff] }
 0x300   : > { %v11256_v32 = vmax.f32 %v3685_v37, 0.0  ;;  %v3686_v15 = vadd.f32 %v11245_v53, %v3641_v27  ;;  %4267 = vmatpush.msrb.mxu2 %v4194_v59  ;;  %v3318_v58 = vpop.f32.mrf.mxu3  ;;  %4202 = vmatpush.msrb.mxu0 %v4163_v10  ;;  %v3025_v21 = vadd.f32 %v11086_v36, %v2714_v24  ;;  %v4041_v36 = vld [vmem:[#allocation22 + $0x440] sm:$0xff]  ;;  %v4190_v11 = vld [vmem:[#allocation22 + $0x5b8] sm:$0xff]  ;;  %v4189_v12 = vld [vmem:[#allocation22 + $0x5b0] sm:$0xff] }
 0x301   : > { %v11258_v14 = vmax.f32 %v3684_v5, 0.0  ;;  %4118 = vmatpush.msra.mxu3 %v4043_v31  ;;  %4232 = vmatpush.msrb.mxu1 %v4181_v50  ;;  %v4192_v5 = vld [vmem:[#allocation22 + $0x5c8] sm:$0xff]  ;;  %v4159_v2 = vld [vmem:[#allocation22 + $0x4c0] sm:$0xff]  ;;  %v4158_v18 = vld [vmem:[#allocation22 + $0x4b8] sm:$0xff] }
 0x302   : > { %v11264_v56 = vmax.f32 %v3686_v15, 0.0  ;;  %3779 = vmatmul.f32.gmra.mxu3 %v11256_v32  ;;  %3924 = vmatmul.f32.gmra.mxu2 %v11256_v32  ;;  %v3335_v9 = vadd.f32 %v3318_v58, %v3025_v21  ;;  %v4039_v15 = vld [vmem:[#allocation22 + $0x430] sm:$0xff]  ;;  %v4038_v13 = vld [vmem:[#allocation22 + $0x428] sm:$0xff]  ;;  %v4037_v6 = vld [vmem:[#allocation22 + $0x420] sm:$0xff] }
 0x303   : > { %3840 = vmatmul.f32.gmra.mxu1 %v11258_v14  ;;  %v3564_v8 = vpop.f32.mrf.mxu0  ;;  %4268 = vmatpush.msrb.mxu2 %v4193_v42  ;;  %v4188_v25 = vld [vmem:[#allocation22 + $0x5a8] sm:$0xff]  ;;  %v4036_v41 = vld [vmem:[#allocation22 + $0x418] sm:$0xff]  ;;  %v4155_v62 = vld [vmem:[#allocation22 + $0x4a0] sm:$0xff] }
 0x304   : > { %v3625_v23 = vpop.f32.mrf.mxu2  ;;  %v3643_v43 = vadd.f32 %v3564_v8, %v3333_v57  ;;  %3811 = vmatmul.f32.gmra.mxu0 %v11264_v56  ;;  %4119 = vmatpush.msra.mxu3 %v4042_v52  ;;  %v4157_v57 = vld [vmem:[#allocation22 + $0x4b0] sm:$0xff]  ;;  %v4156_v19 = vld [vmem:[#allocation22 + $0x4a8] sm:$0xff]  ;;  %v4175_v8 = vld [vmem:[#allocation22 + $0x540] sm:$0xff] }
 0x305   : > { %v3642_v29 = vadd.f32 %v3625_v23, %v3332_v60  ;;  %v3596_v1 = vpop.f32.mrf.mxu1  ;;  %4203 = vmatpush.msrb.mxu0 %v4162_v40  ;;  %4269 = vmatpush.msrb.mxu2 %v4192_v5  ;;  %v4176_v60 = vld [vmem:[#allocation22 + $0x548] sm:$0xff]  ;;  %v4187_v23 = vld [vmem:[#allocation22 + $0x5a0] sm:$0xff]  ;;  %v4154_v10 = vld [vmem:[#allocation22 + $0x498] sm:$0xff] }
 0x306   : > { %v3688_v16 = vadd.f32 %v3674_v33, %v3643_v43  ;;  %v3644_v30 = vadd.f32 %v3596_v1, %v3334_v35  ;;  %4120 = vmatpush.msra.mxu3 %v4041_v36  ;;  %v4174_v35 = vld [vmem:[#allocation22 + $0x538] sm:$0xff]  ;;  %v4173_v59 = vld [vmem:[#allocation22 + $0x530] sm:$0xff]  ;;  %v4034_v38 = vld [vmem:[#allocation22 + $0x408] sm:$0xff] }
 0x307   : > { %v3687_v49 = vadd.f32 %v11245_v53, %v3642_v29  ;;  %v4180_v53 = vld [vmem:[#allocation22 + $0x568] sm:$0xff]  ;;  %4204 = vmatpush.msrb.mxu0 %v4161_v17  ;;  %4270 = vmatpush.msrb.mxu2 %v4191_v51  ;;  %v4186_v43 = vld [vmem:[#allocation22 + $0x598] sm:$0xff]  ;;  %v4035_v29 = vld [vmem:[#allocation22 + $0x410] sm:$0xff] }
 0x308   : > { %v11275_v0 = vmax.f32 %v3688_v16, 0.0  ;;  %v3689_v55 = vadd.f32 %v3674_v33, %v3644_v30  ;;  %4233 = vmatpush.msrb.mxu1 %v4180_v53  ;;  %4121 = vmatpush.msra.mxu3 %v4040_v22  ;;  %v4185_v31 = vld [vmem:[#allocation22 + $0x590] sm:$0xff]  ;;  %v4184_v1 = vld [vmem:[#allocation22 + $0x588] sm:$0xff]  ;;  %v4033_v50 = vld [vmem:[#allocation22 + $0x400] sm:$0xff] }
 0x309   : > { %v11277_v48 = vmax.f32 %v3687_v49, 0.0  ;;  %4205 = vmatpush.msrb.mxu0 %v4160_v63  ;;  %4271 = vmatpush.msrb.mxu2 %v4190_v11  ;;  %v4153_v24 = vld [vmem:[#allocation22 + $0x490] sm:$0xff]  ;;  %v4152_v42 = vld [vmem:[#allocation22 + $0x488] sm:$0xff]  ;;  %v4171_v16 = vld [vmem:[#allocation22 + $0x520] sm:$0xff] }
 0x30a   : > { %v11279_v37 = vmax.f32 %v3689_v55, 0.0  ;;  %3782 = vmatmul.f32.gmra.mxu3 %v11275_v0  ;;  %3927 = vmatmul.f32.gmra.mxu2 %v11275_v0  ;;  %v4183_v49 = vld [vmem:[#allocation22 + $0x580] sm:$0xff]  ;;  %v4170_v40 = vld [vmem:[#allocation22 + $0x518] sm:$0xff]  ;;  %v4169_v52 = vld [vmem:[#allocation22 + $0x510] sm:$0xff] }
 0x30b   : > { %3843 = vmatmul.f32.gmra.mxu1 %v11277_v48  ;;  %4206 = vmatpush.msrb.mxu0 %v4159_v2  ;;  %v4151_v30 = vld [vmem:[#allocation22 + $0x480] sm:$0xff]  ;;  %v4168_v58 = vld [vmem:[#allocation22 + $0x508] sm:$0xff] }
 0x30c   : > { %v3628_v27 = vpop.f32.mrf.mxu2  ;;  %3814 = vmatmul.f32.gmra.mxu0 %v11279_v37  ;;  %4234 = vmatpush.msrb.mxu1 %v4179_v44  ;;  %v4167_v21 = vld [vmem:[#allocation22 + $0x500] sm:$0xff] }
 0x30d   : > { %v3645_v45 = vadd.f32 %v3628_v27, %v3335_v9  ;;  %4122 = vmatpush.msra.mxu3 %v4039_v15  ;;  %4207 = vmatpush.msrb.mxu0 %v4158_v18 }
 0x30e   : > { %4235 = vmatpush.msrb.mxu1 %v4178_v46  ;;  %4272 = vmatpush.msrb.mxu2 %v4189_v12 }
 0x30f   : > { %v3690_v3 = vadd.f32 %v3674_v33, %v3645_v45  ;;  %4123 = vmatpush.msra.mxu3 %v4038_v13  ;;  %4208 = vmatpush.msrb.mxu0 %v4157_v57  ;;  %v4172_v33 = vld [vmem:[#allocation22 + $0x528] sm:$0xff] }
 0x310   : > { %4236 = vmatpush.msrb.mxu1 %v4177_v4  ;;  %4273 = vmatpush.msrb.mxu2 %v4188_v25 }
 0x311   : > { %v11285_v61 = vmax.f32 %v3690_v3, 0.0  ;;  %4124 = vmatpush.msra.mxu3 %v4037_v6  ;;  %4209 = vmatpush.msrb.mxu0 %v4156_v19 }
 0x312   : > { %3947 = vmatmul.f32.vlgmr.msrb.gmra.mxu3 %v11170_v34  ;;  %4097 = vmatmul.f32.vlgmr.msra.gmra.mxu2 %v11170_v34 }
 0x313   : > { %3846 = vmatmul.f32.gmra.mxu1 %v11285_v61  ;;  %4274 = vmatpush.msrb.mxu2 %v4187_v23 }
 0x314   : > { %3979 = vmatmul.f32.vlgmr.msra.gmra.mxu0 %v11193_v47  ;;  %4237 = vmatpush.msrb.mxu1 %v4176_v60 }
 0x315   : > { %4125 = vmatpush.msra.mxu3 %v4036_v41  ;;  %4210 = vmatpush.msrb.mxu0 %v4155_v62 }
 0x316   : > { %4238 = vmatpush.msrb.mxu1 %v4175_v8  ;;  %4275 = vmatpush.msrb.mxu2 %v4186_v43 }
 0x317   : > { %4126 = vmatpush.msra.mxu3 %v4035_v29  ;;  %4211 = vmatpush.msrb.mxu0 %v4154_v10 }
 0x318   : > { %4239 = vmatpush.msrb.mxu1 %v4174_v35  ;;  %4276 = vmatpush.msrb.mxu2 %v4185_v31 }
 0x319   : > { %4127 = vmatpush.msra.mxu3 %v4034_v38  ;;  %4212 = vmatpush.msrb.mxu0 %v4153_v24 }
 0x31a   : > { %3950 = vmatmul.f32.gmra.mxu3 %v11204_v7  ;;  %4100 = vmatmul.f32.gmra.mxu2 %v11204_v7 }
 0x31b   : > { %4065 = vmatmul.f32.vlgmr.msra.gmra.mxu1 %v11156_v28  ;;  %4277 = vmatpush.msrb.mxu2 %v4184_v1 }
 0x31c   : > { %3982 = vmatmul.f32.gmra.mxu0 %v11228_v54  ;;  %4240 = vmatpush.msrb.mxu1 %v4173_v59 }
 0x31d   : > { %4128 = vmatpush.msra.mxu3 %v4033_v50  ;;  %4213 = vmatpush.msrb.mxu0 %v4152_v42 }
 0x31e   : > { %4241 = vmatpush.msrb.mxu1 %v4172_v33  ;;  %4278 = vmatpush.msrb.mxu2 %v4183_v49 }
 0x31f   : > { %4214 = vmatpush.msrb.mxu0 %v4151_v30 }
 0x320   : > { %4242 = vmatpush.msrb.mxu1 %v4171_v16 }
 0x322   : > { %3953 = vmatmul.f32.gmra.mxu3 %v11236_v39  ;;  %4103 = vmatmul.f32.gmra.mxu2 %v11236_v39 }
 0x323   : > { %4068 = vmatmul.f32.gmra.mxu1 %v11191_v26 }
 0x324   : > { %3985 = vmatmul.f32.gmra.mxu0 %v11258_v14  ;;  %4243 = vmatpush.msrb.mxu1 %v4170_v40 }
 0x326   : > { %4244 = vmatpush.msrb.mxu1 %v4169_v52 }
 0x328   : > { %4245 = vmatpush.msrb.mxu1 %v4168_v58 }
 0x32a   : > { %3956 = vmatmul.f32.gmra.mxu3 %v11264_v56  ;;  %4106 = vmatmul.f32.gmra.mxu2 %v11264_v56 }
 0x32b   : > { %4071 = vmatmul.f32.gmra.mxu1 %v11226_v20 }
 0x32c   : > { %3988 = vmatmul.f32.gmra.mxu0 %v11277_v48  ;;  %4246 = vmatpush.msrb.mxu1 %v4167_v21 }
 0x332   : > { %3959 = vmatmul.f32.gmra.mxu3 %v11279_v37  ;;  %4109 = vmatmul.f32.gmra.mxu2 %v11279_v37 }
 0x333   : > { %4074 = vmatmul.f32.gmra.mxu1 %v11256_v32 }
 0x334   : > { %3991 = vmatmul.f32.gmra.mxu0 %v11285_v61 }
 0x33a   : > { %4129 = vmatmul.f32.vlgmr.msra.gmra.mxu3 %v11193_v47  ;;  %4279 = vmatmul.f32.vlgmr.msrb.gmra.mxu2 %v11193_v47 }
 0x33b   : > { %4077 = vmatmul.f32.gmra.mxu1 %v11275_v0 }
 0x33c   : > { %4215 = vmatmul.f32.vlgmr.msrb.gmra.mxu0 %v11156_v28 }
 0x342   : > { %4132 = vmatmul.f32.gmra.mxu3 %v11228_v54  ;;  %4282 = vmatmul.f32.gmra.mxu2 %v11228_v54 }
 0x343   : > { %4247 = vmatmul.f32.vlgmr.msrb.gmra.mxu1 %v11170_v34 }
 0x344   : > { %4218 = vmatmul.f32.gmra.mxu0 %v11191_v26 }
 0x34a   : > { %4135 = vmatmul.f32.gmra.mxu3 %v11258_v14  ;;  %4285 = vmatmul.f32.gmra.mxu2 %v11258_v14 }
 0x34b   : > { %4250 = vmatmul.f32.gmra.mxu1 %v11204_v7 }
 0x34c   : > { %4221 = vmatmul.f32.gmra.mxu0 %v11226_v20 }
 0x352   : > { %4138 = vmatmul.f32.gmra.mxu3 %v11277_v48  ;;  %4288 = vmatmul.f32.gmra.mxu2 %v11277_v48 }
 0x353   : > { %4253 = vmatmul.f32.gmra.mxu1 %v11236_v39 }
 0x354   : > { %4224 = vmatmul.f32.gmra.mxu0 %v11256_v32 }
 0x35a   : > { %4141 = vmatmul.f32.gmra.mxu3 %v11285_v61  ;;  %4291 = vmatmul.f32.gmra.mxu2 %v11285_v61 }
 0x35b   : > { %4256 = vmatmul.f32.gmra.mxu1 %v11264_v56 }
 0x35c   : > { %4227 = vmatmul.f32.gmra.mxu0 %v11275_v0 }
 0x363   : > { %4259 = vmatmul.f32.gmra.mxu1 %v11279_v37 }
 0x369   : > { %v3803_v28 = vpop.f32.mrf.mxu0 }
 0x36d   : > { %v3771_v34 = vpop.f32.mrf.mxu3  ;;  %v3916_v26 = vpop.f32.mrf.mxu2 }
 0x36e   : > { %v3804_v23 = vadd.f32 %v3803_v28, %v3771_v34 }
 0x370   : > { %v3835_v47 = vpop.f32.mrf.mxu1 }
 0x371   : > { %v3806_v7 = vpop.f32.mrf.mxu0  ;;  %v3836_v43 = vadd.f32 %v3835_v47, %v3804_v23 }
 0x375   : > { %v3774_v20 = vpop.f32.mrf.mxu3  ;;  %v3919_v54 = vpop.f32.mrf.mxu2 }
 0x376   : > { %v3807_v1 = vadd.f32 %v3806_v7, %v3774_v20 }
 0x378   : > { %v3838_v39 = vpop.f32.mrf.mxu1 }
 0x379   : > { %v11328_v14 = vpop.f32.mrf.mxu0  ;;  %v3839_v52 = vadd.f32 %v3838_v39, %v3807_v1  ;;  %v4678_v1 = vld [vmem:[#allocation12] sm:$0xff] }
 0x37d   : > { %v11330_v32 = vpop.f32.mrf.mxu3  ;;  %v3922_v48 = vpop.f32.mrf.mxu2 }
 0x37e   : > { %v3810_v7 = vadd.f32 %v11328_v14, %v11330_v32 }
 0x380   : > { %v11332_v56 = vpop.f32.mrf.mxu1 }
 0x381   : > { %v11334_v55 = vpop.f32.mrf.mxu0 }
 0x385   : > { %v11336_v0 = vpop.f32.mrf.mxu3  ;;  %v11338_v17 = vpop.f32.mrf.mxu2 }
 0x388   : > { %v11340_v53 = vpop.f32.mrf.mxu1 }
 0x389   : > { %v11342_v9 = vpop.f32.mrf.mxu0 }
 0x38d   : > { %v11344_v37 = vpop.f32.mrf.mxu3  ;;  %v11346_v5 = vpop.f32.mrf.mxu2 }
 0x390   : > { %v11348_v36 = vpop.f32.mrf.mxu1 }
 0x391   : > { %v3980_v27 = vpop.f32.mrf.mxu0 }
 0x395   : > { %v3948_v63 = vpop.f32.mrf.mxu3  ;;  %v4098_v44 = vpop.f32.mrf.mxu2 }
 0x396   : > { %v3949_v19 = vadd.f32 %v3948_v63, %v3916_v26 }
 0x398   : > { %v4066_v45 = vpop.f32.mrf.mxu1  ;;  %v3981_v41 = vadd.f32 %v3980_v27, %v3949_v19 }
 0x399   : > { %v3983_v51 = vpop.f32.mrf.mxu0  ;;  %v4099_v62 = vadd.f32 %v4098_v44, %v4066_v45 }
 0x39a   : > { %v3995_v38 = vmax.f32 %v3836_v43, %v3981_v41 }
 0x39d   : > { %v3951_v22 = vpop.f32.mrf.mxu3  ;;  %v4101_v2 = vpop.f32.mrf.mxu2 }
 0x39e   : > { %v3952_v31 = vadd.f32 %v3951_v22, %v3919_v54 }
 0x3a0   : > { %v4069_v46 = vpop.f32.mrf.mxu1  ;;  %v3984_v16 = vadd.f32 %v3983_v51, %v3952_v31  ;;  %v3842_v51 = vadd.f32 %v11332_v56, %v3810_v7 }
 0x3a1   : > { %v3986_v3 = vpop.f32.mrf.mxu0  ;;  %v4102_v49 = vadd.f32 %v4101_v2, %v4069_v46  ;;  %v3813_v46 = vadd.f32 %v11334_v55, %v11336_v0 }
 0x3a2   : > { %v3996_v26 = vmax.f32 %v3839_v52, %v3984_v16  ;;  %v4680_v16 = vld [vmem:[#allocation12 + $0x10] sm:$0xff] }
 0x3a3   : > { %v3845_v41 = vadd.f32 %v11340_v53, %v3813_v46 }
 0x3a5   : > { %v3954_v11 = vpop.f32.mrf.mxu3  ;;  %v4104_v15 = vpop.f32.mrf.mxu2 }
 0x3a6   : > { %v3955_v34 = vadd.f32 %v3954_v11, %v3922_v48 }
 0x3a8   : > { %v4072_v61 = vpop.f32.mrf.mxu1  ;;  %v3987_v27 = vadd.f32 %v3986_v3, %v3955_v34 }
 0x3a9   : > { %v11350_v18 = vpop.f32.mrf.mxu0  ;;  %v4105_v63 = vadd.f32 %v4104_v15, %v4072_v61 }
 0x3aa   : > { %v3997_v56 = vmax.f32 %v3842_v51, %v3987_v27 }
 0x3ad   : > { %v3957_v4 = vpop.f32.mrf.mxu3  ;;  %v11352_v12 = vpop.f32.mrf.mxu2 }
 0x3ae   : > { %v3958_v32 = vadd.f32 %v3957_v4, %v11338_v17 }
 0x3b0   : > { %v4075_v13 = vpop.f32.mrf.mxu1  ;;  %v3990_v15 = vadd.f32 %v11350_v18, %v3958_v32 }
 0x3b1   : > { %v11354_v57 = vpop.f32.mrf.mxu0  ;;  %v4108_v61 = vadd.f32 %v11352_v12, %v4075_v13  ;;  %v3816_v12 = vadd.f32 %v11342_v9, %v11344_v37 }
 0x3b2   : > { %v3998_v4 = vmax.f32 %v3845_v41, %v3990_v15 }
 0x3b5   : > { %v11356_v60 = vpop.f32.mrf.mxu3  ;;  %v11358_v25 = vpop.f32.mrf.mxu2 }
 0x3b6   : > { %v3961_v18 = vadd.f32 %v11356_v60, %v11346_v5 }
 0x3b8   : > { %v11360_v6 = vpop.f32.mrf.mxu1 }
 0x3b9   : > { %v4216_v8 = vpop.f32.mrf.mxu0  ;;  %v4111_v43 = vadd.f32 %v11358_v25, %v11360_v6 }
 0x3bd   : > { %v4130_v35 = vpop.f32.mrf.mxu3  ;;  %v4280_v10 = vpop.f32.mrf.mxu2 }
 0x3be   : > { %v4131_v29 = vadd.f32 %v4130_v35, %v4099_v62  ;;  %v3993_v35 = vadd.f32 %v11354_v57, %v3961_v18 }
 0x3c0   : > { %v4248_v59 = vpop.f32.mrf.mxu1  ;;  %v4145_v50 = vmax.f32 %v3995_v38, %v4131_v29 }
 0x3c1   : > { %v4249_v24 = vadd.f32 %v4248_v59, %v4216_v8  ;;  %v4219_v33 = vpop.f32.mrf.mxu0  ;;  %v3848_v59 = vadd.f32 %v11348_v36, %v3816_v12 }
 0x3c3   : > { %v4281_v42 = vadd.f32 %v4280_v10, %v4249_v24  ;;  %v3999_v5 = vmax.f32 %v3848_v59, %v3993_v35 }
 0x3c5   : > { %v11362_v30 = vmax.f32 %v4145_v50, %v4281_v42  ;;  %v4133_v40 = vpop.f32.mrf.mxu3  ;;  %v4283_v21 = vpop.f32.mrf.mxu2  ;;  %v4682_v42 = vld [vmem:[#allocation12 + $0x20] sm:$0xff] }
 0x3c6   : > { %v4134_v58 = vadd.f32 %v4133_v40, %v4102_v49  ;;  %v4681_v49 = vld [vmem:[#allocation12 + $0x18] sm:$0xff] }
 0x3c7   : > { %4300 = vst.msk [vmem:[#allocation3] sm:$0xff] %vm1455_vm11, %v11362_v30  ;;  %4585 = vrot.lane.b32.xlu2 %v11362_v30, %s9064_s29  ;;  %4310 = vrot.lane.b32.xlu0 %v11362_v30, %s9036_s15 }
 0x3c8   : > { %4330 = vrot.lane.b32.xlu1 %v11362_v30, %s9034_s3  ;;  %v4251_v28 = vpop.f32.mrf.mxu1  ;;  %v4146_v20 = vmax.f32 %v3996_v26, %v4134_v58 }
 0x3c9   : > { %v4252_v47 = vadd.f32 %v4251_v28, %v4219_v33  ;;  %v4222_v39 = vpop.f32.mrf.mxu0  ;;  %v4679_v33 = vld [vmem:[#allocation12 + $0x8] sm:$0xff] }
 0x3cb   : > { %v4284_v54 = vadd.f32 %v4283_v21, %v4252_v47 }
 0x3cd   : > { %v11374_v44 = vmax.f32 %v4146_v20, %v4284_v54  ;;  %v4136_v45 = vpop.f32.mrf.mxu3  ;;  %v4286_v48 = vpop.f32.mrf.mxu2 }
 0x3ce   : > { %v4137_v22 = vadd.f32 %v4136_v45, %v4105_v63 }
 0x3cf   : > { %4301 = vst.msk [vmem:[#allocation3 + $0x8] sm:$0xff] %vm1455_vm11, %v11374_v44  ;;  %4412 = vrot.lane.b32.xlu2 %v11374_v44, %s9092_s30  ;;  %4390 = vrot.lane.b32.xlu0 %v11362_v30, %s9093_s22 }
 0x3d0   : > { %4410 = vrot.lane.b32.xlu1 %v11362_v30, %s9092_s30  ;;  %v4254_v14 = vpop.f32.mrf.mxu1  ;;  %v4147_v3 = vmax.f32 %v3997_v56, %v4137_v22 }
 0x3d1   : > { %v4255_v2 = vadd.f32 %v4254_v14, %v4222_v39  ;;  %v4225_v8 = vpop.f32.mrf.mxu0 }
 0x3d3   : > { %v4287_v11 = vadd.f32 %v4286_v48, %v4255_v2 }
 0x3d5   : > { %v11390_v19 = vmax.f32 %v4147_v3, %v4287_v11  ;;  %v4139_v23 = vpop.f32.mrf.mxu3  ;;  %v4289_v55 = vpop.f32.mrf.mxu2 }
 0x3d6   : > { %v4140_v17 = vadd.f32 %v4139_v23, %v4108_v61 }
 0x3d7   : > { %4302 = vst.msk [vmem:[#allocation3 + $0x10] sm:$0xff] %vm1455_vm11, %v11390_v19  ;;  %4334 = vrot.lane.b32.xlu2 %v11390_v19, %s9034_s3  ;;  %4332 = vrot.lane.b32.xlu0 %v11374_v44, %s9034_s3 }
 0x3d8   : > { %4392 = vrot.lane.b32.xlu1 %v11374_v44, %s9093_s22  ;;  %v4257_v0 = vpop.f32.mrf.mxu1  ;;  %v4148_v13 = vmax.f32 %v3998_v4, %v4140_v17  ;;  %v11491_v17 = vld [vmem:[#allocation3 + $0x8] sm:$0xff] }
 0x3d9   : > { %v4258_v53 = vadd.f32 %v4257_v0, %v4225_v8  ;;  %v4228_v9 = vpop.f32.mrf.mxu0 }
 0x3db   : > { %v4290_v62 = vadd.f32 %v4289_v55, %v4258_v53 }
 0x3dd   : > { %v4298_v29 = vmax.f32 %v4148_v13, %v4290_v62  ;;  %v4142_v10 = vpop.f32.mrf.mxu3  ;;  %v4292_v60 = vpop.f32.mrf.mxu2 }
 0x3de   : > { %v4143_v31 = vadd.f32 %v4142_v10, %v4111_v43 }
 0x3df   : > { %4303 = vst.msk [vmem:[#allocation3 + $0x18] sm:$0xff] %vm1455_vm11, %v4298_v29  ;;  %4394 = vrot.lane.b32.xlu2 %v11390_v19, %s9093_s22  ;;  %4312 = vrot.lane.b32.xlu0 %v11374_v44, %s9036_s15 }
 0x3e0   : > { %4314 = vrot.lane.b32.xlu1 %v11390_v19, %s9036_s15  ;;  %v4260_v37 = vpop.f32.mrf.mxu1  ;;  %v4149_v25 = vmax.f32 %v3999_v5, %v4143_v31 }
 0x3e1   : > { %v4261_v57 = vadd.f32 %v4260_v37, %v4228_v9 }
 0x3e3   : > { %v4293_v6 = vadd.f32 %v4292_v60, %v4261_v57 }
 0x3e5   : > { %v4299_v36 = vmax.f32 %v4149_v25, %v4293_v6  ;;  %v4357_v6 = vld [vmem:[#allocation3 + $0x10] sm:$0xff] }
 0x3e6   : > { %v4358_v12 = vld [vmem:[#allocation3 + $0x18] sm:$0xff] }
 0x3e7   : > { %4304 = vst.msk [vmem:[#allocation3 + $0x20] sm:$0xff] %vm1455_vm11, %v4299_v36  ;;  %4316 = vrot.lane.b32.xlu2 %v4298_v29, %s9036_s15  ;;  %4587 = vrot.lane.b32.xlu0 %v11374_v44, %s9064_s29 }
 0x3e8   : > { %4589 = vrot.lane.b32.xlu1 %v11390_v19, %s9064_s29 }
 0x3ee   : > { %v4359_v53 = vld [vmem:[#allocation3 + $0x20] sm:$0xff] }
 0x3ef   : > { %4591 = vrot.lane.b32.xlu2 %v4298_v29, %s9064_s29  ;;  %4414 = vrot.lane.b32.xlu0 %v11390_v19, %s9092_s30 }
 0x3f0   : > { %4336 = vrot.lane.b32.xlu1 %v4298_v29, %s9034_s3 }
 0x3f7   : > { %4396 = vrot.lane.b32.xlu0 %v4298_v29, %s9093_s22  ;;  %4418 = vrot.lane.b32.xlu2 %v4299_v36, %s9092_s30 }
 0x3f8   : > { %4416 = vrot.lane.b32.xlu1 %v4298_v29, %s9092_s30 }
 0x3ff   : > { %4569 = vrot.lane.b32.xlu2 %v11390_v19, %s9066_s11  ;;  %4338 = vrot.lane.b32.xlu0 %v4299_v36, %s9034_s3 }
 0x400   : > { %4376 = vrot.lane.b32.xlu1 %v4298_v29, %s9094_s14 }
 0x407   : > { %4593 = vrot.lane.b32.xlu2 %v4299_v36, %s9064_s29  ;;  %4318 = vrot.lane.b32.xlu0 %v4299_v36, %s9036_s15 }
 0x408   : > { %4567 = vrot.lane.b32.xlu1 %v11374_v44, %s9066_s11 }
 0x40f   : > { %4372 = vrot.lane.b32.xlu2 %v11374_v44, %s9094_s14  ;;  %4571 = vrot.lane.b32.xlu0 %v4298_v29, %s9066_s11 }
 0x410   : > { %4398 = vrot.lane.b32.xlu1 %v4299_v36, %s9093_s22 }
 0x417   : > { %4378 = vrot.lane.b32.xlu2 %v4299_v36, %s9094_s14  ;;  %4374 = vrot.lane.b32.xlu0 %v11390_v19, %s9094_s14 }
 0x418   : > { %4573 = vrot.lane.b32.xlu1 %v4299_v36, %s9066_s11 }
 0x41f   : > { %4553 = vrot.lane.b32.xlu2 %v4299_v36, %s12693_s26  ;;  %4565 = vrot.lane.b32.xlu0 %v11362_v30, %s9066_s11 }
 0x420   : > { %4370 = vrot.lane.b32.xlu1 %v11362_v30, %s9094_s14 }
 0x421   : > { %v4586_v38 = vpop.permute.xlu2 %4585 }
 0x427   : > { %4547 = vrot.lane.b32.xlu2 %v11374_v44, %s12693_s26  ;;  %4551 = vrot.lane.b32.xlu0 %v4298_v29, %s12693_s26 }
 0x428   : > { %4549 = vrot.lane.b32.xlu1 %v11390_v19, %s12693_s26 }
 0x429   : > { %v4413_v24 = vpop.permute.xlu2 %4412 }
 0x42f   : > { %4690 = vperm.xlu2 %8566, %v4679_v33   ;;  %4545 = vrot.lane.b32.xlu0 %v11362_v30, %s12693_s26 }
 0x430   : > { %4685 = vperm.xlu1 %8565, %v4678_v1  }
 0x431   : > { %v4335_v50 = vpop.permute.xlu2 %4334 }
 0x432   : > { %4347 = vst.msk [vmem:[#allocation3 + $0x60] sm:$0xff] %vm1455_vm11, %v4335_v50 }
 0x437   : > { %4705 = vperm.xlu2 %8566, %v4682_v42   ;;  %4695 = vperm.xlu0 %8564, %v4680_v16  }
 0x438   : > { %4700 = vperm.xlu1 %8565, %v4681_v49  }
 0x439   : > { %v4395_v40 = vpop.permute.xlu2 %4394  ;;  %v4311_v52 = vpop.permute.xlu0 %4310  ;;  %v4367_v46 = vld [vmem:[#allocation3 + $0x60] sm:$0xff] }
 0x43a   : > { %4325 = vst.msk [vmem:[#allocation3 + $0x28] sm:$0xff] %vm1455_vm11, %v4311_v52  ;;  %v4331_v58 = vpop.permute.xlu1 %4330  ;;  %v4355_v52 = vld [vmem:[#allocation3] sm:$0xff] }
 0x43b   : > { %4345 = vst.msk [vmem:[#allocation3 + $0x50] sm:$0xff] %vm1455_vm11, %v4331_v58 }
 0x441   : > { %v4317_v21 = vpop.permute.xlu2 %4316  ;;  %v4391_v28 = vpop.permute.xlu0 %4390  ;;  %v11460_v30 = vld [vmem:[#allocation3 + $0x28] sm:$0xff] }
 0x442   : > { %4328 = vst.msk [vmem:[#allocation3 + $0x40] sm:$0xff] %vm1455_vm11, %v4317_v21  ;;  %v4411_v34 = vpop.permute.xlu1 %4410  ;;  %v11463_v26 = vld [vmem:[#allocation3 + $0x50] sm:$0xff]  ;;  %v4350_v21 = vld [vmem:[#allocation10] sm:$0xff] }
 0x443   : > { %4425 = vst.msk [vmem:[#allocation3 + $0x50] sm:$0xff] %vm1455_vm11, %v4411_v34 }
 0x444   : > { %4405 = vst.msk [vmem:[#allocation3 + $0x28] sm:$0xff] %vm1455_vm11, %v4391_v28 }
 0x449   : > { %v4592_v47 = vpop.permute.xlu2 %4591  ;;  %v4333_v7 = vpop.permute.xlu0 %4332  ;;  %v4363_v41 = vld [vmem:[#allocation3 + $0x40] sm:$0xff] }
 0x44a   : > { %4346 = vst.msk [vmem:[#allocation3 + $0x58] sm:$0xff] %vm1455_vm11, %v4333_v7  ;;  %v4393_v20 = vpop.permute.xlu1 %4392  ;;  %v11468_v54 = vld [vmem:[#allocation3 + $0x50] sm:$0xff] }
 0x44b   : > { %4600 = vst.msk [vmem:[#allocation3 + $0x50] sm:$0xff] %vm1455_vm11, %v4586_v38  ;;  %v4441_v16 = vld [vmem:[#allocation3 + $0x28] sm:$0xff] }
 0x451   : > { %v4313_v39 = vpop.permute.xlu0 %4312  ;;  %v4419_v27 = vpop.permute.xlu2 %4418  ;;  %v4366_v63 = vld [vmem:[#allocation3 + $0x58] sm:$0xff] }
 0x452   : > { %4326 = vst.msk [vmem:[#allocation3 + $0x30] sm:$0xff] %vm1455_vm11, %v4313_v39  ;;  %v4315_v44 = vpop.permute.xlu1 %4314  ;;  %v4431_v39 = vld [vmem:[#allocation10 + $0x28] sm:$0xff] }
 0x453   : > { %4327 = vst.msk [vmem:[#allocation3 + $0x38] sm:$0xff] %vm1455_vm11, %v4315_v44 }
 0x454   : > { %4426 = vst.msk [vmem:[#allocation3 + $0x58] sm:$0xff] %vm1455_vm11, %v4413_v24 }
 0x459   : > { %v4588_v45 = vpop.permute.xlu0 %4587  ;;  %v4570_v51 = vpop.permute.xlu2 %4569  ;;  %v11474_v22 = vld [vmem:[#allocation3 + $0x30] sm:$0xff] }
 0x45a   : > { %v4590_v48 = vpop.permute.xlu1 %4589  ;;  %v11476_v14 = vld [vmem:[#allocation3 + $0x38] sm:$0xff]  ;;  %4406 = vst.msk [vmem:[#allocation3 + $0x30] sm:$0xff] %vm1455_vm11, %v4393_v20 }
 0x45b   : > { %v11479_v32 = vld [vmem:[#allocation3 + $0x58] sm:$0xff]  ;;  %4407 = vst.msk [vmem:[#allocation3 + $0x38] sm:$0xff] %vm1455_vm11, %v4395_v40  ;;  %v4621_v40 = vld [vmem:[#allocation3 + $0x50] sm:$0xff] }
 0x45c   : > { %4601 = vst.msk [vmem:[#allocation3 + $0x58] sm:$0xff] %vm1455_vm11, %v4588_v45 }
 0x461   : > { %v4415_v56 = vpop.permute.xlu0 %4414  ;;  %v4594_v2 = vpop.permute.xlu2 %4593  ;;  %v4442_v29 = vld [vmem:[#allocation3 + $0x30] sm:$0xff] }
 0x462   : > { %v4337_v3 = vpop.permute.xlu1 %4336  ;;  %4427 = vst.msk [vmem:[#allocation3 + $0x60] sm:$0xff] %vm1455_vm11, %v4415_v56  ;;  %v11484_v11 = vld [vmem:[#allocation3 + $0x38] sm:$0xff] }
 0x463   : > { %4348 = vst.msk [vmem:[#allocation3 + $0x68] sm:$0xff] %vm1455_vm11, %v4337_v3  ;;  %v4622_v50 = vld [vmem:[#allocation3 + $0x58] sm:$0xff]  ;;  %v4726_v3 = vld [vmem:[#allocation24 + $0x40] sm:$0xff] }
 0x464   : > { %4582 = vst.msk [vmem:[#allocation3 + $0x38] sm:$0xff] %vm1455_vm11, %v4570_v51  ;;  %v4606_v56 = vld [vmem:[#allocation10 + $0x50] sm:$0xff] }
 0x469   : > { %v4397_v15 = vpop.permute.xlu0 %4396  ;;  %v4373_v61 = vpop.permute.xlu2 %4372  ;;  %v4448_v19 = vld [vmem:[#allocation3 + $0x60] sm:$0xff] }
 0x46a   : > { %v4417_v8 = vpop.permute.xlu1 %4416  ;;  %v4368_v23 = vld [vmem:[#allocation3 + $0x68] sm:$0xff]  ;;  %4602 = vst.msk [vmem:[#allocation3 + $0x60] sm:$0xff] %vm1455_vm11, %v4590_v48 }
 0x46b   : > { %4428 = vst.msk [vmem:[#allocation3 + $0x68] sm:$0xff] %vm1455_vm11, %v4417_v8  ;;  %v4618_v34 = vld [vmem:[#allocation3 + $0x38] sm:$0xff] }
 0x46c   : > { %4408 = vst.msk [vmem:[#allocation3 + $0x40] sm:$0xff] %vm1455_vm11, %v4397_v15  ;;  %v4353_v15 = vld [vmem:[#allocation10 + $0x18] sm:$0xff] }
 0x46d   : > { %4386 = vst.msk [vmem:[#allocation3 + $0x8] sm:$0xff] %vm1455_vm11, %v4373_v61  ;;  %v4725_v61 = vld [vmem:[#allocation24 + $0x38] sm:$0xff]  ;;  %v4724_v8 = vld [vmem:[#allocation24 + $0x30] sm:$0xff] }
 0x471   : > { %v4379_v55 = vpop.permute.xlu2 %4378  ;;  %v4339_v0 = vpop.permute.xlu0 %4338  ;;  %v4623_v1 = vld [vmem:[#allocation3 + $0x60] sm:$0xff] }
 0x472   : > { %v4377_v18 = vpop.permute.xlu1 %4376  ;;  %4349 = vst.msk [vmem:[#allocation3 + $0x70] sm:$0xff] %vm1455_vm11, %v4339_v0  ;;  %v4449_v4 = vld [vmem:[#allocation3 + $0x68] sm:$0xff] }
 0x473   : > { %4603 = vst.msk [vmem:[#allocation3 + $0x68] sm:$0xff] %vm1455_vm11, %v4592_v47  ;;  %v4444_v9 = vld [vmem:[#allocation3 + $0x40] sm:$0xff]  ;;  %v4435_v0 = vld [vmem:[#allocation10 + $0x48] sm:$0xff] }
 0x474   : > { %4389 = vst.msk [vmem:[#allocation3 + $0x20] sm:$0xff] %vm1455_vm11, %v4379_v55  ;;  %v4437_v60 = vld [vmem:[#allocation3 + $0x8] sm:$0xff] }
 0x475   : > { %4388 = vst.msk [vmem:[#allocation3 + $0x18] sm:$0xff] %vm1455_vm11, %v4377_v18  ;;  %v4608_v55 = vld [vmem:[#allocation10 + $0x60] sm:$0xff]  ;;  %v4609_v18 = vld [vmem:[#allocation10 + $0x68] sm:$0xff] }
 0x479   : > { %v4554_v13 = vpop.permute.xlu2 %4553  ;;  %v4319_v62 = vpop.permute.xlu0 %4318  ;;  %v4369_v35 = vld [vmem:[#allocation3 + $0x70] sm:$0xff] }
 0x47a   : > { %v4568_v43 = vpop.permute.xlu1 %4567  ;;  %4329 = vst.msk [vmem:[#allocation3 + $0x48] sm:$0xff] %vm1455_vm11, %v4319_v62  ;;  %4514 = vmatpush.msra.mxu0 %v4369_v35  ;;  %v4624_v33 = vld [vmem:[#allocation3 + $0x68] sm:$0xff]  ;;  %v4719_v62 = vld [vmem:[#allocation24 + $0x8] sm:$0xff] }
 0x47b   : > { %4429 = vst.msk [vmem:[#allocation3 + $0x70] sm:$0xff] %vm1455_vm11, %v4419_v27  ;;  %v11500_v10 = vld [vmem:[#allocation3 + $0x20] sm:$0xff]  ;;  %v4351_v27 = vld [vmem:[#allocation10 + $0x8] sm:$0xff] }
 0x47c   : > { %4515 = vmatpush.msra.mxu0 %v4368_v23  ;;  %4581 = vst.msk [vmem:[#allocation3 + $0x30] sm:$0xff] %vm1455_vm11, %v4568_v43  ;;  %v4723_v23 = vld [vmem:[#allocation24 + $0x28] sm:$0xff]  ;;  %v4718_v35 = vld [vmem:[#allocation24] sm:$0xff] }
 0x47d   : > { %4564 = vst.msk [vmem:[#allocation3 + $0x20] sm:$0xff] %vm1455_vm11, %v4554_v13  ;;  %v4720_v13 = vld [vmem:[#allocation24 + $0x10] sm:$0xff] }
 0x47e   : > { %4516 = vmatpush.msra.mxu0 %v4367_v46  ;;  %v4727_v46 = vld [vmem:[#allocation24 + $0x48] sm:$0xff] }
 0x47f   : > { %4749 = vmatpush.msra.mxu2 %v4727_v46 }
 0x480   : > { %4517 = vmatpush.msra.mxu0 %v4366_v63 }
 0x481   : > { %v4572_v59 = vpop.permute.xlu0 %4571  ;;  %v4364_v31 = vld [vmem:[#allocation3 + $0x48] sm:$0xff]  ;;  %v4548_v5 = vpop.permute.xlu2 %4547  ;;  %4750 = vmatpush.msra.mxu2 %v4726_v3 }
 0x482   : > { %v4399_v37 = vpop.permute.xlu1 %4398  ;;  %v4450_v57 = vld [vmem:[#allocation3 + $0x70] sm:$0xff]  ;;  %4518 = vmatpush.msra.mxu0 %v11463_v26  ;;  %4583 = vst.msk [vmem:[#allocation3 + $0x40] sm:$0xff] %vm1455_vm11, %v4572_v59 }
 0x483   : > { %4467 = vmatpush.msrb.mxu3 %v4450_v57  ;;  %4604 = vst.msk [vmem:[#allocation3 + $0x70] sm:$0xff] %vm1455_vm11, %v4594_v2  ;;  %v4617_v20 = vld [vmem:[#allocation3 + $0x30] sm:$0xff]  ;;  %4751 = vmatpush.msra.mxu2 %v4725_v61 }
 0x484   : > { %4409 = vst.msk [vmem:[#allocation3 + $0x48] sm:$0xff] %vm1455_vm11, %v4399_v37  ;;  %4519 = vmatpush.msra.mxu0 %v4364_v31  ;;  %v4615_v44 = vld [vmem:[#allocation3 + $0x20] sm:$0xff] }
 0x485   : > { %4468 = vmatpush.msrb.mxu3 %v4449_v4  ;;  %4561 = vst.msk [vmem:[#allocation3 + $0x8] sm:$0xff] %vm1455_vm11, %v4548_v5  ;;  %4752 = vmatpush.msra.mxu2 %v4724_v8  ;;  %v4610_v4 = vld [vmem:[#allocation10 + $0x70] sm:$0xff] }
 0x486   : > { %4520 = vmatpush.msra.mxu0 %v4363_v41  ;;  %v4434_v41 = vld [vmem:[#allocation10 + $0x40] sm:$0xff] }
 0x487   : > { %4469 = vmatpush.msrb.mxu3 %v4448_v19  ;;  %v4607_v19 = vld [vmem:[#allocation10 + $0x58] sm:$0xff]  ;;  %4753 = vmatpush.msra.mxu2 %v4723_v23 }
 0x488   : > { %4521 = vmatpush.msra.mxu0 %v11476_v14  ;;  %v4432_v14 = vld [vmem:[#allocation10 + $0x30] sm:$0xff] }
 0x489   : > { %4470 = vmatpush.msrb.mxu3 %v11479_v32  ;;  %v4375_v25 = vpop.permute.xlu0 %4374  ;;  %v4619_v28 = vld [vmem:[#allocation3 + $0x40] sm:$0xff]  ;;  %v4352_v32 = vld [vmem:[#allocation10 + $0x10] sm:$0xff] }
 0x48a   : > { %v4574_v36 = vpop.permute.xlu1 %4573  ;;  %4522 = vmatpush.msra.mxu0 %v11474_v22  ;;  %v4625_v38 = vld [vmem:[#allocation3 + $0x70] sm:$0xff]  ;;  %4387 = vst.msk [vmem:[#allocation3 + $0x10] sm:$0xff] %vm1455_vm11, %v4375_v25 }
 0x48b   : > { %4471 = vmatpush.msrb.mxu3 %v11468_v54  ;;  %4642 = vmatpush.msra.mxu1 %v4625_v38  ;;  %v4445_v24 = vld [vmem:[#allocation3 + $0x48] sm:$0xff] }
 0x48c   : > { %4584 = vst.msk [vmem:[#allocation3 + $0x48] sm:$0xff] %vm1455_vm11, %v4574_v36  ;;  %4523 = vmatpush.msra.mxu0 %v11460_v30  ;;  %v4439_v30 = vld [vmem:[#allocation3 + $0x18] sm:$0xff]  ;;  %v4612_v48 = vld [vmem:[#allocation3 + $0x8] sm:$0xff] }
 0x48d   : > { %4472 = vmatpush.msrb.mxu3 %v4445_v24  ;;  %4643 = vmatpush.msra.mxu1 %v4624_v33  ;;  %v4691_v24 = vpop.permute.xlu2 %4690 }
 0x48e   : > { %4524 = vmatpush.msra.mxu0 %v4359_v53  ;;  %v4722_v53 = vld [vmem:[#allocation24 + $0x20] sm:$0xff] }
 0x48f   : > { %4473 = vmatpush.msrb.mxu3 %v4444_v9  ;;  %4644 = vmatpush.msra.mxu1 %v4623_v1 }
 0x490   : > { %4525 = vmatpush.msra.mxu0 %v4358_v12  ;;  %4754 = vmatpush.msra.mxu2 %v4722_v53  ;;  %v4721_v12 = vld [vmem:[#allocation24 + $0x18] sm:$0xff] }
 0x491   : > { %4474 = vmatpush.msrb.mxu3 %v11484_v11  ;;  %4645 = vmatpush.msra.mxu1 %v4622_v50  ;;  %v4566_v42 = vpop.permute.xlu0 %4565  ;;  %v4438_v7 = vld [vmem:[#allocation3 + $0x10] sm:$0xff]  ;;  %v4433_v11 = vld [vmem:[#allocation10 + $0x38] sm:$0xff] }
 0x492   : > { %v4371_v49 = vpop.permute.xlu1 %4370  ;;  %4526 = vmatpush.msra.mxu0 %v4357_v6  ;;  %4580 = vst.msk [vmem:[#allocation3 + $0x28] sm:$0xff] %vm1455_vm11, %v4566_v42  ;;  %4755 = vmatpush.msra.mxu2 %v4721_v12 }
 0x493   : > { %4475 = vmatpush.msrb.mxu3 %v4442_v29  ;;  %4646 = vmatpush.msra.mxu1 %v4621_v40  ;;  %4385 = vst.msk [vmem:[#allocation3] sm:$0xff] %vm1455_vm11, %v4371_v49  ;;  %v4620_v58 = vld [vmem:[#allocation3 + $0x48] sm:$0xff] }
 0x494   : > { %4527 = vmatpush.msra.mxu0 %v11491_v17  ;;  %v4354_v17 = vld [vmem:[#allocation10 + $0x20] sm:$0xff]  ;;  %4756 = vmatpush.msra.mxu2 %v4720_v13 }
 0x495   : > { %4476 = vmatpush.msrb.mxu3 %v4441_v16  ;;  %4647 = vmatpush.msra.mxu1 %v4620_v58 }
 0x496   : > { %4528 = vmatpush.msra.mxu0 %v4355_v52  ;;  %4757 = vmatpush.msra.mxu2 %v4719_v62 }
 0x497   : > { %4477 = vmatpush.msrb.mxu3 %v11500_v10  ;;  %4648 = vmatpush.msra.mxu1 %v4619_v28 }
 0x498   : > { %7403 = vmatmul.msk.f32.vlgmr.msra.gmra.mxu0 %vm987_vm9, %v4350_v21  ;;  %4758 = vmatpush.msra.mxu2 %v4718_v35 }
 0x499   : > { %4478 = vmatpush.msrb.mxu3 %v4439_v30  ;;  %4649 = vmatpush.msra.mxu1 %v4618_v34  ;;  %v4552_v26 = vpop.permute.xlu0 %4551  ;;  %v4616_v54 = vld [vmem:[#allocation3 + $0x28] sm:$0xff] }
 0x49a   : > { %v4550_v47 = vpop.permute.xlu1 %4549  ;;  %4563 = vst.msk [vmem:[#allocation3 + $0x18] sm:$0xff] %vm1455_vm11, %v4552_v26  ;;  %v4436_v63 = vld [vmem:[#allocation3] sm:$0xff]  ;;  %5323 = vmatpush.msrb.mxu2 %v4727_v46 }
 0x49b   : > { %4479 = vmatpush.msrb.mxu3 %v4438_v7  ;;  %4562 = vst.msk [vmem:[#allocation3 + $0x10] sm:$0xff] %vm1455_vm11, %v4550_v47  ;;  %4650 = vmatpush.msra.mxu1 %v4617_v20 }
 0x49c   : > { %5324 = vmatpush.msrb.mxu2 %v4726_v3 }
 0x49d   : > { %4480 = vmatpush.msrb.mxu3 %v4437_v60  ;;  %4651 = vmatpush.msra.mxu1 %v4616_v54 }
 0x49e   : > { %5325 = vmatpush.msrb.mxu2 %v4725_v61 }
 0x49f   : > { %4481 = vmatpush.msrb.mxu3 %v4436_v63  ;;  %4652 = vmatpush.msra.mxu1 %v4615_v44 }
 0x4a0   : > { %7398 = vmatmul.msk.f32.vlgmr.msrb.gmra.mxu3 %vm987_vm9, %v4431_v39  ;;  %7404 = vmatmul.msk.f32.gmra.mxu0 %vm987_vm9, %v4351_v27 }
 0x4a1   : > { %v4546_v45 = vpop.permute.xlu0 %4545  ;;  %v4614_v51 = vld [vmem:[#allocation3 + $0x18] sm:$0xff]  ;;  %5326 = vmatpush.msrb.mxu2 %v4724_v8 }
 0x4a2   : > { %4560 = vst.msk [vmem:[#allocation3] sm:$0xff] %vm1455_vm11, %v4546_v45  ;;  %4653 = vmatpush.msra.mxu1 %v4614_v51  ;;  %v4613_v22 = vld [vmem:[#allocation3 + $0x10] sm:$0xff]  ;;  %v4686_v37 = vpop.permute.xlu1 %4685  ;;  %v4706_v45 = vpop.permute.xlu2 %4705 }
 0x4a3   : > { %5327 = vmatpush.msrb.mxu2 %v4723_v23  ;;  %v5221_v8 = vld [vmem:[#allocation13 + $0x10] sm:$0xff]  ;;  %v5222_v23 = vld [vmem:[#allocation13 + $0x18] sm:$0xff] }
 0x4a4   : > { %4654 = vmatpush.msra.mxu1 %v4613_v22 }
 0x4a5   : > { %5328 = vmatpush.msrb.mxu2 %v4722_v53 }
 0x4a6   : > { %4655 = vmatpush.msra.mxu1 %v4612_v48 }
 0x4a7   : > { %5329 = vmatpush.msrb.mxu2 %v4721_v12 }
 0x4a8   : > { %7399 = vmatmul.msk.f32.gmra.mxu3 %vm987_vm9, %v4432_v14  ;;  %7405 = vmatmul.msk.f32.gmra.mxu0 %vm987_vm9, %v4352_v32 }
 0x4a9   : > { %v4611_v2 = vld [vmem:[#allocation3] sm:$0xff]  ;;  %5330 = vmatpush.msrb.mxu2 %v4720_v13  ;;  %v4696_v52 = vpop.permute.xlu0 %4695 }
 0x4aa   : > { %4656 = vmatpush.msra.mxu1 %v4611_v2  ;;  %v4701_v47 = vpop.permute.xlu1 %4700 }
 0x4ab   : > { %7408 = vmatmul.msk.f32.vlgmr.msra.gmra.mxu1 %vm987_vm9, %v4606_v56  ;;  %5331 = vmatpush.msrb.mxu2 %v4719_v62 }
 0x4ad   : > { %5332 = vmatpush.msrb.mxu2 %v4718_v35 }
 0x4b0   : > { %7400 = vmatmul.msk.f32.gmra.mxu3 %vm987_vm9, %v4433_v11  ;;  %7406 = vmatmul.msk.f32.gmra.mxu0 %vm987_vm9, %v4353_v15  ;;  %v5220_v11 = vld [vmem:[#allocation13 + $0x8] sm:$0xff]  ;;  %v5219_v15 = vld [vmem:[#allocation13] sm:$0xff] }
 0x4b3   : > { %7409 = vmatmul.msk.f32.gmra.mxu1 %vm987_vm9, %v4607_v19  ;;  %v5223_v19 = vld [vmem:[#allocation13 + $0x20] sm:$0xff] }
 0x4b8   : > { %7401 = vmatmul.msk.f32.gmra.mxu3 %vm987_vm9, %v4434_v41  ;;  %7407 = vmatmul.msk.f32.gmra.mxu0 %vm987_vm9, %v4354_v17 }
 0x4bb   : > { %7410 = vmatmul.msk.f32.gmra.mxu1 %vm987_vm9, %v4608_v55 }
 0x4c0   : > { %7402 = vmatmul.msk.f32.gmra.mxu3 %vm987_vm9, %v4435_v0  ;;  %v5226_v0 = vld [vmem:[#allocation13 + $0x38] sm:$0xff] }
 0x4c3   : > { %7411 = vmatmul.msk.f32.gmra.mxu1 %vm987_vm9, %v4609_v18  ;;  %v5224_v18 = vld [vmem:[#allocation13 + $0x28] sm:$0xff] }
 0x4cb   : > { %7412 = vmatmul.msk.f32.gmra.mxu1 %vm987_vm9, %v4610_v4  ;;  %v5225_v4 = vld [vmem:[#allocation13 + $0x30] sm:$0xff] }
 0x515   : > { %v4530_v43 = vpop.f32.mrf.mxu0 }
 0x51d   : > { %v4533_v10 = vpop.f32.mrf.mxu0 }
 0x523   : > { %v4483_v29 = vpop.f32.mrf.mxu3 }
 0x524   : > { %v4531_v59 = vadd.f32 %v4530_v43, %v4483_v29 }
 0x525   : > { %v4536_v6 = vpop.f32.mrf.mxu0 }
 0x528   : > { %v4658_v31 = vpop.f32.mrf.mxu1 }
 0x529   : > { %v4673_v9 = vadd.f32 %v4658_v31, %v4531_v59 }
 0x52b   : > { %v4708_v5 = vadd.f32 %v4686_v37, %v4673_v9  ;;  %v4486_v57 = vpop.f32.mrf.mxu3 }
 0x52c   : > { %v4534_v25 = vadd.f32 %v4533_v10, %v4486_v57 }
 0x52d   : > { %v4713_v60 = vmax.f32 %v4708_v5, 0.0  ;;  %v4539_v49 = vpop.f32.mrf.mxu0 }
 0x52f   : > { %7413 = vmatmul.msk.f32.vlgmr.msra.gmra.mxu2 %vm1455_vm11, %v4713_v60 }
 0x530   : > { %v4661_v36 = vpop.f32.mrf.mxu1 }
 0x531   : > { %v4674_v38 = vadd.f32 %v4661_v36, %v4534_v25 }
 0x533   : > { %v4709_v33 = vadd.f32 %v4691_v24, %v4674_v38  ;;  %v4489_v1 = vpop.f32.mrf.mxu3 }
 0x534   : > { %v4537_v42 = vadd.f32 %v4536_v6, %v4489_v1 }
 0x535   : > { %v4714_v50 = vmax.f32 %v4709_v33, 0.0  ;;  %v4542_v7 = vpop.f32.mrf.mxu0 }
 0x537   : > { %7414 = vmatmul.msk.f32.gmra.mxu2 %vm1455_vm11, %v4714_v50 }
 0x538   : > { %v4664_v16 = vpop.f32.mrf.mxu1 }
 0x539   : > { %v4675_v40 = vadd.f32 %v4664_v16, %v4537_v42 }
 0x53b   : > { %v4710_v58 = vadd.f32 %v4696_v52, %v4675_v40  ;;  %v4492_v21 = vpop.f32.mrf.mxu3 }
 0x53c   : > { %v4540_v30 = vadd.f32 %v4539_v49, %v4492_v21 }
 0x53d   : > { %v4715_v28 = vmax.f32 %v4710_v58, 0.0 }
 0x53f   : > { %7415 = vmatmul.msk.f32.gmra.mxu2 %vm1455_vm11, %v4715_v28 }
 0x540   : > { %v4667_v34 = vpop.f32.mrf.mxu1 }
 0x541   : > { %v4676_v26 = vadd.f32 %v4667_v34, %v4540_v30 }
 0x543   : > { %v4711_v20 = vadd.f32 %v4701_v47, %v4676_v26  ;;  %v4495_v54 = vpop.f32.mrf.mxu3 }
 0x544   : > { %v4543_v27 = vadd.f32 %v4542_v7, %v4495_v54 }
 0x545   : > { %v4716_v39 = vmax.f32 %v4711_v20, 0.0 }
 0x547   : > { %7416 = vmatmul.msk.f32.gmra.mxu2 %vm1455_vm11, %v4716_v39 }
 0x548   : > { %v4670_v63 = vpop.f32.mrf.mxu1 }
 0x549   : > { %v4677_v44 = vadd.f32 %v4670_v63, %v4543_v27 }
 0x54b   : > { %v4712_v51 = vadd.f32 %v4706_v45, %v4677_v44 }
 0x54d   : > { %v4717_v22 = vmax.f32 %v4712_v51, 0.0 }
 0x54f   : > { %7417 = vmatmul.msk.f32.gmra.mxu2 %vm1455_vm11, %v4717_v22 }
 0x5b2   : > { %v4760_v48 = vpop.f32.mrf.mxu2 }
 0x5b3   : > { %4775 = vst.msk [vmem:[#allocation3] sm:$0xff] %vm1455_vm11, %v4760_v48  ;;  %5102 = vrot.lane.b32.xlu2 %v4760_v48, %s9064_s29  ;;  %4785 = vrot.lane.b32.xlu0 %v4760_v48, %s9036_s15 }
 0x5b4   : > { %4805 = vrot.lane.b32.xlu1 %v4760_v48, %s9034_s3 }
 0x5ba   : > { %v4763_v14 = vpop.f32.mrf.mxu2 }
 0x5bb   : > { %4776 = vst.msk [vmem:[#allocation3 + $0x8] sm:$0xff] %vm1455_vm11, %v4763_v14  ;;  %4868 = vrot.lane.b32.xlu0 %v4760_v48, %s9093_s22  ;;  %4890 = vrot.lane.b32.xlu2 %v4763_v14, %s9092_s30 }
 0x5bc   : > { %4888 = vrot.lane.b32.xlu1 %v4760_v48, %s9092_s30 }
 0x5c2   : > { %v4766_v32 = vpop.f32.mrf.mxu2  ;;  %v11623_v28 = vld [vmem:[#allocation3 + $0x8] sm:$0xff] }
 0x5c3   : > { %4777 = vst.msk [vmem:[#allocation3 + $0x10] sm:$0xff] %vm1455_vm11, %v4766_v32  ;;  %4807 = vrot.lane.b32.xlu0 %v4763_v14, %s9034_s3  ;;  %4809 = vrot.lane.b32.xlu2 %v4766_v32, %s9034_s3 }
 0x5c4   : > { %4870 = vrot.lane.b32.xlu1 %v4763_v14, %s9093_s22 }
 0x5ca   : > { %v4769_v56 = vpop.f32.mrf.mxu2 }
 0x5cb   : > { %4778 = vst.msk [vmem:[#allocation3 + $0x18] sm:$0xff] %vm1455_vm11, %v4769_v56  ;;  %4787 = vrot.lane.b32.xlu0 %v4763_v14, %s9036_s15  ;;  %4872 = vrot.lane.b32.xlu2 %v4766_v32, %s9093_s22 }
 0x5cc   : > { %4789 = vrot.lane.b32.xlu1 %v4766_v32, %s9036_s15 }
 0x5d2   : > { %v4772_v2 = vpop.f32.mrf.mxu2  ;;  %v4836_v20 = vld [vmem:[#allocation3 + $0x18] sm:$0xff] }
 0x5d3   : > { %4779 = vst.msk [vmem:[#allocation3 + $0x20] sm:$0xff] %vm1455_vm11, %v4772_v2  ;;  %5104 = vrot.lane.b32.xlu0 %v4763_v14, %s9064_s29  ;;  %4791 = vrot.lane.b32.xlu2 %v4769_v56, %s9036_s15 }
 0x5d4   : > { %5106 = vrot.lane.b32.xlu1 %v4766_v32, %s9064_s29 }
 0x5da   : > { %v4837_v7 = vld [vmem:[#allocation3 + $0x20] sm:$0xff] }
 0x5db   : > { %4892 = vrot.lane.b32.xlu0 %v4766_v32, %s9092_s30  ;;  %5108 = vrot.lane.b32.xlu2 %v4769_v56, %s9064_s29 }
 0x5dc   : > { %4811 = vrot.lane.b32.xlu1 %v4769_v56, %s9034_s3 }
 0x5e3   : > { %4874 = vrot.lane.b32.xlu0 %v4769_v56, %s9093_s22  ;;  %4896 = vrot.lane.b32.xlu2 %v4772_v2, %s9092_s30 }
 0x5e4   : > { %4894 = vrot.lane.b32.xlu1 %v4769_v56, %s9092_s30 }
 0x5eb   : > { %5086 = vrot.lane.b32.xlu2 %v4766_v32, %s9066_s11  ;;  %4813 = vrot.lane.b32.xlu0 %v4772_v2, %s9034_s3 }
 0x5ec   : > { %4854 = vrot.lane.b32.xlu1 %v4769_v56, %s9094_s14 }
 0x5f3   : > { %5110 = vrot.lane.b32.xlu2 %v4772_v2, %s9064_s29  ;;  %4793 = vrot.lane.b32.xlu0 %v4772_v2, %s9036_s15 }
 0x5f4   : > { %5084 = vrot.lane.b32.xlu1 %v4763_v14, %s9066_s11 }
 0x5fb   : > { %4850 = vrot.lane.b32.xlu2 %v4763_v14, %s9094_s14  ;;  %5088 = vrot.lane.b32.xlu0 %v4769_v56, %s9066_s11 }
 0x5fc   : > { %4876 = vrot.lane.b32.xlu1 %v4772_v2, %s9093_s22 }
 0x603   : > { %4856 = vrot.lane.b32.xlu2 %v4772_v2, %s9094_s14  ;;  %4852 = vrot.lane.b32.xlu0 %v4766_v32, %s9094_s14 }
 0x604   : > { %5090 = vrot.lane.b32.xlu1 %v4772_v2, %s9066_s11 }
 0x60b   : > { %5070 = vrot.lane.b32.xlu2 %v4772_v2, %s12693_s26  ;;  %5082 = vrot.lane.b32.xlu0 %v4760_v48, %s9066_s11 }
 0x60c   : > { %4848 = vrot.lane.b32.xlu1 %v4760_v48, %s9094_s14 }
 0x60d   : > { %v5103_v46 = vpop.permute.xlu2 %5102 }
 0x613   : > { %5064 = vrot.lane.b32.xlu2 %v4763_v14, %s12693_s26  ;;  %5068 = vrot.lane.b32.xlu0 %v4769_v56, %s12693_s26 }
 0x614   : > { %5066 = vrot.lane.b32.xlu1 %v4766_v32, %s12693_s26 }
 0x615   : > { %v4891_v3 = vpop.permute.xlu2 %4890 }
 0x61b   : > { %5234 = vperm.xlu2 %8566, %v5220_v11   ;;  %5062 = vrot.lane.b32.xlu0 %v4760_v48, %s12693_s26 }
 0x61c   : > { %5229 = vperm.xlu1 %8565, %v5219_v15  }
 0x61d   : > { %v4810_v61 = vpop.permute.xlu2 %4809 }
 0x61e   : > { %4822 = vst.msk [vmem:[#allocation3 + $0x60] sm:$0xff] %vm1455_vm11, %v4810_v61 }
 0x623   : > { %5249 = vperm.xlu2 %8566, %v5223_v19   ;;  %5239 = vperm.xlu0 %8564, %v5221_v8  }
 0x624   : > { %5244 = vperm.xlu1 %8565, %v5222_v23  }
 0x625   : > { %v4786_v41 = vpop.permute.xlu0 %4785  ;;  %v4873_v17 = vpop.permute.xlu2 %4872  ;;  %v4845_v1 = vld [vmem:[#allocation3 + $0x60] sm:$0xff] }
 0x626   : > { %4800 = vst.msk [vmem:[#allocation3 + $0x28] sm:$0xff] %vm1455_vm11, %v4786_v41  ;;  %v4806_v55 = vpop.permute.xlu1 %4805 }
 0x627   : > { %4820 = vst.msk [vmem:[#allocation3 + $0x50] sm:$0xff] %vm1455_vm11, %v4806_v55 }
 0x62b   : > { %5264 = vperm.xlu2 %8566, %v5226_v0   ;;  %5254 = vperm.xlu0 %8564, %v5224_v18   ;;  %v4833_v18 = vld [vmem:[#allocation3] sm:$0xff] }
 0x62c   : > { %5259 = vperm.xlu1 %8565, %v5225_v4  }
 0x62d   : > { %v4869_v53 = vpop.permute.xlu0 %4868  ;;  %v4792_v12 = vpop.permute.xlu2 %4791  ;;  %v11592_v13 = vld [vmem:[#allocation3 + $0x28] sm:$0xff] }
 0x62e   : > { %v4889_v62 = vpop.permute.xlu1 %4888  ;;  %4803 = vst.msk [vmem:[#allocation3 + $0x40] sm:$0xff] %vm1455_vm11, %v4792_v12  ;;  %v11595_v35 = vld [vmem:[#allocation3 + $0x50] sm:$0xff] }
 0x62f   : > { %4903 = vst.msk [vmem:[#allocation3 + $0x50] sm:$0xff] %vm1455_vm11, %v4889_v62 }
 0x630   : > { %4883 = vst.msk [vmem:[#allocation3 + $0x28] sm:$0xff] %vm1455_vm11, %v4869_v53  ;;  %v4825_v53 = vld [vmem:[%s12502_s5] sm:$0xff] }
 0x635   : > { %v4808_v43 = vpop.permute.xlu0 %4807  ;;  %v5109_v29 = vpop.permute.xlu2 %5108  ;;  %v4841_v21 = vld [vmem:[#allocation3 + $0x40] sm:$0xff] }
 0x636   : > { %v4871_v10 = vpop.permute.xlu1 %4870  ;;  %4821 = vst.msk [vmem:[#allocation3 + $0x58] sm:$0xff] %vm1455_vm11, %v4808_v43  ;;  %v11600_v59 = vld [vmem:[#allocation3 + $0x50] sm:$0xff] }
 0x637   : > { %5117 = vst.msk [vmem:[#allocation3 + $0x50] sm:$0xff] %vm1455_vm11, %v5103_v46 }
 0x63d   : > { %v4788_v31 = vpop.permute.xlu0 %4787  ;;  %v4897_v9 = vpop.permute.xlu2 %4896  ;;  %v4844_v37 = vld [vmem:[#allocation3 + $0x58] sm:$0xff] }
 0x63e   : > { %4801 = vst.msk [vmem:[#allocation3 + $0x30] sm:$0xff] %vm1455_vm11, %v4788_v31  ;;  %v4790_v5 = vpop.permute.xlu1 %4789  ;;  %v5141_v0 = vld [vmem:[#allocation3 + $0x50] sm:$0xff]  ;;  %v7418_v31 = vld [vmem:[%s12502_s5 + $0x40] sm:$0xff] }
 0x63f   : > { %4802 = vst.msk [vmem:[#allocation3 + $0x38] sm:$0xff] %vm1455_vm11, %v4790_v5 }
 0x640   : > { %4904 = vst.msk [vmem:[#allocation3 + $0x58] sm:$0xff] %vm1455_vm11, %v4891_v3  ;;  %v4835_v3 = vld [vmem:[#allocation3 + $0x10] sm:$0xff] }
 0x645   : > { %v5105_v57 = vpop.permute.xlu0 %5104  ;;  %v5087_v60 = vpop.permute.xlu2 %5086  ;;  %v11606_v25 = vld [vmem:[#allocation3 + $0x30] sm:$0xff] }
 0x646   : > { %v5107_v6 = vpop.permute.xlu1 %5106  ;;  %v11608_v36 = vld [vmem:[#allocation3 + $0x38] sm:$0xff]  ;;  %4884 = vst.msk [vmem:[#allocation3 + $0x30] sm:$0xff] %vm1455_vm11, %v4871_v10 }
 0x647   : > { %v11611_v38 = vld [vmem:[#allocation3 + $0x58] sm:$0xff]  ;;  %4885 = vst.msk [vmem:[#allocation3 + $0x38] sm:$0xff] %vm1455_vm11, %v4873_v17  ;;  %v4922_v17 = vld [vmem:[#allocation3 + $0x28] sm:$0xff] }
 0x648   : > { %5118 = vst.msk [vmem:[#allocation3 + $0x58] sm:$0xff] %vm1455_vm11, %v5105_v57 }
 0x64d   : > { %v4893_v24 = vpop.permute.xlu0 %4892  ;;  %v5111_v33 = vpop.permute.xlu2 %5110  ;;  %v4923_v44 = vld [vmem:[#allocation3 + $0x30] sm:$0xff] }
 0x64e   : > { %v4812_v50 = vpop.permute.xlu1 %4811  ;;  %4905 = vst.msk [vmem:[#allocation3 + $0x60] sm:$0xff] %vm1455_vm11, %v4893_v24  ;;  %v11616_v42 = vld [vmem:[#allocation3 + $0x38] sm:$0xff]  ;;  %v7442_v24 = vld [vmem:[%s12502_s5 + $0x80] sm:$0xff] }
 0x64f   : > { %4823 = vst.msk [vmem:[#allocation3 + $0x68] sm:$0xff] %vm1455_vm11, %v4812_v50  ;;  %v5142_v23 = vld [vmem:[#allocation3 + $0x58] sm:$0xff] }
 0x650   : > { %5099 = vst.msk [vmem:[#allocation3 + $0x38] sm:$0xff] %vm1455_vm11, %v5087_v60  ;;  %v4828_v50 = vld [vmem:[%s12502_s5 + $0x18] sm:$0xff] }
 0x655   : > { %v4875_v16 = vpop.permute.xlu0 %4874  ;;  %v4851_v49 = vpop.permute.xlu2 %4850  ;;  %v4929_v40 = vld [vmem:[#allocation3 + $0x60] sm:$0xff] }
 0x656   : > { %v4895_v52 = vpop.permute.xlu1 %4894  ;;  %v4846_v58 = vld [vmem:[#allocation3 + $0x68] sm:$0xff]  ;;  %5119 = vst.msk [vmem:[#allocation3 + $0x60] sm:$0xff] %vm1455_vm11, %v5107_v6 }
 0x657   : > { %4906 = vst.msk [vmem:[#allocation3 + $0x68] sm:$0xff] %vm1455_vm11, %v4895_v52  ;;  %v5138_v62 = vld [vmem:[#allocation3 + $0x38] sm:$0xff]  ;;  %v7422_v52 = vld [vmem:[%s12502_s5 + $0x60] sm:$0xff] }
 0x658   : > { %4886 = vst.msk [vmem:[#allocation3 + $0x40] sm:$0xff] %vm1455_vm11, %v4875_v16  ;;  %v7421_v16 = vld [vmem:[%s12502_s5 + $0x58] sm:$0xff] }
 0x659   : > { %4864 = vst.msk [vmem:[#allocation3 + $0x8] sm:$0xff] %vm1455_vm11, %v4851_v49  ;;  %v4829_v49 = vld [vmem:[%s12502_s5 + $0x20] sm:$0xff] }
 0x65d   : > { %v4857_v30 = vpop.permute.xlu2 %4856  ;;  %v4814_v34 = vpop.permute.xlu0 %4813  ;;  %v5143_v8 = vld [vmem:[#allocation3 + $0x60] sm:$0xff] }
 0x65e   : > { %v4855_v26 = vpop.permute.xlu1 %4854  ;;  %4824 = vst.msk [vmem:[#allocation3 + $0x70] sm:$0xff] %vm1455_vm11, %v4814_v34  ;;  %v4930_v47 = vld [vmem:[#allocation3 + $0x68] sm:$0xff]  ;;  %v7446_v34 = vld [vmem:[%s12502_s5 + $0xa0] sm:$0xff] }
 0x65f   : > { %5120 = vst.msk [vmem:[#allocation3 + $0x68] sm:$0xff] %vm1455_vm11, %v5109_v29  ;;  %v4925_v48 = vld [vmem:[#allocation3 + $0x40] sm:$0xff] }
 0x660   : > { %4867 = vst.msk [vmem:[#allocation3 + $0x20] sm:$0xff] %vm1455_vm11, %v4857_v30  ;;  %v4918_v2 = vld [vmem:[#allocation3 + $0x8] sm:$0xff]  ;;  %v4831_v30 = vld [vmem:[%s12502_s5 + $0x30] sm:$0xff] }
 0x661   : > { %4866 = vst.msk [vmem:[#allocation3 + $0x18] sm:$0xff] %vm1455_vm11, %v4855_v26  ;;  %v7424_v26 = vld [vmem:[%s12502_s5 + $0x70] sm:$0xff] }
 0x665   : > { %v5071_v54 = vpop.permute.xlu2 %5070  ;;  %v4794_v39 = vpop.permute.xlu0 %4793  ;;  %v4847_v27 = vld [vmem:[#allocation3 + $0x70] sm:$0xff] }
 0x666   : > { %v5085_v63 = vpop.permute.xlu1 %5084  ;;  %4804 = vst.msk [vmem:[#allocation3 + $0x48] sm:$0xff] %vm1455_vm11, %v4794_v39  ;;  %5022 = vmatpush.msrb.mxu0 %v4847_v27  ;;  %v5144_v19 = vld [vmem:[#allocation3 + $0x68] sm:$0xff]  ;;  %v7449_v39 = vld [vmem:[%s12502_s5 + $0xb8] sm:$0xff] }
 0x667   : > { %4907 = vst.msk [vmem:[#allocation3 + $0x70] sm:$0xff] %vm1455_vm11, %v4897_v9  ;;  %v11632_v45 = vld [vmem:[#allocation3 + $0x20] sm:$0xff]  ;;  %v4826_v9 = vld [vmem:[%s12502_s5 + $0x8] sm:$0xff] }
 0x668   : > { %5023 = vmatpush.msrb.mxu0 %v4846_v58  ;;  %5098 = vst.msk [vmem:[#allocation3 + $0x30] sm:$0xff] %vm1455_vm11, %v5085_v63  ;;  %v4830_v58 = vld [vmem:[%s12502_s5 + $0x28] sm:$0xff] }
 0x669   : > { %5081 = vst.msk [vmem:[#allocation3 + $0x20] sm:$0xff] %vm1455_vm11, %v5071_v54  ;;  %v7448_v54 = vld [vmem:[%s12502_s5 + $0xb0] sm:$0xff] }
 0x66a   : > { %5024 = vmatpush.msrb.mxu0 %v4845_v1  ;;  %v7420_v1 = vld [vmem:[%s12502_s5 + $0x50] sm:$0xff] }
 0x66c   : > { %5025 = vmatpush.msrb.mxu0 %v4844_v37 }
 0x66d   : > { %v5089_v51 = vpop.permute.xlu0 %5088  ;;  %v4842_v22 = vld [vmem:[#allocation3 + $0x48] sm:$0xff]  ;;  %v5065_v32 = vpop.permute.xlu2 %5064 }
 0x66e   : > { %v4877_v14 = vpop.permute.xlu1 %4876  ;;  %v4931_v56 = vld [vmem:[#allocation3 + $0x70] sm:$0xff]  ;;  %5026 = vmatpush.msrb.mxu0 %v11595_v35  ;;  %5100 = vst.msk [vmem:[#allocation3 + $0x40] sm:$0xff] %vm1455_vm11, %v5089_v51 }
 0x66f   : > { %4957 = vmatpush.msra.mxu3 %v4931_v56  ;;  %5121 = vst.msk [vmem:[#allocation3 + $0x70] sm:$0xff] %vm1455_vm11, %v5111_v33  ;;  %v5137_v10 = vld [vmem:[#allocation3 + $0x30] sm:$0xff] }
 0x670   : > { %4887 = vst.msk [vmem:[#allocation3 + $0x48] sm:$0xff] %vm1455_vm11, %v4877_v14  ;;  %5027 = vmatpush.msrb.mxu0 %v4842_v22  ;;  %v5135_v5 = vld [vmem:[#allocation3 + $0x20] sm:$0xff] }
 0x671   : > { %4958 = vmatpush.msra.mxu3 %v4930_v47  ;;  %5078 = vst.msk [vmem:[#allocation3 + $0x8] sm:$0xff] %vm1455_vm11, %v5065_v32  ;;  %v4832_v47 = vld [vmem:[%s12502_s5 + $0x38] sm:$0xff] }
 0x672   : > { %5028 = vmatpush.msrb.mxu0 %v4841_v21  ;;  %v7445_v21 = vld [vmem:[%s12502_s5 + $0x98] sm:$0xff] }
 0x673   : > { %4959 = vmatpush.msra.mxu3 %v4929_v40  ;;  %v7444_v40 = vld [vmem:[%s12502_s5 + $0x90] sm:$0xff] }
 0x674   : > { %5029 = vmatpush.msrb.mxu0 %v11608_v36  ;;  %v7419_v36 = vld [vmem:[%s12502_s5 + $0x48] sm:$0xff] }
 0x675   : > { %4960 = vmatpush.msra.mxu3 %v11611_v38  ;;  %v4853_v46 = vpop.permute.xlu0 %4852  ;;  %v5139_v12 = vld [vmem:[#allocation3 + $0x40] sm:$0xff]  ;;  %v4827_v38 = vld [vmem:[%s12502_s5 + $0x10] sm:$0xff] }
 0x676   : > { %v5091_v11 = vpop.permute.xlu1 %5090  ;;  %5030 = vmatpush.msrb.mxu0 %v11606_v25  ;;  %v5145_v15 = vld [vmem:[#allocation3 + $0x70] sm:$0xff]  ;;  %4865 = vst.msk [vmem:[#allocation3 + $0x10] sm:$0xff] %vm1455_vm11, %v4853_v46 }
 0x677   : > { %4961 = vmatpush.msra.mxu3 %v11600_v59  ;;  %5171 = vmatpush.msrb.mxu1 %v5145_v15  ;;  %v4926_v61 = vld [vmem:[#allocation3 + $0x48] sm:$0xff]  ;;  %v5235_v15 = vpop.permute.xlu2 %5234 }
 0x678   : > { %5101 = vst.msk [vmem:[#allocation3 + $0x48] sm:$0xff] %vm1455_vm11, %v5091_v11  ;;  %5031 = vmatpush.msrb.mxu0 %v11592_v13  ;;  %v4920_v13 = vld [vmem:[#allocation3 + $0x18] sm:$0xff]  ;;  %v5132_v6 = vld [vmem:[#allocation3 + $0x8] sm:$0xff] }
 0x679   : > { %4962 = vmatpush.msra.mxu3 %v4926_v61  ;;  %5172 = vmatpush.msrb.mxu1 %v5144_v19 }
 0x67a   : > { %5032 = vmatpush.msrb.mxu0 %v4837_v7  ;;  %v7447_v7 = vld [vmem:[%s12502_s5 + $0xa8] sm:$0xff] }
 0x67b   : > { %4963 = vmatpush.msra.mxu3 %v4925_v48  ;;  %5173 = vmatpush.msrb.mxu1 %v5143_v8 }
 0x67c   : > { %5033 = vmatpush.msrb.mxu0 %v4836_v20  ;;  %v7425_v20 = vld [vmem:[%s12502_s5 + $0x78] sm:$0xff] }
 0x67d   : > { %4964 = vmatpush.msra.mxu3 %v11616_v42  ;;  %5174 = vmatpush.msrb.mxu1 %v5142_v23  ;;  %v5083_v41 = vpop.permute.xlu0 %5082  ;;  %v4919_v29 = vld [vmem:[#allocation3 + $0x10] sm:$0xff]  ;;  %v7443_v42 = vld [vmem:[%s12502_s5 + $0x88] sm:$0xff] }
 0x67e   : > { %v4849_v55 = vpop.permute.xlu1 %4848  ;;  %5034 = vmatpush.msrb.mxu0 %v4835_v3  ;;  %5097 = vst.msk [vmem:[#allocation3 + $0x28] sm:$0xff] %vm1455_vm11, %v5083_v41 }
 0x67f   : > { %4965 = vmatpush.msra.mxu3 %v4923_v44  ;;  %5175 = vmatpush.msrb.mxu1 %v5141_v0  ;;  %4863 = vst.msk [vmem:[#allocation3] sm:$0xff] %vm1455_vm11, %v4849_v55  ;;  %v5140_v4 = vld [vmem:[#allocation3 + $0x48] sm:$0xff] }
 0x680   : > { %5035 = vmatpush.msrb.mxu0 %v11623_v28  ;;  %v7423_v28 = vld [vmem:[%s12502_s5 + $0x68] sm:$0xff] }
 0x681   : > { %4966 = vmatpush.msra.mxu3 %v4922_v17  ;;  %5176 = vmatpush.msrb.mxu1 %v5140_v4 }
 0x682   : > { %5036 = vmatpush.msrb.mxu0 %v4833_v18 }
 0x683   : > { %4967 = vmatpush.msra.mxu3 %v11632_v45  ;;  %5177 = vmatpush.msrb.mxu1 %v5139_v12 }
 0x684   : > { %7434 = vmatmul.msk.f32.vlgmr.msrb.gmra.mxu0 %vm987_vm9, %v4825_v53 }
 0x685   : > { %4968 = vmatpush.msra.mxu3 %v4920_v13  ;;  %5178 = vmatpush.msrb.mxu1 %v5138_v62  ;;  %v5069_v35 = vpop.permute.xlu0 %5068  ;;  %v5136_v59 = vld [vmem:[#allocation3 + $0x28] sm:$0xff] }
 0x686   : > { %v5067_v43 = vpop.permute.xlu1 %5066  ;;  %5080 = vst.msk [vmem:[#allocation3 + $0x18] sm:$0xff] %vm1455_vm11, %v5069_v35  ;;  %v4917_v37 = vld [vmem:[#allocation3] sm:$0xff] }
 0x687   : > { %4969 = vmatpush.msra.mxu3 %v4919_v29  ;;  %5079 = vst.msk [vmem:[#allocation3 + $0x10] sm:$0xff] %vm1455_vm11, %v5067_v43  ;;  %5179 = vmatpush.msrb.mxu1 %v5137_v10 }
 0x689   : > { %4970 = vmatpush.msra.mxu3 %v4918_v2  ;;  %5180 = vmatpush.msrb.mxu1 %v5136_v59 }
 0x68b   : > { %4971 = vmatpush.msra.mxu3 %v4917_v37  ;;  %5181 = vmatpush.msrb.mxu1 %v5135_v5 }
 0x68c   : > { %7426 = vmatmul.msk.f32.vlgmr.msra.gmra.mxu3 %vm987_vm9, %v7418_v31  ;;  %7435 = vmatmul.msk.f32.gmra.mxu0 %vm987_vm9, %v4826_v9 }
 0x68d   : > { %v5063_v57 = vpop.permute.xlu0 %5062  ;;  %v5134_v60 = vld [vmem:[#allocation3 + $0x18] sm:$0xff] }
 0x68e   : > { %5077 = vst.msk [vmem:[#allocation3] sm:$0xff] %vm1455_vm11, %v5063_v57  ;;  %5182 = vmatpush.msrb.mxu1 %v5134_v60  ;;  %v5133_v25 = vld [vmem:[#allocation3 + $0x10] sm:$0xff]  ;;  %v5230_v14 = vpop.permute.xlu1 %5229  ;;  %v5250_v57 = vpop.permute.xlu2 %5249 }
 0x690   : > { %5183 = vmatpush.msrb.mxu1 %v5133_v25 }
 0x692   : > { %5184 = vmatpush.msrb.mxu1 %v5132_v6 }
 0x694   : > { %7427 = vmatmul.msk.f32.gmra.mxu3 %vm987_vm9, %v7419_v36  ;;  %7436 = vmatmul.msk.f32.gmra.mxu0 %vm987_vm9, %v4827_v38 }
 0x695   : > { %v5131_v33 = vld [vmem:[#allocation3] sm:$0xff]  ;;  %v5240_v0 = vpop.permute.xlu0 %5239 }
 0x696   : > { %5185 = vmatpush.msrb.mxu1 %v5131_v33  ;;  %v5245_v43 = vpop.permute.xlu1 %5244 }
 0x697   : > { %7450 = vmatmul.msk.f32.vlgmr.msrb.gmra.mxu1 %vm987_vm9, %v7442_v24 }
 0x69c   : > { %7428 = vmatmul.msk.f32.gmra.mxu3 %vm987_vm9, %v7420_v1  ;;  %7437 = vmatmul.msk.f32.gmra.mxu0 %vm987_vm9, %v4828_v50 }
 0x69d   : > { %v5255_v1 = vpop.permute.xlu0 %5254 }
 0x69f   : > { %7451 = vmatmul.msk.f32.gmra.mxu1 %vm987_vm9, %v7443_v42 }
 0x6a4   : > { %7429 = vmatmul.msk.f32.gmra.mxu3 %vm987_vm9, %v7421_v16  ;;  %7438 = vmatmul.msk.f32.gmra.mxu0 %vm987_vm9, %v4829_v49 }
 0x6a7   : > { %7452 = vmatmul.msk.f32.gmra.mxu1 %vm987_vm9, %v7444_v40 }
 0x6ac   : > { %7430 = vmatmul.msk.f32.gmra.mxu3 %vm987_vm9, %v7422_v52  ;;  %7439 = vmatmul.msk.f32.gmra.mxu0 %vm987_vm9, %v4830_v58  ;;  %v5260_v58 = vpop.permute.xlu1 %5259 }
 0x6af   : > { %7453 = vmatmul.msk.f32.gmra.mxu1 %vm987_vm9, %v7445_v21 }
 0x6b4   : > { %7431 = vmatmul.msk.f32.gmra.mxu3 %vm987_vm9, %v7423_v28  ;;  %7440 = vmatmul.msk.f32.gmra.mxu0 %vm987_vm9, %v4831_v30 }
 0x6b7   : > { %7454 = vmatmul.msk.f32.gmra.mxu1 %vm987_vm9, %v7446_v34 }
 0x6bc   : > { %7432 = vmatmul.msk.f32.gmra.mxu3 %vm987_vm9, %v7424_v26  ;;  %7441 = vmatmul.msk.f32.gmra.mxu0 %vm987_vm9, %v4832_v47 }
 0x6bf   : > { %7455 = vmatmul.msk.f32.gmra.mxu1 %vm987_vm9, %v7447_v7 }
 0x6c4   : > { %7433 = vmatmul.msk.f32.gmra.mxu3 %vm987_vm9, %v7425_v20  ;;  %v5265_v20 = vpop.permute.xlu2 %5264 }
 0x6c7   : > { %7456 = vmatmul.msk.f32.gmra.mxu1 %vm987_vm9, %v7448_v54 }
 0x6cf   : > { %7457 = vmatmul.msk.f32.gmra.mxu1 %vm987_vm9, %v7449_v39 }
 0x701   : > { %v5038_v27 = vpop.f32.mrf.mxu0 }
 0x709   : > { %v5041_v63 = vpop.f32.mrf.mxu0 }
 0x70f   : > { %v4973_v44 = vpop.f32.mrf.mxu3 }
 0x710   : > { %v5039_v45 = vadd.f32 %v5038_v27, %v4973_v44 }
 0x711   : > { %v5044_v22 = vpop.f32.mrf.mxu0 }
 0x714   : > { %v5187_v51 = vpop.f32.mrf.mxu1 }
 0x715   : > { %v5211_v48 = vadd.f32 %v5187_v51, %v5039_v45 }
 0x717   : > { %v5267_v32 = vadd.f32 %v5230_v14, %v5211_v48  ;;  %v4976_v56 = vpop.f32.mrf.mxu3 }
 0x718   : > { %v5042_v46 = vadd.f32 %v5041_v63, %v4976_v56 }
 0x719   : > { %v5275_v2 = vmax.f32 %v5267_v32, 0.0  ;;  %v5047_v61 = vpop.f32.mrf.mxu0 }
 0x71b   : > { %7458 = vmatmul.msk.f32.vlgmr.msrb.gmra.mxu2 %vm1455_vm11, %v5275_v2 }
 0x71c   : > { %v5190_v3 = vpop.f32.mrf.mxu1 }
 0x71d   : > { %v5212_v11 = vadd.f32 %v5190_v3, %v5042_v46 }
 0x71f   : > { %v5268_v19 = vadd.f32 %v5235_v15, %v5212_v11  ;;  %v4979_v8 = vpop.f32.mrf.mxu3 }
 0x720   : > { %v5045_v41 = vadd.f32 %v5044_v22, %v4979_v8 }
 0x721   : > { %v5276_v23 = vmax.f32 %v5268_v19, 0.0  ;;  %v5050_v53 = vpop.f32.mrf.mxu0 }
 0x723   : > { %7459 = vmatmul.msk.f32.gmra.mxu2 %vm1455_vm11, %v5276_v23 }
 0x724   : > { %v5193_v17 = vpop.f32.mrf.mxu1 }
 0x725   : > { %v5213_v55 = vadd.f32 %v5193_v17, %v5045_v41 }
 0x727   : > { %v5269_v18 = vadd.f32 %v5240_v0, %v5213_v55  ;;  %v4982_v4 = vpop.f32.mrf.mxu3 }
 0x728   : > { %v5048_v13 = vadd.f32 %v5047_v61, %v4982_v4 }
 0x729   : > { %v5277_v12 = vmax.f32 %v5269_v18, 0.0  ;;  %v5053_v9 = vpop.f32.mrf.mxu0 }
 0x72b   : > { %7460 = vmatmul.msk.f32.gmra.mxu2 %vm1455_vm11, %v5277_v12 }
 0x72c   : > { %v5196_v62 = vpop.f32.mrf.mxu1 }
 0x72d   : > { %v5214_v35 = vadd.f32 %v5196_v62, %v5048_v13 }
 0x72f   : > { %v5270_v29 = vadd.f32 %v5245_v43, %v5214_v35  ;;  %v4985_v10 = vpop.f32.mrf.mxu3 }
 0x730   : > { %v5051_v31 = vadd.f32 %v5050_v53, %v4985_v10 }
 0x731   : > { %v5278_v59 = vmax.f32 %v5270_v29, 0.0  ;;  %v5056_v24 = vpop.f32.mrf.mxu0 }
 0x733   : > { %7461 = vmatmul.msk.f32.gmra.mxu2 %vm1455_vm11, %v5278_v59 }
 0x734   : > { %v5199_v37 = vpop.f32.mrf.mxu1 }
 0x735   : > { %v5215_v5 = vadd.f32 %v5199_v37, %v5051_v31 }
 0x737   : > { %v5271_v60 = vadd.f32 %v5250_v57, %v5215_v5  ;;  %v4988_v25 = vpop.f32.mrf.mxu3 }
 0x738   : > { %v5054_v36 = vadd.f32 %v5053_v9, %v4988_v25  ;;  %v5976_v25 = vld [vmem:[#allocation15] sm:$0xff] }
 0x739   : > { %v5279_v6 = vmax.f32 %v5271_v60, 0.0  ;;  %v5059_v21 = vpop.f32.mrf.mxu0 }
 0x73b   : > { %7462 = vmatmul.msk.f32.gmra.mxu2 %vm1455_vm11, %v5279_v6  ;;  %v5977_v6 = vld [vmem:[#allocation15 + $0x8] sm:$0xff] }
 0x73c   : > { %v5202_v38 = vpop.f32.mrf.mxu1 }
 0x73d   : > { %v5216_v33 = vadd.f32 %v5202_v38, %v5054_v36 }
 0x73f   : > { %v5272_v50 = vadd.f32 %v5255_v1, %v5216_v33  ;;  %v4991_v42 = vpop.f32.mrf.mxu3 }
 0x740   : > { %v5057_v49 = vadd.f32 %v5056_v24, %v4991_v42  ;;  %v5980_v42 = vld [vmem:[#allocation15 + $0x20] sm:$0xff] }
 0x741   : > { %v5280_v16 = vmax.f32 %v5272_v50, 0.0  ;;  %v5979_v50 = vld [vmem:[#allocation15 + $0x18] sm:$0xff] }
 0x743   : > { %7463 = vmatmul.msk.f32.gmra.mxu2 %vm1455_vm11, %v5280_v16 }
 0x744   : > { %v5205_v40 = vpop.f32.mrf.mxu1 }
 0x745   : > { %v5217_v52 = vadd.f32 %v5205_v40, %v5057_v49 }
 0x747   : > { %v5273_v28 = vadd.f32 %v5260_v58, %v5217_v52  ;;  %v4994_v30 = vpop.f32.mrf.mxu3 }
 0x748   : > { %v5060_v26 = vadd.f32 %v5059_v21, %v4994_v30 }
 0x749   : > { %v5281_v34 = vmax.f32 %v5273_v28, 0.0  ;;  %v5978_v28 = vld [vmem:[#allocation15 + $0x10] sm:$0xff] }
 0x74b   : > { %7464 = vmatmul.msk.f32.gmra.mxu2 %vm1455_vm11, %v5281_v34 }
 0x74c   : > { %v5208_v47 = vpop.f32.mrf.mxu1 }
 0x74d   : > { %v5218_v7 = vadd.f32 %v5208_v47, %v5060_v26 }
 0x74f   : > { %v5274_v54 = vadd.f32 %v5265_v20, %v5218_v7 }
 0x751   : > { %v5282_v39 = vmax.f32 %v5274_v54, 0.0 }
 0x753   : > { %7465 = vmatmul.msk.f32.gmra.mxu2 %vm1455_vm11, %v5282_v39 }
 0x79e   : > { %v11760_v27 = vpop.f32.mrf.mxu2 }
 0x79f   : > { %5358 = vst.msk [vmem:[#allocation4] sm:$0xff] %vm1455_vm11, %v11760_v27  ;;  %5406 = vrot.lane.b32.xlu2 %v11760_v27, %s9034_s3  ;;  %5374 = vrot.lane.b32.xlu1 %v11760_v27, %s9036_s15 }
 0x7a6   : > { %v11768_v63 = vpop.f32.mrf.mxu2  ;;  %v11970_v21 = vld [vmem:[#allocation4] sm:$0xff] }
 0x7a7   : > { %5359 = vst.msk [vmem:[#allocation4 + $0x8] sm:$0xff] %vm1455_vm11, %v11768_v63  ;;  %5504 = vrot.lane.b32.xlu1 %v11760_v27, %s9093_s22  ;;  %5474 = vrot.lane.b32.xlu0 %v11768_v63, %s9094_s14 }
 0x7a8   : > { %5376 = vrot.lane.b32.xlu2 %v11768_v63, %s9036_s15 }
 0x7ae   : > { %v11778_v44 = vpop.f32.mrf.mxu2  ;;  %v11897_v23 = vld [vmem:[#allocation4 + $0x8] sm:$0xff] }
 0x7af   : > { %5360 = vst.msk [vmem:[#allocation4 + $0x10] sm:$0xff] %vm1455_vm11, %v11778_v44  ;;  %5508 = vrot.lane.b32.xlu1 %v11778_v44, %s9093_s22  ;;  %5378 = vrot.lane.b32.xlu0 %v11778_v44, %s9036_s15 }
 0x7b0   : > { %5506 = vrot.lane.b32.xlu2 %v11768_v63, %s9093_s22 }
 0x7b6   : > { %v11788_v45 = vpop.f32.mrf.mxu2  ;;  %v11918_v12 = vld [vmem:[#allocation4 + $0x10] sm:$0xff] }
 0x7b7   : > { %5361 = vst.msk [vmem:[#allocation4 + $0x18] sm:$0xff] %vm1455_vm11, %v11788_v45  ;;  %5476 = vrot.lane.b32.xlu0 %v11778_v44, %s9094_s14  ;;  %5380 = vrot.lane.b32.xlu1 %v11788_v45, %s9036_s15 }
 0x7b8   : > { %5408 = vrot.lane.b32.xlu2 %v11768_v63, %s9034_s3 }
 0x7be   : > { %v11798_v51 = vpop.f32.mrf.mxu2  ;;  %v11939_v31 = vld [vmem:[#allocation4 + $0x18] sm:$0xff] }
 0x7bf   : > { %5362 = vst.msk [vmem:[#allocation4 + $0x20] sm:$0xff] %vm1455_vm11, %v11798_v51  ;;  %5510 = vrot.lane.b32.xlu0 %v11788_v45, %s9093_s22  ;;  %5544 = vrot.lane.b32.xlu1 %v11798_v51, %s9092_s30 }
 0x7c0   : > { %5410 = vrot.lane.b32.xlu2 %v11778_v44, %s9034_s3 }
 0x7c6   : > { %v11808_v22 = vpop.f32.mrf.mxu2  ;;  %v11965_v52 = vld [vmem:[#allocation4 + $0x20] sm:$0xff] }
 0x7c7   : > { %5363 = vst.msk [vmem:[#allocation4 + $0x28] sm:$0xff] %vm1455_vm11, %v11808_v22  ;;  %5478 = vrot.lane.b32.xlu0 %v11788_v45, %s9094_s14  ;;  %5416 = vrot.lane.b32.xlu1 %v11808_v22, %s9034_s3 }
 0x7c8   : > { %5412 = vrot.lane.b32.xlu2 %v11788_v45, %s9034_s3 }
 0x7ce   : > { %v11818_v48 = vpop.f32.mrf.mxu2  ;;  %v11952_v60 = vld [vmem:[#allocation4 + $0x28] sm:$0xff] }
 0x7cf   : > { %5364 = vst.msk [vmem:[#allocation4 + $0x30] sm:$0xff] %vm1455_vm11, %v11818_v48  ;;  %5382 = vrot.lane.b32.xlu0 %v11798_v51, %s9036_s15  ;;  %5482 = vrot.lane.b32.xlu1 %v11808_v22, %s9094_s14 }
 0x7d0   : > { %5512 = vrot.lane.b32.xlu2 %v11798_v51, %s9093_s22 }
 0x7d6   : > { %v11828_v14 = vpop.f32.mrf.mxu2  ;;  %v11949_v57 = vld [vmem:[#allocation4 + $0x30] sm:$0xff] }
 0x7d7   : > { %5365 = vst.msk [vmem:[#allocation4 + $0x38] sm:$0xff] %vm1455_vm11, %v11828_v14  ;;  %5414 = vrot.lane.b32.xlu0 %v11798_v51, %s9034_s3  ;;  %5546 = vrot.lane.b32.xlu1 %v11808_v22, %s9092_s30 }
 0x7d8   : > { %5384 = vrot.lane.b32.xlu2 %v11808_v22, %s9036_s15 }
 0x7df   : > { %5480 = vrot.lane.b32.xlu0 %v11798_v51, %s9094_s14  ;;  %5386 = vrot.lane.b32.xlu1 %v11818_v48, %s9036_s15 }
 0x7e0   : > { %5418 = vrot.lane.b32.xlu2 %v11818_v48, %s9034_s3 }
 0x7e7   : > { %5514 = vrot.lane.b32.xlu0 %v11808_v22, %s9093_s22  ;;  %5516 = vrot.lane.b32.xlu1 %v11818_v48, %s9093_s22 }
 0x7e8   : > { %5484 = vrot.lane.b32.xlu2 %v11818_v48, %s9094_s14 }
 0x7ef   : > { %5548 = vrot.lane.b32.xlu1 %v11818_v48, %s9092_s30  ;;  %5388 = vrot.lane.b32.xlu0 %v11828_v14, %s9036_s15 }
 0x7f0   : > { %5518 = vrot.lane.b32.xlu2 %v11828_v14, %s9093_s22  ;;  %s12698_s22 = smov 124  }
 0x7f7   : > { %5540 = vrot.lane.b32.xlu1 %v11778_v44, %s9092_s30  ;;  %5542 = vrot.lane.b32.xlu0 %v11788_v45, %s9092_s30 }
 0x7f8   : > { %5472 = vrot.lane.b32.xlu2 %v11760_v27, %s9094_s14 }
 0x7f9   : > { %v5407_v32 = vpop.permute.xlu2 %5406 }
 0x7fa   : > { %5430 = vst.msk [vmem:[#allocation4 + $0x80] sm:$0xff] %vm1455_vm11, %v5407_v32 }
 0x7ff   : > { %5801 = vrot.lane.b32.xlu1 %v11798_v51, %s9066_s11  ;;  %5536 = vrot.lane.b32.xlu0 %v11760_v27, %s9092_s30 }
 0x800   : > { %5538 = vrot.lane.b32.xlu2 %v11768_v63, %s9092_s30 }
 0x802   : > { %v5377_v56 = vpop.permute.xlu2 %5376 }
 0x803   : > { %5399 = vst.msk [vmem:[#allocation4 + $0x48] sm:$0xff] %vm1455_vm11, %v5377_v56 }
 0x807   : > { %5550 = vrot.lane.b32.xlu1 %v11828_v14, %s9092_s30  ;;  %5420 = vrot.lane.b32.xlu0 %v11828_v14, %s9034_s3 }
 0x808   : > { %5805 = vrot.lane.b32.xlu2 %v11818_v48, %s9066_s11 }
 0x80a   : > { %v5507_v2 = vpop.permute.xlu2 %5506  ;;  %v11876_v46 = vld [vmem:[#allocation4 + $0x48] sm:$0xff] }
 0x80b   : > { %5529 = vst.msk [vmem:[#allocation4 + $0x48] sm:$0xff] %vm1455_vm11, %v5507_v2 }
 0x80f   : > { %5795 = vrot.lane.b32.xlu1 %v11768_v63, %s9066_s11  ;;  %5486 = vrot.lane.b32.xlu0 %v11828_v14, %s9094_s14 }
 0x810   : > { %5799 = vrot.lane.b32.xlu2 %v11788_v45, %s9066_s11 }
 0x811   : > { %v5375_v3 = vpop.permute.xlu1 %5374 }
 0x812   : > { %5398 = vst.msk [vmem:[#allocation4 + $0x40] sm:$0xff] %vm1455_vm11, %v5375_v3  ;;  %v5409_v11 = vpop.permute.xlu2 %5408 }
 0x813   : > { %5431 = vst.msk [vmem:[#allocation4 + $0x88] sm:$0xff] %vm1455_vm11, %v5409_v11 }
 0x817   : > { %5773 = vrot.lane.b32.xlu1 %v11818_v48, %s12693_s26  ;;  %5803 = vrot.lane.b32.xlu0 %v11808_v22, %s9066_s11 }
 0x818   : > { %5793 = vrot.lane.b32.xlu2 %v11760_v27, %s9066_s11 }
 0x819   : > { %v5505_v15 = vpop.permute.xlu1 %5504  ;;  %v5475_v61 = vpop.permute.xlu0 %5474  ;;  %v11893_v19 = vld [vmem:[#allocation4 + $0x40] sm:$0xff] }
 0x81a   : > { %v5411_v8 = vpop.permute.xlu2 %5410  ;;  %5528 = vst.msk [vmem:[#allocation4 + $0x40] sm:$0xff] %vm1455_vm11, %v5505_v15  ;;  %v11976_v20 = vld [vmem:[#allocation4 + $0x88] sm:$0xff] }
 0x81b   : > { %5432 = vst.msk [vmem:[#allocation4 + $0x90] sm:$0xff] %vm1455_vm11, %v5411_v8 }
 0x81c   : > { %5497 = vst.msk [vmem:[#allocation4 + $0x8] sm:$0xff] %vm1455_vm11, %v5475_v61 }
 0x81f   : > { %5807 = vrot.lane.b32.xlu1 %v11828_v14, %s9066_s11  ;;  %5797 = vrot.lane.b32.xlu0 %v11778_v44, %s9066_s11  ;;  %s12696_s11 = smov 122  }
 0x820   : > { %5771 = vrot.lane.b32.xlu2 %v11808_v22, %s12693_s26 }
 0x821   : > { %v5509_v41 = vpop.permute.xlu1 %5508  ;;  %v5379_v17 = vpop.permute.xlu0 %5378  ;;  %v5587_v8 = vld [vmem:[#allocation4 + $0x40] sm:$0xff] }
 0x822   : > { %5400 = vst.msk [vmem:[#allocation4 + $0x50] sm:$0xff] %vm1455_vm11, %v5379_v17  ;;  %v5413_v55 = vpop.permute.xlu2 %5412  ;;  %v11987_v56 = vld [vmem:[#allocation4 + $0x90] sm:$0xff] }
 0x823   : > { %5433 = vst.msk [vmem:[#allocation4 + $0x98] sm:$0xff] %vm1455_vm11, %v5413_v55 }
 0x827   : > { %5765 = vrot.lane.b32.xlu1 %v11778_v44, %s12693_s26  ;;  %5769 = vrot.lane.b32.xlu0 %v11798_v51, %s12693_s26 }
 0x828   : > { %5767 = vrot.lane.b32.xlu2 %v11788_v45, %s12693_s26 }
 0x829   : > { %v5477_v0 = vpop.permute.xlu0 %5476  ;;  %v5381_v18 = vpop.permute.xlu1 %5380  ;;  %v11914_v4 = vld [vmem:[#allocation4 + $0x50] sm:$0xff] }
 0x82a   : > { %5401 = vst.msk [vmem:[#allocation4 + $0x58] sm:$0xff] %vm1455_vm11, %v5381_v18  ;;  %v5513_v53 = vpop.permute.xlu2 %5512  ;;  %v11984_v32 = vld [vmem:[#allocation4 + $0x98] sm:$0xff] }
 0x82b   : > { %5530 = vst.msk [vmem:[#allocation4 + $0x50] sm:$0xff] %vm1455_vm11, %v5509_v41  ;;  %v11993_v41 = vld [vmem:[#allocation4 + $0x80] sm:$0xff]  ;;  %v5455_v18 = vld [vmem:[#allocation4 + $0x38] sm:$0xff] }
 0x82c   : > { %5498 = vst.msk [vmem:[#allocation4 + $0x10] sm:$0xff] %vm1455_vm11, %v5477_v0 }
 0x82f   : > { %5839 = vrot.lane.b32.xlu1 %v11828_v14, %s9064_s29  ;;  %5837 = vrot.lane.b32.xlu0 %v11818_v48, %s9064_s29 }
 0x830   : > { %5835 = vrot.lane.b32.xlu2 %v11808_v22, %s9064_s29 }
 0x831   : > { %v5511_v13 = vpop.permute.xlu0 %5510  ;;  %v5545_v62 = vpop.permute.xlu1 %5544  ;;  %v11927_v35 = vld [vmem:[#allocation4 + $0x58] sm:$0xff] }
 0x832   : > { %v5385_v43 = vpop.permute.xlu2 %5384  ;;  %5531 = vst.msk [vmem:[#allocation4 + $0x58] sm:$0xff] %vm1455_vm11, %v5511_v13 }
 0x833   : > { %5403 = vst.msk [vmem:[#allocation4 + $0x68] sm:$0xff] %vm1455_vm11, %v5385_v43 }
 0x837   : > { %5833 = vrot.lane.b32.xlu1 %v11798_v51, %s9064_s29  ;;  %5775 = vrot.lane.b32.xlu0 %v11828_v14, %s12693_s26 }
 0x838   : > { %5761 = vrot.lane.b32.xlu2 %v11760_v27, %s12693_s26 }
 0x839   : > { %v5479_v29 = vpop.permute.xlu0 %5478  ;;  %v5417_v10 = vpop.permute.xlu1 %5416  ;;  %v5590_v14 = vld [vmem:[#allocation4 + $0x58] sm:$0xff] }
 0x83a   : > { %5435 = vst.msk [vmem:[#allocation4 + $0xa8] sm:$0xff] %vm1455_vm11, %v5417_v10  ;;  %v5419_v59 = vpop.permute.xlu2 %5418  ;;  %v5461_v7 = vld [vmem:[#allocation4 + $0x68] sm:$0xff] }
 0x83b   : > { %5436 = vst.msk [vmem:[#allocation4 + $0xb0] sm:$0xff] %vm1455_vm11, %v5419_v59  ;;  %v5438_v10 = vld [vmem:[%s12504_s7] sm:$0xff] }
 0x83c   : > { %5499 = vst.msk [vmem:[#allocation4 + $0x18] sm:$0xff] %vm1455_vm11, %v5479_v29 }
 0x83f   : > { %5829 = vrot.lane.b32.xlu1 %v11778_v44, %s9064_s29  ;;  %5763 = vrot.lane.b32.xlu0 %v11768_v63, %s12693_s26  ;;  %s9097_s26 = smov 119  }
 0x840   : > { %5827 = vrot.lane.b32.xlu2 %v11768_v63, %s9064_s29 }
 0x841   : > { %v5383_v9 = vpop.permute.xlu0 %5382  ;;  %v5483_v37 = vpop.permute.xlu1 %5482  ;;  %v11959_v1 = vld [vmem:[#allocation4 + $0xa8] sm:$0xff] }
 0x842   : > { %5402 = vst.msk [vmem:[#allocation4 + $0x60] sm:$0xff] %vm1455_vm11, %v5383_v9  ;;  %v5485_v5 = vpop.permute.xlu2 %5484  ;;  %v5470_v44 = vld [vmem:[#allocation4 + $0xb0] sm:$0xff] }
 0x843   : > { %5502 = vst.msk [vmem:[#allocation4 + $0x30] sm:$0xff] %vm1455_vm11, %v5485_v5  ;;  %v5582_v29 = vld [vmem:[#allocation4 + $0x18] sm:$0xff] }
 0x844   : > { %5501 = vst.msk [vmem:[#allocation4 + $0x28] sm:$0xff] %vm1455_vm11, %v5483_v37 }
 0x847   : > { %5983 = vperm.xlu1 %8565, %v5976_v25   ;;  %5831 = vrot.lane.b32.xlu0 %v11788_v45, %s9064_s29  ;;  %v5440_v25 = vld [vmem:[%s12504_s7 + $0x10] sm:$0xff] }
 0x848   : > { %5988 = vperm.xlu2 %8566, %v5977_v6  }
 0x849   : > { %v5415_v36 = vpop.permute.xlu0 %5414  ;;  %v5547_v38 = vpop.permute.xlu1 %5546  ;;  %v5460_v24 = vld [vmem:[#allocation4 + $0x60] sm:$0xff] }
 0x84a   : > { %5434 = vst.msk [vmem:[#allocation4 + $0xa0] sm:$0xff] %vm1455_vm11, %v5415_v36  ;;  %v5519_v33 = vpop.permute.xlu2 %5518 }
 0x84b   : > { %5532 = vst.msk [vmem:[#allocation4 + $0x60] sm:$0xff] %vm1455_vm11, %v5513_v53  ;;  %v5584_v13 = vld [vmem:[#allocation4 + $0x28] sm:$0xff] }
 0x84c   : > { %5565 = vst.msk [vmem:[#allocation4 + $0xa8] sm:$0xff] %vm1455_vm11, %v5547_v38 }
 0x84f   : > { %5998 = vperm.xlu1 %8565, %v5979_v50   ;;  %5825 = vrot.lane.b32.xlu0 %v11760_v27, %s9064_s29  ;;  %s9096_s29 = smov 115  }
 0x850   : > { %6003 = vperm.xlu2 %8566, %v5980_v42   ;;  %v5581_v42 = vld [vmem:[#allocation4 + $0x10] sm:$0xff] }
 0x851   : > { %v5481_v16 = vpop.permute.xlu0 %5480  ;;  %v5387_v49 = vpop.permute.xlu1 %5386  ;;  %v11967_v58 = vld [vmem:[#allocation4 + $0xa0] sm:$0xff] }
 0x852   : > { %5404 = vst.msk [vmem:[#allocation4 + $0x70] sm:$0xff] %vm1455_vm11, %v5387_v49  ;;  %v5473_v40 = vpop.permute.xlu2 %5472  ;;  %v5591_v15 = vld [vmem:[#allocation4 + $0x60] sm:$0xff]  ;;  %v5580_v49 = vld [vmem:[#allocation4 + $0x8] sm:$0xff] }
 0x853   : > { %5500 = vst.msk [vmem:[#allocation4 + $0x20] sm:$0xff] %vm1455_vm11, %v5481_v16  ;;  %v5600_v5 = vld [vmem:[#allocation4 + $0xa8] sm:$0xff] }
 0x854   : > { %5496 = vst.msk [vmem:[#allocation4] sm:$0xff] %vm1455_vm11, %v5473_v40  ;;  %v5441_v40 = vld [vmem:[%s12504_s7 + $0x18] sm:$0xff] }
 0x855   : > { %5564 = vst.msk [vmem:[#allocation4 + $0xa0] sm:$0xff] %vm1455_vm11, %v5545_v62  ;;  %v5589_v62 = vld [vmem:[#allocation4 + $0x50] sm:$0xff] }
 0x857   : > { %5993 = vperm.xlu0 %8564, %v5978_v28  }
 0x859   : > { %v5515_v30 = vpop.permute.xlu0 %5514  ;;  %v5517_v34 = vpop.permute.xlu1 %5516  ;;  %v5462_v26 = vld [vmem:[#allocation4 + $0x70] sm:$0xff] }
 0x85a   : > { %v5539_v47 = vpop.permute.xlu2 %5538  ;;  %5534 = vst.msk [vmem:[#allocation4 + $0x70] sm:$0xff] %vm1455_vm11, %v5517_v34  ;;  %v5583_v6 = vld [vmem:[#allocation4 + $0x20] sm:$0xff] }
 0x85b   : > { %5533 = vst.msk [vmem:[#allocation4 + $0x68] sm:$0xff] %vm1455_vm11, %v5515_v30  ;;  %v5579_v50 = vld [vmem:[#allocation4] sm:$0xff] }
 0x85c   : > { %5561 = vst.msk [vmem:[#allocation4 + $0x88] sm:$0xff] %vm1455_vm11, %v5539_v47  ;;  %v5599_v36 = vld [vmem:[#allocation4 + $0xa0] sm:$0xff]  ;;  %v5442_v47 = vld [vmem:[%s12504_s7 + $0x20] sm:$0xff] }
 0x861   : > { %v5549_v54 = vpop.permute.xlu1 %5548  ;;  %v5389_v39 = vpop.permute.xlu0 %5388  ;;  %v5593_v27 = vld [vmem:[#allocation4 + $0x70] sm:$0xff] }
 0x862   : > { %v5806_v63 = vpop.permute.xlu2 %5805  ;;  %5405 = vst.msk [vmem:[#allocation4 + $0x78] sm:$0xff] %vm1455_vm11, %v5389_v39  ;;  %v5592_v17 = vld [vmem:[#allocation4 + $0x68] sm:$0xff]  ;;  %v5443_v39 = vld [vmem:[%s12504_s7 + $0x28] sm:$0xff] }
 0x863   : > { %5823 = vst.msk [vmem:[#allocation4 + $0x70] sm:$0xff] %vm1455_vm11, %v5806_v63  ;;  %v7468_v63 = vld [vmem:[%s12504_s7 + $0x60] sm:$0xff] }
 0x864   : > { %5566 = vst.msk [vmem:[#allocation4 + $0xb0] sm:$0xff] %vm1455_vm11, %v5549_v54 }
 0x869   : > { %v5541_v45 = vpop.permute.xlu1 %5540  ;;  %v5543_v51 = vpop.permute.xlu0 %5542  ;;  %v5463_v22 = vld [vmem:[#allocation4 + $0x78] sm:$0xff] }
 0x86a   : > { %v5800_v48 = vpop.permute.xlu2 %5799  ;;  %5535 = vst.msk [vmem:[#allocation4 + $0x78] sm:$0xff] %vm1455_vm11, %v5519_v33  ;;  %5697 = vmatpush.msra.mxu1 %v5463_v22 }
 0x86b   : > { %5820 = vst.msk [vmem:[#allocation4 + $0x58] sm:$0xff] %vm1455_vm11, %v5800_v48  ;;  %v5444_v48 = vld [vmem:[%s12504_s7 + $0x30] sm:$0xff] }
 0x86c   : > { %5698 = vmatpush.msra.mxu1 %v5462_v26  ;;  %5563 = vst.msk [vmem:[#allocation4 + $0x98] sm:$0xff] %vm1455_vm11, %v5543_v51 }
 0x86d   : > { %5562 = vst.msk [vmem:[#allocation4 + $0x90] sm:$0xff] %vm1455_vm11, %v5541_v45 }
 0x86e   : > { %5699 = vmatpush.msra.mxu1 %v5461_v7 }
 0x870   : > { %5700 = vmatpush.msra.mxu1 %v5460_v24 }
 0x871   : > { %v5802_v2 = vpop.permute.xlu1 %5801  ;;  %v5537_v3 = vpop.permute.xlu0 %5536  ;;  %v5594_v11 = vld [vmem:[#allocation4 + $0x78] sm:$0xff] }
 0x872   : > { %v5794_v61 = vpop.permute.xlu2 %5793  ;;  %5618 = vmatpush.msrb.mxu3 %v5594_v11  ;;  %5701 = vmatpush.msra.mxu1 %v11927_v35  ;;  %5821 = vst.msk [vmem:[#allocation4 + $0x60] sm:$0xff] %vm1455_vm11, %v5802_v2  ;;  %v5879_v22 = vld [vmem:[#allocation4 + $0x58] sm:$0xff]  ;;  %v7471_v11 = vld [vmem:[%s12504_s7 + $0x78] sm:$0xff] }
 0x873   : > { %5817 = vst.msk [vmem:[#allocation4 + $0x40] sm:$0xff] %vm1455_vm11, %v5794_v61 }
 0x874   : > { %5619 = vmatpush.msrb.mxu3 %v5593_v27  ;;  %5702 = vmatpush.msra.mxu1 %v11914_v4  ;;  %5560 = vst.msk [vmem:[#allocation4 + $0x80] sm:$0xff] %vm1455_vm11, %v5537_v3  ;;  %v5588_v4 = vld [vmem:[#allocation4 + $0x48] sm:$0xff]  ;;  %v5597_v16 = vld [vmem:[#allocation4 + $0x90] sm:$0xff]  ;;  %v7470_v3 = vld [vmem:[%s12504_s7 + $0x70] sm:$0xff] }
 0x876   : > { %5620 = vmatpush.msrb.mxu3 %v5592_v17  ;;  %5703 = vmatpush.msra.mxu1 %v11876_v46 }
 0x878   : > { %5621 = vmatpush.msrb.mxu3 %v5591_v15  ;;  %5704 = vmatpush.msra.mxu1 %v11893_v19 }
 0x879   : > { %v5551_v55 = vpop.permute.xlu1 %5550  ;;  %v5421_v0 = vpop.permute.xlu0 %5420  ;;  %v5880_v27 = vld [vmem:[#allocation4 + $0x60] sm:$0xff] }
 0x87a   : > { %v5772_v53 = vpop.permute.xlu2 %5771  ;;  %5437 = vst.msk [vmem:[#allocation4 + $0xb8] sm:$0xff] %vm1455_vm11, %v5421_v0  ;;  %5622 = vmatpush.msrb.mxu3 %v5590_v14  ;;  %5705 = vmatpush.msra.mxu1 %v5455_v18  ;;  %v5876_v2 = vld [vmem:[#allocation4 + $0x40] sm:$0xff]  ;;  %v5447_v0 = vld [vmem:[%s12504_s7 + $0x48] sm:$0xff] }
 0x87b   : > { %5790 = vst.msk [vmem:[#allocation4 + $0x28] sm:$0xff] %vm1455_vm11, %v5772_v53  ;;  %v5595_v28 = vld [vmem:[#allocation4 + $0x80] sm:$0xff]  ;;  %v7473_v18 = vld [vmem:[%s12504_s7 + $0x88] sm:$0xff] }
 0x87c   : > { %5623 = vmatpush.msrb.mxu3 %v5589_v62  ;;  %5706 = vmatpush.msra.mxu1 %v11949_v57  ;;  %v5601_v57 = vld [vmem:[#allocation4 + $0xb0] sm:$0xff] }
 0x87e   : > { %5624 = vmatpush.msrb.mxu3 %v5588_v4  ;;  %5707 = vmatpush.msra.mxu1 %v11952_v60  ;;  %v5439_v60 = vld [vmem:[%s12504_s7 + $0x8] sm:$0xff]  ;;  %v7472_v4 = vld [vmem:[%s12504_s7 + $0x80] sm:$0xff] }
 0x880   : > { %5625 = vmatpush.msrb.mxu3 %v5587_v8  ;;  %5708 = vmatpush.msra.mxu1 %v11965_v52  ;;  %v5596_v52 = vld [vmem:[#allocation4 + $0x88] sm:$0xff] }
 0x881   : > { %v5796_v46 = vpop.permute.xlu1 %5795  ;;  %v5487_v19 = vpop.permute.xlu0 %5486  ;;  %v5471_v35 = vld [vmem:[#allocation4 + $0xb8] sm:$0xff] }
 0x882   : > { %5818 = vst.msk [vmem:[#allocation4 + $0x48] sm:$0xff] %vm1455_vm11, %v5796_v46  ;;  %v5768_v43 = vpop.permute.xlu2 %5767  ;;  %5709 = vmatpush.msra.mxu1 %v11939_v31  ;;  %5737 = vmatpush.msra.mxu2 %v5471_v35  ;;  %v5873_v35 = vld [vmem:[#allocation4 + $0x28] sm:$0xff] }
 0x883   : > { %5503 = vst.msk [vmem:[#allocation4 + $0x38] sm:$0xff] %vm1455_vm11, %v5487_v19 }
 0x884   : > { %5567 = vst.msk [vmem:[#allocation4 + $0xb8] sm:$0xff] %vm1455_vm11, %v5551_v55  ;;  %5710 = vmatpush.msra.mxu1 %v11918_v12  ;;  %5738 = vmatpush.msra.mxu2 %v5470_v44  ;;  %v7469_v44 = vld [vmem:[%s12504_s7 + $0x68] sm:$0xff] }
 0x885   : > { %5788 = vst.msk [vmem:[#allocation4 + $0x18] sm:$0xff] %vm1455_vm11, %v5768_v43 }
 0x886   : > { %5711 = vmatpush.msra.mxu1 %v11897_v23  ;;  %5739 = vmatpush.msra.mxu2 %v11959_v1  ;;  %v5585_v23 = vld [vmem:[#allocation4 + $0x30] sm:$0xff]  ;;  %v5598_v1 = vld [vmem:[#allocation4 + $0x98] sm:$0xff] }
 0x888   : > { %5712 = vmatpush.msra.mxu1 %v11970_v21  ;;  %5740 = vmatpush.msra.mxu2 %v11967_v58  ;;  %v7466_v58 = vld [vmem:[%s12504_s7 + $0x50] sm:$0xff]  ;;  %v7467_v21 = vld [vmem:[%s12504_s7 + $0x58] sm:$0xff] }
 0x889   : > { %v5774_v59 = vpop.permute.xlu1 %5773  ;;  %v5804_v31 = vpop.permute.xlu0 %5803  ;;  %5713 = vmatmul.f32.vlgmr.msra.gmra.mxu1 %v5438_v10 }
 0x88a   : > { %v5836_v12 = vpop.permute.xlu2 %5835  ;;  %5822 = vst.msk [vmem:[#allocation4 + $0x68] sm:$0xff] %vm1455_vm11, %v5804_v31  ;;  %v5586_v9 = vld [vmem:[#allocation4 + $0x38] sm:$0xff]  ;;  %5741 = vmatpush.msra.mxu2 %v11984_v32  ;;  %v5877_v32 = vld [vmem:[#allocation4 + $0x48] sm:$0xff] }
 0x88b   : > { %5626 = vmatpush.msrb.mxu3 %v5586_v9  ;;  %v5602_v37 = vld [vmem:[#allocation4 + $0xb8] sm:$0xff]  ;;  %5791 = vst.msk [vmem:[#allocation4 + $0x30] sm:$0xff] %vm1455_vm11, %v5774_v59 }
 0x88c   : > { %5658 = vmatpush.msra.mxu0 %v5602_v37  ;;  %5742 = vmatpush.msra.mxu2 %v11987_v56  ;;  %5854 = vst.msk [vmem:[#allocation4 + $0xa8] sm:$0xff] %vm1455_vm11, %v5836_v12  ;;  %v5445_v56 = vld [vmem:[%s12504_s7 + $0x38] sm:$0xff]  ;;  %v7474_v59 = vld [vmem:[%s12504_s7 + $0x90] sm:$0xff] }
 0x88d   : > { %5627 = vmatpush.msrb.mxu3 %v5585_v23  ;;  %v5871_v31 = vld [vmem:[#allocation4 + $0x18] sm:$0xff] }
 0x88e   : > { %5659 = vmatpush.msra.mxu0 %v5601_v57  ;;  %5743 = vmatpush.msra.mxu2 %v11976_v20  ;;  %v5882_v20 = vld [vmem:[#allocation4 + $0x70] sm:$0xff]  ;;  %v7486_v57 = vld [vmem:[%s12504_s7 + $0xa0] sm:$0xff] }
 0x88f   : > { %5628 = vmatpush.msrb.mxu3 %v5584_v13 }
 0x890   : > { %5660 = vmatpush.msra.mxu0 %v5600_v5  ;;  %5744 = vmatpush.msra.mxu2 %v11993_v41  ;;  %v5446_v41 = vld [vmem:[%s12504_s7 + $0x40] sm:$0xff] }
 0x891   : > { %5629 = vmatpush.msrb.mxu3 %v5583_v6  ;;  %v5808_v38 = vpop.permute.xlu1 %5807  ;;  %v5798_v24 = vpop.permute.xlu0 %5797  ;;  %7481 = vmatmul.msk.f32.vlgmr.msra.gmra.mxu2 %vm3344_vm3, %v5439_v60  ;;  %v5881_v54 = vld [vmem:[#allocation4 + $0x68] sm:$0xff]  ;;  %v7487_v6 = vld [vmem:[%s12504_s7 + $0xa8] sm:$0xff] }
 0x892   : > { %5661 = vmatpush.msra.mxu0 %v5599_v36  ;;  %5824 = vst.msk [vmem:[#allocation4 + $0x78] sm:$0xff] %vm1455_vm11, %v5808_v38  ;;  %v5762_v33 = vpop.permute.xlu2 %5761  ;;  %5716 = vmatmul.f32.gmra.mxu1 %v5440_v25  ;;  %v5874_v19 = vld [vmem:[#allocation4 + $0x30] sm:$0xff]  ;;  %v7488_v38 = vld [vmem:[%s12504_s7 + $0xb0] sm:$0xff] }
 0x893   : > { %5819 = vst.msk [vmem:[#allocation4 + $0x50] sm:$0xff] %vm1455_vm11, %v5798_v24  ;;  %5630 = vmatpush.msrb.mxu3 %v5582_v29  ;;  %v5889_v55 = vld [vmem:[#allocation4 + $0xa8] sm:$0xff]  ;;  %v7475_v29 = vld [vmem:[%s12504_s7 + $0x98] sm:$0xff] }
 0x894   : > { %5662 = vmatpush.msra.mxu0 %v5598_v1  ;;  %5785 = vst.msk [vmem:[#allocation4] sm:$0xff] %vm1455_vm11, %v5762_v33  ;;  %v7489_v24 = vld [vmem:[%s12504_s7 + $0xb8] sm:$0xff]  ;;  %v7490_v33 = vld [vmem:[%s12504_s7 + $0xc0] sm:$0xff]  ;;  %v7491_v1 = vld [vmem:[%s12504_s7 + $0xc8] sm:$0xff] }
 0x895   : > { %5631 = vmatpush.msrb.mxu3 %v5581_v42  ;;  %v7493_v42 = vld [vmem:[%s12504_s7 + $0xd8] sm:$0xff] }
 0x896   : > { %5663 = vmatpush.msra.mxu0 %v5597_v16  ;;  %v7494_v16 = vld [vmem:[%s12504_s7 + $0xe0] sm:$0xff] }
 0x897   : > { %5632 = vmatpush.msrb.mxu3 %v5580_v49  ;;  %v7495_v49 = vld [vmem:[%s12504_s7 + $0xe8] sm:$0xff] }
 0x898   : > { %5664 = vmatpush.msra.mxu0 %v5596_v52  ;;  %v6025_v52 = vld [vmem:[%s12514_s17 + $0x48] sm:$0xff] }
 0x899   : > { %5633 = vmatpush.msrb.mxu3 %v5579_v50  ;;  %v5766_v30 = vpop.permute.xlu1 %5765  ;;  %v5770_v34 = vpop.permute.xlu0 %5769  ;;  %v5883_v26 = vld [vmem:[#allocation4 + $0x78] sm:$0xff]  ;;  %7482 = vmatmul.msk.f32.gmra.mxu2 %vm3344_vm3, %v5441_v40 }
 0x89a   : > { %5665 = vmatpush.msra.mxu0 %v5595_v28  ;;  %5787 = vst.msk [vmem:[#allocation4 + $0x10] sm:$0xff] %vm1455_vm11, %v5766_v30  ;;  %v5828_v7 = vpop.permute.xlu2 %5827  ;;  %5634 = vmatmul.f32.vlgmr.msrb.gmra.mxu3 %v7466_v58  ;;  %v5878_v14 = vld [vmem:[#allocation4 + $0x50] sm:$0xff]  ;;  %v7492_v50 = vld [vmem:[%s12504_s7 + $0xd0] sm:$0xff]  ;;  %v7515_v58 = vld [vmem:[%s12514_s17 + $0x98] sm:$0xff] }
 0x89b   : > { %5907 = vmatpush.msra.mxu3 %v5883_v26  ;;  %5850 = vst.msk [vmem:[#allocation4 + $0x88] sm:$0xff] %vm1455_vm11, %v5828_v7  ;;  %7476 = vmatmul.msk.f32.vlgmr.msra.gmra.mxu0 %vm3344_vm3, %v7467_v21  ;;  %v5868_v23 = vld [vmem:[#allocation4] sm:$0xff]  ;;  %v7530_v21 = vld [vmem:[%s12514_s17 + $0xe8] sm:$0xff]  ;;  %v6024_v26 = vld [vmem:[%s12514_s17 + $0x40] sm:$0xff] }
 0x89c   : > { %5789 = vst.msk [vmem:[#allocation4 + $0x20] sm:$0xff] %vm1455_vm11, %v5770_v34  ;;  %5719 = vmatmul.f32.gmra.mxu1 %v5442_v47  ;;  %6090 = vmatpush.msrb.mxu2 %v7515_v58  ;;  %v7545_v28 = vld [vmem:[%s12514_s17 + $0x138] sm:$0xff]  ;;  %v7514_v47 = vld [vmem:[%s12514_s17 + $0x90] sm:$0xff]  ;;  %v7529_v7 = vld [vmem:[%s12514_s17 + $0xe0] sm:$0xff] }
 0x89d   : > { %5908 = vmatpush.msra.mxu3 %v5882_v20  ;;  %6047 = vmatpush.msrb.mxu1 %v6025_v52  ;;  %v7544_v20 = vld [vmem:[%s12514_s17 + $0x130] sm:$0xff] }
 0x89e   : > { %6091 = vmatpush.msrb.mxu2 %v7514_v47 }
 0x89f   : > { %5909 = vmatpush.msra.mxu3 %v5881_v54  ;;  %6048 = vmatpush.msrb.mxu1 %v6024_v26  ;;  %v6023_v54 = vld [vmem:[%s12514_s17 + $0x38] sm:$0xff] }
 0x8a1   : > { %5910 = vmatpush.msra.mxu3 %v5880_v27  ;;  %v5840_v45 = vpop.permute.xlu1 %5839  ;;  %v5838_v51 = vpop.permute.xlu0 %5837  ;;  %7483 = vmatmul.msk.f32.gmra.mxu2 %vm3344_vm3, %v5443_v39  ;;  %v5870_v12 = vld [vmem:[#allocation4 + $0x10] sm:$0xff]  ;;  %v7528_v27 = vld [vmem:[%s12514_s17 + $0xd8] sm:$0xff] }
 0x8a2   : > { %5856 = vst.msk [vmem:[#allocation4 + $0xb8] sm:$0xff] %vm1455_vm11, %v5840_v45  ;;  %5637 = vmatmul.f32.gmra.mxu3 %v7468_v63  ;;  %v5885_v25 = vld [vmem:[#allocation4 + $0x88] sm:$0xff]  ;;  %v7513_v39 = vld [vmem:[%s12514_s17 + $0x88] sm:$0xff]  ;;  %6049 = vmatpush.msrb.mxu1 %v6023_v54 }
 0x8a3   : > { %5911 = vmatpush.msra.mxu3 %v5879_v22  ;;  %5855 = vst.msk [vmem:[#allocation4 + $0xb0] sm:$0xff] %vm1455_vm11, %v5838_v51  ;;  %7477 = vmatmul.msk.f32.gmra.mxu0 %vm3344_vm3, %v7469_v44  ;;  %v5872_v43 = vld [vmem:[#allocation4 + $0x20] sm:$0xff]  ;;  %v7543_v63 = vld [vmem:[%s12514_s17 + $0x128] sm:$0xff]  ;;  %v6022_v44 = vld [vmem:[%s12514_s17 + $0x30] sm:$0xff] }
 0x8a4   : > { %5722 = vmatmul.f32.gmra.mxu1 %v5444_v48  ;;  %6092 = vmatpush.msrb.mxu2 %v7513_v39  ;;  %v7512_v45 = vld [vmem:[%s12514_s17 + $0x80] sm:$0xff]  ;;  %v7527_v51 = vld [vmem:[%s12514_s17 + $0xd0] sm:$0xff]  ;;  %v6021_v48 = vld [vmem:[%s12514_s17 + $0x28] sm:$0xff] }
 0x8a5   : > { %5912 = vmatpush.msra.mxu3 %v5878_v14  ;;  %v7542_v22 = vld [vmem:[%s12514_s17 + $0x120] sm:$0xff]  ;;  %v7511_v14 = vld [vmem:[%s12514_s17 + $0x78] sm:$0xff]  ;;  %6050 = vmatpush.msrb.mxu1 %v6022_v44 }
 0x8a6   : > { %6093 = vmatpush.msrb.mxu2 %v7512_v45 }
 0x8a7   : > { %5913 = vmatpush.msra.mxu3 %v5877_v32  ;;  %v7526_v32 = vld [vmem:[%s12514_s17 + $0xc8] sm:$0xff]  ;;  %6051 = vmatpush.msrb.mxu1 %v6021_v48 }
 0x8a8   : > { %6094 = vmatpush.msrb.mxu2 %v7511_v14 }
 0x8a9   : > { %5914 = vmatpush.msra.mxu3 %v5876_v2  ;;  %v5834_v15 = vpop.permute.xlu1 %5833  ;;  %v5776_v61 = vpop.permute.xlu0 %5775  ;;  %v5891_v8 = vld [vmem:[#allocation4 + $0xb8] sm:$0xff]  ;;  %7484 = vmatmul.msk.f32.gmra.mxu2 %vm3344_vm3, %v5445_v56  ;;  %v7541_v56 = vld [vmem:[%s12514_s17 + $0x118] sm:$0xff] }
 0x8aa   : > { %5853 = vst.msk [vmem:[#allocation4 + $0xa0] sm:$0xff] %vm1455_vm11, %v5834_v15  ;;  %5947 = vmatpush.msrb.mxu0 %v5891_v8  ;;  %v5890_v17 = vld [vmem:[#allocation4 + $0xb0] sm:$0xff]  ;;  %5640 = vmatmul.f32.gmra.mxu3 %v7470_v3  ;;  %v7510_v15 = vld [vmem:[%s12514_s17 + $0x70] sm:$0xff] }
 0x8ab   : > { %5792 = vst.msk [vmem:[#allocation4 + $0x38] sm:$0xff] %vm1455_vm11, %v5776_v61  ;;  %7478 = vmatmul.msk.f32.gmra.mxu0 %vm3344_vm3, %v7471_v11  ;;  %v6020_v11 = vld [vmem:[%s12514_s17 + $0x20] sm:$0xff]  ;;  %6095 = vmatpush.msrb.mxu2 %v7510_v15  ;;  %v7540_v8 = vld [vmem:[%s12514_s17 + $0x110] sm:$0xff] }
 0x8ac   : > { %5948 = vmatpush.msrb.mxu0 %v5890_v17  ;;  %5725 = vmatmul.f32.gmra.mxu1 %v5446_v41  ;;  %v7525_v61 = vld [vmem:[%s12514_s17 + $0xc0] sm:$0xff]  ;;  %v6019_v41 = vld [vmem:[%s12514_s17 + $0x18] sm:$0xff]  ;;  %v7509_v17 = vld [vmem:[%s12514_s17 + $0x68] sm:$0xff] }
 0x8ad   : > { %6052 = vmatpush.msrb.mxu1 %v6020_v11  ;;  %6096 = vmatpush.msrb.mxu2 %v7509_v17 }
 0x8ae   : > { %5949 = vmatpush.msrb.mxu0 %v5889_v55  ;;  %v7524_v55 = vld [vmem:[%s12514_s17 + $0xb8] sm:$0xff] }
 0x8af   : > { %6053 = vmatpush.msrb.mxu1 %v6019_v41 }
 0x8b1   : > { %v5830_v53 = vpop.permute.xlu1 %5829  ;;  %v5764_v13 = vpop.permute.xlu0 %5763  ;;  %v5888_v62 = vld [vmem:[#allocation4 + $0xa0] sm:$0xff]  ;;  %7485 = vmatmul.msk.f32.gmra.mxu2 %vm3344_vm3, %v5447_v0  ;;  %v7539_v0 = vld [vmem:[%s12514_s17 + $0x108] sm:$0xff] }
 0x8b2   : > { %5851 = vst.msk [vmem:[#allocation4 + $0x90] sm:$0xff] %vm1455_vm11, %v5830_v53  ;;  %v5875_v46 = vld [vmem:[#allocation4 + $0x38] sm:$0xff]  ;;  %5950 = vmatpush.msrb.mxu0 %v5888_v62  ;;  %5643 = vmatmul.f32.gmra.mxu3 %v7472_v4  ;;  %v7538_v4 = vld [vmem:[%s12514_s17 + $0x100] sm:$0xff] }
 0x8b3   : > { %5786 = vst.msk [vmem:[#allocation4 + $0x8] sm:$0xff] %vm1455_vm11, %v5764_v13  ;;  %5915 = vmatpush.msra.mxu3 %v5875_v46  ;;  %7479 = vmatmul.msk.f32.gmra.mxu0 %vm3344_vm3, %v7473_v18  ;;  %v6018_v53 = vld [vmem:[%s12514_s17 + $0x10] sm:$0xff]  ;;  %v7508_v13 = vld [vmem:[%s12514_s17 + $0x60] sm:$0xff]  ;;  %v6017_v46 = vld [vmem:[%s12514_s17 + $0x8] sm:$0xff] }
 0x8b4   : > { %v7523_v62 = vld [vmem:[%s12514_s17 + $0xb0] sm:$0xff]  ;;  %6054 = vmatpush.msrb.mxu1 %v6018_v53  ;;  %6097 = vmatpush.msrb.mxu2 %v7508_v13 }
 0x8b5   : > { %5916 = vmatpush.msra.mxu3 %v5874_v19  ;;  %v7507_v19 = vld [vmem:[%s12514_s17 + $0x58] sm:$0xff] }
 0x8b6   : > { %6055 = vmatpush.msrb.mxu1 %v6017_v46  ;;  %6098 = vmatpush.msrb.mxu2 %v7507_v19 }
 0x8b7   : > { %5917 = vmatpush.msra.mxu3 %v5873_v35  ;;  %v7522_v35 = vld [vmem:[%s12514_s17 + $0xa8] sm:$0xff] }
 0x8b9   : > { %5918 = vmatpush.msra.mxu3 %v5872_v43  ;;  %v5832_v10 = vpop.permute.xlu0 %5831  ;;  %v5886_v60 = vld [vmem:[#allocation4 + $0x90] sm:$0xff]  ;;  %v7537_v43 = vld [vmem:[%s12514_s17 + $0xf8] sm:$0xff] }
 0x8ba   : > { %5852 = vst.msk [vmem:[#allocation4 + $0x98] sm:$0xff] %vm1455_vm11, %v5832_v10  ;;  %5646 = vmatmul.f32.gmra.mxu3 %v7474_v59  ;;  %v5869_v9 = vld [vmem:[#allocation4 + $0x8] sm:$0xff]  ;;  %v7506_v10 = vld [vmem:[%s12514_s17 + $0x50] sm:$0xff] }
 0x8bb   : > { %5919 = vmatpush.msra.mxu3 %v5871_v31  ;;  %7480 = vmatmul.msk.f32.gmra.mxu0 %vm3344_vm3, %v7475_v29  ;;  %v6016_v29 = vld [vmem:[%s12514_s17] sm:$0xff]  ;;  %v7536_v31 = vld [vmem:[%s12514_s17 + $0xf0] sm:$0xff] }
 0x8bc   : > { %v7521_v59 = vld [vmem:[%s12514_s17 + $0xa0] sm:$0xff]  ;;  %6056 = vmatpush.msrb.mxu1 %v6016_v29  ;;  %6099 = vmatpush.msrb.mxu2 %v7506_v10 }
 0x8bd   : > { %5920 = vmatpush.msra.mxu3 %v5870_v12 }
 0x8bf   : > { %5921 = vmatpush.msra.mxu3 %v5869_v9 }
 0x8c1   : > { %5922 = vmatpush.msra.mxu3 %v5868_v23  ;;  %v5826_v37 = vpop.permute.xlu0 %5825  ;;  %v5887_v5 = vld [vmem:[#allocation4 + $0x98] sm:$0xff] }
 0x8c2   : > { %5849 = vst.msk [vmem:[#allocation4 + $0x80] sm:$0xff] %vm1455_vm11, %v5826_v37  ;;  %5951 = vmatpush.msrb.mxu0 %v5887_v5  ;;  %5923 = vmatmul.f32.vlgmr.msra.gmra.mxu3 %v7486_v57 }
 0x8c3   : > { %6138 = vmatpush.msrb.mxu3 %v7530_v21 }
 0x8c4   : > { %5952 = vmatpush.msrb.mxu0 %v5886_v60 }
 0x8c5   : > { %6139 = vmatpush.msrb.mxu3 %v7529_v7 }
 0x8c6   : > { %5953 = vmatpush.msrb.mxu0 %v5885_v25 }
 0x8c7   : > { %6140 = vmatpush.msrb.mxu3 %v7528_v27 }
 0x8c9   : > { %v5884_v36 = vld [vmem:[#allocation4 + $0x80] sm:$0xff]  ;;  %6141 = vmatpush.msrb.mxu3 %v7527_v51 }
 0x8ca   : > { %5954 = vmatpush.msrb.mxu0 %v5884_v36  ;;  %5926 = vmatmul.f32.gmra.mxu3 %v7488_v38 }
 0x8cb   : > { %7496 = vmatmul.msk.f32.vlgmr.msrb.gmra.mxu0 %vm3344_vm3, %v7487_v6  ;;  %6142 = vmatpush.msrb.mxu3 %v7526_v32  ;;  %v5994_v32 = vpop.permute.xlu0 %5993 }
 0x8cc   : > { %6186 = vmatpush.msra.mxu0 %v7545_v28 }
 0x8cd   : > { %6143 = vmatpush.msrb.mxu3 %v7525_v61 }
 0x8ce   : > { %6187 = vmatpush.msra.mxu0 %v7544_v20  ;;  %v5989_v20 = vpop.permute.xlu2 %5988 }
 0x8cf   : > { %6144 = vmatpush.msrb.mxu3 %v7524_v55 }
 0x8d0   : > { %6188 = vmatpush.msra.mxu0 %v7543_v63 }
 0x8d1   : > { %6145 = vmatpush.msrb.mxu3 %v7523_v62 }
 0x8d2   : > { %5929 = vmatmul.f32.gmra.mxu3 %v7490_v33  ;;  %6189 = vmatpush.msra.mxu0 %v7542_v22 }
 0x8d3   : > { %7497 = vmatmul.msk.f32.gmra.mxu0 %vm3344_vm3, %v7489_v24  ;;  %6146 = vmatpush.msrb.mxu3 %v7522_v35 }
 0x8d4   : > { %6190 = vmatpush.msra.mxu0 %v7541_v56 }
 0x8d5   : > { %6147 = vmatpush.msrb.mxu3 %v7521_v59 }
 0x8d6   : > { %6191 = vmatpush.msra.mxu0 %v7540_v8  ;;  %v6004_v10 = vpop.permute.xlu2 %6003 }
 0x8d8   : > { %6192 = vmatpush.msra.mxu0 %v7539_v0 }
 0x8da   : > { %5932 = vmatmul.f32.gmra.mxu3 %v7492_v50  ;;  %6193 = vmatpush.msra.mxu0 %v7538_v4 }
 0x8db   : > { %7498 = vmatmul.msk.f32.gmra.mxu0 %vm3344_vm3, %v7491_v1 }
 0x8dc   : > { %6194 = vmatpush.msra.mxu0 %v7537_v43 }
 0x8de   : > { %6195 = vmatpush.msra.mxu0 %v7536_v31 }
 0x8e2   : > { %5935 = vmatmul.f32.gmra.mxu3 %v7494_v16  ;;  %v5984_v16 = vpop.permute.xlu1 %5983 }
 0x8e3   : > { %7499 = vmatmul.msk.f32.gmra.mxu0 %vm3344_vm3, %v7493_v42 }
 0x8eb   : > { %7500 = vmatmul.msk.f32.gmra.mxu0 %vm3344_vm3, %v7495_v49 }
 0x906   : > { %v5714_v23 = vpop.f32.mrf.mxu1 }
 0x90f   : > { %v5717_v25 = vpop.f32.mrf.mxu1 }
 0x914   : > { %v5746_v37 = vpop.f32.mrf.mxu2 }
 0x918   : > { %v12140_v40 = vpop.f32.mrf.mxu0 }
 0x919   : > { %v5720_v58 = vpop.f32.mrf.mxu1 }
 0x91c   : > { %v5749_v38 = vpop.f32.mrf.mxu2 }
 0x91d   : > { %v12154_v30 = vpop.f32.mrf.mxu3 }
 0x91e   : > { %v5668_v60 = vadd.f32 %v12140_v40, %v12154_v30 }
 0x920   : > { %v12156_v34 = vpop.f32.mrf.mxu0  ;;  %v5715_v6 = vadd.f32 %v5714_v23, %v5668_v60 }
 0x921   : > { %v5723_v44 = vpop.f32.mrf.mxu1 }
 0x922   : > { %v5747_v1 = vadd.f32 %v5746_v37, %v5715_v6 }
 0x924   : > { %v5752_v7 = vpop.f32.mrf.mxu2 }
 0x925   : > { %v5638_v2 = vpop.f32.mrf.mxu3 }
 0x926   : > { %v5671_v33 = vadd.f32 %v12156_v34, %v5638_v2 }
 0x928   : > { %v12206_v3 = vpop.f32.mrf.mxu0  ;;  %v5718_v49 = vadd.f32 %v5717_v25, %v5671_v33 }
 0x929   : > { %v5726_v55 = vpop.f32.mrf.mxu1 }
 0x92a   : > { %v5750_v40 = vadd.f32 %v5749_v38, %v5718_v49 }
 0x92c   : > { %v5755_v56 = vpop.f32.mrf.mxu2 }
 0x92d   : > { %v5641_v18 = vpop.f32.mrf.mxu3 }
 0x92e   : > { %v5674_v47 = vadd.f32 %v12206_v3, %v5641_v18  ;;  %v5999_v18 = vpop.permute.xlu1 %5998 }
 0x930   : > { %v5676_v12 = vpop.f32.mrf.mxu0  ;;  %v5721_v54 = vadd.f32 %v5720_v58, %v5674_v47 }
 0x932   : > { %v5753_v22 = vadd.f32 %v5752_v7, %v5721_v54 }
 0x934   : > { %v5758_v62 = vpop.f32.mrf.mxu2 }
 0x935   : > { %v5644_v9 = vpop.f32.mrf.mxu3 }
 0x936   : > { %v5677_v51 = vadd.f32 %v5676_v12, %v5644_v9 }
 0x938   : > { %v5679_v5 = vpop.f32.mrf.mxu0  ;;  %v5724_v2 = vadd.f32 %v5723_v44, %v5677_v51 }
 0x93a   : > { %v5756_v41 = vadd.f32 %v5755_v56, %v5724_v2  ;;  %v6553_v56 = vld [vmem:[#allocation18 + $0x10] sm:$0xff] }
 0x93d   : > { %v5647_v57 = vpop.f32.mrf.mxu3 }
 0x93e   : > { %v5680_v8 = vadd.f32 %v5679_v5, %v5647_v57 }
 0x940   : > { %v5727_v53 = vadd.f32 %v5726_v55, %v5680_v8 }
 0x942   : > { %v5759_v35 = vadd.f32 %v5758_v62, %v5727_v53 }
 0x945   : > { %v5924_v36 = vpop.f32.mrf.mxu3 }
 0x948   : > { %v5956_v24 = vpop.f32.mrf.mxu0 }
 0x949   : > { %v5957_v50 = vadd.f32 %v5956_v24, %v5924_v36 }
 0x94b   : > { %v5971_v42 = vadd.f32 %v5957_v50, %v5747_v1 }
 0x94d   : > { %v6006_v52 = vadd.f32 %v5984_v16, %v5971_v42  ;;  %v5927_v28 = vpop.f32.mrf.mxu3 }
 0x94f   : > { %v6011_v21 = vmax.f32 %v6006_v52, 0.0 }
 0x950   : > { %v5959_v26 = vpop.f32.mrf.mxu0 }
 0x951   : > { %v5960_v30 = vadd.f32 %v5959_v26, %v5927_v28  ;;  %7501 = vmatmul.msk.f32.vlgmr.msrb.gmra.mxu1 %vm1455_vm11, %v6011_v21  ;;  %7516 = vmatmul.msk.f32.vlgmr.msrb.gmra.mxu2 %vm1455_vm11, %v6011_v21 }
 0x952   : > { %7531 = vmatmul.msk.f32.vlgmr.msrb.gmra.mxu3 %vm1455_vm11, %v6011_v21  ;;  %7546 = vmatmul.msk.f32.vlgmr.msra.gmra.mxu0 %vm1455_vm11, %v6011_v21 }
 0x953   : > { %v5972_v34 = vadd.f32 %v5960_v30, %v5750_v40 }
 0x955   : > { %v6007_v39 = vadd.f32 %v5989_v20, %v5972_v34  ;;  %v5930_v63 = vpop.f32.mrf.mxu3 }
 0x957   : > { %v6012_v27 = vmax.f32 %v6007_v39, 0.0 }
 0x958   : > { %v5962_v45 = vpop.f32.mrf.mxu0 }
 0x959   : > { %v5963_v48 = vadd.f32 %v5962_v45, %v5930_v63  ;;  %7502 = vmatmul.msk.f32.gmra.mxu1 %vm1455_vm11, %v6012_v27  ;;  %7517 = vmatmul.msk.f32.gmra.mxu2 %vm1455_vm11, %v6012_v27 }
 0x95a   : > { %7532 = vmatmul.msk.f32.gmra.mxu3 %vm1455_vm11, %v6012_v27  ;;  %7547 = vmatmul.msk.f32.gmra.mxu0 %vm1455_vm11, %v6012_v27 }
 0x95b   : > { %v5973_v14 = vadd.f32 %v5963_v48, %v5753_v22  ;;  %v6552_v48 = vld [vmem:[#allocation18 + $0x8] sm:$0xff] }
 0x95d   : > { %v6008_v3 = vadd.f32 %v5994_v32, %v5973_v14  ;;  %v5933_v15 = vpop.f32.mrf.mxu3  ;;  %v6551_v14 = vld [vmem:[#allocation18] sm:$0xff] }
 0x95f   : > { %v6013_v11 = vmax.f32 %v6008_v3, 0.0 }
 0x960   : > { %v5965_v61 = vpop.f32.mrf.mxu0 }
 0x961   : > { %v5966_v17 = vadd.f32 %v5965_v61, %v5933_v15  ;;  %7503 = vmatmul.msk.f32.gmra.mxu1 %vm1455_vm11, %v6013_v11  ;;  %7518 = vmatmul.msk.f32.gmra.mxu2 %vm1455_vm11, %v6013_v11 }
 0x962   : > { %7533 = vmatmul.msk.f32.gmra.mxu3 %vm1455_vm11, %v6013_v11  ;;  %7548 = vmatmul.msk.f32.gmra.mxu0 %vm1455_vm11, %v6013_v11 }
 0x963   : > { %v5974_v0 = vadd.f32 %v5966_v17, %v5756_v41 }
 0x965   : > { %v6009_v13 = vadd.f32 %v5999_v18, %v5974_v0  ;;  %v5936_v46 = vpop.f32.mrf.mxu3 }
 0x967   : > { %v6014_v4 = vmax.f32 %v6009_v13, 0.0 }
 0x968   : > { %v5968_v19 = vpop.f32.mrf.mxu0 }
 0x969   : > { %v5969_v43 = vadd.f32 %v5968_v19, %v5936_v46  ;;  %7504 = vmatmul.msk.f32.gmra.mxu1 %vm1455_vm11, %v6014_v4  ;;  %7519 = vmatmul.msk.f32.gmra.mxu2 %vm1455_vm11, %v6014_v4 }
 0x96a   : > { %7534 = vmatmul.msk.f32.gmra.mxu3 %vm1455_vm11, %v6014_v4  ;;  %7549 = vmatmul.msk.f32.gmra.mxu0 %vm1455_vm11, %v6014_v4 }
 0x96b   : > { %v5975_v29 = vadd.f32 %v5969_v43, %v5759_v35 }
 0x96d   : > { %v6010_v59 = vadd.f32 %v6004_v10, %v5975_v29 }
 0x96f   : > { %v6015_v31 = vmax.f32 %v6010_v59, 0.0 }
 0x971   : > { %7505 = vmatmul.msk.f32.gmra.mxu1 %vm1455_vm11, %v6015_v31  ;;  %7520 = vmatmul.msk.f32.gmra.mxu2 %vm1455_vm11, %v6015_v31 }
 0x972   : > { %7535 = vmatmul.msk.f32.gmra.mxu3 %vm1455_vm11, %v6015_v31  ;;  %7550 = vmatmul.msk.f32.gmra.mxu0 %vm1455_vm11, %v6015_v31 }
 0x9ce   : > { %v6058_v12 = vpop.f32.mrf.mxu1 }
 0x9cf   : > { %v6197_v9 = vpop.f32.mrf.mxu0 }
 0x9d4   : > { %v6101_v23 = vpop.f32.mrf.mxu2 }
 0x9d5   : > { %v6116_v37 = vmax.f32 %v6058_v12, %v6101_v23  ;;  %v6149_v5 = vpop.f32.mrf.mxu3 }
 0x9d6   : > { %v6061_v57 = vpop.f32.mrf.mxu1 }
 0x9d7   : > { %v6164_v60 = vmax.f32 %v6116_v37, %v6149_v5  ;;  %v6200_v6 = vpop.f32.mrf.mxu0 }
 0x9d9   : > { %v12292_v25 = vmax.f32 %v6164_v60, %v6197_v9 }
 0x9db   : > { %6217 = vst.msk [vmem:[#allocation5] sm:$0xff] %vm2240_vm6, %v12292_v25  ;;  %6474 = vrot.lane.b32.xlu2 %v12292_v25, %s9095_s4  ;;  %6227 = vrot.lane.b32.xlu0 %v12292_v25, %s9036_s15 }
 0x9dc   : > { %6247 = vrot.lane.b32.xlu1 %v12292_v25, %s9034_s3  ;;  %v6104_v36 = vpop.f32.mrf.mxu2 }
 0x9dd   : > { %v6117_v38 = vmax.f32 %v6061_v57, %v6104_v36  ;;  %v6152_v24 = vpop.f32.mrf.mxu3 }
 0x9de   : > { %v6064_v1 = vpop.f32.mrf.mxu1 }
 0x9df   : > { %v6165_v33 = vmax.f32 %v6117_v38, %v6152_v24  ;;  %v6203_v42 = vpop.f32.mrf.mxu0 }
 0x9e1   : > { %v6213_v50 = vmax.f32 %v6165_v33, %v6200_v6 }
 0x9e3   : > { %6218 = vst.msk [vmem:[#allocation5 + $0x8] sm:$0xff] %vm2240_vm6, %v6213_v50  ;;  %6305 = vrot.lane.b32.xlu0 %v12292_v25, %s12694_s2  ;;  %6327 = vrot.lane.b32.xlu2 %v6213_v50, %s12695_s27 }
 0x9e4   : > { %6325 = vrot.lane.b32.xlu1 %v12292_v25, %s12695_s27  ;;  %v6107_v16 = vpop.f32.mrf.mxu2 }
 0x9e5   : > { %v6118_v49 = vmax.f32 %v6064_v1, %v6107_v16  ;;  %v6155_v52 = vpop.f32.mrf.mxu3 }
 0x9e6   : > { %v6067_v28 = vpop.f32.mrf.mxu1 }
 0x9e7   : > { %v6166_v58 = vmax.f32 %v6118_v49, %v6155_v52  ;;  %v6206_v30 = vpop.f32.mrf.mxu0 }
 0x9e9   : > { %v6214_v21 = vmax.f32 %v6166_v58, %v6203_v42 }
 0x9ea   : > { %v12377_v38 = vld [vmem:[#allocation5 + $0x8] sm:$0xff] }
 0x9eb   : > { %6219 = vst.msk [vmem:[#allocation5 + $0x10] sm:$0xff] %vm2240_vm6, %v6214_v21  ;;  %6249 = vrot.lane.b32.xlu0 %v6213_v50, %s9034_s3  ;;  %6251 = vrot.lane.b32.xlu2 %v6214_v21, %s9034_s3 }
 0x9ec   : > { %6307 = vrot.lane.b32.xlu1 %v6213_v50, %s12694_s2  ;;  %v6110_v26 = vpop.f32.mrf.mxu2 }
 0x9ed   : > { %v6119_v47 = vmax.f32 %v6067_v28, %v6110_v26  ;;  %v6158_v40 = vpop.f32.mrf.mxu3 }
 0x9ee   : > { %v6070_v20 = vpop.f32.mrf.mxu1 }
 0x9ef   : > { %v6167_v7 = vmax.f32 %v6119_v47, %v6158_v40  ;;  %v6209_v44 = vpop.f32.mrf.mxu0 }
 0x9f1   : > { %v6215_v34 = vmax.f32 %v6167_v7, %v6206_v30 }
 0x9f3   : > { %6220 = vst.msk [vmem:[#allocation5 + $0x18] sm:$0xff] %vm2240_vm6, %v6215_v34  ;;  %6229 = vrot.lane.b32.xlu0 %v6213_v50, %s9036_s15  ;;  %6309 = vrot.lane.b32.xlu2 %v6214_v21, %s12694_s2 }
 0x9f4   : > { %6231 = vrot.lane.b32.xlu1 %v6214_v21, %s9036_s15  ;;  %v6113_v54 = vpop.f32.mrf.mxu2 }
 0x9f5   : > { %v6120_v39 = vmax.f32 %v6070_v20, %v6113_v54  ;;  %v6161_v27 = vpop.f32.mrf.mxu3 }
 0x9f7   : > { %v6168_v63 = vmax.f32 %v6120_v39, %v6161_v27  ;;  %v6272_v27 = vld [vmem:[#allocation5 + $0x10] sm:$0xff] }
 0x9f9   : > { %v6216_v45 = vmax.f32 %v6168_v63, %v6209_v44 }
 0x9fa   : > { %v6273_v16 = vld [vmem:[#allocation5 + $0x18] sm:$0xff] }
 0x9fb   : > { %6221 = vst.msk [vmem:[#allocation5 + $0x20] sm:$0xff] %vm2240_vm6, %v6216_v45  ;;  %6476 = vrot.lane.b32.xlu0 %v6213_v50, %s9095_s4  ;;  %6233 = vrot.lane.b32.xlu2 %v6215_v34, %s9036_s15 }
 0x9fc   : > { %6478 = vrot.lane.b32.xlu1 %v6214_v21, %s9095_s4 }
 0xa02   : > { %v6274_v42 = vld [vmem:[#allocation5 + $0x20] sm:$0xff] }
 0xa03   : > { %6329 = vrot.lane.b32.xlu0 %v6214_v21, %s12695_s27  ;;  %6480 = vrot.lane.b32.xlu2 %v6215_v34, %s9095_s4 }
 0xa04   : > { %6253 = vrot.lane.b32.xlu1 %v6215_v34, %s9034_s3 }
 0xa0b   : > { %6311 = vrot.lane.b32.xlu0 %v6215_v34, %s12694_s2  ;;  %6333 = vrot.lane.b32.xlu2 %v6216_v45, %s12695_s27 }
 0xa0c   : > { %6331 = vrot.lane.b32.xlu1 %v6215_v34, %s12695_s27 }
 0xa13   : > { %6458 = vrot.lane.b32.xlu2 %v6214_v21, %s9096_s29  ;;  %6255 = vrot.lane.b32.xlu0 %v6216_v45, %s9034_s3 }
 0xa14   : > { %6291 = vrot.lane.b32.xlu1 %v6215_v34, %s12696_s11 }
 0xa1b   : > { %6482 = vrot.lane.b32.xlu2 %v6216_v45, %s9095_s4  ;;  %6235 = vrot.lane.b32.xlu0 %v6216_v45, %s9036_s15 }
 0xa1c   : > { %6456 = vrot.lane.b32.xlu1 %v6213_v50, %s9096_s29 }
 0xa23   : > { %6287 = vrot.lane.b32.xlu2 %v6213_v50, %s12696_s11  ;;  %6460 = vrot.lane.b32.xlu0 %v6215_v34, %s9096_s29 }
 0xa24   : > { %6313 = vrot.lane.b32.xlu1 %v6216_v45, %s12694_s2 }
 0xa2b   : > { %6293 = vrot.lane.b32.xlu2 %v6216_v45, %s12696_s11  ;;  %6289 = vrot.lane.b32.xlu0 %v6214_v21, %s12696_s11 }
 0xa2c   : > { %6462 = vrot.lane.b32.xlu1 %v6216_v45, %s9096_s29 }
 0xa33   : > { %6442 = vrot.lane.b32.xlu2 %v6216_v45, %s9092_s30  ;;  %6454 = vrot.lane.b32.xlu0 %v12292_v25, %s9096_s29 }
 0xa34   : > { %6285 = vrot.lane.b32.xlu1 %v12292_v25, %s12696_s11 }
 0xa35   : > { %v6475_v51 = vpop.permute.xlu2 %6474 }
 0xa3b   : > { %6436 = vrot.lane.b32.xlu2 %v6213_v50, %s9092_s30  ;;  %6440 = vrot.lane.b32.xlu0 %v6215_v34, %s9092_s30 }
 0xa3c   : > { %6438 = vrot.lane.b32.xlu1 %v6214_v21, %s9092_s30 }
 0xa3d   : > { %v6328_v22 = vpop.permute.xlu2 %6327 }
 0xa43   : > { %6561 = vperm.xlu2 %8566, %v6552_v48   ;;  %6434 = vrot.lane.b32.xlu0 %v12292_v25, %s9092_s30  ;;  %s12697_s30 = smov 123  }
 0xa44   : > { %6556 = vperm.xlu1 %8565, %v6551_v14  }
 0xa45   : > { %v6252_v32 = vpop.permute.xlu2 %6251 }
 0xa46   : > { %6264 = vst.msk [vmem:[#allocation5 + $0x60] sm:$0xff] %vm2240_vm6, %v6252_v32 }
 0xa4b   : > { %6566 = vperm.xlu0 %8564, %v6553_v56  }
 0xa4d   : > { %v6228_v2 = vpop.permute.xlu0 %6227  ;;  %v6310_v3 = vpop.permute.xlu2 %6309  ;;  %v6282_v9 = vld [vmem:[#allocation5 + $0x60] sm:$0xff] }
 0xa4e   : > { %6242 = vst.msk [vmem:[#allocation5 + $0x28] sm:$0xff] %vm2240_vm6, %v6228_v2  ;;  %v6248_v11 = vpop.permute.xlu1 %6247 }
 0xa4f   : > { %6262 = vst.msk [vmem:[#allocation5 + $0x50] sm:$0xff] %vm2240_vm6, %v6248_v11 }
 0xa55   : > { %v6306_v15 = vpop.permute.xlu0 %6305  ;;  %v6234_v61 = vpop.permute.xlu2 %6233  ;;  %v12346_v8 = vld [vmem:[#allocation5 + $0x28] sm:$0xff] }
 0xa56   : > { %v6326_v41 = vpop.permute.xlu1 %6325  ;;  %6245 = vst.msk [vmem:[#allocation5 + $0x40] sm:$0xff] %vm2240_vm6, %v6234_v61  ;;  %v12349_v17 = vld [vmem:[#allocation5 + $0x50] sm:$0xff] }
 0xa57   : > { %6340 = vst.msk [vmem:[#allocation5 + $0x50] sm:$0xff] %vm2240_vm6, %v6326_v41 }
 0xa58   : > { %6320 = vst.msk [vmem:[#allocation5 + $0x28] sm:$0xff] %vm2240_vm6, %v6306_v15  ;;  %v6267_v15 = vld [vmem:[#allocation16] sm:$0xff] }
 0xa5d   : > { %v6250_v55 = vpop.permute.xlu0 %6249  ;;  %v6481_v0 = vpop.permute.xlu2 %6480  ;;  %v6278_v36 = vld [vmem:[#allocation5 + $0x40] sm:$0xff] }
 0xa5e   : > { %v6308_v18 = vpop.permute.xlu1 %6307  ;;  %6263 = vst.msk [vmem:[#allocation5 + $0x58] sm:$0xff] %vm2240_vm6, %v6250_v55  ;;  %v12354_v53 = vld [vmem:[#allocation5 + $0x50] sm:$0xff] }
 0xa5f   : > { %6489 = vst.msk [vmem:[#allocation5 + $0x50] sm:$0xff] %vm2240_vm6, %v6475_v51  ;;  %v6354_v32 = vld [vmem:[#allocation5 + $0x28] sm:$0xff] }
 0xa65   : > { %v6230_v13 = vpop.permute.xlu0 %6229  ;;  %v6334_v62 = vpop.permute.xlu2 %6333  ;;  %v6281_v4 = vld [vmem:[#allocation5 + $0x58] sm:$0xff] }
 0xa66   : > { %6243 = vst.msk [vmem:[#allocation5 + $0x30] sm:$0xff] %vm2240_vm6, %v6230_v13  ;;  %v6232_v46 = vpop.permute.xlu1 %6231  ;;  %v6508_v2 = vld [vmem:[#allocation5 + $0x50] sm:$0xff] }
 0xa67   : > { %6244 = vst.msk [vmem:[#allocation5 + $0x38] sm:$0xff] %vm2240_vm6, %v6232_v46  ;;  %v6346_v13 = vld [vmem:[#allocation16 + $0x18] sm:$0xff] }
 0xa68   : > { %6341 = vst.msk [vmem:[#allocation5 + $0x58] sm:$0xff] %vm2240_vm6, %v6328_v22 }
 0xa6d   : > { %v6477_v19 = vpop.permute.xlu0 %6476  ;;  %v6459_v35 = vpop.permute.xlu2 %6458  ;;  %v12360_v43 = vld [vmem:[#allocation5 + $0x30] sm:$0xff] }
 0xa6e   : > { %v6479_v29 = vpop.permute.xlu1 %6478  ;;  %v12362_v10 = vld [vmem:[#allocation5 + $0x38] sm:$0xff]  ;;  %6321 = vst.msk [vmem:[#allocation5 + $0x30] sm:$0xff] %vm2240_vm6, %v6308_v18 }
 0xa6f   : > { %v12365_v59 = vld [vmem:[#allocation5 + $0x58] sm:$0xff]  ;;  %6322 = vst.msk [vmem:[#allocation5 + $0x38] sm:$0xff] %vm2240_vm6, %v6310_v3  ;;  %v6270_v3 = vld [vmem:[#allocation5] sm:$0xff] }
 0xa70   : > { %6490 = vst.msk [vmem:[#allocation5 + $0x58] sm:$0xff] %vm2240_vm6, %v6477_v19 }
 0xa75   : > { %v6330_v31 = vpop.permute.xlu0 %6329  ;;  %v6483_v12 = vpop.permute.xlu2 %6482  ;;  %v6355_v28 = vld [vmem:[#allocation5 + $0x30] sm:$0xff] }
 0xa76   : > { %v6254_v23 = vpop.permute.xlu1 %6253  ;;  %6342 = vst.msk [vmem:[#allocation5 + $0x60] sm:$0xff] %vm2240_vm6, %v6330_v31  ;;  %v12370_v37 = vld [vmem:[#allocation5 + $0x38] sm:$0xff]  ;;  %v6495_v31 = vld [vmem:[#allocation16 + $0x30] sm:$0xff] }
 0xa77   : > { %6265 = vst.msk [vmem:[#allocation5 + $0x68] sm:$0xff] %vm2240_vm6, %v6254_v23  ;;  %v6509_v48 = vld [vmem:[#allocation5 + $0x58] sm:$0xff]  ;;  %v6496_v23 = vld [vmem:[#allocation16 + $0x38] sm:$0xff] }
 0xa78   : > { %6471 = vst.msk [vmem:[#allocation5 + $0x38] sm:$0xff] %vm2240_vm6, %v6459_v35 }
 0xa7d   : > { %v6312_v5 = vpop.permute.xlu0 %6311  ;;  %v6288_v57 = vpop.permute.xlu2 %6287  ;;  %v6361_v60 = vld [vmem:[#allocation5 + $0x60] sm:$0xff] }
 0xa7e   : > { %v6332_v25 = vpop.permute.xlu1 %6331  ;;  %v6283_v6 = vld [vmem:[#allocation5 + $0x68] sm:$0xff]  ;;  %6491 = vst.msk [vmem:[#allocation5 + $0x60] sm:$0xff] %vm2240_vm6, %v6479_v29 }
 0xa7f   : > { %6343 = vst.msk [vmem:[#allocation5 + $0x68] sm:$0xff] %vm2240_vm6, %v6332_v25  ;;  %v6505_v41 = vld [vmem:[#allocation5 + $0x38] sm:$0xff] }
 0xa80   : > { %6323 = vst.msk [vmem:[#allocation5 + $0x40] sm:$0xff] %vm2240_vm6, %v6312_v5  ;;  %v6577_v5 = vld [vmem:[#allocation25 + $0x10] sm:$0xff]  ;;  %v6682_v25 = vld [vmem:[#allocation25 + $0x58] sm:$0xff] }
 0xa81   : > { %6301 = vst.msk [vmem:[#allocation5 + $0x8] sm:$0xff] %vm2240_vm6, %v6288_v57  ;;  %v6616_v57 = vld [vmem:[#allocation25 + $0x28] sm:$0xff]  ;;  %6696 = vmatpush.msrb.mxu0 %v6682_v25 }
 0xa85   : > { %v6294_v24 = vpop.permute.xlu2 %6293  ;;  %v6256_v33 = vpop.permute.xlu0 %6255  ;;  %v6510_v22 = vld [vmem:[#allocation5 + $0x60] sm:$0xff] }
 0xa86   : > { %v6292_v1 = vpop.permute.xlu1 %6291  ;;  %6266 = vst.msk [vmem:[#allocation5 + $0x70] sm:$0xff] %vm2240_vm6, %v6256_v33  ;;  %v6362_v50 = vld [vmem:[#allocation5 + $0x68] sm:$0xff] }
 0xa87   : > { %6492 = vst.msk [vmem:[#allocation5 + $0x68] sm:$0xff] %vm2240_vm6, %v6481_v0  ;;  %v6357_v30 = vld [vmem:[#allocation5 + $0x40] sm:$0xff] }
 0xa88   : > { %6304 = vst.msk [vmem:[#allocation5 + $0x20] sm:$0xff] %vm2240_vm6, %v6294_v24  ;;  %v6350_v54 = vld [vmem:[#allocation5 + $0x8] sm:$0xff]  ;;  %v6681_v24 = vld [vmem:[#allocation25 + $0x50] sm:$0xff] }
 0xa89   : > { %6303 = vst.msk [vmem:[#allocation5 + $0x18] sm:$0xff] %vm2240_vm6, %v6292_v1  ;;  %v6575_v33 = vld [vmem:[#allocation25] sm:$0xff]  ;;  %v6614_v1 = vld [vmem:[#allocation25 + $0x18] sm:$0xff]  ;;  %6697 = vmatpush.msrb.mxu0 %v6681_v24 }
 0xa8d   : > { %v6443_v49 = vpop.permute.xlu2 %6442  ;;  %v6236_v52 = vpop.permute.xlu0 %6235  ;;  %v6284_v58 = vld [vmem:[#allocation5 + $0x70] sm:$0xff] }
 0xa8e   : > { %v6457_v21 = vpop.permute.xlu1 %6456  ;;  %6246 = vst.msk [vmem:[#allocation5 + $0x48] sm:$0xff] %vm2240_vm6, %v6236_v52  ;;  %6409 = vmatpush.msra.mxu2 %v6284_v58  ;;  %v6511_v51 = vld [vmem:[#allocation5 + $0x68] sm:$0xff] }
 0xa8f   : > { %6344 = vst.msk [vmem:[#allocation5 + $0x70] sm:$0xff] %vm2240_vm6, %v6334_v62  ;;  %v12386_v26 = vld [vmem:[#allocation5 + $0x20] sm:$0xff] }
 0xa90   : > { %6410 = vmatpush.msra.mxu2 %v6283_v6  ;;  %6470 = vst.msk [vmem:[#allocation5 + $0x30] sm:$0xff] %vm2240_vm6, %v6457_v21  ;;  %v6268_v62 = vld [vmem:[#allocation16 + $0x8] sm:$0xff]  ;;  %v6576_v6 = vld [vmem:[#allocation25 + $0x8] sm:$0xff] }
 0xa91   : > { %6453 = vst.msk [vmem:[#allocation5 + $0x20] sm:$0xff] %vm2240_vm6, %v6443_v49 }
 0xa92   : > { %6411 = vmatpush.msra.mxu2 %v6282_v9  ;;  %v6348_v9 = vld [vmem:[#allocation16 + $0x28] sm:$0xff] }
 0xa94   : > { %6412 = vmatpush.msra.mxu2 %v6281_v4 }
 0xa95   : > { %v6461_v47 = vpop.permute.xlu0 %6460  ;;  %v6279_v40 = vld [vmem:[#allocation5 + $0x48] sm:$0xff]  ;;  %v6437_v34 = vpop.permute.xlu2 %6436 }
 0xa96   : > { %v6314_v7 = vpop.permute.xlu1 %6313  ;;  %v6363_v20 = vld [vmem:[#allocation5 + $0x70] sm:$0xff]  ;;  %6413 = vmatpush.msra.mxu2 %v12349_v17  ;;  %6472 = vst.msk [vmem:[#allocation5 + $0x40] sm:$0xff] %vm2240_vm6, %v6461_v47 }
 0xa97   : > { %6374 = vmatpush.msra.mxu1 %v6363_v20  ;;  %6493 = vst.msk [vmem:[#allocation5 + $0x70] sm:$0xff] %vm2240_vm6, %v6483_v12  ;;  %v6504_v18 = vld [vmem:[#allocation5 + $0x30] sm:$0xff] }
 0xa98   : > { %6324 = vst.msk [vmem:[#allocation5 + $0x48] sm:$0xff] %vm2240_vm6, %v6314_v7  ;;  %6414 = vmatpush.msra.mxu2 %v6279_v40  ;;  %v6502_v46 = vld [vmem:[#allocation5 + $0x20] sm:$0xff] }
 0xa99   : > { %6375 = vmatpush.msra.mxu1 %v6362_v50  ;;  %6450 = vst.msk [vmem:[#allocation5 + $0x8] sm:$0xff] %vm2240_vm6, %v6437_v34  ;;  %v6647_v50 = vld [vmem:[#allocation25 + $0x30] sm:$0xff] }
 0xa9a   : > { %6415 = vmatpush.msra.mxu2 %v6278_v36  ;;  %v6615_v36 = vld [vmem:[#allocation25 + $0x20] sm:$0xff] }
 0xa9b   : > { %6376 = vmatpush.msra.mxu1 %v6361_v60  ;;  %v6649_v60 = vld [vmem:[#allocation25 + $0x40] sm:$0xff] }
 0xa9c   : > { %6416 = vmatpush.msra.mxu2 %v12362_v10  ;;  %v6347_v10 = vld [vmem:[#allocation16 + $0x20] sm:$0xff] }
 0xa9d   : > { %6377 = vmatpush.msra.mxu1 %v12365_v59  ;;  %v6290_v39 = vpop.permute.xlu0 %6289  ;;  %v6506_v61 = vld [vmem:[#allocation5 + $0x40] sm:$0xff]  ;;  %v6562_v20 = vpop.permute.xlu2 %6561 }
 0xa9e   : > { %v6463_v63 = vpop.permute.xlu1 %6462  ;;  %6417 = vmatpush.msra.mxu2 %v12360_v43  ;;  %v6512_v44 = vld [vmem:[#allocation5 + $0x70] sm:$0xff]  ;;  %6302 = vst.msk [vmem:[#allocation5 + $0x10] sm:$0xff] %vm2240_vm6, %v6290_v39  ;;  %v6269_v59 = vld [vmem:[#allocation16 + $0x10] sm:$0xff] }
 0xa9f   : > { %6378 = vmatpush.msra.mxu1 %v12354_v53  ;;  %6523 = vmatpush.msra.mxu3 %v6512_v44  ;;  %v6358_v45 = vld [vmem:[#allocation5 + $0x48] sm:$0xff] }
 0xaa0   : > { %6473 = vst.msk [vmem:[#allocation5 + $0x48] sm:$0xff] %vm2240_vm6, %v6463_v63  ;;  %6418 = vmatpush.msra.mxu2 %v12346_v8  ;;  %v6352_v8 = vld [vmem:[#allocation5 + $0x18] sm:$0xff]  ;;  %v6499_v29 = vld [vmem:[#allocation5 + $0x8] sm:$0xff] }
 0xaa1   : > { %6379 = vmatpush.msra.mxu1 %v6358_v45  ;;  %6524 = vmatpush.msra.mxu3 %v6511_v51 }
 0xaa2   : > { %6419 = vmatpush.msra.mxu2 %v6274_v42  ;;  %v6680_v42 = vld [vmem:[#allocation25 + $0x48] sm:$0xff] }
 0xaa3   : > { %6380 = vmatpush.msra.mxu1 %v6357_v30  ;;  %6525 = vmatpush.msra.mxu3 %v6510_v22 }
 0xaa4   : > { %6420 = vmatpush.msra.mxu2 %v6273_v16  ;;  %6698 = vmatpush.msrb.mxu0 %v6680_v42 }
 0xaa5   : > { %6381 = vmatpush.msra.mxu1 %v12370_v37  ;;  %6526 = vmatpush.msra.mxu3 %v6509_v48  ;;  %v6455_v14 = vpop.permute.xlu0 %6454  ;;  %v6351_v0 = vld [vmem:[#allocation5 + $0x10] sm:$0xff] }
 0xaa6   : > { %v6286_v56 = vpop.permute.xlu1 %6285  ;;  %6421 = vmatpush.msra.mxu2 %v6272_v27  ;;  %6469 = vst.msk [vmem:[#allocation5 + $0x28] sm:$0xff] %vm2240_vm6, %v6455_v14  ;;  %v6497_v37 = vld [vmem:[#allocation16 + $0x40] sm:$0xff] }
 0xaa7   : > { %6382 = vmatpush.msra.mxu1 %v6355_v28  ;;  %6527 = vmatpush.msra.mxu3 %v6508_v2  ;;  %6300 = vst.msk [vmem:[#allocation5] sm:$0xff] %vm2240_vm6, %v6286_v56  ;;  %v6507_v11 = vld [vmem:[#allocation5 + $0x48] sm:$0xff] }
 0xaa8   : > { %6422 = vmatpush.msra.mxu2 %v12377_v38  ;;  %v6648_v38 = vld [vmem:[#allocation25 + $0x38] sm:$0xff] }
 0xaa9   : > { %6383 = vmatpush.msra.mxu1 %v6354_v32  ;;  %6528 = vmatpush.msra.mxu3 %v6507_v11 }
 0xaaa   : > { %6423 = vmatpush.msra.mxu2 %v6270_v3 }
 0xaab   : > { %6384 = vmatpush.msra.mxu1 %v12386_v26  ;;  %6529 = vmatpush.msra.mxu3 %v6506_v61 }
 0xaac   : > { %7554 = vmatmul.msk.f32.vlgmr.msra.gmra.mxu2 %vm987_vm9, %v6267_v15 }
 0xaad   : > { %6385 = vmatpush.msra.mxu1 %v6352_v8  ;;  %6530 = vmatpush.msra.mxu3 %v6505_v41  ;;  %v6441_v17 = vpop.permute.xlu0 %6440  ;;  %v6503_v53 = vld [vmem:[#allocation5 + $0x28] sm:$0xff] }
 0xaae   : > { %v6439_v55 = vpop.permute.xlu1 %6438  ;;  %6452 = vst.msk [vmem:[#allocation5 + $0x18] sm:$0xff] %vm2240_vm6, %v6441_v17  ;;  %v6349_v4 = vld [vmem:[#allocation5] sm:$0xff]  ;;  %6630 = vmatpush.msrb.mxu2 %v6616_v57 }
 0xaaf   : > { %6386 = vmatpush.msra.mxu1 %v6351_v0  ;;  %6451 = vst.msk [vmem:[#allocation5 + $0x10] sm:$0xff] %vm2240_vm6, %v6439_v55  ;;  %6531 = vmatpush.msra.mxu3 %v6504_v18 }
 0xab0   : > { %6631 = vmatpush.msrb.mxu2 %v6615_v36 }
 0xab1   : > { %6387 = vmatpush.msra.mxu1 %v6350_v54  ;;  %6532 = vmatpush.msra.mxu3 %v6503_v53 }
 0xab2   : > { %6632 = vmatpush.msrb.mxu2 %v6614_v1 }
 0xab3   : > { %6388 = vmatpush.msra.mxu1 %v6349_v4  ;;  %6533 = vmatpush.msra.mxu3 %v6502_v46 }
 0xab4   : > { %7551 = vmatmul.msk.f32.vlgmr.msra.gmra.mxu1 %vm987_vm9, %v6346_v13  ;;  %7555 = vmatmul.msk.f32.gmra.mxu2 %vm987_vm9, %v6268_v62 }
 0xab5   : > { %v6435_v19 = vpop.permute.xlu0 %6434  ;;  %v6501_v35 = vld [vmem:[#allocation5 + $0x18] sm:$0xff]  ;;  %6600 = vmatpush.msrb.mxu1 %v6577_v5 }
 0xab6   : > { %6449 = vst.msk [vmem:[#allocation5] sm:$0xff] %vm2240_vm6, %v6435_v19  ;;  %6534 = vmatpush.msra.mxu3 %v6501_v35  ;;  %v6500_v43 = vld [vmem:[#allocation5 + $0x10] sm:$0xff]  ;;  %v6557_v47 = vpop.permute.xlu1 %6556 }
 0xab7   : > { %6601 = vmatpush.msrb.mxu1 %v6576_v6 }
 0xab8   : > { %6535 = vmatpush.msra.mxu3 %v6500_v43 }
 0xab9   : > { %6602 = vmatpush.msrb.mxu1 %v6575_v33 }
 0xaba   : > { %6536 = vmatpush.msra.mxu3 %v6499_v29 }
 0xabc   : > { %7552 = vmatmul.msk.f32.gmra.mxu1 %vm987_vm9, %v6347_v10  ;;  %7556 = vmatmul.msk.f32.gmra.mxu2 %vm987_vm9, %v6269_v59  ;;  %v6985_v10 = vld [vmem:[#allocation7] sm:$0x1]  ;;  %v6939_v59 = vld [vmem:[#allocation21 + $0x8] sm:$0xff] }
 0xabd   : > { %v6498_v12 = vld [vmem:[#allocation5] sm:$0xff]  ;;  %v6567_v48 = vpop.permute.xlu0 %6566 }
 0xabe   : > { %6537 = vmatpush.msra.mxu3 %v6498_v12 }
 0xabf   : > { %7557 = vmatmul.msk.f32.vlgmr.msra.gmra.mxu3 %vm987_vm9, %v6495_v31  ;;  %v6938_v31 = vld [vmem:[#allocation21] sm:$0xff] }
 0xac0   : > { %6663 = vmatpush.msrb.mxu3 %v6649_v60 }
 0xac2   : > { %6664 = vmatpush.msrb.mxu3 %v6648_v38 }
 0xac4   : > { %7553 = vmatmul.msk.f32.gmra.mxu1 %vm987_vm9, %v6348_v9  ;;  %6665 = vmatpush.msrb.mxu3 %v6647_v50 }
 0xac7   : > { %7558 = vmatmul.msk.f32.gmra.mxu3 %vm987_vm9, %v6496_v23 }
 0xacf   : > { %7559 = vmatmul.msk.f32.gmra.mxu3 %vm987_vm9, %v6497_v37  ;;  %vm6992_vm9 = vcmask 130048  }
 0xb2f   : > { %v6425_v16 = vpop.f32.mrf.mxu2 }
 0xb31   : > { %v6390_v49 = vpop.f32.mrf.mxu1 }
 0xb32   : > { %v6426_v52 = vadd.f32 %v6425_v16, %v6390_v49 }
 0xb37   : > { %v6428_v58 = vpop.f32.mrf.mxu2 }
 0xb39   : > { %v6393_v28 = vpop.f32.mrf.mxu1 }
 0xb3a   : > { %v6429_v7 = vadd.f32 %v6428_v58, %v6393_v28 }
 0xb3f   : > { %v6431_v27 = vpop.f32.mrf.mxu2 }
 0xb41   : > { %v6396_v39 = vpop.f32.mrf.mxu1 }
 0xb42   : > { %v6539_v21 = vpop.f32.mrf.mxu3  ;;  %v6432_v45 = vadd.f32 %v6431_v27, %v6396_v39 }
 0xb43   : > { %v6548_v26 = vadd.f32 %v6539_v21, %v6426_v52 }
 0xb45   : > { %v6569_v40 = vadd.f32 %v6557_v47, %v6548_v26 }
 0xb47   : > { %v6572_v30 = vmax.f32 %v6569_v40, 0.0 }
 0xb49   : > { %7560 = vmatmul.msk.f32.vlgmr.msrb.gmra.mxu1 %vm2240_vm6, %v6572_v30  ;;  %7563 = vmatmul.msk.f32.vlgmr.msrb.gmra.mxu2 %vm2240_vm6, %v6572_v30 }
 0xb4a   : > { %7566 = vmatmul.msk.f32.vlgmr.msrb.gmra.mxu3 %vm2240_vm6, %v6572_v30  ;;  %7569 = vmatmul.msk.f32.vlgmr.msrb.gmra.mxu0 %vm2240_vm6, %v6572_v30  ;;  %v6542_v34 = vpop.f32.mrf.mxu3 }
 0xb4b   : > { %v6549_v54 = vadd.f32 %v6542_v34, %v6429_v7 }
 0xb4d   : > { %v6570_v63 = vadd.f32 %v6562_v20, %v6549_v54 }
 0xb4f   : > { %v6573_v44 = vmax.f32 %v6570_v63, 0.0 }
 0xb51   : > { %7561 = vmatmul.msk.f32.gmra.mxu1 %vm2240_vm6, %v6573_v44  ;;  %7564 = vmatmul.msk.f32.gmra.mxu2 %vm2240_vm6, %v6573_v44 }
 0xb52   : > { %7567 = vmatmul.msk.f32.gmra.mxu3 %vm2240_vm6, %v6573_v44  ;;  %7570 = vmatmul.msk.f32.gmra.mxu0 %vm2240_vm6, %v6573_v44  ;;  %v6545_v51 = vpop.f32.mrf.mxu3 }
 0xb53   : > { %v6550_v22 = vadd.f32 %v6545_v51, %v6432_v45 }
 0xb55   : > { %v6571_v14 = vadd.f32 %v6567_v48, %v6550_v22 }
 0xb57   : > { %v6574_v32 = vmax.f32 %v6571_v14, 0.0  ;;  %v6742_v14 = vld [vmem:[#allocation19] sm:$0xff] }
 0xb59   : > { %7562 = vmatmul.msk.f32.gmra.mxu1 %vm2240_vm6, %v6574_v32  ;;  %7565 = vmatmul.msk.f32.gmra.mxu2 %vm2240_vm6, %v6574_v32 }
 0xb5a   : > { %7568 = vmatmul.msk.f32.gmra.mxu3 %vm2240_vm6, %v6574_v32  ;;  %7571 = vmatmul.msk.f32.gmra.mxu0 %vm2240_vm6, %v6574_v32 }
 0xbc6   : > { %v6604_v56 = vpop.f32.mrf.mxu1 }
 0xbc7   : > { %v6700_v2 = vpop.f32.mrf.mxu0 }
 0xbcc   : > { %v6634_v3 = vpop.f32.mrf.mxu2 }
 0xbcd   : > { %v6643_v11 = vmax.f32 %v6604_v56, %v6634_v3  ;;  %v6667_v15 = vpop.f32.mrf.mxu3 }
 0xbce   : > { %v6607_v41 = vpop.f32.mrf.mxu1 }
 0xbcf   : > { %v6676_v61 = vmax.f32 %v6643_v11, %v6667_v15  ;;  %v6703_v18 = vpop.f32.mrf.mxu0 }
 0xbd1   : > { %v6709_v8 = vmax.f32 %v6676_v61, %v6700_v2 }
 0xbd3   : > { %6712 = vst.msk [vmem:[#allocation6] sm:$0xff] %vm2417_vm2, %v6709_v8  ;;  %6718 = vrot.lane.b32.xlu1 %v6709_v8, %s9036_s15  ;;  %6730 = vrot.lane.b32.xlu0 %v6709_v8, %s9034_s3 }
 0xbd4   : > { %v6637_v17 = vpop.f32.mrf.mxu2 }
 0xbd5   : > { %v6644_v55 = vmax.f32 %v6607_v41, %v6637_v17  ;;  %v6670_v0 = vpop.f32.mrf.mxu3  ;;  %v6790_v41 = vld [vmem:[#allocation19 + $0x10] sm:$0xff]  ;;  %v6743_v17 = vld [vmem:[#allocation19 + $0x8] sm:$0xff] }
 0xbd6   : > { %v6610_v62 = vpop.f32.mrf.mxu1 }
 0xbd7   : > { %v6677_v53 = vmax.f32 %v6644_v55, %v6670_v0  ;;  %v6706_v43 = vpop.f32.mrf.mxu0 }
 0xbd9   : > { %v6710_v13 = vmax.f32 %v6677_v53, %v6703_v18  ;;  %v6791_v53 = vld [vmem:[#allocation19 + $0x18] sm:$0xff] }
 0xbda   : > { %v6744_v48 = vld [vmem:[#allocation6] sm:$0xff] }
 0xbdb   : > { %6713 = vst.msk [vmem:[#allocation6 + $0x8] sm:$0xff] %vm2417_vm2, %v6710_v13  ;;  %6765 = vrot.lane.b32.xlu1 %v6709_v8, %s12697_s30  ;;  %6777 = vrot.lane.b32.xlu0 %v6709_v8, %s12696_s11 }
 0xbdc   : > { %6732 = vrot.lane.b32.xlu2 %v6710_v13, %s9034_s3  ;;  %v6640_v4 = vpop.f32.mrf.mxu2 }
 0xbdd   : > { %v6645_v46 = vmax.f32 %v6610_v62, %v6640_v4  ;;  %v6673_v19 = vpop.f32.mrf.mxu3  ;;  %v6896_v62 = vld [vmem:[#allocation19 + $0x20] sm:$0xff] }
 0xbdf   : > { %v6678_v35 = vmax.f32 %v6645_v46, %v6673_v19  ;;  %v6897_v46 = vld [vmem:[#allocation19 + $0x28] sm:$0xff]  ;;  %v6954_v19 = vld [vmem:[#allocation27] sm:$0xff] }
 0xbe0   : > { %6976 = vmatpush.msra.mxu0 %v6954_v19 }
 0xbe1   : > { %v6711_v29 = vmax.f32 %v6678_v35, %v6706_v43 }
 0xbe2   : > { %v6745_v21 = vld [vmem:[#allocation6 + $0x8] sm:$0xff] }
 0xbe3   : > { %6714 = vst.msk [vmem:[#allocation6 + $0x10] sm:$0xff] %vm2417_vm2, %v6711_v29  ;;  %6883 = vrot.lane.b32.xlu1 %v6709_v8, %s9094_s14  ;;  %6781 = vrot.lane.b32.xlu0 %v6711_v29, %s12696_s11 }
 0xbe4   : > { %6720 = vrot.lane.b32.xlu2 %v6710_v13, %s9036_s15 }
 0xbea   : > { %v6746_v30 = vld [vmem:[#allocation6 + $0x10] sm:$0xff] }
 0xbeb   : > { %6887 = vrot.lane.b32.xlu0 %v6711_v29, %s9094_s14  ;;  %6734 = vrot.lane.b32.xlu1 %v6711_v29, %s9034_s3 }
 0xbec   : > { %6779 = vrot.lane.b32.xlu2 %v6710_v13, %s12696_s11 }
 0xbf3   : > { %6757 = vrot.lane.b32.xlu0 %v6711_v29, %s12698_s22  ;;  %6722 = vrot.lane.b32.xlu1 %v6711_v29, %s9036_s15 }
 0xbf4   : > { %6767 = vrot.lane.b32.xlu2 %v6710_v13, %s12697_s30 }
 0xbfb   : > { %6875 = vrot.lane.b32.xlu0 %v6711_v29, %s9097_s26  ;;  %6769 = vrot.lane.b32.xlu1 %v6711_v29, %s12697_s30 }
 0xbfc   : > { %6885 = vrot.lane.b32.xlu2 %v6710_v13, %s9094_s14 }
 0xc03   : > { %6871 = vrot.lane.b32.xlu0 %v6709_v8, %s9097_s26  ;;  %6753 = vrot.lane.b32.xlu1 %v6709_v8, %s12698_s22 }
 0xc04   : > { %6755 = vrot.lane.b32.xlu2 %v6710_v13, %s12698_s22 }
 0xc0b   : > { %6859 = vrot.lane.b32.xlu0 %v6709_v8, %s12695_s27  ;;  %6863 = vrot.lane.b32.xlu1 %v6711_v29, %s12695_s27 }
 0xc0c   : > { %6873 = vrot.lane.b32.xlu2 %v6710_v13, %s9097_s26 }
 0xc13   : > { %6988 = vperm.xlu0 %8564, %v6985_v10   ;;  %6947 = vperm.xlu1 %8565, %v6939_v59  }
 0xc14   : > { %6861 = vrot.lane.b32.xlu2 %v6710_v13, %s12695_s27 }
 0xc1c   : > { %6942 = vperm.xlu2 %8566, %v6938_v31  }
 0xc36   : > { %v6733_v12 = vpop.permute.xlu2 %6732 }
 0xc37   : > { %6740 = vst.msk [vmem:[#allocation6 + $0x38] sm:$0xff] %vm2417_vm2, %v6733_v12 }
 0xc3e   : > { %v6721_v9 = vpop.permute.xlu2 %6720  ;;  %v6751_v57 = vld [vmem:[#allocation6 + $0x38] sm:$0xff] }
 0xc3f   : > { %6728 = vst.msk [vmem:[#allocation6 + $0x20] sm:$0xff] %vm2417_vm2, %v6721_v9 }
 0xc45   : > { %v6719_v23 = vpop.permute.xlu1 %6718  ;;  %v6731_v37 = vpop.permute.xlu0 %6730 }
 0xc46   : > { %6727 = vst.msk [vmem:[#allocation6 + $0x18] sm:$0xff] %vm2417_vm2, %v6719_v23  ;;  %v6780_v5 = vpop.permute.xlu2 %6779  ;;  %v6748_v24 = vld [vmem:[#allocation6 + $0x20] sm:$0xff] }
 0xc47   : > { %6739 = vst.msk [vmem:[#allocation6 + $0x30] sm:$0xff] %vm2417_vm2, %v6731_v37 }
 0xc48   : > { %6787 = vst.msk [vmem:[#allocation6 + $0x38] sm:$0xff] %vm2417_vm2, %v6780_v5 }
 0xc4d   : > { %v6766_v60 = vpop.permute.xlu1 %6765  ;;  %v6778_v25 = vpop.permute.xlu0 %6777  ;;  %v6747_v6 = vld [vmem:[#allocation6 + $0x18] sm:$0xff] }
 0xc4e   : > { %v6768_v36 = vpop.permute.xlu2 %6767  ;;  %v6750_v38 = vld [vmem:[#allocation6 + $0x30] sm:$0xff]  ;;  %6774 = vst.msk [vmem:[#allocation6 + $0x18] sm:$0xff] %vm2417_vm2, %v6766_v60 }
 0xc4f   : > { %6786 = vst.msk [vmem:[#allocation6 + $0x30] sm:$0xff] %vm2417_vm2, %v6778_v25  ;;  %v6799_v42 = vld [vmem:[#allocation6 + $0x38] sm:$0xff] }
 0xc50   : > { %6775 = vst.msk [vmem:[#allocation6 + $0x20] sm:$0xff] %vm2417_vm2, %v6768_v36 }
 0xc55   : > { %v6884_v33 = vpop.permute.xlu1 %6883  ;;  %v6782_v1 = vpop.permute.xlu0 %6781  ;;  %v6795_v32 = vld [vmem:[#allocation6 + $0x18] sm:$0xff] }
 0xc56   : > { %v6886_v50 = vpop.permute.xlu2 %6885  ;;  %v6798_v16 = vld [vmem:[#allocation6 + $0x30] sm:$0xff] }
 0xc57   : > { %6893 = vst.msk [vmem:[#allocation6 + $0x38] sm:$0xff] %vm2417_vm2, %v6886_v50  ;;  %v6796_v7 = vld [vmem:[#allocation6 + $0x20] sm:$0xff] }
 0xc58   : > { %6892 = vst.msk [vmem:[#allocation6 + $0x30] sm:$0xff] %vm2417_vm2, %v6884_v33 }
 0xc5d   : > { %v6888_v49 = vpop.permute.xlu0 %6887  ;;  %v6735_v52 = vpop.permute.xlu1 %6734 }
 0xc5e   : > { %v6756_v58 = vpop.permute.xlu2 %6755  ;;  %6741 = vst.msk [vmem:[#allocation6 + $0x40] sm:$0xff] %vm2417_vm2, %v6735_v52  ;;  %v6905_v56 = vld [vmem:[#allocation6 + $0x38] sm:$0xff] }
 0xc5f   : > { %6763 = vst.msk [vmem:[#allocation6 + $0x8] sm:$0xff] %vm2417_vm2, %v6756_v58  ;;  %v6904_v2 = vld [vmem:[#allocation6 + $0x30] sm:$0xff] }
 0xc65   : > { %v6758_v28 = vpop.permute.xlu0 %6757  ;;  %v6723_v26 = vpop.permute.xlu1 %6722  ;;  %v6752_v47 = vld [vmem:[#allocation6 + $0x40] sm:$0xff] }
 0xc66   : > { %v6874_v40 = vpop.permute.xlu2 %6873  ;;  %6729 = vst.msk [vmem:[#allocation6 + $0x28] sm:$0xff] %vm2417_vm2, %v6723_v26  ;;  %6843 = vmatpush.msra.mxu2 %v6752_v47  ;;  %v6793_v63 = vld [vmem:[#allocation6 + $0x8] sm:$0xff] }
 0xc67   : > { %6788 = vst.msk [vmem:[#allocation6 + $0x40] sm:$0xff] %vm2417_vm2, %v6782_v1 }
 0xc68   : > { %6844 = vmatpush.msra.mxu2 %v6751_v57  ;;  %6764 = vst.msk [vmem:[#allocation6 + $0x10] sm:$0xff] %vm2417_vm2, %v6758_v28 }
 0xc69   : > { %6881 = vst.msk [vmem:[#allocation6 + $0x20] sm:$0xff] %vm2417_vm2, %v6874_v40 }
 0xc6a   : > { %6845 = vmatpush.msra.mxu2 %v6750_v38 }
 0xc6d   : > { %v6876_v34 = vpop.permute.xlu0 %6875  ;;  %v6770_v20 = vpop.permute.xlu1 %6769  ;;  %v6749_v54 = vld [vmem:[#allocation6 + $0x28] sm:$0xff] }
 0xc6e   : > { %v6862_v39 = vpop.permute.xlu2 %6861  ;;  %v6800_v27 = vld [vmem:[#allocation6 + $0x40] sm:$0xff]  ;;  %6776 = vst.msk [vmem:[#allocation6 + $0x28] sm:$0xff] %vm2417_vm2, %v6770_v20  ;;  %6846 = vmatpush.msra.mxu2 %v6749_v54 }
 0xc6f   : > { %6814 = vmatpush.msra.mxu1 %v6800_v27  ;;  %6894 = vst.msk [vmem:[#allocation6 + $0x40] sm:$0xff] %vm2417_vm2, %v6888_v49  ;;  %v6794_v3 = vld [vmem:[#allocation6 + $0x10] sm:$0xff] }
 0xc70   : > { %6847 = vmatpush.msra.mxu2 %v6748_v24  ;;  %6869 = vst.msk [vmem:[#allocation6 + $0x8] sm:$0xff] %vm2417_vm2, %v6862_v39  ;;  %v6902_v55 = vld [vmem:[#allocation6 + $0x20] sm:$0xff]  ;;  %v6984_v24 = vld [vmem:[%s12510_s13] sm:$0x1] }
 0xc71   : > { %6815 = vmatpush.msra.mxu1 %v6799_v42 }
 0xc72   : > { %6848 = vmatpush.msra.mxu2 %v6747_v6 }
 0xc73   : > { %6816 = vmatpush.msra.mxu1 %v6798_v16 }
 0xc74   : > { %6849 = vmatpush.msra.mxu2 %v6746_v30 }
 0xc75   : > { %v6872_v44 = vpop.permute.xlu0 %6871  ;;  %v6754_v45 = vpop.permute.xlu1 %6753  ;;  %v6797_v51 = vld [vmem:[#allocation6 + $0x28] sm:$0xff] }
 0xc76   : > { %6817 = vmatpush.msra.mxu1 %v6797_v51  ;;  %6882 = vst.msk [vmem:[#allocation6 + $0x28] sm:$0xff] %vm2417_vm2, %v6876_v34  ;;  %6850 = vmatpush.msra.mxu2 %v6745_v21  ;;  %v6906_v22 = vld [vmem:[#allocation6 + $0x40] sm:$0xff]  ;;  %v6943_v59 = vpop.permute.xlu2 %6942 }
 0xc77   : > { %6920 = vmatpush.msra.mxu3 %v6906_v22  ;;  %6762 = vst.msk [vmem:[#allocation6] sm:$0xff] %vm2417_vm2, %v6754_v45  ;;  %v6899_v13 = vld [vmem:[#allocation6 + $0x8] sm:$0xff] }
 0xc78   : > { %6818 = vmatpush.msra.mxu1 %v6796_v7  ;;  %6851 = vmatpush.msra.mxu2 %v6744_v48  ;;  %6880 = vst.msk [vmem:[#allocation6 + $0x18] sm:$0xff] %vm2417_vm2, %v6872_v44 }
 0xc79   : > { %6921 = vmatpush.msra.mxu3 %v6905_v56  ;;  %7574 = vmatmul.msk.f32.vlgmr.msra.gmra.mxu2 %vm1224_vm13, %v6742_v14 }
 0xc7a   : > { %6819 = vmatpush.msra.mxu1 %v6795_v32  ;;  %7583 = vmatpush.msrb.mxu2 %v6954_v19 }
 0xc7b   : > { %6922 = vmatpush.msra.mxu3 %v6904_v2 }
 0xc7c   : > { %6820 = vmatpush.msra.mxu1 %v6794_v3 }
 0xc7d   : > { %v6860_v11 = vpop.permute.xlu0 %6859  ;;  %v6864_v15 = vpop.permute.xlu1 %6863  ;;  %v6903_v61 = vld [vmem:[#allocation6 + $0x28] sm:$0xff] }
 0xc7e   : > { %6870 = vst.msk [vmem:[#allocation6 + $0x10] sm:$0xff] %vm2417_vm2, %v6864_v15  ;;  %6821 = vmatpush.msra.mxu1 %v6793_v63  ;;  %6923 = vmatpush.msra.mxu3 %v6903_v61  ;;  %v6792_v8 = vld [vmem:[#allocation6] sm:$0xff] }
 0xc7f   : > { %6868 = vst.msk [vmem:[#allocation6] sm:$0xff] %vm2417_vm2, %v6860_v11  ;;  %v6901_v0 = vld [vmem:[#allocation6 + $0x18] sm:$0xff] }
 0xc80   : > { %6822 = vmatpush.msra.mxu1 %v6792_v8  ;;  %6924 = vmatpush.msra.mxu3 %v6902_v55 }
 0xc81   : > { %7572 = vmatmul.msk.f32.vlgmr.msra.gmra.mxu1 %vm1224_vm13, %v6790_v41  ;;  %7575 = vmatmul.msk.f32.gmra.mxu2 %vm1224_vm13, %v6743_v17 }
 0xc82   : > { %6925 = vmatpush.msra.mxu3 %v6901_v0 }
 0xc85   : > { %v6900_v18 = vld [vmem:[#allocation6 + $0x10] sm:$0xff]  ;;  %v6948_v25 = vpop.permute.xlu1 %6947  ;;  %v6989_v1 = vpop.permute.xlu0 %6988 }
 0xc86   : > { %6926 = vmatpush.msra.mxu3 %v6900_v18  ;;  %v6898_v4 = vld [vmem:[#allocation6] sm:$0xff]  ;;  %v6991_v50 = vperm.slane %v6989_v1, 0 }
 0xc88   : > { %6927 = vmatpush.msra.mxu3 %v6899_v13 }
 0xc89   : > { %7573 = vmatmul.msk.f32.gmra.mxu1 %vm1224_vm13, %v6791_v53 }
 0xc8a   : > { %6928 = vmatpush.msra.mxu3 %v6898_v4 }
 0xc8b   : > { %7576 = vmatmul.msk.f32.vlgmr.msra.gmra.mxu3 %vm1224_vm13, %v6896_v62 }
 0xc93   : > { %7577 = vmatmul.msk.f32.gmra.mxu3 %vm1224_vm13, %v6897_v46  ;;  %vm7016_vm13 = vcmask 24576  }
 0xcfc   : > { %v6853_v43 = vpop.f32.mrf.mxu2 }
 0xcfe   : > { %v6824_v35 = vpop.f32.mrf.mxu1 }
 0xcff   : > { %v6854_v29 = vadd.f32 %v6853_v43, %v6824_v35 }
 0xd04   : > { %v6856_v9 = vpop.f32.mrf.mxu2 }
 0xd06   : > { %v6827_v12 = vpop.f32.mrf.mxu1 }
 0xd07   : > { %v6857_v5 = vadd.f32 %v6856_v9, %v6827_v12 }
 0xd0e   : > { %v6930_v10 = vpop.f32.mrf.mxu3 }
 0xd0f   : > { %v6936_v31 = vadd.f32 %v6930_v10, %v6854_v29 }
 0xd11   : > { %v6950_v23 = vadd.f32 %v6943_v59, %v6936_v31 }
 0xd13   : > { %v6952_v37 = vmax.f32 %v6950_v23, 0.0 }
 0xd15   : > { %7578 = vmatmul.msk.f32.vlgmr.msra.gmra.mxu0 %vm2417_vm2, %v6952_v37 }
 0xd16   : > { %v6933_v57 = vpop.f32.mrf.mxu3 }
 0xd17   : > { %v6937_v60 = vadd.f32 %v6933_v57, %v6857_v5 }
 0xd19   : > { %v6951_v6 = vadd.f32 %v6948_v25, %v6937_v60 }
 0xd1b   : > { %v6953_v36 = vmax.f32 %v6951_v6, 0.0 }
 0xd1d   : > { %7579 = vmatmul.msk.f32.vlgmr.msrb.gmra.mxu2 %vm2417_vm2, %v6953_v36 }
 0xd92   : > { %v6978_v33 = vpop.f32.mrf.mxu0 }
 0xda0   : > { %v6981_v38 = vpop.f32.mrf.mxu2 }
 0xda1   : > { %7010 = vmatpush.msrb.mxu1 %v6981_v38 }
 0xda3   : > { %7011 = vmatpush.msrb.mxu1 %v6978_v33 }
 0xda4   : > { %7580 = vmatmul.msk.f32.vlgmr.msrb.gmra.mxu1 %vm6992_vm9, %v6984_v24 }
 0xe21   : > { %v7013_v42 = vpop.f32.mrf.mxu1 }
 0xe22   : > { %v7014_v16 = vadd.f32 %v7013_v42, %v6991_v50 }
 0xe24   : > { %7017 = vst.msk [vmem:[%s840_s28] sm:$0x1] %vm7016_vm13, %v7014_v16 }
 0xe25 PF: > { %s39_s23 = sadd.s32 1, %s8998_s23  }
 0xe26   : > { %p36_p7 = scmp.ge.s32.totalorder %s39_s23, 4  }
 0xe28   :  { %38 = sbr.rel (!%p36_p7) target bundleno = 17 (0x11), region = 210 }
 0xe2d   :  { %7035 = vsyncpa [#allocation9], 1 }
 0xe2e   :  { %7037 = vsyncpa [#allocation9 + $0x1], 1 }
 0xe2f   :  { %7038 = vsyncpa [#allocation11], 1 }
 0xe30   :  { %7039 = vsyncpa [#allocation14], 1 }
 0xe31   :  { %7040 = vsyncpa [#allocation17], 1 }
 0xe32   :  { %7041 = vsyncpa [#allocation20], 1 }
 0xe33   :  { %7042 = vsyncpa [#allocation23], 1 }
 0xe34   :  { %7043 = vsyncpa [#allocation26], 1 }

</bundles_post_ra>
